<compile_context>
chip_gen: v7x
topology: tpu7x:2x2x1
jax: 0.10.0
libtpu: 0.0.40
codegen_flags: <defaults>
</compile_context>

<pallas_src>
import functools
import math

import jax
import jax.numpy as jnp
from jax import lax
from jax.experimental import pallas as pl
from jax.experimental.pallas import tpu as pltpu

_GN_EPS = 1e-5  # PyTorch GroupNorm default eps


def _shift_pad(W):
    """Lane padding on each side of the flat-spatial shift buffer (>= W+1,
    rounded up to a multiple of 128 so the interior store is lane-aligned)."""
    return ((W + 1 + 127) // 128) * 128


# --------------------------------------------------------------------------
# Fused UNetConvBlock (+ optional 2x2 maxpool) kernel.  One grid step = one
# batch element.  All tensors inside use the (C, H*W) lane-dense layout.
# --------------------------------------------------------------------------
def _block_kernel(x_ref, w1_ref, a1_ref, w2_ref, a2_ref, P_ref, *rest,
                  cin, cout, H, W, with_pool):
    if with_pool:
        S_ref, enc_ref, pool_ref, xbuf, col = rest
    else:
        enc_ref, xbuf, col = rest
        S_ref = pool_ref = None

    HW = H * W
    PAD = _shift_pad(W)

    # Zero halo + stage this sample's input into the shift buffer (aligned
    # store: PAD is a multiple of 128 and HW is the full lane extent).
    xbuf[...] = jnp.zeros_like(xbuf)
    xbuf[0:cin, pl.ds(PAD, HW)] = x_ref[0]

    # Per-lane masks that zero taps which would wrap across image rows.
    wpos = lax.broadcasted_iota(jnp.int32, (1, HW), 1) % W
    mask_l = (wpos >= 1).astype(jnp.float32)       # for tap dx == 0
    mask_r = (wpos <= W - 2).astype(jnp.float32)   # for tap dx == 2

    def conv_gn_relu(c_in, w_ref, a_ref):
        # im2col: col[k*c_in + ci, p] = x[ci, h+dy-1, w+dx-1] (zero padded).
        for k in range(9):
            dy, dx = k // 3, k % 3
            off = PAD + (dy - 1) * W + (dx - 1)        # static lane offset
            patch = xbuf[0:c_in, pl.ds(off, HW)]
            if dx == 0:
                patch = patch * mask_l
            elif dx == 2:
                patch = patch * mask_r
            col[k * c_in:(k + 1) * c_in, :] = patch.astype(jnp.bfloat16)

        # Single big-K MXU matmul: (cout, 9*c_in) @ (9*c_in, HW), f32 accum.
        acc = jnp.dot(w_ref[...], col[0:9 * c_in, :],
                      preferred_element_type=jnp.float32)
        acc = acc + a_ref[0]                            # conv bias

        # GroupNorm (per sample, per group) in f32; P folds 1/(group_size*HW).
        s1 = jnp.sum(acc, axis=1, keepdims=True)        # (cout, 1)
        mean = jnp.dot(P_ref[...], s1, preferred_element_type=jnp.float32)
        d = acc - mean
        s2 = jnp.sum(d * d, axis=1, keepdims=True)
        var = jnp.dot(P_ref[...], s2, preferred_element_type=jnp.float32)
        y = d * lax.rsqrt(var + _GN_EPS) * a_ref[1] + a_ref[2]
        return jnp.maximum(y, 0.0)                      # ReLU, (cout, HW)

    y1 = conv_gn_relu(cin, w1_ref, a1_ref)
    # Stage conv1 output back into the shift buffer (halo columns stay zero).
    xbuf[0:cout, pl.ds(PAD, HW)] = y1
    y2 = conv_gn_relu(cout, w2_ref, a2_ref)

    enc_ref[0] = y2                                     # pre-pool block output

    if with_pool:
        # MaxPool2d(2,2): max of 4 one-hot selection matmuls (exact gather).
        pooled = jnp.dot(y2, S_ref[0], preferred_element_type=jnp.float32)
        for ph in range(1, 4):
            pooled = jnp.maximum(
                pooled,
                jnp.dot(y2, S_ref[ph], preferred_element_type=jnp.float32))
        pool_ref[0] = pooled


def _pool_select(H, W):
    """(4, H*W, H*W/4) one-hot matrices: phase (dy,dx) -> pooled position."""
    H2, W2 = H // 2, W // 2
    dst = (jnp.arange(H2)[:, None] * W2 + jnp.arange(W2)[None, :]).reshape(-1)
    mats = []
    for dy in range(2):
        for dx in range(2):
            src = ((2 * jnp.arange(H2)[:, None] + dy) * W
                   + (2 * jnp.arange(W2)[None, :] + dx)).reshape(-1)
            m = jnp.zeros((H * W, H2 * W2), jnp.float32).at[src, dst].set(1.0)
            mats.append(m)
    return jnp.stack(mats)


def unet_block(x_flat, blk, H, W, pool):
    """Fused conv-block (+ optional pool) on (B, Cin, H*W) activations."""
    B, cin, HW = x_flat.shape
    assert HW == H * W and cin % 8 == 0
    cout = blk["w1t"].shape[0]

    # Group-average matrix for GroupNorm (groups = cout // 2).
    G = max(cout // 2, 1)
    gs = cout // G
    grp = jnp.arange(cout) // gs
    Pm = (grp[:, None] == grp[None, :]).astype(jnp.float32) / float(gs * HW)

    kernel = functools.partial(_block_kernel, cin=cin, cout=cout, H=H, W=W,
                               with_pool=pool)

    in_specs = [
        pl.BlockSpec((1, cin, HW), lambda i: (i, 0, 0)),
        pl.BlockSpec(blk["w1t"].shape, lambda i: (0, 0)),
        pl.BlockSpec(blk["a1"].shape, lambda i: (0, 0, 0)),
        pl.BlockSpec(blk["w2t"].shape, lambda i: (0, 0)),
        pl.BlockSpec(blk["a2"].shape, lambda i: (0, 0, 0)),
        pl.BlockSpec((cout, cout), lambda i: (0, 0)),
    ]
    args = [x_flat, blk["w1t"], blk["a1"], blk["w2t"], blk["a2"], Pm]

    enc_spec = pl.BlockSpec((1, cout, HW), lambda i: (i, 0, 0))
    if pool:
        H2, W2 = H // 2, W // 2
        S = _pool_select(H, W)
        in_specs.append(pl.BlockSpec(S.shape, lambda i: (0, 0, 0)))
        args.append(S)
        out_shape = (jax.ShapeDtypeStruct((B, cout, HW), jnp.float32),
                     jax.ShapeDtypeStruct((B, cout, H2 * W2), jnp.float32))
        out_specs = (enc_spec,
                     pl.BlockSpec((1, cout, H2 * W2), lambda i: (i, 0, 0)))
    else:
        out_shape = jax.ShapeDtypeStruct((B, cout, HW), jnp.float32)
        out_specs = enc_spec

    cmax = max(cin, cout)
    PAD = _shift_pad(W)
    scratch = [
        pltpu.VMEM((cmax, HW + 2 * PAD), jnp.float32),   # padded shift buffer
        pltpu.VMEM((9 * cmax, HW), jnp.bfloat16),        # im2col matrix
    ]

    return pl.pallas_call(
        kernel,
        out_shape=out_shape,
        grid_spec=pltpu.PrefetchScalarGridSpec(
            num_scalar_prefetch=0,
            grid=(B,),
            in_specs=in_specs,
            out_specs=out_specs,
            scratch_shapes=scratch),
        compiler_params=pltpu.CompilerParams(
            dimension_semantics=("parallel",),
            vmem_limit_bytes=32 * 1024 * 1024),
    )(*args)


# --------------------------------------------------------------------------
# Parameter construction (deterministic, synthetic).
# --------------------------------------------------------------------------
def _round_up8(c):
    return max(8, ((c + 7) // 8) * 8)


def _make_conv_unit(key, cin, cin_pad, cout):
    kw, kb = jax.random.split(key)
    w = jax.random.normal(kw, (3, 3, cin, cout), jnp.float32) * (
        1.0 / math.sqrt(9 * cin))
    b = 0.01 * jax.random.normal(kb, (cout,), jnp.float32)
    if cin_pad > cin:
        # zero-padded input channels contribute nothing.
        w = jnp.pad(w, ((0, 0), (0, 0), (0, cin_pad - cin), (0, 0)))
    # (Cout, 9*Cin_pad) with col index = tap*Cin_pad + ci  (matches im2col).
    wt = jnp.transpose(w.reshape(9, cin_pad, cout), (2, 0, 1)).reshape(
        cout, 9 * cin_pad)
    a = jnp.stack([b, jnp.ones((cout,), jnp.float32),
                   jnp.zeros((cout,), jnp.float32)]).reshape(3, cout, 1)
    return wt.astype(jnp.bfloat16), a


def _init_block(key, cin, cin_pad, cout):
    assert cout % 8 == 0, "feature_maps must be a multiple of 8"
    k1, k2 = jax.random.split(key)
    w1t, a1 = _make_conv_unit(k1, cin, cin_pad, cout)
    w2t, a2 = _make_conv_unit(k2, cout, cout, cout)
    return dict(w1t=w1t, a1=a1, w2t=w2t, a2=a2)


def init_dat_unet_encoder(key, in_channels, feature_maps, levels):
    params = {"in_channels": in_channels, "in_pad": _round_up8(in_channels)}
    keys = jax.random.split(key, levels + 1)
    cin, cin_pad = in_channels, params["in_pad"]
    for i in range(levels):
        cout = (2 ** i) * feature_maps
        params["convblock%d" % (i + 1)] = _init_block(keys[i], cin, cin_pad, cout)
        cin, cin_pad = cout, cout
    params["center"] = _init_block(keys[levels], cin, cin_pad,
                                   (2 ** levels) * feature_maps)
    return params


# --------------------------------------------------------------------------
# DATUNetEncoder.forward equivalent (return_gradient_reversal == True branch).
# --------------------------------------------------------------------------
def dat_unet_encoder_forward(x_nchw, params, lambdas, levels):
    B, C, H, W = x_nchw.shape
    cpad = params["in_pad"]
    x = x_nchw.astype(jnp.float32)
    if cpad > C:
        x = jnp.pad(x, ((0, 0), (0, cpad - C), (0, 0), (0, 0)))
    out = x.reshape(B, cpad, H * W)          # free trailing-dim reshape (NCHW-flat)

    encoder_outputs, reverse_outputs = [], []
    h, w = H, W
    for i in range(levels):
        blk = params["convblock%d" % (i + 1)]
        enc_flat, pooled = unet_block(out, blk, h, w, pool=True)
        enc = enc_flat.reshape(B, enc_flat.shape[1], h, w)     # NCHW, free
        encoder_outputs.append(enc)
        # ReverseLayerF.forward is identity; only backward negates gradients.
        reverse_outputs.append(enc if lambdas[i] > 0 else None)
        out = pooled
        h, w = h // 2, w // 2

    center_flat = unet_block(out, params["center"], h, w, pool=False)
    center = center_flat.reshape(B, center_flat.shape[1], h, w)
    reverse_outputs.append(center if lambdas[levels] > 0 else None)
    return encoder_outputs, reverse_outputs, center


if __name__ == "__main__":
    key = jax.random.PRNGKey(0)
    kx, kp = jax.random.split(key)

    # Small, module-consistent shapes (spatial stays a power of 2 per level).
    B, Cin, S = 2, 4, 32
    feature_maps, levels = 8, 2
    lambdas = [1.0, 0.0, 1.0]                 # length levels + 1

    x = jax.random.normal(kx, (B, Cin, S, S), jnp.float32)   # NCHW input
    params = init_dat_unet_encoder(kp, Cin, feature_maps, levels)

    enc_outs, rev_outs, out = dat_unet_encoder_forward(x, params, lambdas, levels)

    jax.block_until_ready(out)
    for e in enc_outs:
        jax.block_until_ready(e)
    for r in rev_outs:
        if r is not None:
            jax.block_until_ready(r)

    # Shape sanity: enc[0]=(2,8,32,32), enc[1]=(2,16,16,16), out=(2,32,8,8)
    assert enc_outs[0].shape == (B, feature_maps, S, S)
    assert enc_outs[1].shape == (B, 2 * feature_maps, S // 2, S // 2)
    assert out.shape == (B, (2 ** levels) * feature_maps,
                         S // (2 ** levels), S // (2 ** levels))
    assert bool(jnp.all(jnp.isfinite(out)))
    print("KERNEL_OK")
</pallas_src>

<mosaic_0001>
module attributes {stable_mosaic.version = 11 : i64} {
  func.func @_block_kernel(%arg0: i32, %arg1: memref<1x8x1024xf32, #tpu.memory_space<vmem>>, %arg2: memref<8x72xbf16, #tpu.memory_space<vmem>>, %arg3: memref<3x8x1xf32, #tpu.memory_space<vmem>>, %arg4: memref<8x72xbf16, #tpu.memory_space<vmem>>, %arg5: memref<3x8x1xf32, #tpu.memory_space<vmem>>, %arg6: memref<8x8xf32, #tpu.memory_space<vmem>>, %arg7: memref<4x1024x256xf32, #tpu.memory_space<vmem>>, %arg8: memref<1x8x1024xf32, #tpu.memory_space<vmem>>, %arg9: memref<1x8x256xf32, #tpu.memory_space<vmem>>, %arg10: memref<8x1280xf32, #tpu.memory_space<vmem>>, %arg11: memref<72x1024xbf16, #tpu.memory_space<vmem>>) attributes {dimension_semantics = [#tpu.dimension_semantics<parallel>], iteration_bounds = array<i64: 2>, scalar_prefetch = 0 : i64, scratch_operands = 2 : i64, tpu.core_type = #tpu.core_type<tc>, window_params = [{transform_indices = @transform_0, window_bounds = array<i64: 1, 8, 1024>}, {pipeline_mode = #tpu.pipeline_mode<synchronous>, transform_indices = @transform_1, window_bounds = array<i64: 8, 72>}, {pipeline_mode = #tpu.pipeline_mode<synchronous>, transform_indices = @transform_2, window_bounds = array<i64: 3, 8, 1>}, {pipeline_mode = #tpu.pipeline_mode<synchronous>, transform_indices = @transform_3, window_bounds = array<i64: 8, 72>}, {pipeline_mode = #tpu.pipeline_mode<synchronous>, transform_indices = @transform_4, window_bounds = array<i64: 3, 8, 1>}, {pipeline_mode = #tpu.pipeline_mode<synchronous>, transform_indices = @transform_5, window_bounds = array<i64: 8, 8>}, {pipeline_mode = #tpu.pipeline_mode<synchronous>, transform_indices = @transform_6, window_bounds = array<i64: 4, 1024, 256>}, {transform_indices = @transform_7, window_bounds = array<i64: 1, 8, 1024>}, {transform_indices = @transform_8, window_bounds = array<i64: 1, 8, 256>}]} {
    %cst = arith.constant 0.000000e+00 : f32
    %0 = vector.broadcast %cst : f32 to vector<8x1280xf32>
    %c0 = arith.constant 0 : index
    %c0_0 = arith.constant 0 : index
    %1 = vector.load %arg10[%c0, %c0_0] : memref<8x1280xf32, #tpu.memory_space<vmem>>, vector<8x1280xf32>
    tpu.vector_store %arg10[%c0, %c0_0], %0 {strides = array<i32>} : memref<8x1280xf32, #tpu.memory_space<vmem>>, vector<8x1280xf32>,
    %c0_1 = arith.constant 0 : index
    %c0_2 = arith.constant 0 : index
    %c0_3 = arith.constant 0 : index
    %2 = vector.load %arg1[%c0_1, %c0_2, %c0_3] : memref<1x8x1024xf32, #tpu.memory_space<vmem>>, vector<1x8x1024xf32>
    %3 = vector.shape_cast %2 : vector<1x8x1024xf32> to vector<8x1024xf32>
    %c0_4 = arith.constant 0 : index
    %c128 = arith.constant 128 : index
    %4 = vector.load %arg10[%c0_4, %c128] : memref<8x1280xf32, #tpu.memory_space<vmem>>, vector<8x1024xf32>
    tpu.vector_store %arg10[%c0_4, %c128], %3 {strides = array<i32>} : memref<8x1280xf32, #tpu.memory_space<vmem>>, vector<8x1024xf32>,
    %5 = tpu.iota {dimensions = array<i32: 1>} : vector<1x1024xi32>
    %c32_i32 = arith.constant 32 : i32
    %c0_i32 = arith.constant 0 : i32
    %6 = arith.cmpi eq, %c32_i32, %c0_i32 : i32
    %c1_i32 = arith.constant 1 : i32
    %7 = arith.select %6, %c1_i32, %c32_i32 : i32
    %8 = vector.broadcast %7 : i32 to vector<1x1024xi32>
    %9 = arith.remsi %5, %8 : vector<1x1024xi32>
    %c0_i32_5 = arith.constant 0 : i32
    %10 = vector.broadcast %c0_i32_5 : i32 to vector<1x1024xi32>
    %11 = arith.cmpi ne, %9, %10 : vector<1x1024xi32>
    %c0_i32_6 = arith.constant 0 : i32
    %12 = vector.broadcast %c0_i32_6 : i32 to vector<1x1024xi32>
    %13 = arith.cmpi slt, %9, %12 : vector<1x1024xi32>
    %c0_i32_7 = arith.constant 0 : i32
    %14 = arith.cmpi slt, %7, %c0_i32_7 : i32
    %15 = vector.broadcast %14 : i1 to vector<1x1024xi1>
    %16 = vector.broadcast %15 : vector<1x1024xi1> to vector<1x1024xi1>
    %17 = arith.xori %13, %16 : vector<1x1024xi1>
    %18 = arith.andi %17, %11 : vector<1x1024xi1>
    %19 = vector.broadcast %7 : i32 to vector<1x1024xi32>
    %20 = arith.addi %9, %19 : vector<1x1024xi32>
    %21 = arith.select %18, %20, %9 : vector<1x1024xi1>, vector<1x1024xi32>
    %c1_i32_8 = arith.constant 1 : i32
    %22 = vector.broadcast %c1_i32_8 : i32 to vector<1x1024xi32>
    %23 = arith.cmpi sge, %21, %22 : vector<1x1024xi32>
    %24 = arith.extui %23 : vector<1x1024xi1> to vector<1x1024xi32>
    %25 = arith.sitofp %24 : vector<1x1024xi32> to vector<1x1024xf32>
    %c30_i32 = arith.constant 30 : i32
    %26 = vector.broadcast %c30_i32 : i32 to vector<1x1024xi32>
    %27 = arith.cmpi sle, %21, %26 : vector<1x1024xi32>
    %28 = arith.extui %27 : vector<1x1024xi1> to vector<1x1024xi32>
    %29 = arith.sitofp %28 : vector<1x1024xi32> to vector<1x1024xf32>
    %c0_9 = arith.constant 0 : index
    %c95 = arith.constant 95 : index
    %30 = vector.load %arg10[%c0_9, %c95] : memref<8x1280xf32, #tpu.memory_space<vmem>>, vector<8x1024xf32>
    %31 = vector.broadcast %25 : vector<1x1024xf32> to vector<8x1024xf32>
    %32 = arith.mulf %30, %31 : vector<8x1024xf32>
    %33 = arith.truncf %32 : vector<8x1024xf32> to vector<8x1024xbf16>
    %c0_10 = arith.constant 0 : index
    %c0_11 = arith.constant 0 : index
    %34 = vector.load %arg11[%c0_10, %c0_11] : memref<72x1024xbf16, #tpu.memory_space<vmem>>, vector<8x1024xbf16>
    tpu.vector_store %arg11[%c0_10, %c0_11], %33 {strides = array<i32>} : memref<72x1024xbf16, #tpu.memory_space<vmem>>, vector<8x1024xbf16>,
    %c0_12 = arith.constant 0 : index
    %c96 = arith.constant 96 : index
    %35 = vector.load %arg10[%c0_12, %c96] : memref<8x1280xf32, #tpu.memory_space<vmem>>, vector<8x1024xf32>
    %36 = arith.truncf %35 : vector<8x1024xf32> to vector<8x1024xbf16>
    %c8 = arith.constant 8 : index
    %c0_13 = arith.constant 0 : index
    %37 = vector.load %arg11[%c8, %c0_13] : memref<72x1024xbf16, #tpu.memory_space<vmem>>, vector<8x1024xbf16>
    tpu.vector_store %arg11[%c8, %c0_13], %36 {strides = array<i32>} : memref<72x1024xbf16, #tpu.memory_space<vmem>>, vector<8x1024xbf16>,
    %c0_14 = arith.constant 0 : index
    %c97 = arith.constant 97 : index
    %38 = vector.load %arg10[%c0_14, %c97] : memref<8x1280xf32, #tpu.memory_space<vmem>>, vector<8x1024xf32>
    %39 = vector.broadcast %29 : vector<1x1024xf32> to vector<8x1024xf32>
    %40 = arith.mulf %38, %39 : vector<8x1024xf32>
    %41 = arith.truncf %40 : vector<8x1024xf32> to vector<8x1024xbf16>
    %c16 = arith.constant 16 : index
    %c0_15 = arith.constant 0 : index
    %42 = vector.load %arg11[%c16, %c0_15] : memref<72x1024xbf16, #tpu.memory_space<vmem>>, vector<8x1024xbf16>
    tpu.vector_store %arg11[%c16, %c0_15], %41 {strides = array<i32>} : memref<72x1024xbf16, #tpu.memory_space<vmem>>, vector<8x1024xbf16>,
    %c0_16 = arith.constant 0 : index
    %c127 = arith.constant 127 : index
    %43 = vector.load %arg10[%c0_16, %c127] : memref<8x1280xf32, #tpu.memory_space<vmem>>, vector<8x1024xf32>
    %44 = vector.broadcast %25 : vector<1x1024xf32> to vector<8x1024xf32>
    %45 = arith.mulf %43, %44 : vector<8x1024xf32>
    %46 = arith.truncf %45 : vector<8x1024xf32> to vector<8x1024xbf16>
    %c24 = arith.constant 24 : index
    %c0_17 = arith.constant 0 : index
    %47 = vector.load %arg11[%c24, %c0_17] : memref<72x1024xbf16, #tpu.memory_space<vmem>>, vector<8x1024xbf16>
    tpu.vector_store %arg11[%c24, %c0_17], %46 {strides = array<i32>} : memref<72x1024xbf16, #tpu.memory_space<vmem>>, vector<8x1024xbf16>,
    %c0_18 = arith.constant 0 : index
    %c128_19 = arith.constant 128 : index
    %48 = vector.load %arg10[%c0_18, %c128_19] : memref<8x1280xf32, #tpu.memory_space<vmem>>, vector<8x1024xf32>
    %49 = arith.truncf %48 : vector<8x1024xf32> to vector<8x1024xbf16>
    %c32 = arith.constant 32 : index
    %c0_20 = arith.constant 0 : index
    %50 = vector.load %arg11[%c32, %c0_20] : memref<72x1024xbf16, #tpu.memory_space<vmem>>, vector<8x1024xbf16>
    tpu.vector_store %arg11[%c32, %c0_20], %49 {strides = array<i32>} : memref<72x1024xbf16, #tpu.memory_space<vmem>>, vector<8x1024xbf16>,
    %c0_21 = arith.constant 0 : index
    %c129 = arith.constant 129 : index
    %51 = vector.load %arg10[%c0_21, %c129] : memref<8x1280xf32, #tpu.memory_space<vmem>>, vector<8x1024xf32>
    %52 = vector.broadcast %29 : vector<1x1024xf32> to vector<8x1024xf32>
    %53 = arith.mulf %51, %52 : vector<8x1024xf32>
    %54 = arith.truncf %53 : vector<8x1024xf32> to vector<8x1024xbf16>
    %c40 = arith.constant 40 : index
    %c0_22 = arith.constant 0 : index
    %55 = vector.load %arg11[%c40, %c0_22] : memref<72x1024xbf16, #tpu.memory_space<vmem>>, vector<8x1024xbf16>
    tpu.vector_store %arg11[%c40, %c0_22], %54 {strides = array<i32>} : memref<72x1024xbf16, #tpu.memory_space<vmem>>, vector<8x1024xbf16>,
    %c0_23 = arith.constant 0 : index
    %c159 = arith.constant 159 : index
    %56 = vector.load %arg10[%c0_23, %c159] : memref<8x1280xf32, #tpu.memory_space<vmem>>, vector<8x1024xf32>
    %57 = vector.broadcast %25 : vector<1x1024xf32> to vector<8x1024xf32>
    %58 = arith.mulf %56, %57 : vector<8x1024xf32>
    %59 = arith.truncf %58 : vector<8x1024xf32> to vector<8x1024xbf16>
    %c48 = arith.constant 48 : index
    %c0_24 = arith.constant 0 : index
    %60 = vector.load %arg11[%c48, %c0_24] : memref<72x1024xbf16, #tpu.memory_space<vmem>>, vector<8x1024xbf16>
    tpu.vector_store %arg11[%c48, %c0_24], %59 {strides = array<i32>} : memref<72x1024xbf16, #tpu.memory_space<vmem>>, vector<8x1024xbf16>,
    %c0_25 = arith.constant 0 : index
    %c160 = arith.constant 160 : index
    %61 = vector.load %arg10[%c0_25, %c160] : memref<8x1280xf32, #tpu.memory_space<vmem>>, vector<8x1024xf32>
    %62 = arith.truncf %61 : vector<8x1024xf32> to vector<8x1024xbf16>
    %c56 = arith.constant 56 : index
    %c0_26 = arith.constant 0 : index
    %63 = vector.load %arg11[%c56, %c0_26] : memref<72x1024xbf16, #tpu.memory_space<vmem>>, vector<8x1024xbf16>
    tpu.vector_store %arg11[%c56, %c0_26], %62 {strides = array<i32>} : memref<72x1024xbf16, #tpu.memory_space<vmem>>, vector<8x1024xbf16>,
    %c0_27 = arith.constant 0 : index
    %c161 = arith.constant 161 : index
    %64 = vector.load %arg10[%c0_27, %c161] : memref<8x1280xf32, #tpu.memory_space<vmem>>, vector<8x1024xf32>
    %65 = vector.broadcast %29 : vector<1x1024xf32> to vector<8x1024xf32>
    %66 = arith.mulf %64, %65 : vector<8x1024xf32>
    %67 = arith.truncf %66 : vector<8x1024xf32> to vector<8x1024xbf16>
    %c64 = arith.constant 64 : index
    %c0_28 = arith.constant 0 : index
    %68 = vector.load %arg11[%c64, %c0_28] : memref<72x1024xbf16, #tpu.memory_space<vmem>>, vector<8x1024xbf16>
    tpu.vector_store %arg11[%c64, %c0_28], %67 {strides = array<i32>} : memref<72x1024xbf16, #tpu.memory_space<vmem>>, vector<8x1024xbf16>,
    %c0_29 = arith.constant 0 : index
    %c0_30 = arith.constant 0 : index
    %69 = vector.load %arg2[%c0_29, %c0_30] : memref<8x72xbf16, #tpu.memory_space<vmem>>, vector<8x72xbf16>
    %c0_31 = arith.constant 0 : index
    %c0_32 = arith.constant 0 : index
    %70 = vector.load %arg11[%c0_31, %c0_32] : memref<72x1024xbf16, #tpu.memory_space<vmem>>, vector<72x1024xbf16>
    %cst_33 = arith.constant dense<0.000000e+00> : vector<8x1024xf32>
    %71 = tpu.matmul %69, %70, %cst_33 {dimension_numbers = #tpu.dot_dimension_numbers<[1], [0], [0], [1], [0, 0, 1, 1], [], []>} : vector<8x72xbf16>, vector<72x1024xbf16>, vector<8x1024xf32> -> vector<8x1024xf32>
    %c0_34 = arith.constant 0 : index
    %c0_35 = arith.constant 0 : index
    %c0_36 = arith.constant 0 : index
    %72 = vector.load %arg3[%c0_34, %c0_35, %c0_36] : memref<3x8x1xf32, #tpu.memory_space<vmem>>, vector<1x8x1xf32>
    %73 = vector.shape_cast %72 : vector<1x8x1xf32> to vector<8x1xf32>
    %74 = vector.broadcast %73 : vector<8x1xf32> to vector<8x1024xf32>
    %75 = arith.addf %71, %74 : vector<8x1024xf32>
    %cst_37 = arith.constant dense<0.000000e+00> : vector<8xf32>
    %76 = vector.multi_reduction <add>, %75, %cst_37 [1] : vector<8x1024xf32> to vector<8xf32>
    %77 = vector.shape_cast %76 : vector<8xf32> to vector<8x1xf32>
    %c0_38 = arith.constant 0 : index
    %c0_39 = arith.constant 0 : index
    %78 = vector.load %arg6[%c0_38, %c0_39] : memref<8x8xf32, #tpu.memory_space<vmem>>, vector<8x8xf32>
    %cst_40 = arith.constant dense<0.000000e+00> : vector<8x1xf32>
    %79 = tpu.matmul %78, %77, %cst_40 {dimension_numbers = #tpu.dot_dimension_numbers<[1], [0], [0], [1], [0, 0, 1, 1], [], []>} : vector<8x8xf32>, vector<8x1xf32>, vector<8x1xf32> -> vector<8x1xf32>
    %80 = vector.broadcast %79 : vector<8x1xf32> to vector<8x1024xf32>
    %81 = arith.subf %75, %80 : vector<8x1024xf32>
    %82 = arith.mulf %81, %81 : vector<8x1024xf32>
    %cst_41 = arith.constant dense<0.000000e+00> : vector<8xf32>
    %83 = vector.multi_reduction <add>, %82, %cst_41 [1] : vector<8x1024xf32> to vector<8xf32>
    %84 = vector.shape_cast %83 : vector<8xf32> to vector<8x1xf32>
    %c0_42 = arith.constant 0 : index
    %c0_43 = arith.constant 0 : index
    %85 = vector.load %arg6[%c0_42, %c0_43] : memref<8x8xf32, #tpu.memory_space<vmem>>, vector<8x8xf32>
    %cst_44 = arith.constant dense<0.000000e+00> : vector<8x1xf32>
    %86 = tpu.matmul %85, %84, %cst_44 {dimension_numbers = #tpu.dot_dimension_numbers<[1], [0], [0], [1], [0, 0, 1, 1], [], []>} : vector<8x8xf32>, vector<8x1xf32>, vector<8x1xf32> -> vector<8x1xf32>
    %cst_45 = arith.constant 9.99999974E-6 : f32
    %87 = vector.broadcast %cst_45 : f32 to vector<8x1xf32>
    %88 = arith.addf %86, %87 : vector<8x1xf32>
    %89 = math.rsqrt %88 : vector<8x1xf32>
    %90 = vector.broadcast %89 : vector<8x1xf32> to vector<8x1024xf32>
    %91 = arith.mulf %81, %90 : vector<8x1024xf32>
    %c1 = arith.constant 1 : index
    %c0_46 = arith.constant 0 : index
    %c0_47 = arith.constant 0 : index
    %92 = vector.load %arg3[%c1, %c0_46, %c0_47] : memref<3x8x1xf32, #tpu.memory_space<vmem>>, vector<1x8x1xf32>
    %93 = vector.shape_cast %92 : vector<1x8x1xf32> to vector<8x1xf32>
    %94 = vector.broadcast %93 : vector<8x1xf32> to vector<8x1024xf32>
    %95 = arith.mulf %91, %94 : vector<8x1024xf32>
    %c2 = arith.constant 2 : index
    %c0_48 = arith.constant 0 : index
    %c0_49 = arith.constant 0 : index
    %96 = vector.load %arg3[%c2, %c0_48, %c0_49] : memref<3x8x1xf32, #tpu.memory_space<vmem>>, vector<1x8x1xf32>
    %97 = vector.shape_cast %96 : vector<1x8x1xf32> to vector<8x1xf32>
    %98 = vector.broadcast %97 : vector<8x1xf32> to vector<8x1024xf32>
    %99 = arith.addf %95, %98 : vector<8x1024xf32>
    %cst_50 = arith.constant 0.000000e+00 : f32
    %100 = vector.broadcast %cst_50 : f32 to vector<8x1024xf32>
    %101 = arith.maximumf %99, %100 : vector<8x1024xf32>
    %c0_51 = arith.constant 0 : index
    %c128_52 = arith.constant 128 : index
    %102 = vector.load %arg10[%c0_51, %c128_52] : memref<8x1280xf32, #tpu.memory_space<vmem>>, vector<8x1024xf32>
    tpu.vector_store %arg10[%c0_51, %c128_52], %101 {strides = array<i32>} : memref<8x1280xf32, #tpu.memory_space<vmem>>, vector<8x1024xf32>,
    %c0_53 = arith.constant 0 : index
    %c95_54 = arith.constant 95 : index
    %103 = vector.load %arg10[%c0_53, %c95_54] : memref<8x1280xf32, #tpu.memory_space<vmem>>, vector<8x1024xf32>
    %104 = vector.broadcast %25 : vector<1x1024xf32> to vector<8x1024xf32>
    %105 = arith.mulf %103, %104 : vector<8x1024xf32>
    %106 = arith.truncf %105 : vector<8x1024xf32> to vector<8x1024xbf16>
    %c0_55 = arith.constant 0 : index
    %c0_56 = arith.constant 0 : index
    %107 = vector.load %arg11[%c0_55, %c0_56] : memref<72x1024xbf16, #tpu.memory_space<vmem>>, vector<8x1024xbf16>
    tpu.vector_store %arg11[%c0_55, %c0_56], %106 {strides = array<i32>} : memref<72x1024xbf16, #tpu.memory_space<vmem>>, vector<8x1024xbf16>,
    %c0_57 = arith.constant 0 : index
    %c96_58 = arith.constant 96 : index
    %108 = vector.load %arg10[%c0_57, %c96_58] : memref<8x1280xf32, #tpu.memory_space<vmem>>, vector<8x1024xf32>
    %109 = arith.truncf %108 : vector<8x1024xf32> to vector<8x1024xbf16>
    %c8_59 = arith.constant 8 : index
    %c0_60 = arith.constant 0 : index
    %110 = vector.load %arg11[%c8_59, %c0_60] : memref<72x1024xbf16, #tpu.memory_space<vmem>>, vector<8x1024xbf16>
    tpu.vector_store %arg11[%c8_59, %c0_60], %109 {strides = array<i32>} : memref<72x1024xbf16, #tpu.memory_space<vmem>>, vector<8x1024xbf16>,
    %c0_61 = arith.constant 0 : index
    %c97_62 = arith.constant 97 : index
    %111 = vector.load %arg10[%c0_61, %c97_62] : memref<8x1280xf32, #tpu.memory_space<vmem>>, vector<8x1024xf32>
    %112 = vector.broadcast %29 : vector<1x1024xf32> to vector<8x1024xf32>
    %113 = arith.mulf %111, %112 : vector<8x1024xf32>
    %114 = arith.truncf %113 : vector<8x1024xf32> to vector<8x1024xbf16>
    %c16_63 = arith.constant 16 : index
    %c0_64 = arith.constant 0 : index
    %115 = vector.load %arg11[%c16_63, %c0_64] : memref<72x1024xbf16, #tpu.memory_space<vmem>>, vector<8x1024xbf16>
    tpu.vector_store %arg11[%c16_63, %c0_64], %114 {strides = array<i32>} : memref<72x1024xbf16, #tpu.memory_space<vmem>>, vector<8x1024xbf16>,
    %c0_65 = arith.constant 0 : index
    %c127_66 = arith.constant 127 : index
    %116 = vector.load %arg10[%c0_65, %c127_66] : memref<8x1280xf32, #tpu.memory_space<vmem>>, vector<8x1024xf32>
    %117 = vector.broadcast %25 : vector<1x1024xf32> to vector<8x1024xf32>
    %118 = arith.mulf %116, %117 : vector<8x1024xf32>
    %119 = arith.truncf %118 : vector<8x1024xf32> to vector<8x1024xbf16>
    %c24_67 = arith.constant 24 : index
    %c0_68 = arith.constant 0 : index
    %120 = vector.load %arg11[%c24_67, %c0_68] : memref<72x1024xbf16, #tpu.memory_space<vmem>>, vector<8x1024xbf16>
    tpu.vector_store %arg11[%c24_67, %c0_68], %119 {strides = array<i32>} : memref<72x1024xbf16, #tpu.memory_space<vmem>>, vector<8x1024xbf16>,
    %c0_69 = arith.constant 0 : index
    %c128_70 = arith.constant 128 : index
    %121 = vector.load %arg10[%c0_69, %c128_70] : memref<8x1280xf32, #tpu.memory_space<vmem>>, vector<8x1024xf32>
    %122 = arith.truncf %121 : vector<8x1024xf32> to vector<8x1024xbf16>
    %c32_71 = arith.constant 32 : index
    %c0_72 = arith.constant 0 : index
    %123 = vector.load %arg11[%c32_71, %c0_72] : memref<72x1024xbf16, #tpu.memory_space<vmem>>, vector<8x1024xbf16>
    tpu.vector_store %arg11[%c32_71, %c0_72], %122 {strides = array<i32>} : memref<72x1024xbf16, #tpu.memory_space<vmem>>, vector<8x1024xbf16>,
    %c0_73 = arith.constant 0 : index
    %c129_74 = arith.constant 129 : index
    %124 = vector.load %arg10[%c0_73, %c129_74] : memref<8x1280xf32, #tpu.memory_space<vmem>>, vector<8x1024xf32>
    %125 = vector.broadcast %29 : vector<1x1024xf32> to vector<8x1024xf32>
    %126 = arith.mulf %124, %125 : vector<8x1024xf32>
    %127 = arith.truncf %126 : vector<8x1024xf32> to vector<8x1024xbf16>
    %c40_75 = arith.constant 40 : index
    %c0_76 = arith.constant 0 : index
    %128 = vector.load %arg11[%c40_75, %c0_76] : memref<72x1024xbf16, #tpu.memory_space<vmem>>, vector<8x1024xbf16>
    tpu.vector_store %arg11[%c40_75, %c0_76], %127 {strides = array<i32>} : memref<72x1024xbf16, #tpu.memory_space<vmem>>, vector<8x1024xbf16>,
    %c0_77 = arith.constant 0 : index
    %c159_78 = arith.constant 159 : index
    %129 = vector.load %arg10[%c0_77, %c159_78] : memref<8x1280xf32, #tpu.memory_space<vmem>>, vector<8x1024xf32>
    %130 = vector.broadcast %25 : vector<1x1024xf32> to vector<8x1024xf32>
    %131 = arith.mulf %129, %130 : vector<8x1024xf32>
    %132 = arith.truncf %131 : vector<8x1024xf32> to vector<8x1024xbf16>
    %c48_79 = arith.constant 48 : index
    %c0_80 = arith.constant 0 : index
    %133 = vector.load %arg11[%c48_79, %c0_80] : memref<72x1024xbf16, #tpu.memory_space<vmem>>, vector<8x1024xbf16>
    tpu.vector_store %arg11[%c48_79, %c0_80], %132 {strides = array<i32>} : memref<72x1024xbf16, #tpu.memory_space<vmem>>, vector<8x1024xbf16>,
    %c0_81 = arith.constant 0 : index
    %c160_82 = arith.constant 160 : index
    %134 = vector.load %arg10[%c0_81, %c160_82] : memref<8x1280xf32, #tpu.memory_space<vmem>>, vector<8x1024xf32>
    %135 = arith.truncf %134 : vector<8x1024xf32> to vector<8x1024xbf16>
    %c56_83 = arith.constant 56 : index
    %c0_84 = arith.constant 0 : index
    %136 = vector.load %arg11[%c56_83, %c0_84] : memref<72x1024xbf16, #tpu.memory_space<vmem>>, vector<8x1024xbf16>
    tpu.vector_store %arg11[%c56_83, %c0_84], %135 {strides = array<i32>} : memref<72x1024xbf16, #tpu.memory_space<vmem>>, vector<8x1024xbf16>,
    %c0_85 = arith.constant 0 : index
    %c161_86 = arith.constant 161 : index
    %137 = vector.load %arg10[%c0_85, %c161_86] : memref<8x1280xf32, #tpu.memory_space<vmem>>, vector<8x1024xf32>
    %138 = vector.broadcast %29 : vector<1x1024xf32> to vector<8x1024xf32>
    %139 = arith.mulf %137, %138 : vector<8x1024xf32>
    %140 = arith.truncf %139 : vector<8x1024xf32> to vector<8x1024xbf16>
    %c64_87 = arith.constant 64 : index
    %c0_88 = arith.constant 0 : index
    %141 = vector.load %arg11[%c64_87, %c0_88] : memref<72x1024xbf16, #tpu.memory_space<vmem>>, vector<8x1024xbf16>
    tpu.vector_store %arg11[%c64_87, %c0_88], %140 {strides = array<i32>} : memref<72x1024xbf16, #tpu.memory_space<vmem>>, vector<8x1024xbf16>,
    %c0_89 = arith.constant 0 : index
    %c0_90 = arith.constant 0 : index
    %142 = vector.load %arg4[%c0_89, %c0_90] : memref<8x72xbf16, #tpu.memory_space<vmem>>, vector<8x72xbf16>
    %c0_91 = arith.constant 0 : index
    %c0_92 = arith.constant 0 : index
    %143 = vector.load %arg11[%c0_91, %c0_92] : memref<72x1024xbf16, #tpu.memory_space<vmem>>, vector<72x1024xbf16>
    %cst_93 = arith.constant dense<0.000000e+00> : vector<8x1024xf32>
    %144 = tpu.matmul %142, %143, %cst_93 {dimension_numbers = #tpu.dot_dimension_numbers<[1], [0], [0], [1], [0, 0, 1, 1], [], []>} : vector<8x72xbf16>, vector<72x1024xbf16>, vector<8x1024xf32> -> vector<8x1024xf32>
    %c0_94 = arith.constant 0 : index
    %c0_95 = arith.constant 0 : index
    %c0_96 = arith.constant 0 : index
    %145 = vector.load %arg5[%c0_94, %c0_95, %c0_96] : memref<3x8x1xf32, #tpu.memory_space<vmem>>, vector<1x8x1xf32>
    %146 = vector.shape_cast %145 : vector<1x8x1xf32> to vector<8x1xf32>
    %147 = vector.broadcast %146 : vector<8x1xf32> to vector<8x1024xf32>
    %148 = arith.addf %144, %147 : vector<8x1024xf32>
    %cst_97 = arith.constant dense<0.000000e+00> : vector<8xf32>
    %149 = vector.multi_reduction <add>, %148, %cst_97 [1] : vector<8x1024xf32> to vector<8xf32>
    %150 = vector.shape_cast %149 : vector<8xf32> to vector<8x1xf32>
    %c0_98 = arith.constant 0 : index
    %c0_99 = arith.constant 0 : index
    %151 = vector.load %arg6[%c0_98, %c0_99] : memref<8x8xf32, #tpu.memory_space<vmem>>, vector<8x8xf32>
    %cst_100 = arith.constant dense<0.000000e+00> : vector<8x1xf32>
    %152 = tpu.matmul %151, %150, %cst_100 {dimension_numbers = #tpu.dot_dimension_numbers<[1], [0], [0], [1], [0, 0, 1, 1], [], []>} : vector<8x8xf32>, vector<8x1xf32>, vector<8x1xf32> -> vector<8x1xf32>
    %153 = vector.broadcast %152 : vector<8x1xf32> to vector<8x1024xf32>
    %154 = arith.subf %148, %153 : vector<8x1024xf32>
    %155 = arith.mulf %154, %154 : vector<8x1024xf32>
    %cst_101 = arith.constant dense<0.000000e+00> : vector<8xf32>
    %156 = vector.multi_reduction <add>, %155, %cst_101 [1] : vector<8x1024xf32> to vector<8xf32>
    %157 = vector.shape_cast %156 : vector<8xf32> to vector<8x1xf32>
    %c0_102 = arith.constant 0 : index
    %c0_103 = arith.constant 0 : index
    %158 = vector.load %arg6[%c0_102, %c0_103] : memref<8x8xf32, #tpu.memory_space<vmem>>, vector<8x8xf32>
    %cst_104 = arith.constant dense<0.000000e+00> : vector<8x1xf32>
    %159 = tpu.matmul %158, %157, %cst_104 {dimension_numbers = #tpu.dot_dimension_numbers<[1], [0], [0], [1], [0, 0, 1, 1], [], []>} : vector<8x8xf32>, vector<8x1xf32>, vector<8x1xf32> -> vector<8x1xf32>
    %cst_105 = arith.constant 9.99999974E-6 : f32
    %160 = vector.broadcast %cst_105 : f32 to vector<8x1xf32>
    %161 = arith.addf %159, %160 : vector<8x1xf32>
    %162 = math.rsqrt %161 : vector<8x1xf32>
    %163 = vector.broadcast %162 : vector<8x1xf32> to vector<8x1024xf32>
    %164 = arith.mulf %154, %163 : vector<8x1024xf32>
    %c1_106 = arith.constant 1 : index
    %c0_107 = arith.constant 0 : index
    %c0_108 = arith.constant 0 : index
    %165 = vector.load %arg5[%c1_106, %c0_107, %c0_108] : memref<3x8x1xf32, #tpu.memory_space<vmem>>, vector<1x8x1xf32>
    %166 = vector.shape_cast %165 : vector<1x8x1xf32> to vector<8x1xf32>
    %167 = vector.broadcast %166 : vector<8x1xf32> to vector<8x1024xf32>
    %168 = arith.mulf %164, %167 : vector<8x1024xf32>
    %c2_109 = arith.constant 2 : index
    %c0_110 = arith.constant 0 : index
    %c0_111 = arith.constant 0 : index
    %169 = vector.load %arg5[%c2_109, %c0_110, %c0_111] : memref<3x8x1xf32, #tpu.memory_space<vmem>>, vector<1x8x1xf32>
    %170 = vector.shape_cast %169 : vector<1x8x1xf32> to vector<8x1xf32>
    %171 = vector.broadcast %170 : vector<8x1xf32> to vector<8x1024xf32>
    %172 = arith.addf %168, %171 : vector<8x1024xf32>
    %cst_112 = arith.constant 0.000000e+00 : f32
    %173 = vector.broadcast %cst_112 : f32 to vector<8x1024xf32>
    %174 = arith.maximumf %172, %173 : vector<8x1024xf32>
    %c0_113 = arith.constant 0 : index
    %c0_114 = arith.constant 0 : index
    %c0_115 = arith.constant 0 : index
    %175 = vector.load %arg8[%c0_113, %c0_114, %c0_115] : memref<1x8x1024xf32, #tpu.memory_space<vmem>>, vector<1x8x1024xf32>
    %176 = vector.shape_cast %175 : vector<1x8x1024xf32> to vector<8x1024xf32>
    %177 = vector.shape_cast %174 : vector<8x1024xf32> to vector<1x8x1024xf32>
    tpu.vector_store %arg8[%c0_113, %c0_114, %c0_115], %177 {strides = array<i32>} : memref<1x8x1024xf32, #tpu.memory_space<vmem>>, vector<1x8x1024xf32>,
    %c0_116 = arith.constant 0 : index
    %c0_117 = arith.constant 0 : index
    %c0_118 = arith.constant 0 : index
    %178 = vector.load %arg7[%c0_116, %c0_117, %c0_118] : memref<4x1024x256xf32, #tpu.memory_space<vmem>>, vector<1x1024x256xf32>
    %179 = vector.shape_cast %178 : vector<1x1024x256xf32> to vector<1024x256xf32>
    %cst_119 = arith.constant dense<0.000000e+00> : vector<8x256xf32>
    %180 = tpu.matmul %174, %179, %cst_119 {dimension_numbers = #tpu.dot_dimension_numbers<[1], [0], [0], [1], [0, 0, 1, 1], [], []>} : vector<8x1024xf32>, vector<1024x256xf32>, vector<8x256xf32> -> vector<8x256xf32>
    %c1_120 = arith.constant 1 : index
    %c0_121 = arith.constant 0 : index
    %c0_122 = arith.constant 0 : index
    %181 = vector.load %arg7[%c1_120, %c0_121, %c0_122] : memref<4x1024x256xf32, #tpu.memory_space<vmem>>, vector<1x1024x256xf32>
    %182 = vector.shape_cast %181 : vector<1x1024x256xf32> to vector<1024x256xf32>
    %cst_123 = arith.constant dense<0.000000e+00> : vector<8x256xf32>
    %183 = tpu.matmul %174, %182, %cst_123 {dimension_numbers = #tpu.dot_dimension_numbers<[1], [0], [0], [1], [0, 0, 1, 1], [], []>} : vector<8x1024xf32>, vector<1024x256xf32>, vector<8x256xf32> -> vector<8x256xf32>
    %184 = arith.maximumf %180, %183 : vector<8x256xf32>
    %c2_124 = arith.constant 2 : index
    %c0_125 = arith.constant 0 : index
    %c0_126 = arith.constant 0 : index
    %185 = vector.load %arg7[%c2_124, %c0_125, %c0_126] : memref<4x1024x256xf32, #tpu.memory_space<vmem>>, vector<1x1024x256xf32>
    %186 = vector.shape_cast %185 : vector<1x1024x256xf32> to vector<1024x256xf32>
    %cst_127 = arith.constant dense<0.000000e+00> : vector<8x256xf32>
    %187 = tpu.matmul %174, %186, %cst_127 {dimension_numbers = #tpu.dot_dimension_numbers<[1], [0], [0], [1], [0, 0, 1, 1], [], []>} : vector<8x1024xf32>, vector<1024x256xf32>, vector<8x256xf32> -> vector<8x256xf32>
    %188 = arith.maximumf %184, %187 : vector<8x256xf32>
    %c3 = arith.constant 3 : index
    %c0_128 = arith.constant 0 : index
    %c0_129 = arith.constant 0 : index
    %189 = vector.load %arg7[%c3, %c0_128, %c0_129] : memref<4x1024x256xf32, #tpu.memory_space<vmem>>, vector<1x1024x256xf32>
    %190 = vector.shape_cast %189 : vector<1x1024x256xf32> to vector<1024x256xf32>
    %cst_130 = arith.constant dense<0.000000e+00> : vector<8x256xf32>
    %191 = tpu.matmul %174, %190, %cst_130 {dimension_numbers = #tpu.dot_dimension_numbers<[1], [0], [0], [1], [0, 0, 1, 1], [], []>} : vector<8x1024xf32>, vector<1024x256xf32>, vector<8x256xf32> -> vector<8x256xf32>
    %192 = arith.maximumf %188, %191 : vector<8x256xf32>
    %c0_131 = arith.constant 0 : index
    %c0_132 = arith.constant 0 : index
    %c0_133 = arith.constant 0 : index
    %193 = vector.load %arg9[%c0_131, %c0_132, %c0_133] : memref<1x8x256xf32, #tpu.memory_space<vmem>>, vector<1x8x256xf32>
    %194 = vector.shape_cast %193 : vector<1x8x256xf32> to vector<8x256xf32>
    %195 = vector.shape_cast %192 : vector<8x256xf32> to vector<1x8x256xf32>
    tpu.vector_store %arg9[%c0_131, %c0_132, %c0_133], %195 {strides = array<i32>} : memref<1x8x256xf32, #tpu.memory_space<vmem>>, vector<1x8x256xf32>,
    return
  }
  func.func @transform_0(%arg0: i32) -> (i32, i32, i32) {
    %c0_i32 = arith.constant 0 : i32
    %c0_i32_0 = arith.constant 0 : i32
    %c0_i32_1 = arith.constant 0 : i32
    return %arg0, %c0_i32, %c0_i32_0 : i32, i32, i32
  }
  func.func @transform_1(%arg0: i32) -> (i32, i32) {
    %c0_i32 = arith.constant 0 : i32
    %c0_i32_0 = arith.constant 0 : i32
    %c0_i32_1 = arith.constant 0 : i32
    return %c0_i32, %c0_i32_0 : i32, i32
  }
  func.func @transform_2(%arg0: i32) -> (i32, i32, i32) {
    %c0_i32 = arith.constant 0 : i32
    %c0_i32_0 = arith.constant 0 : i32
    %c0_i32_1 = arith.constant 0 : i32
    %c0_i32_2 = arith.constant 0 : i32
    return %c0_i32, %c0_i32_0, %c0_i32_1 : i32, i32, i32
  }
  func.func @transform_3(%arg0: i32) -> (i32, i32) {
    %c0_i32 = arith.constant 0 : i32
    %c0_i32_0 = arith.constant 0 : i32
    %c0_i32_1 = arith.constant 0 : i32
    return %c0_i32, %c0_i32_0 : i32, i32
  }
  func.func @transform_4(%arg0: i32) -> (i32, i32, i32) {
    %c0_i32 = arith.constant 0 : i32
    %c0_i32_0 = arith.constant 0 : i32
    %c0_i32_1 = arith.constant 0 : i32
    %c0_i32_2 = arith.constant 0 : i32
    return %c0_i32, %c0_i32_0, %c0_i32_1 : i32, i32, i32
  }
  func.func @transform_5(%arg0: i32) -> (i32, i32) {
    %c0_i32 = arith.constant 0 : i32
    %c0_i32_0 = arith.constant 0 : i32
    %c0_i32_1 = arith.constant 0 : i32
    return %c0_i32, %c0_i32_0 : i32, i32
  }
  func.func @transform_6(%arg0: i32) -> (i32, i32, i32) {
    %c0_i32 = arith.constant 0 : i32
    %c0_i32_0 = arith.constant 0 : i32
    %c0_i32_1 = arith.constant 0 : i32
    %c0_i32_2 = arith.constant 0 : i32
    return %c0_i32, %c0_i32_0, %c0_i32_1 : i32, i32, i32
  }
  func.func @transform_7(%arg0: i32) -> (i32, i32, i32) {
    %c0_i32 = arith.constant 0 : i32
    %c0_i32_0 = arith.constant 0 : i32
    %c0_i32_1 = arith.constant 0 : i32
    return %arg0, %c0_i32, %c0_i32_0 : i32, i32, i32
  }
  func.func @transform_8(%arg0: i32) -> (i32, i32, i32) {
    %c0_i32 = arith.constant 0 : i32
    %c0_i32_0 = arith.constant 0 : i32
    %c0_i32_1 = arith.constant 0 : i32
    return %arg0, %c0_i32, %c0_i32_0 : i32, i32, i32
  }
}

</mosaic_0001>

<bundles_post_ra>
// kernel: tpu_custom_call.1
= control target key start
LH: loop header
LB: loop body
LE: loop exit
PB: predicated region body
PF: predicated region fallthrough
CT: control target
= control target key end

     0   :  { %s9263_s0 = inlined_call_operand.hbm [shape: f32[2,8,1024], index: 0, kind: input, shape index: {}]   ;;  %s9264_s1 = inlined_call_operand.hbm [shape: bf16[8,72], index: 1, kind: input, shape index: {}]   ;;  %s9265_s2 = inlined_call_operand.vmem [shape: f32[3,8,1], index: 2, kind: input, shape index: {}]   ;;  %s9266_s3 = inlined_call_operand.hbm [shape: bf16[8,72], index: 3, kind: input, shape index: {}]   ;;  %s9267_s4 = inlined_call_operand.vmem [shape: f32[3,8,1], index: 4, kind: input, shape index: {}]   ;;  %s9268_s5 = inlined_call_operand.hbm [shape: f32[8,8], index: 5, kind: input, shape index: {}]   ;;  %s9269_s6 = inlined_call_operand.hbm [shape: f32[4,1024,256], index: 6, kind: input, shape index: {}]   ;;  %s9270_s7 = inlined_call_operand.hbm [shape: f32[2,8,1024], index: 7, kind: output, shape index: {0}]   ;;  %s9271_s8 = inlined_call_operand.hbm [shape: f32[2,8,256], index: 8, kind: output, shape index: {1}]  }
   0x1   :  { %9316 = sst [smem:[#allocation48_spill]] %s9264_s1 }
   0x2   :  { %14 = vsyncpa [#allocation5], 0 }
   0x3   :  { %16 = vsyncpa [#allocation5 + $0x1], 0 }
   0x4   :  { %17 = vsyncpa [#allocation8], 0 }
   0x5   :  { %18 = vsyncpa [#allocation11], 0 }
   0x6   :  { %19 = vsyncpa [#allocation6], 0 }
   0x7   :  { %21 = vsyncpa [#allocation6 + $0x1], 0 }
   0x8   :  { %22 = vsyncpa [#allocation15], 0 }
   0x9   :  { %24 = vsyncpa [#allocation15 + $0x1], 0  ;;  %s7758_s27 = smov 0   ;;  %s7760_s28 = smov 0  }
   0xa   :  { %s7762_s29 = smov 0   ;;  %s7764_s30 = smov 0  }
   0xb LB: > { %s7692_s9 = smov [#allocation7]   ;;  %s7779_s11 = sadd.s32 4294967295, %s7690_s30   ;;  %s7690_s30 = sphi %s7764_s30, %s9408_s30   ;;  %s7686_s29 = sphi %s7762_s29, %s9407_s29   ;;  %s7682_s28 = sphi %s7760_s28, %s9406_s28   ;;  %s7678_s27 = sphi %s7758_s27, %s9405_s27  }
   0xc   : > { %s252_s10 = sshll.u32 %s7692_s9, 4  ;;  %p5799_p0 = scmp.ge.s32.totalorder %s7690_s30, 1  ;;  %s7784_s10 = int_to_ptr.vmem [resolvable:$true] %s252_s10 }
   0xd   : > { %p9272_p1 = scmp.eq.s32.totalorder %s7779_s11, 0  ;;  %p239_p2 = scmp.lt.s32.totalorder %s7690_s30, 3 }
   0xe   : > { %s7693_s13 = smov [#allocation10]   ;;  %s7694_s15 = smov [#allocation9]  }
   0xf   : > { %p7786_p3 = pnand %p5799_p0, %p239_p2  ;;  %s280_s14 = sshll.u32 %s7693_s13, 4  ;;  %s7793_s14 = int_to_ptr.vmem [resolvable:$true] %s280_s14 }
  0x10   : > { %s266_s16 = sshll.u32 %s7694_s15, 4  ;;  %s7695_s18 = smov [#allocation12]   ;;  %s7801_s16 = int_to_ptr.vmem [resolvable:$true] %s266_s16 }
  0x11   : > { %s9317_s12 = scalar_select %p7786_p3, 1, 0 }
  0x12   : > { %p7221_p5 = pneg %p7786_p3  ;;  %s7803_s19 = sshll.u32 %s7695_s18, 4  ;;  %s291_s19 = int_to_ptr.vmem [resolvable:$true] %s7803_s19 }
  0x13   : > { %s9319_s1 = sld [smem:[#allocation48_spill]] }
  0x14   : > { %p7797_p6 = pnand %p7221_p5, %p9272_p1 }
  0x16   : > { %p7813_p8 = pneg %p7797_p6 }
  0x19   : > { %s7442_s22 = scalar_lea.hbm %s9319_s1, 64 }
  0x1a   : > { %p7443_p7 = scmp.ne.s32.totalorder %s9319_s1, %s7442_s22  ;;  %p7449_p11 = scmp.lt.u32.totalorder %s7442_s22, %s9319_s1 }
  0x1c   : > { %p7445_p9 = pnand %p7813_p8, %p7443_p7 }
  0x1e   : > { %p7446_p10 = pneg %p7445_p9 }
  0x20   : > { %p7451_p12 = pnand %p7449_p11, %p7446_p10 }
  0x22   : > { %7454 = shalt.err (!%p7451_p12)
}
  0x23   : > { %s7455_s13 = scalar_lea.vmem %s7784_s10, 64  ;;  %p7463_p5 = scmp.lt.s32.totalorder %s7784_s10, %s7784_s10 }
  0x24   : > { %p7456_p13 = scmp.ne.s32.totalorder %s7784_s10, %s7455_s13  ;;  %p7464_p4 = scmp.lt.s32.totalorder %s7455_s13, %s7455_s13 }
  0x26   : > { %p7458_p0 = pnand %p7456_p13, %p7813_p8  ;;  %p7465_p7 = por %p7464_p4, %p7463_p5 }
  0x28   : > { %p7459_p2 = pneg %p7458_p0 }
  0x2a   : > { %p7466_p9 = pnand %p7465_p7, %p7459_p2 }
  0x2c   : > { %7469 = shalt.err (!%p7466_p9)
}
  0x2d   : > { %7224 = dma.hbm_to_vmem [thread:$0]  (!%p7797_p6), %s9319_s1, 64, %s7784_s10, [#allocation8]  }
  0x2e   : > { %s7470_s22 = scalar_lea.hbm %s9268_s5, 128 }
  0x2f   : > { %p7471_p10 = scmp.ne.s32.totalorder %s9268_s5, %s7470_s22  ;;  %p7477_p12 = scmp.lt.u32.totalorder %s7470_s22, %s9268_s5 }
  0x31   : > { %p7473_p4 = pnand %p7471_p10, %p7813_p8 }
  0x33   : > { %p7474_p11 = pneg %p7473_p4 }
  0x35   : > { %p7479_p13 = pnand %p7477_p12, %p7474_p11 }
  0x37   : > { %7482 = shalt.err (!%p7479_p13)
}
  0x38   : > { %s7483_s10 = scalar_lea.vmem %s7793_s14, 128  ;;  %p7491_p7 = scmp.lt.s32.totalorder %s7793_s14, %s7793_s14 }
  0x39   : > { %p7484_p0 = scmp.ne.s32.totalorder %s7793_s14, %s7483_s10  ;;  %p7492_p9 = scmp.lt.s32.totalorder %s7483_s10, %s7483_s10 }
  0x3b   : > { %p7486_p2 = pnand %p7484_p0, %p7813_p8  ;;  %p7493_p10 = por %p7492_p9, %p7491_p7 }
  0x3d   : > { %p7487_p5 = pneg %p7486_p2 }
  0x3f   : > { %p7494_p4 = pnand %p7493_p10, %p7487_p5 }
  0x41   : > { %7497 = shalt.err (!%p7494_p4)
}
  0x42   : > { %7230 = dma.hbm_to_vmem [thread:$0]  (!%p7797_p6), %s9268_s5, 128, %s7793_s14, [#allocation11]  }
  0x43   : > { %s7498_s21 = scalar_lea.hbm %s9266_s3, 64 }
  0x44   : > { %p7499_p11 = scmp.ne.s32.totalorder %s9266_s3, %s7498_s21  ;;  %p7505_p0 = scmp.lt.u32.totalorder %s7498_s21, %s9266_s3 }
  0x46   : > { %p7501_p12 = pnand %p7499_p11, %p7813_p8 }
  0x48   : > { %p7502_p13 = pneg %p7501_p12 }
  0x4a   : > { %p7507_p2 = pnand %p7505_p0, %p7502_p13 }
  0x4c   : > { %7510 = shalt.err (!%p7507_p2)
}
  0x4d   : > { %s7511_s14 = scalar_lea.vmem %s7801_s16, 64  ;;  %p7519_p10 = scmp.lt.s32.totalorder %s7801_s16, %s7801_s16 }
  0x4e   : > { %p7512_p5 = scmp.ne.s32.totalorder %s7801_s16, %s7511_s14  ;;  %p7520_p4 = scmp.lt.s32.totalorder %s7511_s14, %s7511_s14 }
  0x50   : > { %p7514_p7 = pnand %p7512_p5, %p7813_p8  ;;  %p7521_p11 = por %p7520_p4, %p7519_p10 }
  0x52   : > { %p7515_p9 = pneg %p7514_p7 }
  0x54   : > { %p7522_p12 = pnand %p7521_p11, %p7515_p9 }
  0x56   : > { %7525 = shalt.err (!%p7522_p12)
}
  0x57   : > { %7227 = dma.hbm_to_vmem [thread:$0]  (!%p7797_p6), %s9266_s3, 64, %s7801_s16, [#allocation8]  }
  0x58   : > { %s7526_s18 = scalar_lea.hbm %s9269_s6, 131072 }
  0x59   : > { %p7527_p13 = scmp.ne.s32.totalorder %s9269_s6, %s7526_s18  ;;  %p7533_p5 = scmp.lt.u32.totalorder %s7526_s18, %s9269_s6 }
  0x5b   : > { %p7529_p0 = pnand %p7527_p13, %p7813_p8 }
  0x5d   : > { %p7530_p2 = pneg %p7529_p0 }
  0x5f   : > { %p7535_p7 = pnand %p7533_p5, %p7530_p2 }
  0x61   : > { %7538 = shalt.err (!%p7535_p7)
}
  0x62   : > { %s7539_s24 = scalar_lea.vmem %s291_s19, 131072  ;;  %p7547_p11 = scmp.lt.s32.totalorder %s291_s19, %s291_s19 }
  0x63   : > { %p7540_p9 = scmp.ne.s32.totalorder %s291_s19, %s7539_s24  ;;  %p7548_p12 = scmp.lt.s32.totalorder %s7539_s24, %s7539_s24 }
  0x65   : > { %p7542_p10 = pnand %p7540_p9, %p7813_p8  ;;  %p7549_p1 = por %p7548_p12, %p7547_p11 }
  0x67   : > { %p7543_p4 = pneg %p7542_p10 }
  0x69   : > { %p7550_p3 = pnand %p7549_p1, %p7543_p4 }
  0x6b   : > { %7553 = shalt.err (!%p7550_p3)
}
  0x6c   : > { %s7696_s16 = smov 256   ;;  %s7697_s25 = smov 16  }
  0x6d   : > { %7233 = dma.hbm_to_vmem [thread:$0]  (!%p7797_p6), %s9269_s6, 131072, %s291_s19, [#allocation11], %s7696_s16, %s7696_s16, %s7697_s25  }
  0x6e   : > { %s5798_s9 = sadd.s32 4294967294, %s7690_s30   ;;  %s7901_s10 = sadd.s32 1, %s7690_s30  }
  0x6f   : > { %s34_s13 = ssub.s32 %s7690_s30, %s7901_s10  ;;  %s37_s15 = sadd.s32 1, %s7686_s29 }
  0x70   : > { %p35_p1 = scmp.eq.s32.totalorder %s34_s13, 0  ;;  %p44_p3 = scmp.ne.s32.totalorder %s7686_s29, %s7682_s28 }
  0x71   : > { %p45_p8 = scmp.eq.s32.totalorder %s7690_s30, 0  ;;  %p50_p13 = scmp.ne.s32.totalorder %s7682_s28, %s7678_s27 }
  0x72   : > { %s7912_s18 = scalar_select %p35_p1, %s7686_s29, %s37_s15  }
  0x73   : > { %p7914_p0 = por %p45_p8, %p44_p3  ;;  %p9322_p2 = scmp.eq.s32.totalorder %s7779_s11, 0 }
  0x74   : > { %p200_p5 = scmp.eq.s32.totalorder %s7779_s11, 1  ;;  %p206_p7 = scmp.eq.s32.totalorder %s5798_s9, 1 }
  0x75   : > { %p7920_p6 = por %p9322_p2, %p50_p13  ;;  %p7249_p9 = scmp.lt.s32.totalorder %s7690_s30, 2 }
  0x76   : > { %s304_s20 = sand.u32 1, %s7686_s29   ;;  %p7927_p10 = por %p200_p5, %p44_p3 }
  0x77   : > { %p7931_p4 = por %p206_p7, %p50_p13  ;;  %s5805_s23 = sshll.u32 %s304_s20, 6 }
  0x78   : > { %s9324_s21 = scalar_select %p7927_p10, 1, 0 }
  0x79   : > { %s9325_s22 = scalar_select %p7931_p4, 1, 0 }
  0x7a   : > { %s6032_s24 = sshll.u32 %s7690_s30, 10  ;;  %s308_s14 = scalar_lea.vmem [#allocation4], %s5805_s23 }
  0x7b   : > { %s7939_s26 = scalar_lea.hbm %s9263_s0, %s6032_s24  ;;  %s316_s9 = sshll.u32 %s308_s14, 4  ;;  %s7941_s9 = int_to_ptr.vmem [resolvable:$true] %s316_s9 }
  0x7c   : > { %p7945_p11 = pnand %p7249_p9, %p7914_p0  ;;  %s305_s15 = scalar_lea.sflag [#allocation5], %s304_s20 }
  0x7d   : > { %s7554_s1 = scalar_lea.hbm %s7939_s26, 1024  ;;  %s7559_s16 = scalar_lea.hbm %s9263_s0, 2048 }
  0x7e   : > { %p7555_p12 = scmp.ne.s32.totalorder %s7939_s26, %s7554_s1  ;;  %p7556_p1 = pneg %p7945_p11 }
  0x7f   : > { %p7560_p13 = scmp.lt.u32.totalorder %s7939_s26, %s9263_s0  ;;  %p7561_p0 = scmp.lt.u32.totalorder %s7559_s16, %s7554_s1 }
  0x80   : > { %p7557_p3 = pnand %p7556_p1, %p7555_p12  ;;  %p7563_p5 = scmp.lt.u32.totalorder %s7554_s1, %s7939_s26 }
  0x81   : > { %p7562_p2 = por %p7561_p0, %p7560_p13 }
  0x82   : > { %p7558_p8 = pneg %p7557_p3 }
  0x83   : > { %p7564_p7 = por %p7563_p5, %p7562_p2 }
  0x85   : > { %p7565_p9 = pnand %p7564_p7, %p7558_p8 }
  0x87   : > { %7568 = shalt.err (!%p7565_p9)
}
  0x88   : > { %s7569_s20 = scalar_lea.vmem %s7941_s9, 1024  ;;  %s7698_s14 = smov [#allocation4]  }
  0x89   : > { %p7570_p12 = scmp.ne.s32.totalorder %s7941_s9, %s7569_s20  ;;  %s7574_s23 = sshll.u32 %s7698_s14, 4  ;;  %s7575_s23 = int_to_ptr.vmem [resolvable:$false] %s7574_s23 }
  0x8a   : > { %s7576_s24 = scalar_lea.vmem %s7575_s23, 2048  ;;  %p7577_p10 = scmp.lt.s32.totalorder %s7941_s9, %s7575_s23 }
  0x8b   : > { %p7572_p3 = pnand %p7570_p12, %p7556_p1  ;;  %p7578_p13 = scmp.lt.s32.totalorder %s7576_s24, %s7569_s20 }
  0x8d   : > { %p7573_p4 = pneg %p7572_p3  ;;  %p7579_p0 = por %p7578_p13, %p7577_p10 }
  0x8f   : > { %p7580_p2 = pnand %p7579_p0, %p7573_p4 }
  0x91   : > { %7583 = shalt.err (!%p7580_p2)
}
  0x92   : > { %7237 = dma.hbm_to_vmem [thread:$0]  (!%p7945_p11), %s7939_s26, 1024, %s7941_s9, %s305_s15  }
  0x93   : > { %p9327_p8 = scmp.ne.s32.totalorder %s9317_s12, 0 }
  0x95   : > { %325 = sbr.rel (%p9327_p8) target bundleno = 3856 (0xf10), region = 48 }
  0x9c   : > { %s7977_s1 = sand.u32 1, %s7682_s28  }
  0x9d   : > { %s5809_s16 = sshll.u32 %s7977_s1, 6  ;;  %s328_s17 = scalar_lea.sflag [#allocation5], %s7977_s1 }
  0x9e   : > { %s7983_s25 = scalar_lea.vmem [#allocation4], %s5809_s16 }
  0x9f   : > { %7657 = dma.done.wait (%p7920_p6), %s328_s17, 1024  }
  0xa0   : > { %7659 = vsyncadd (%p7920_p6), %s328_s17, 4294966272  ;;  %p9328_p10 = scmp.eq.s32.totalorder %s7779_s11, 0 }
  0xa2   : > { %7661 = dma.done.wait (%p9328_p10), [#allocation8], 128   ;;  %p9329_p4 = pmov %p9328_p10 }
  0xa4   : > { %7663 = vsyncadd (%p9329_p4), [#allocation8], 4294967168  ;;  %p9330_p11 = pmov %p9329_p4 }
  0xa5   : > { %p9331_p1 = pmov %p9329_p4 }
  0xa6   : > { %7665 = dma.done.wait (%p9330_p11), [#allocation11], 131200  }
  0xa7   : > { %7667 = vsyncadd (%p9331_p1), [#allocation11], 4294836096  ;;  %v412_v0 = vlaneseq  ;;  %v9275_v11 = vmov 0.0   ;;  %s7700_s12 = smov 95   ;;  %s7701_s19 = smov 97   ;;  %v8036_v42 = vld [vmem:[%s7983_s25] sm:$0xff] }
  0xa8   : > { %s7702_s26 = smov 127   ;;  %s7703_s9 = smov 1   ;;  %v8039_v43 = vld [vmem:[%s7983_s25 + $0x8] sm:$0xff]  ;;  %v8042_v44 = vld [vmem:[%s7983_s25 + $0x10] sm:$0xff]  ;;  %v6038_v45 = vpack.c.bf16 %v8036_v42, %v9275_v11  ;;  %v8051_v47 = vld [vmem:[%s7983_s25 + $0x18] sm:$0xff] }
  0xa9   : > { %v413_v1 = vand.u32 127, %v412_v0  ;;  %s7704_s13 = smov 31   ;;  %s7705_s15 = smov 33   ;;  %v6039_v46 = vpack.c.bf16 %v8042_v44, %v8039_v43  ;;  %v8054_v48 = vld [vmem:[%s7983_s25 + $0x20] sm:$0xff]  ;;  %v8060_v49 = vpack.c.bf16 %v8051_v47, %v8042_v44  ;;  %v8065_v51 = vld [vmem:[%s7983_s25 + $0x28] sm:$0xff]  ;;  %v8076_v53 = vpack.c.bf16 %v8039_v43, %v8036_v42  ;;  %v8079_v54 = vld [vmem:[%s7983_s25 + $0x30] sm:$0xff] }
  0xaa   : > { %s7706_s20 = smov 32   ;;  %v6040_v50 = vpack.c.bf16 %v8054_v48, %v8051_v47  ;;  %s7707_s14 = smov 96   ;;  %v8072_v52 = vpack.c.bf16 %v8065_v51, %v8054_v48  ;;  %v8082_v55 = vld [vmem:[%s7983_s25 + $0x38] sm:$0xff]  ;;  %v6041_v56 = vpack.c.bf16 %v8079_v54, %v8065_v51 }
  0xab   : > { %v417_v2 = vadd.s32 512, %v413_v1  ;;  %v418_v3 = vadd.s32 640, %v413_v1  ;;  %v414_v4 = vadd.s32 128, %v413_v1  ;;  %v425_v5 = vand.u32 31, %v413_v1  ;;  %s5625_s24 = scalar_lea.sflag [#allocation6], %s7977_s1  ;;  %p9402_p5 = scmp.ne.s32.totalorder %s9324_s21, 0 }
  0xac   : > { %v415_v6 = vadd.s32 256, %v413_v1  ;;  %v416_v7 = vadd.s32 384, %v413_v1  ;;  %v419_v32 = vadd.s32 768, %v413_v1  ;;  %v420_v33 = vadd.s32 896, %v413_v1 }
  0xad   : > { %v453_v8 = vand.u32 31, %v417_v2  ;;  %v460_v9 = vand.u32 31, %v418_v3  ;;  %v432_v10 = vand.u32 31, %v414_v4  ;;  %vm517_vm0 = vcmp.ge.s32.totalorder %v425_v5, 1 }
  0xae   : > { %v5816_v12 = vsel %vm517_vm0, 1.0, %v9275_v11  ;;  %vm541_vm1 = vcmp.le.s32.totalorder %v425_v5, 30  ;;  %v439_v13 = vand.u32 31, %v415_v6  ;;  %v446_v14 = vand.u32 31, %v416_v7 }
  0xaf   : > { %vm521_vm2 = vcmp.ge.s32.totalorder %v453_v8, 1  ;;  %vm522_vm3 = vcmp.ge.s32.totalorder %v460_v9, 1  ;;  %vm518_vm4 = vcmp.ge.s32.totalorder %v432_v10, 1  ;;  %vm542_vm5 = vcmp.le.s32.totalorder %v432_v10, 30 }
  0xb0   : > { %v5820_v15 = vsel %vm521_vm2, 1.0, %v9275_v11  ;;  %v5821_v16 = vsel %vm522_vm3, 1.0, %v9275_v11  ;;  %v5817_v17 = vsel %vm518_vm4, 1.0, %v9275_v11  ;;  %v5824_v18 = vsel %vm541_vm1, 1.0, %v9275_v11 }
  0xb1   : > { %v7315_v19 = vpack.i.bf16 %v5821_v16, %v5820_v15  ;;  %v7305_v20 = vpack.i.bf16 %v5817_v17, %v5816_v12  ;;  %v5825_v21 = vsel %vm542_vm5, 1.0, %v9275_v11  ;;  %vm519_vm6 = vcmp.ge.s32.totalorder %v439_v13, 1 }
  0xb2   : > { %vm520_vm7 = vcmp.ge.s32.totalorder %v446_v14, 1  ;;  %v5818_v22 = vsel %vm519_vm6, 1.0, %v9275_v11  ;;  %v7320_v23 = vpack.i.bf16 %v5825_v21, %v5824_v18  ;;  %vm543_vm8 = vcmp.le.s32.totalorder %v439_v13, 30 }
  0xb3   : > { %7316 = vrot.lane.b32.xlu1 %v7315_v19, %s7700_s12  ;;  %7306 = vrot.lane.b32.xlu0 %v7305_v20, %s7700_s12  ;;  %v5819_v24 = vsel %vm520_vm7, 1.0, %v9275_v11  ;;  %vm544_vm9 = vcmp.le.s32.totalorder %v446_v14, 30  ;;  %v5826_v26 = vsel %vm543_vm8, 1.0, %v9275_v11  ;;  %vm545_vm10 = vcmp.le.s32.totalorder %v453_v8, 30 }
  0xb4   : > { %v7310_v25 = vpack.i.bf16 %v5819_v24, %v5818_v22  ;;  %v5827_v27 = vsel %vm544_vm9, 1.0, %v9275_v11  ;;  %vm546_vm11 = vcmp.le.s32.totalorder %v460_v9, 30  ;;  %v5828_v29 = vsel %vm545_vm10, 1.0, %v9275_v11 }
  0xb5   : > { %v7325_v28 = vpack.i.bf16 %v5827_v27, %v5826_v26  ;;  %v5829_v30 = vsel %vm546_vm11, 1.0, %v9275_v11  ;;  %v467_v34 = vand.u32 31, %v419_v32  ;;  %v474_v35 = vand.u32 31, %v420_v33 }
  0xb6   : > { %v7340_v31 = vpack.i.bf16 %v5829_v30, %v5828_v29  ;;  %v6042_v57 = vpack.c.bf16 %v8082_v55, %v8082_v55  ;;  %vm598_vm0 = vcmask 777216   ;;  %vm795_vm1 = vcmask 793600  }
  0xb7   : > { %7321 = vrot.lane.b32.xlu1 %v7320_v23, %s7701_s19  ;;  %7311 = vrot.lane.b32.xlu0 %v7310_v25, %s7700_s12  ;;  %vm523_vm12 = vcmp.ge.s32.totalorder %v467_v34, 1  ;;  %vm524_vm13 = vcmp.ge.s32.totalorder %v474_v35, 1  ;;  %vm547_vm14 = vcmp.le.s32.totalorder %v467_v34, 30  ;;  %vm548_vm15 = vcmp.le.s32.totalorder %v474_v35, 30 }
  0xb8   : > { %v5822_v36 = vsel %vm523_vm12, 1.0, %v9275_v11  ;;  %v5823_v37 = vsel %vm524_vm13, 1.0, %v9275_v11  ;;  %v5830_v39 = vsel %vm547_vm14, 1.0, %v9275_v11  ;;  %v5831_v40 = vsel %vm548_vm15, 1.0, %v9275_v11 }
  0xb9   : > { %v7390_v38 = vpack.i.bf16 %v5823_v37, %v5822_v36  ;;  %v7400_v41 = vpack.i.bf16 %v5831_v40, %v5830_v39  ;;  %vm910_vm2 = vcmask 1039360   ;;  %vm984_vm3 = vcmask 7168  }
  0xba   : > { %vm869_vm4 = vcmask 252928   ;;  %vm673_vm5 = vcmask 269312   ;;  %vm671_vm6 = vcmask 1043456   ;;  %vm746_vm7 = vcmask 261120  }
  0xbb   : > { %7331 = vrot.lane.b32.xlu1 %v7305_v20, %s7702_s26  ;;  %7326 = vrot.lane.b32.xlu0 %v7325_v28, %s7701_s19  ;;  %vm1331_vm8 = vcmask 785408   ;;  %vm1685_vm9 = vcmask 588800   ;;  %vm7710_vm10 = vmmov 0   ;;  %vm1888_vm11 = vcmask 64512  }
  0xbf   : > { %7341 = vrot.lane.b32.xlu1 %v7340_v31, %s7701_s19  ;;  %7336 = vrot.lane.b32.xlu0 %v7310_v25, %s7702_s26 }
  0xc3   : > { %7351 = vrot.lane.b32.xlu1 %v7320_v23, %s7703_s9  ;;  %7346 = vrot.lane.b32.xlu0 %v7315_v19, %s7702_s26 }
  0xc7   : > { %7361 = vrot.lane.b32.xlu1 %v7340_v31, %s7703_s9  ;;  %7356 = vrot.lane.b32.xlu0 %v7325_v28, %s7703_s9 }
  0xcb   : > { %7371 = vrot.lane.b32.xlu1 %v7310_v25, %s7704_s13  ;;  %7366 = vrot.lane.b32.xlu0 %v7305_v20, %s7704_s13 }
  0xcf   : > { %7381 = vrot.lane.b32.xlu1 %v7320_v23, %s7705_s15  ;;  %7376 = vrot.lane.b32.xlu0 %v7315_v19, %s7704_s13 }
  0xd3   : > { %7391 = vrot.lane.b32.xlu1 %v7390_v38, %s7700_s12  ;;  %7386 = vrot.lane.b32.xlu0 %v7325_v28, %s7705_s15 }
  0xd7   : > { %7401 = vrot.lane.b32.xlu1 %v7400_v41, %s7701_s19  ;;  %7396 = vrot.lane.b32.xlu0 %v7340_v31, %s7705_s15 }
  0xdb   : > { %7411 = vrot.lane.b32.xlu1 %v7400_v41, %s7703_s9  ;;  %7406 = vrot.lane.b32.xlu0 %v7390_v38, %s7702_s26 }
  0xdf   : > { %7421 = vrot.lane.b32.xlu1 %v7400_v41, %s7705_s15  ;;  %7416 = vrot.lane.b32.xlu0 %v7390_v38, %s7704_s13 }
  0xe3   : > { %730 = vrot.lane.b32.xlu0 %v6038_v45, %s7706_s20  ;;  %732 = vrot.lane.b32.xlu1 %v6039_v46, %s7706_s20 }
  0xe7   : > { %1317 = vrot.lane.b32.xlu0 %v8060_v49, %s7707_s14  ;;  %734 = vrot.lane.b32.xlu1 %v6040_v50, %s7706_s20 }
  0xeb   : > { %1319 = vrot.lane.b32.xlu0 %v8072_v52, %s7707_s14  ;;  %1315 = vrot.lane.b32.xlu1 %v8076_v53, %s7707_s14 }
  0xef   : > { %736 = vrot.lane.b32.xlu0 %v6041_v56, %s7706_s20  ;;  %738 = vrot.lane.b32.xlu1 %v6042_v57, %s7706_s20 }
 0x125   : > { %v8094_v58 = vpop.permute.xlu1 %7316  ;;  %v7307_v59 = vpop.permute.xlu0 %7306 }
 0x126   : > { %v7309_v13 = vunpack.i.h.bf16 %v7307_v59  ;;  %v7308_v14 = vunpack.i.l.bf16 %v7307_v59  ;;  %v9279_v17 = vunpack.i.h.bf16 %v8094_v58  ;;  %v7318_v18 = vunpack.i.l.bf16 %v8094_v58 }
 0x128   : > { %v8139_v24 = vsel %vm598_vm0, %v7308_v14, %v7309_v13  ;;  %v8143_v27 = vmul.f32 0.0, %v7308_v14  ;;  %v8153_v31 = vsel %vm598_vm0, %v7318_v18, %v9279_v17 }
 0x129   : > { %v7322_v60 = vpop.permute.xlu1 %7321  ;;  %v7312_v61 = vpop.permute.xlu0 %7311  ;;  %v616_v30 = vmul.f32 %v8139_v24, %v8036_v42  ;;  %v620_v46 = vmul.f32 %v8153_v31, %v8054_v48 }
 0x12a   : > { %v7314_v21 = vunpack.i.h.bf16 %v7312_v61  ;;  %v7313_v22 = vunpack.i.l.bf16 %v7312_v61  ;;  %v7324_v28 = vunpack.i.h.bf16 %v7322_v60  ;;  %v7323_v32 = vunpack.i.l.bf16 %v7322_v60 }
 0x12b   : > { %v6033_v41 = vpack.c.bf16 %v616_v30, %v8143_v27 }
 0x12c   : > { %v8159_v34 = vsel %vm598_vm0, %v7309_v13, %v7313_v22  ;;  %v8162_v35 = vsel %vm598_vm0, %v7313_v22, %v7314_v21  ;;  %v8167_v39 = vsel %vm598_vm0, %v7314_v21, %v7318_v18  ;;  %v8183_v59 = vsel %vm795_vm1, %v7323_v32, %v7324_v28 }
 0x12d   : > { %v8096_v62 = vpop.permute.xlu1 %7331  ;;  %v8098_v63 = vpop.permute.xlu0 %7326  ;;  %v617_v45 = vmul.f32 %v8159_v34, %v8039_v43  ;;  %v618_v56 = vmul.f32 %v8162_v35, %v8042_v44  ;;  %v619_v57 = vmul.f32 %v8167_v39, %v8051_v47  ;;  %v8194_v18 = vmul.f32 0.0, %v7323_v32 }
 0x12e   : > { %v7329_v36 = vunpack.i.h.bf16 %v8098_v63  ;;  %v7328_v37 = vunpack.i.l.bf16 %v8098_v63  ;;  %v7334_v50 = vunpack.i.h.bf16 %v8096_v62  ;;  %v7333_v60 = vunpack.i.l.bf16 %v8096_v62 }
 0x12f   : > { %v813_v62 = vmul.f32 %v8183_v59, %v8036_v42 }
 0x130   : > { %v8187_v63 = vsel %vm795_vm1, %v7324_v28, %v7328_v37  ;;  %v8190_v13 = vsel %vm795_vm1, %v7328_v37, %v7329_v36  ;;  %v6035_v28 = vpack.c.bf16 %v620_v46, %v619_v57  ;;  %v8207_v30 = vsel %vm910_vm2, %v7333_v60, %v7334_v50 }
 0x131   : > { %v8100_v0 = vpop.permute.xlu1 %7341  ;;  %v8102_v1 = vpop.permute.xlu0 %7336 }
 0x132   : > { %v7339_v14 = vunpack.i.h.bf16 %v8102_v1  ;;  %v9278_v21 = vunpack.i.h.bf16 %v8100_v0  ;;  %v7343_v22 = vunpack.i.l.bf16 %v8100_v0 }
 0x134   : > { %v8225_v57 = vsel %vm795_vm1, %v7329_v36, %v7343_v22 }
 0x135   : > { %v8104_v2 = vpop.permute.xlu1 %7351  ;;  %v8106_v3 = vpop.permute.xlu0 %7346 }
 0x136   : > { %v9277_v32 = vunpack.i.h.bf16 %v8106_v3  ;;  %v7348_v37 = vunpack.i.l.bf16 %v8106_v3 }
 0x139   : > { %v8108_v4 = vpop.permute.xlu1 %7361  ;;  %v8110_v5 = vpop.permute.xlu0 %7356 }
 0x13a   : > { %v7358_v36 = vunpack.i.l.bf16 %v8110_v5 }
 0x13d   : > { %v8112_v6 = vpop.permute.xlu1 %7371  ;;  %v8114_v7 = vpop.permute.xlu0 %7366 }
 0x13e   : > { %v7373_v17 = vunpack.i.l.bf16 %v8112_v6 }
 0x141   : > { %v8116_v8 = vpop.permute.xlu1 %7381  ;;  %v8118_v9 = vpop.permute.xlu0 %7376 }
 0x145   : > { %v8120_v10 = vpop.permute.xlu1 %7391  ;;  %v8122_v12 = vpop.permute.xlu0 %7386 }
 0x146   : > { %v8125_v15 = vunpack.i.h.bf16 %v8120_v10 }
 0x148   : > { %v623_v16 = vmul.f32 %v8125_v15, %v8082_v55 }
 0x149   : > { %v8131_v19 = vpop.permute.xlu1 %7401  ;;  %v8133_v20 = vpop.permute.xlu0 %7396 }
 0x14a   : > { %v8136_v23 = vunpack.i.h.bf16 %v8131_v19  ;;  %v6037_v25 = vpack.c.bf16 %v623_v16, %v623_v16  ;;  %v7338_v16 = vunpack.i.l.bf16 %v8102_v1  ;;  %v815_v1 = vmul.f32 %v8190_v13, %v8042_v44 }
 0x14c   : > { %9332 = vst [vmem:[#allocation21_spill] sm:$0xff] %v8136_v23  ;;  %v820_v26 = vmul.f32 %v8136_v23, %v8082_v55  ;;  %664 = vrot.lane.b32.xlu0 %v6037_v25, %s7705_s15  ;;  %v814_v25 = vmul.f32 %v8187_v63, %v8039_v43 }
 0x14d   : > { %v8146_v29 = vpop.permute.xlu0 %7406 }
 0x14e   : > { %v8156_v33 = vunpack.i.h.bf16 %v8146_v29  ;;  %v6047_v38 = vpack.c.bf16 %v820_v26, %v820_v26  ;;  %v6034_v26 = vpack.c.bf16 %v618_v56, %v617_v45  ;;  %v6043_v45 = vpack.c.bf16 %v813_v62, %v8194_v18 }
 0x14f   : > { %v6044_v46 = vpack.c.bf16 %v815_v1, %v814_v25  ;;  %v928_v56 = vmul.f32 %v8207_v30, %v8036_v42  ;;  %v7359_v25 = vunpack.i.h.bf16 %v8110_v5  ;;  %v8243_v1 = vsel %vm910_vm2, %v7339_v14, %v7348_v37 }
 0x150   : > { %9333 = vst [vmem:[#allocation22_spill] sm:$0xff] %v8156_v33  ;;  %861 = vrot.lane.b32.xlu0 %v6047_v38, %s7704_s13  ;;  %v935_v40 = vmul.f32 %v8156_v33, %v8082_v55  ;;  %v8212_v38 = vsel %vm910_vm2, %v7334_v50, %v7338_v16  ;;  %v8230_v50 = vsel %vm795_vm1, %v7343_v22, %v9278_v21  ;;  %9334 = vst [vmem:[#allocation23_spill] sm:$0xff] %v8243_v1 }
 0x151   : > { %v8248_v22 = vsel %vm910_vm2, %v7348_v37, %v9277_v32  ;;  %v816_v5 = vmul.f32 %v8225_v57, %v8051_v47  ;;  %v931_v37 = vmul.f32 %v8243_v1, %v8051_v47 }
 0x152   : > { %v6052_v61 = vpack.c.bf16 %v935_v40, %v935_v40  ;;  %v8215_v40 = vsel %vm910_vm2, %v7338_v16, %v7339_v14  ;;  %v929_v16 = vmul.f32 %v8212_v38, %v8039_v43  ;;  %9335 = vst [vmem:[#allocation24_spill] sm:$0xff] %v8248_v22  ;;  %v817_v14 = vmul.f32 %v8230_v50, %v8054_v48 }
 0x153   : > { %v930_v62 = vmul.f32 %v8215_v40, %v8042_v44  ;;  %v932_v32 = vmul.f32 %v8248_v22, %v8054_v48  ;;  %v9340_v22 = vunpack.i.h.bf16 %v8108_v4 }
 0x154   : > { %976 = vrot.lane.b32.xlu1 %v6052_v61, %s7703_s9  ;;  %656 = vrot.lane.b32.xlu0 %v6033_v41, %s7705_s15  ;;  %v8217_v41 = vmul.f32 0.0, %v7333_v60  ;;  %v7354_v60 = vunpack.i.h.bf16 %v8104_v2  ;;  %v8234_v61 = vunpack.i.l.bf16 %v8104_v2  ;;  %v7363_v2 = vunpack.i.l.bf16 %v8108_v4 }
 0x155   : > { %v6049_v11 = vpack.c.bf16 %v930_v62, %v929_v16  ;;  %v8275_v16 = vsel %vm984_vm3, %v7358_v36, %v7359_v25  ;;  %v7374_v62 = vunpack.i.h.bf16 %v8112_v6  ;;  %v6050_v1 = vpack.c.bf16 %v932_v32, %v931_v37 }
 0x156   : > { %v8272_v21 = vsel %vm984_vm3, %v7354_v60, %v7358_v36  ;;  %9338 = vst [vmem:[#allocation27_spill] sm:$0xff] %v8275_v16  ;;  %v8289_v36 = vsel %vm984_vm3, %v7363_v2, %v9340_v22 }
 0x157   : > { %9337 = vst [vmem:[#allocation26_spill] sm:$0xff] %v8272_v21  ;;  %9341 = vst [vmem:[#allocation29_spill] sm:$0xff] %v8289_v36  ;;  %v1088_v6 = vmul.f32 %v8272_v21, %v8042_v44  ;;  %v1091_v22 = vmul.f32 %v8289_v36, %v8065_v51  ;;  %v8313_v37 = vsel %vm869_vm4, %v7373_v17, %v7374_v62  ;;  %v7389_v21 = vunpack.i.h.bf16 %v8122_v12 }
 0x158   : > { %658 = vrot.lane.b32.xlu1 %v6034_v26, %s7705_s15  ;;  %660 = vrot.lane.b32.xlu0 %v6035_v28, %s7705_s15  ;;  %v6048_v28 = vpack.c.bf16 %v928_v56, %v8217_v41  ;;  %v8269_v56 = vunpack.i.l.bf16 %v8114_v7  ;;  %v8282_v26 = vsel %vm984_vm3, %v7359_v25, %v7363_v2 }
 0x159   : > { %9339 = vst [vmem:[#allocation28_spill] sm:$0xff] %v8282_v26  ;;  %v1090_v32 = vmul.f32 %v8282_v26, %v8054_v48 }
 0x15a   : > { %v1201_v36 = vmul.f32 %v8269_v56, %v8036_v42 }
 0x15c   : > { %855 = vrot.lane.b32.xlu1 %v6044_v46, %s7704_s13  ;;  %853 = vrot.lane.b32.xlu0 %v6043_v45, %s7704_s13  ;;  %v8265_v45 = vsel %vm984_vm3, %v8234_v61, %v7354_v60  ;;  %v7369_v46 = vunpack.i.h.bf16 %v8114_v7  ;;  %v6045_v7 = vpack.c.bf16 %v817_v14, %v816_v5  ;;  %v1086_v60 = vmul.f32 %v8234_v61, %v8036_v42 }
 0x15d   : > { %9336 = vst [vmem:[#allocation25_spill] sm:$0xff] %v8265_v45  ;;  %v1087_v25 = vmul.f32 %v8265_v45, %v8039_v43  ;;  %v7378_v5 = vunpack.i.l.bf16 %v8118_v9  ;;  %v9343_v45 = vunpack.i.h.bf16 %v8118_v9 }
 0x15e   : > { %v8301_v14 = vsel %vm869_vm4, %v8269_v56, %v7369_v46  ;;  %v8310_v2 = vsel %vm869_vm4, %v7369_v46, %v7373_v17 }
 0x15f   : > { %v1202_v46 = vmul.f32 %v8301_v14, %v8039_v43  ;;  %v8326_v17 = vsel %vm869_vm4, %v7374_v62, %v7378_v5 }
 0x160   : > { %970 = vrot.lane.b32.xlu1 %v6049_v11, %s7703_s9  ;;  %968 = vrot.lane.b32.xlu0 %v6048_v28, %s7703_s9  ;;  %v1089_v11 = vmul.f32 %v8275_v16, %v8051_v47  ;;  %v7384_v28 = vunpack.i.h.bf16 %v8116_v8  ;;  %v8317_v16 = vunpack.i.l.bf16 %v8116_v8  ;;  %v8331_v8 = vsel %vm869_vm4, %v7378_v5, %v9343_v45 }
 0x161   : > { %v6062_v5 = vpack.c.bf16 %v1202_v46, %v1201_v36  ;;  %v9345_v46 = vunpack.i.h.bf16 %v8094_v58 }
 0x162   : > { %9342 = vst [vmem:[#allocation30_spill] sm:$0xff] %v8317_v16  ;;  %v6058_v26 = vpack.c.bf16 %v1089_v11, %v1088_v6  ;;  %v1204_v6 = vmul.f32 %v8313_v37, %v8051_v47  ;;  %v7393_v11 = vunpack.i.l.bf16 %v8120_v10  ;;  %v8342_v62 = vsel %vm673_vm5, %v8317_v16, %v7384_v28 }
 0x163   : > { %9344 = vst [vmem:[#allocation31_spill] sm:$0xff] %v8342_v62  ;;  %v1389_v10 = vmul.f32 %v8317_v16, %v8036_v42  ;;  %v7417_v16 = vpop.permute.xlu0 %7416 }
 0x164   : > { %972 = vrot.lane.b32.xlu1 %v6050_v1, %s7703_s9  ;;  %857 = vrot.lane.b32.xlu0 %v6045_v7, %s7704_s13  ;;  %v7388_v1 = vunpack.i.l.bf16 %v8122_v12  ;;  %v6057_v7 = vpack.c.bf16 %v1087_v25, %v1086_v60  ;;  %v6059_v12 = vpack.c.bf16 %v1091_v22, %v1090_v32  ;;  %v1203_v60 = vmul.f32 %v8310_v2, %v8042_v44 }
 0x165   : > { %v7403_v25 = vunpack.i.l.bf16 %v8131_v19  ;;  %v1205_v32 = vmul.f32 %v8326_v17, %v8054_v48  ;;  %v1206_v22 = vmul.f32 %v8331_v8, %v8065_v51  ;;  %v8369_v42 = vsel %vm598_vm0, %v9345_v46, %v7393_v11 }
 0x166   : > { %v8345_v45 = vsel %vm673_vm5, %v7384_v28, %v7388_v1  ;;  %v1390_v28 = vmul.f32 %v8342_v62, %v8039_v43  ;;  %9346 = vst [vmem:[#allocation32_spill] sm:$0xff] %v8369_v42  ;;  %v8374_v43 = vsel %vm598_vm0, %v7393_v11, %v8125_v15 }
 0x167   : > { %v1391_v19 = vmul.f32 %v8345_v45, %v8042_v44  ;;  %9347 = vst [vmem:[#allocation33_spill] sm:$0xff] %v8374_v43  ;;  %v9348_v44 = vunpack.i.h.bf16 %v8100_v0  ;;  %v8383_v58 = vsel %vm795_vm1, %v7403_v25, %v8136_v23  ;;  %v622_v0 = vmul.f32 %v8374_v43, %v8079_v54 }
 0x168   : > { %1129 = vrot.lane.b32.xlu1 %v6058_v26, %s7702_s26  ;;  %1127 = vrot.lane.b32.xlu0 %v6057_v7, %s7702_s26  ;;  %v8348_v26 = vsel %vm673_vm5, %v7388_v1, %v7389_v21  ;;  %v7398_v1 = vunpack.i.l.bf16 %v8133_v20  ;;  %v6063_v7 = vpack.c.bf16 %v1204_v6, %v1203_v60  ;;  %9350 = vst [vmem:[#allocation35_spill] sm:$0xff] %v8383_v58 }
 0x169   : > { %v1392_v36 = vmul.f32 %v8348_v26, %v8051_v47  ;;  %v8379_v62 = vsel %vm795_vm1, %v9348_v44, %v7403_v25  ;;  %v7412_v47 = vpop.permute.xlu1 %7411  ;;  %v621_v6 = vmul.f32 %v8369_v42, %v8065_v51  ;;  %v819_v46 = vmul.f32 %v8383_v58, %v8079_v54 }
 0x16a   : > { %9349 = vst [vmem:[#allocation34_spill] sm:$0xff] %v8379_v62  ;;  %v818_v11 = vmul.f32 %v8379_v62, %v8065_v51  ;;  %v7413_v25 = vunpack.i.l.bf16 %v7412_v47 }
 0x16b   : > { %v6073_v60 = vpack.c.bf16 %v1392_v36, %v1391_v19  ;;  %v7414_v19 = vunpack.i.h.bf16 %v7412_v47  ;;  %v7408_v36 = vunpack.i.l.bf16 %v8146_v29  ;;  %v6036_v29 = vpack.c.bf16 %v622_v0, %v621_v6 }
 0x16c   : > { %1242 = vrot.lane.b32.xlu1 %v6062_v5, %s7701_s19  ;;  %1131 = vrot.lane.b32.xlu0 %v6059_v12, %s7702_s26  ;;  %v7399_v5 = vunpack.i.h.bf16 %v8133_v20  ;;  %v6064_v12 = vpack.c.bf16 %v1206_v22, %v1205_v32  ;;  %v6072_v20 = vpack.c.bf16 %v1390_v28, %v1389_v10  ;;  %v8394_v32 = vsel %vm673_vm5, %v7389_v21, %v7398_v1 }
 0x16d   : > { %9351 = vst [vmem:[#allocation36_spill] sm:$0xff] %v8394_v32  ;;  %v7419_v22 = vunpack.i.h.bf16 %v7417_v16  ;;  %v9289_v28 = vmov 0   ;;  %v6046_v47 = vpack.c.bf16 %v819_v46, %v818_v11 }
 0x16e   : > { %v8399_v10 = vsel %vm673_vm5, %v7398_v1, %v7399_v5  ;;  %1746 = vmatprep.mubr.bf16.mxu0 %v9289_v28  ;;  %1787 = vmatprep.mubr.bf16.mxu1 %v9289_v28  ;;  %v1393_v1 = vmul.f32 %v8394_v32, %v8054_v48  ;;  %v8427_v48 = vsel %vm910_vm2, %v7408_v36, %v8156_v33  ;;  %v7422_v32 = vpop.permute.xlu1 %7421 }
 0x16f   : > { %9352 = vst [vmem:[#allocation37_spill] sm:$0xff] %v8399_v10  ;;  %7425 = vset.pattern.permute.xlu0 %v9289_v28  ;;  %7426 = vset.pattern.permute.xlu1 %v9289_v28  ;;  %v1209_v21 = vmul.f32 0.0, %v7419_v22  ;;  %v8418_v28 = vsel %vm984_vm3, %v7413_v25, %v7414_v19  ;;  %9358 = vst [vmem:[#allocation41_spill] sm:$0xff] %v8427_v48  ;;  %v7423_v46 = vunpack.i.l.bf16 %v7422_v32 }
 0x170   : > { %1246 = vrot.lane.b32.xlu1 %v6064_v12, %s7701_s19  ;;  %1244 = vrot.lane.b32.xlu0 %v6063_v7, %s7701_s19  ;;  %v1394_v7 = vmul.f32 %v8399_v10, %v8065_v51  ;;  %v9353_v12 = vunpack.i.h.bf16 %v8108_v4  ;;  %9355 = vst [vmem:[#allocation39_spill] sm:$0xff] %v8418_v28  ;;  %v7418_v10 = vunpack.i.l.bf16 %v7417_v16  ;;  %v1093_v16 = vmul.f32 %v8418_v28, %v8082_v55 }
 0x171   : > { %v8431_v4 = vpack.c.bf16 %v1209_v21, %v1209_v21 }
 0x172   : > { %v8415_v44 = vsel %vm984_vm3, %v9353_v12, %v7413_v25  ;;  %v6074_v6 = vpack.c.bf16 %v1394_v7, %v1393_v1  ;;  %v7424_v25 = vunpack.i.h.bf16 %v7422_v32  ;;  %v8447_v1 = vsel %vm869_vm4, %v7418_v10, %v7419_v22 }
 0x173   : > { %9354 = vst [vmem:[#allocation38_spill] sm:$0xff] %v8415_v44  ;;  %9359 = vst [vmem:[#allocation42_spill] sm:$0xff] %v8431_v4  ;;  %v1092_v11 = vmul.f32 %v8415_v44, %v8079_v54  ;;  %v8457_v32 = vsel %vm673_vm5, %v7399_v5, %v7423_v46  ;;  %v8475_v5 = vpack.c.bf16 %v8082_v55, %v8079_v54 }
 0x174   : > { %1430 = vrot.lane.b32.xlu1 %v6072_v20, %s7700_s12  ;;  %1432 = vrot.lane.b32.xlu0 %v6073_v60, %s7700_s12  ;;  %v9356_v20 = vunpack.i.h.bf16 %v8106_v3  ;;  %v934_v3 = vmul.f32 %v8427_v48, %v8079_v54  ;;  %9362 = vst [vmem:[#allocation44_spill] sm:$0xff] %v8447_v1  ;;  %9363 = vst [vmem:[#allocation45_spill] sm:$0xff] %v8457_v32  ;;  %v8460_v22 = vsel %vm673_vm5, %v7423_v46, %v7424_v25  ;;  %v733_v46 = vpop.permute.xlu1 %732 }
 0x175   : > { %v6060_v12 = vpack.c.bf16 %v1093_v16, %v1092_v11  ;;  %9364 = vst [vmem:[#allocation46_spill] sm:$0xff] %v8460_v22  ;;  %v1499_v11 = vld [vmem:[%s9265_s2] sm:$0xff] }
 0x176   : > { %v8423_v60 = vsel %vm910_vm2, %v9356_v20, %v7408_v36  ;;  %v9360_v36 = vunpack.i.h.bf16 %v8118_v9  ;;  %v1208_v9 = vmul.f32 %v8447_v1, %v8082_v55  ;;  %v1396_v20 = vmul.f32 %v8460_v22, %v8082_v55 }
 0x177   : > { %9357 = vst [vmem:[#allocation40_spill] sm:$0xff] %v8423_v60  ;;  %v933_v0 = vmul.f32 %v8423_v60, %v8065_v51  ;;  %v1094_v51 = vmul.f32 0.0, %v7414_v19 }
 0x178   : > { %662 = vrot.lane.b32.xlu1 %v6036_v29, %s7705_s15  ;;  %859 = vrot.lane.b32.xlu0 %v6046_v47, %s7704_s13  ;;  %v8444_v21 = vsel %vm869_vm4, %v9360_v36, %v7418_v10  ;;  %v1395_v47 = vmul.f32 %v8457_v32, %v8079_v54 }
 0x179   : > { %9361 = vst [vmem:[#allocation43_spill] sm:$0xff] %v8444_v21  ;;  %v6051_v7 = vpack.c.bf16 %v934_v3, %v933_v0  ;;  %v1207_v29 = vmul.f32 %v8444_v21, %v8079_v54  ;;  %v8464_v10 = vpack.c.bf16 %v1094_v51, %v1094_v51  ;;  %v1397_v0 = vmul.f32 0.0, %v7424_v25  ;;  %v731_v54 = vpop.permute.xlu0 %730  ;;  %v8493_v25 = vpop.permute.xlu1 %734 }
 0x17a   : > { %v9293_v3 = vmov 0.0|0.0  }
 0x17b   : > { %v6065_v19 = vpack.c.bf16 %v1208_v9, %v1207_v29  ;;  %v8485_v16 = vpack.c.bf16 %v1397_v0, %v1397_v0  ;;  %v9309_v0 = vrot.slane %v8493_v25, 4 }
 0x17c   : > { %1434 = vrot.lane.b32.xlu1 %v6074_v6, %s7700_s12  ;;  %1250 = vrot.lane.b32.xlu0 %v8431_v4, %s7701_s19  ;;  %v6075_v6 = vpack.c.bf16 %v1396_v20, %v1395_v47  ;;  %v741_v47 = vrot.slane %v733_v46, 4 }
 0x17d   : > { %9365 = vst [vmem:[#allocation47_spill] sm:$0xff] %v8485_v16  ;;  %v8489_v55 = vpop.permute.xlu0 %1317 }
 0x17e   : > { %v748_v21 = vsel %vm671_vm6, %v741_v47, %v9309_v0 }
 0x17f   : > { %v749_v23 = vsel %vm746_vm7, %v733_v46, %v748_v21 }
 0x180   : > { %974 = vrot.lane.b32.xlu1 %v6051_v7, %s7703_s9  ;;  %1133 = vrot.lane.b32.xlu0 %v6060_v12, %s7702_s26  ;;  %v8497_v7 = vpop.permute.xlu1 %1315 }
 0x181   : > { %v8491_v36 = vpop.permute.xlu0 %1319 }
 0x184   : > { %1135 = vrot.lane.b32.xlu1 %v8464_v10, %s7702_s26  ;;  %1248 = vrot.lane.b32.xlu0 %v6065_v19, %s7701_s19  ;;  %v8501_v29 = vpop.permute.xlu1 %738  ;;  %v740_v19 = vrot.slane %v731_v54, 4 }
 0x185   : > { %v8495_v51 = vpop.permute.xlu0 %736 }
 0x188   : > { %1321 = vrot.lane.b32.xlu1 %v8475_v5, %s7707_s14  ;;  %1436 = vrot.lane.b32.xlu0 %v6075_v6, %s7700_s12 }
 0x18c   : > { %1323 = vrot.lane.b32.xlu1 %v9293_v3, %s7707_s14  ;;  %1502 = vperm.xlu0 %7425, %v1499_v11  }
 0x190   : > { %1438 = vrot.lane.b32.xlu1 %v8485_v16, %s7700_s12  ;;  %v745_v16 = vsel %vm671_vm6, %v740_v19, %v741_v47 }
 0x191   : > { %v747_v19 = vsel %vm746_vm7, %v731_v54, %v745_v16 }
 0x1be   : > { %v8499_v12 = vpop.permute.xlu0 %664 }
 0x1c2   : > { %v8503_v9 = vpop.permute.xlu0 %861 }
 0x1c6   : > { %v8505_v20 = vpop.permute.xlu1 %976  ;;  %v657_v6 = vpop.permute.xlu0 %656 }
 0x1c7   : > { %v666_v22 = vrot.slane %v657_v6, 4 }
 0x1ca   : > { %v659_v11 = vpop.permute.xlu1 %658  ;;  %v8508_v3 = vpop.permute.xlu0 %660 }
 0x1cb   : > { %v667_v32 = vrot.slane %v659_v11, 4  ;;  %v668_v1 = vrot.slane %v8508_v3, 4 }
 0x1cd   : > { %v672_v4 = vsel %vm671_vm6, %v666_v22, %v667_v32  ;;  %v675_v33 = vsel %vm671_vm6, %v667_v32, %v668_v1 }
 0x1ce   : > { %v856_v28 = vpop.permute.xlu1 %855  ;;  %v854_v44 = vpop.permute.xlu0 %853  ;;  %v674_v48 = vsel %vm673_vm5, %v657_v6, %v672_v4  ;;  %v676_v60 = vsel %vm673_vm5, %v659_v11, %v675_v33 }
 0x1cf   : > { %v864_v43 = vrot.slane %v856_v28, 4  ;;  %v863_v42 = vrot.slane %v854_v44, 4  ;;  %v5877_v58 = vcombine.high %v674_v48, %v747_v19  ;;  %v5879_v47 = vcombine.high %v676_v60, %v749_v23 }
 0x1d0   : > { %v5876_v0 = vcombine.low %v674_v48, %v747_v19  ;;  %v5878_v22 = vcombine.low %v676_v60, %v749_v23 }
 0x1d1   : > { %1714 = vmatprep.subr.bf16.mxu0 %v5877_v58  ;;  %1755 = vmatprep.subr.bf16.mxu1 %v5879_v47  ;;  %v868_v4 = vsel %vm671_vm6, %v863_v42, %v864_v43 }
 0x1d2   : > { %v971_v62 = vpop.permute.xlu1 %970  ;;  %1715 = vmatpush1.bf16.msra.mxu0 %v5876_v0  ;;  %1756 = vmatpush1.bf16.msra.mxu1 %v5878_v22  ;;  %v969_v32 = vpop.permute.xlu0 %968  ;;  %v870_v21 = vsel %vm869_vm4, %v854_v44, %v868_v4 }
 0x1d3   : > { %v979_v6 = vrot.slane %v971_v62, 4  ;;  %v978_v16 = vrot.slane %v969_v32, 4 }
 0x1d5   : > { %v983_v33 = vsel %vm671_vm6, %v978_v16, %v979_v6 }
 0x1d6   : > { %v985_v54 = vsel %vm984_vm3, %v969_v32, %v983_v33  ;;  %v8527_v46 = vpop.permute.xlu1 %972  ;;  %v8529_v48 = vpop.permute.xlu0 %857 }
 0x1d7   : > { %v5884_v23 = vcombine.low %v870_v21, %v985_v54  ;;  %v5885_v58 = vcombine.high %v870_v21, %v985_v54  ;;  %v9311_v60 = vrot.slane %v8527_v46, 4  ;;  %v9314_v0 = vrot.slane %v8529_v48, 4 }
 0x1d8   : > { %v9312_v54 = vrot.slane %v8491_v36, 4 }
 0x1d9   : > { %v986_v42 = vsel %vm671_vm6, %v979_v6, %v9311_v60  ;;  %v871_v44 = vsel %vm671_vm6, %v864_v43, %v9314_v0  ;;  %1716 = vmatprep.subr.bf16.mxu0 %v5885_v58  ;;  %v1326_v6 = vrot.slane %v8489_v55, 4  ;;  %v1325_v43 = vrot.slane %v8497_v7, 4 }
 0x1da   : > { %v1130_v11 = vpop.permute.xlu1 %1129  ;;  %1717 = vmatpush1.bf16.msra.mxu0 %v5884_v23  ;;  %v1128_v19 = vpop.permute.xlu0 %1127  ;;  %v872_v47 = vsel %vm869_vm4, %v856_v28, %v871_v44  ;;  %v987_v22 = vsel %vm984_vm3, %v971_v62, %v986_v42 }
 0x1db   : > { %v1138_v32 = vrot.slane %v1130_v11, 4  ;;  %v1137_v4 = vrot.slane %v1128_v19, 4  ;;  %v5887_v16 = vcombine.high %v872_v47, %v987_v22  ;;  %v5886_v33 = vcombine.low %v872_v47, %v987_v22 }
 0x1dc   : > { %v1330_v22 = vsel %vm671_vm6, %v1325_v43, %v1326_v6 }
 0x1dd   : > { %v1142_v21 = vsel %vm671_vm6, %v1137_v4, %v1138_v32  ;;  %1757 = vmatprep.subr.bf16.mxu1 %v5887_v16  ;;  %v1333_v16 = vsel %vm671_vm6, %v1326_v6, %v9312_v54  ;;  %v1332_v6 = vsel %vm1331_vm8, %v8497_v7, %v1330_v22 }
 0x1de   : > { %v1144_v23 = vsel %vm910_vm2, %v1128_v19, %v1142_v21  ;;  %v1243_v58 = vpop.permute.xlu1 %1242  ;;  %1758 = vmatpush1.bf16.msra.mxu1 %v5886_v33  ;;  %v8546_v28 = vpop.permute.xlu0 %1131 }
 0x1df   : > { %v5892_v62 = vcombine.low %v8076_v53, %v1144_v23  ;;  %v5893_v42 = vcombine.high %v8076_v53, %v1144_v23  ;;  %v9313_v44 = vrot.slane %v8546_v28, 4  ;;  %v1252_v4 = vrot.slane %v1243_v58, 4 }
 0x1e1   : > { %v1145_v47 = vsel %vm671_vm6, %v1138_v32, %v9313_v44  ;;  %1718 = vmatprep.subr.bf16.mxu0 %v5893_v42 }
 0x1e2   : > { %v8555_v19 = vpop.permute.xlu1 %1246  ;;  %1719 = vmatpush1.bf16.msra.mxu0 %v5892_v62  ;;  %v1245_v33 = vpop.permute.xlu0 %1244  ;;  %v1146_v53 = vsel %vm910_vm2, %v1130_v11, %v1145_v47  ;;  %v1334_v11 = vsel %vm1331_vm8, %v8489_v55, %v1333_v16 }
 0x1e3   : > { %v9315_v21 = vrot.slane %v8555_v19, 4  ;;  %v1253_v23 = vrot.slane %v1245_v33, 4  ;;  %v5895_v60 = vcombine.high %v8060_v49, %v1146_v53  ;;  %v5894_v32 = vcombine.low %v8060_v49, %v1146_v53 }
 0x1e5   : > { %v1257_v43 = vsel %vm671_vm6, %v1252_v4, %v1253_v23  ;;  %v1260_v62 = vsel %vm671_vm6, %v1253_v23, %v9315_v21  ;;  %1759 = vmatprep.subr.bf16.mxu1 %v5895_v60  ;;  %v743_v23 = vrot.slane %v8495_v51, 4 }
 0x1e6   : > { %v1261_v42 = vsel %vm795_vm1, %v1245_v33, %v1260_v62  ;;  %v1431_v47 = vpop.permute.xlu1 %1430  ;;  %1760 = vmatpush1.bf16.msra.mxu1 %v5894_v32  ;;  %v1433_v54 = vpop.permute.xlu0 %1432  ;;  %v1259_v49 = vsel %vm795_vm1, %v1243_v58, %v1257_v43  ;;  %v744_v33 = vrot.slane %v8501_v29, 4  ;;  %v9366_v62 = vrot.slane %v8493_v25, 4 }
 0x1e7   : > { %v5902_v53 = vcombine.low %v1261_v42, %v1334_v11  ;;  %v5903_v4 = vcombine.high %v1261_v42, %v1334_v11  ;;  %v1440_v44 = vrot.slane %v1431_v47, 4  ;;  %v1441_v0 = vrot.slane %v1433_v54, 4 }
 0x1e8   : > { %v5901_v60 = vcombine.high %v1259_v49, %v1332_v6  ;;  %v5900_v21 = vcombine.low %v1259_v49, %v1332_v6  ;;  %v750_v11 = vsel %vm671_vm6, %v9366_v62, %v743_v23  ;;  %v670_v6 = vrot.slane %v8499_v12, 4 }
 0x1e9   : > { %v1445_v7 = vsel %vm671_vm6, %v1440_v44, %v1441_v0  ;;  %1761 = vmatprep.subr.bf16.mxu1 %v5903_v4  ;;  %v8598_v4 = vld [vmem:[#allocation7] sm:$0xf] }
 0x1ea   : > { %1720 = vmatprep.subr.bf16.mxu0 %v5901_v60  ;;  %v663_v55 = vpop.permute.xlu1 %662  ;;  %1762 = vmatpush1.bf16.msra.mxu1 %v5902_v53  ;;  %v860_v22 = vpop.permute.xlu0 %859  ;;  %v1447_v16 = vsel %vm598_vm0, %v1431_v47, %v1445_v7  ;;  %v752_v53 = vsel %vm671_vm6, %v743_v23, %v744_v33  ;;  %v867_v23 = vrot.slane %v8503_v9, 4  ;;  %v982_v33 = vrot.slane %v8505_v20, 4 }
 0x1eb   : > { %v669_v58 = vrot.slane %v663_v55, 4  ;;  %1721 = vmatpush1.bf16.msra.mxu0 %v5900_v21  ;;  %v5909_v32 = vcombine.high %v1447_v16, %v1447_v16  ;;  %v5908_v43 = vcombine.low %v1447_v16, %v1447_v16  ;;  %v866_v60 = vrot.slane %v860_v22, 4 }
 0x1ec   : > { %v9368_v20 = vrot.slane %v8529_v48, 4 }
 0x1ed   : > { %v677_v44 = vsel %vm671_vm6, %v668_v1, %v669_v58  ;;  %5916 = vmatprep.subr.msk.bf16.mxu0 %vm671_vm6, %v5909_v32  ;;  %v679_v42 = vsel %vm671_vm6, %v669_v58, %v670_v6  ;;  %v1691_v29 = vsel %vm671_vm6, %v5908_v43, 0  ;;  %v751_v1 = vsel %vm746_vm7, %v8493_v25, %v750_v11 }
 0x1ee   : > { %v8587_v47 = vpop.permute.xlu1 %1434  ;;  %v8590_v21 = vpop.permute.xlu0 %1250  ;;  %v678_v49 = vsel %vm673_vm5, %v8508_v3, %v677_v44  ;;  %v680_v58 = vsel %vm673_vm5, %v663_v55, %v679_v42  ;;  %v753_v32 = vsel %vm746_vm7, %v8495_v51, %v752_v53  ;;  %v9367_v44 = vmov 0  }
 0x1ef   : > { %v1442_v12 = vrot.slane %v8587_v47, 4  ;;  %1723 = vmatpush1.bf16.msra.mxu0 %v1691_v29  ;;  %v5880_v7 = vcombine.low %v678_v49, %v751_v1  ;;  %v5881_v16 = vcombine.high %v678_v49, %v751_v1  ;;  %v5883_v9 = vcombine.high %v680_v58, %v753_v32 }
 0x1f0   : > { %v873_v51 = vsel %vm671_vm6, %v9368_v20, %v866_v60  ;;  %v875_v42 = vsel %vm671_vm6, %v866_v60, %v867_v23  ;;  %v9369_v29 = vrot.slane %v8527_v46, 4  ;;  %v9370_v53 = vrot.slane %v8546_v28, 4 }
 0x1f1   : > { %v1448_v3 = vsel %vm671_vm6, %v1441_v0, %v1442_v12  ;;  %1796 = vmatprep.subr.bf16.mxu0 %v5881_v16 }
 0x1f2   : > { %v975_v25 = vpop.permute.xlu1 %974  ;;  %5917 = vmatmul.mubr.msk.bf16.vlgmr.msra.gmra.mrb[0].mxu0 %vm1685_vm9, %v8598_v4  ;;  %v1134_v43 = vpop.permute.xlu0 %1133  ;;  %v1449_v62 = vsel %vm598_vm0, %v1433_v54, %v1448_v3 }
 0x1f3   : > { %v981_v55 = vrot.slane %v975_v25, 4  ;;  %1797 = vmatpush1.bf16.msra.mxu0 %v5880_v7  ;;  %v1140_v11 = vrot.slane %v1134_v43, 4  ;;  %v5911_v6 = vcombine.high %v1449_v62, %v1449_v62  ;;  %v5910_v0 = vcombine.low %v1449_v62, %v1449_v62  ;;  %1828 = vmatprep.mubr.bf16.mxu0 %v9367_v44 }
 0x1f5   : > { %v988_v49 = vsel %vm671_vm6, %v9369_v29, %v981_v55  ;;  %v990_v54 = vsel %vm671_vm6, %v981_v55, %v982_v33  ;;  %v1147_v1 = vsel %vm671_vm6, %v9370_v53, %v1140_v11  ;;  %5918 = vmatprep.subr.msk.bf16.mxu1 %vm671_vm6, %v5911_v6  ;;  %v1697_v7 = vsel %vm671_vm6, %v5910_v0, 0 }
 0x1f6   : > { %v991_v16 = vsel %vm984_vm3, %v975_v25, %v990_v54  ;;  %v1136_v3 = vpop.permute.xlu1 %1135  ;;  %1764 = vmatpush1.bf16.msra.mxu1 %v1697_v7  ;;  %v1249_v62 = vpop.permute.xlu0 %1248  ;;  %v989_v60 = vsel %vm984_vm3, %v8527_v46, %v988_v49  ;;  %v874_v33 = vsel %vm869_vm4, %v8529_v48, %v873_v51  ;;  %v1148_v55 = vsel %vm910_vm2, %v8546_v28, %v1147_v1 }
 0x1f7   : > { %v1141_v23 = vrot.slane %v1136_v3, 4  ;;  %v1255_v20 = vrot.slane %v1249_v62, 4  ;;  %1837 = vmatprep.subr.bf16.mxu1 %v5883_v9  ;;  %v5882_v6 = vcombine.low %v680_v58, %v753_v32  ;;  %v876_v0 = vsel %vm869_vm4, %v860_v22, %v875_v42 }
 0x1f8   : > { %v5888_v29 = vcombine.low %v874_v33, %v989_v60  ;;  %v5889_v25 = vcombine.high %v874_v33, %v989_v60  ;;  %v5891_v54 = vcombine.high %v876_v0, %v991_v16  ;;  %v5897_v48 = vcombine.high %v8072_v52, %v1148_v55 }
 0x1f9   : > { %v1149_v53 = vsel %vm671_vm6, %v1140_v11, %v1141_v23  ;;  %5919 = vmatmul.mubr.msk.bf16.vlgmr.msra.gmra.mrb[0].mxu1 %vm1685_vm9, %v8598_v4  ;;  %v9371_v28 = vrot.slane %v8555_v19, 4  ;;  %v1256_v11 = vrot.slane %v8590_v21, 4  ;;  %v5890_v42 = vcombine.low %v876_v0, %v991_v16 }
 0x1fa   : > { %1798 = vmatprep.subr.bf16.mxu0 %v5889_v25  ;;  %v1322_v46 = vpop.permute.xlu1 %1321  ;;  %1838 = vmatpush1.bf16.msra.mxu1 %v5882_v6  ;;  %v1437_v9 = vpop.permute.xlu0 %1436  ;;  %v1150_v51 = vsel %vm910_vm2, %v1134_v43, %v1149_v53  ;;  %v9372_v49 = vrot.slane %v8491_v36, 4  ;;  %v5896_v7 = vcombine.low %v8072_v52, %v1148_v55 }
 0x1fb   : > { %v1262_v22 = vsel %vm671_vm6, %v9371_v28, %v1255_v20  ;;  %v1328_v58 = vrot.slane %v1322_v46, 4  ;;  %1799 = vmatpush1.bf16.msra.mxu0 %v5888_v29  ;;  %v1443_v32 = vrot.slane %v1437_v9, 4  ;;  %1839 = vmatprep.subr.bf16.mxu1 %v5891_v54  ;;  %v5899_v3 = vcombine.high %v8475_v5, %v1150_v51 }
 0x1fc   : > { %1800 = vmatprep.subr.bf16.mxu0 %v5897_v48  ;;  %1869 = vmatprep.mubr.bf16.mxu1 %v9367_v44  ;;  %v1264_v60 = vsel %vm671_vm6, %v1255_v20, %v1256_v11  ;;  %v1263_v21 = vsel %vm795_vm1, %v8555_v19, %v1262_v22  ;;  %v9373_v22 = vmov 0.0  }
 0x1fd   : > { %v1335_v1 = vsel %vm671_vm6, %v9372_v49, %v1328_v58  ;;  %v1450_v43 = vsel %vm671_vm6, %v1442_v12, %v1443_v32  ;;  %v5898_v12 = vcombine.low %v8475_v5, %v1150_v51  ;;  %v1265_v55 = vsel %vm795_vm1, %v1249_v62, %v1264_v60 }
 0x1fe   : > { %v1324_v23 = vpop.permute.xlu1 %1323  ;;  %1840 = vmatpush1.bf16.msra.mxu1 %v5890_v42  ;;  %v1336_v16 = vsel %vm1331_vm8, %v8491_v36, %v1335_v1  ;;  %v1451_v52 = vsel %vm598_vm0, %v8587_v47, %v1450_v43 }
 0x1ff   : > { %v1329_v33 = vrot.slane %v1324_v23, 4  ;;  %1801 = vmatpush1.bf16.msra.mxu0 %v5896_v7  ;;  %1841 = vmatprep.subr.bf16.mxu1 %v5899_v3  ;;  %v5904_v6 = vcombine.low %v1263_v21, %v1336_v16  ;;  %v5905_v0 = vcombine.high %v1263_v21, %v1336_v16  ;;  %v5913_v19 = vcombine.high %v1451_v52, %v1451_v52 }
 0x200   : > { %v5912_v25 = vcombine.low %v1451_v52, %v1451_v52 }
 0x201   : > { %v1337_v20 = vsel %vm671_vm6, %v1328_v58, %v1329_v33  ;;  %1802 = vmatprep.subr.bf16.mxu0 %v5905_v0 }
 0x202   : > { %v1439_v29 = vpop.permute.xlu1 %1438  ;;  %1842 = vmatpush1.bf16.msra.mxu1 %v5898_v12  ;;  %v1338_v36 = vsel %vm1331_vm8, %v1322_v46, %v1337_v20  ;;  %v1703_v51 = vsel %vm671_vm6, %v5912_v25, 0 }
 0x203   : > { %v1444_v54 = vrot.slane %v1439_v29, 4  ;;  %1803 = vmatpush1.bf16.msra.mxu0 %v5904_v6  ;;  %v5906_v53 = vcombine.low %v1265_v55, %v1338_v36  ;;  %v5907_v48 = vcombine.high %v1265_v55, %v1338_v36 }
 0x204   : > { %5920 = vmatprep.subr.msk.bf16.mxu0 %vm671_vm6, %v5913_v19 }
 0x205   : > { %v1452_v47 = vsel %vm671_vm6, %v1443_v32, %v1444_v54  ;;  %1843 = vmatprep.subr.bf16.mxu1 %v5907_v48 }
 0x206   : > { %v1453_v5 = vsel %vm598_vm0, %v1437_v9, %v1452_v47  ;;  %1844 = vmatpush1.bf16.msra.mxu1 %v5906_v53 }
 0x207   : > { %1805 = vmatpush1.bf16.msra.mxu0 %v1703_v51  ;;  %v5915_v62 = vcombine.high %v1453_v5, %v1453_v5  ;;  %v5914_v28 = vcombine.low %v1453_v5, %v1453_v5 }
 0x208   : > { %6131 = vmatprep.subr.mxu0 %v9373_v22 }
 0x209   : > { %5922 = vmatprep.subr.msk.bf16.mxu1 %vm671_vm6, %v5915_v62  ;;  %v1709_v46 = vsel %vm671_vm6, %v5914_v28, 0  ;;  %v8678_v62 = vld [vmem:[#allocation10] sm:$0xff] }
 0x20a   : > { %5921 = vmatmul.mubr.msk.bf16.vlgmr.msra.gmra.mrb[4].mxu0 %vm1685_vm9, %v8598_v4  ;;  %1846 = vmatpush1.bf16.msra.mxu1 %v1709_v46 }
 0x20b   : > { %6136 = vmatprep.subr.mxu1 %v9373_v22  ;;  %v1503_v43 = vpop.permute.xlu0 %1502  ;;  %6133 = vmatprep.mubr.msk.f32.mxu0 %vm7710_vm10, %v9373_v22 }
 0x20d   : > { %5923 = vmatmul.mubr.msk.bf16.vlgmr.msra.gmra.mrb[4].mxu1 %vm1685_vm9, %v8598_v4 }
 0x20e   : > { %6138 = vmatprep.mubr.msk.f32.mxu1 %vm7710_vm10, %v9373_v22 }
 0x2c5   : > { %v1748_v9 = vpop.f32.mrb[0].mxu0 }
 0x2c6   : > { %v1750_v58 = vpop.f32.mrb[1].mxu0  ;;  %v1749_v3 = vadd.f32 %v1748_v9, %v1503_v43 }
 0x2c7   : > { %v1752_v32 = vpop.f32.mrb[2].mxu0  ;;  %v1751_v60 = vadd.f32 %v1750_v58, %v1503_v43 }
 0x2c8   : > { %v1753_v11 = vpop.f32.mrb[3].mxu0 }
 0x2c9   : > { %v1878_v21 = vadd.f32 %v1751_v60, %v1749_v3 }
 0x2cc   : > { %v1789_v42 = vpop.f32.mrb[0].mxu1 }
 0x2cd   : > { %v1791_v49 = vpop.f32.mrb[1].mxu1  ;;  %v1790_v23 = vadd.f32 %v1789_v42, %v1503_v43 }
 0x2ce   : > { %v1793_v1 = vpop.f32.mrb[2].mxu1  ;;  %v1792_v33 = vadd.f32 %v1791_v49, %v1503_v43 }
 0x2cf   : > { %v1794_v7 = vpop.f32.mrb[3].mxu1  ;;  %v1879_v16 = vadd.f32 %v1878_v21, %v1790_v23 }
 0x2d1   : > { %v1880_v0 = vadd.f32 %v1879_v16, %v1792_v33 }
 0x2dd   : > { %v1830_v6 = vpop.f32.mrb[4].mxu0 }
 0x2de   : > { %v1831_v52 = vadd.f32 %v1830_v6, %v1503_v43  ;;  %v1832_v12 = vpop.f32.mrb[5].mxu0 }
 0x2df   : > { %v1833_v4 = vadd.f32 %v1832_v12, %v1503_v43  ;;  %v1834_v20 = vpop.f32.mrb[6].mxu0 }
 0x2e0   : > { %v1881_v55 = vadd.f32 %v1880_v0, %v1831_v52  ;;  %v1835_v29 = vpop.f32.mrb[7].mxu0  ;;  %v1871_v19 = vpop.f32.mrb[4].mxu1 }
 0x2e1   : > { %v1872_v36 = vadd.f32 %v1871_v19, %v1503_v43  ;;  %v1873_v25 = vpop.f32.mrb[5].mxu1 }
 0x2e2   : > { %v1882_v54 = vadd.f32 %v1881_v55, %v1833_v4  ;;  %v1874_v53 = vadd.f32 %v1873_v25, %v1503_v43  ;;  %v1875_v48 = vpop.f32.mrb[6].mxu1 }
 0x2e3   : > { %v1876_v47 = vpop.f32.mrb[7].mxu1 }
 0x2e4   : > { %v1883_v5 = vadd.f32 %v1882_v54, %v1872_v36 }
 0x2e6   : > { %v1884_v51 = vadd.f32 %v1883_v5, %v1874_v53 }
 0x2e8   : > { %1885 = vadd.xlane.f32.xlu1 %v1884_v51  ;;  %v5927_v51 = vld [vmem:[%s9265_s2 + $0x10] sm:$0xff] }
 0x375   : > { %v1886_v28 = vpop.xlane.xlu1 %1885 }
 0x376   : > { %6132 = vmatpush3.msra.mxu0 %v1886_v28 }
 0x377   : > { %6134 = vmatmul.mubr.msk.f32.vlgmr.msra.gmra.mrb[8].mxu0 %vm1888_vm11, %v8678_v62 }
 0x378   : > { %3078 = vmatprep.mubr.bf16.mxu0 %v9367_v44 }
 0x44a   : > { %v1958_v46 = vpop.f32.mrb[8].mxu0 }
 0x44b   : > { %1964 = vperm.xlu0 %7425, %v1958_v46   ;;  %v6135_v9 = vpop.f32.mrb[9].mxu0 }
 0x4ca   : > { %v1965_v58 = vpop.permute.xlu0 %1964 }
 0x4cb   : > { %v1967_v32 = vsub.f32 %v1749_v3, %v1965_v58  ;;  %v1968_v11 = vsub.f32 %v1751_v60, %v1965_v58  ;;  %v1969_v42 = vsub.f32 %v1790_v23, %v1965_v58  ;;  %v1970_v49 = vsub.f32 %v1792_v33, %v1965_v58  ;;  %v5926_v33 = vld [vmem:[%s9265_s2 + $0x8] sm:$0xff] }
 0x4cc   : > { %v1971_v7 = vsub.f32 %v1831_v52, %v1965_v58  ;;  %v1972_v6 = vsub.f32 %v1833_v4, %v1965_v58  ;;  %v1973_v20 = vsub.f32 %v1872_v36, %v1965_v58  ;;  %v1974_v19 = vsub.f32 %v1874_v53, %v1965_v58 }
 0x4cd   : > { %v1975_v1 = vmul.f32 %v1967_v32, %v1967_v32  ;;  %v1976_v43 = vmul.f32 %v1968_v11, %v1968_v11  ;;  %v1977_v21 = vmul.f32 %v1969_v42, %v1969_v42  ;;  %v1978_v0 = vmul.f32 %v1970_v49, %v1970_v49 }
 0x4ce   : > { %v1979_v55 = vmul.f32 %v1971_v7, %v1971_v7  ;;  %v1980_v25 = vmul.f32 %v1972_v6, %v1972_v6  ;;  %v1981_v48 = vmul.f32 %v1973_v20, %v1973_v20  ;;  %v1982_v3 = vmul.f32 %v1974_v19, %v1974_v19 }
 0x4cf   : > { %v1983_v16 = vadd.f32 %v1976_v43, %v1975_v1 }
 0x4d1   : > { %v1984_v12 = vadd.f32 %v1983_v16, %v1977_v21 }
 0x4d3   : > { %v1985_v29 = vadd.f32 %v1984_v12, %v1978_v0 }
 0x4d5   : > { %v1986_v54 = vadd.f32 %v1985_v29, %v1979_v55 }
 0x4d7   : > { %v1987_v47 = vadd.f32 %v1986_v54, %v1980_v25 }
 0x4d9   : > { %v1988_v60 = vadd.f32 %v1987_v47, %v1981_v48 }
 0x4db   : > { %v1989_v23 = vadd.f32 %v1988_v60, %v1982_v3 }
 0x4dd   : > { %1990 = vadd.xlane.f32.xlu0 %v1989_v23 }
 0x4f3   : > { %2080 = vperm.xlu0 %7425, %v5926_v33  }
 0x56a   : > { %v1991_v52 = vpop.xlane.xlu0 %1990 }
 0x56b   : > { %6137 = vmatpush3.msra.mxu1 %v1991_v52 }
 0x56c   : > { %6139 = vmatmul.mubr.msk.f32.vlgmr.msra.gmra.mrb[8].mxu1 %vm1888_vm11, %v8678_v62 }
 0x56d   : > { %3119 = vmatprep.mubr.bf16.mxu1 %v9367_v44 }
 0x572   : > { %v2081_v43 = vpop.permute.xlu0 %2080 }
 0x63f   : > { %v2058_v4 = vpop.f32.mrb[8].mxu1 }
 0x640   : > { %v2059_v36 = vadd.f32 1e-05, %v2058_v4  ;;  %v6140_v53 = vpop.f32.mrb[9].mxu1 }
 0x642   : > { %7427 = vrsqrt.f32 %v2059_v36 }
 0x64c   : > { %v7428_v5 = vpop.eup %7427 }
 0x64d   : > { %2065 = vperm.xlu1 %7426, %v7428_v5  }
 0x651   : > { %2095 = vperm.xlu1 %7426, %v5927_v51  }
 0x655   : > { %2539 = vrot.lane.b32.xlu1 %v8464_v10, %s7702_s26 }
 0x6cc   : > { %v2066_v28 = vpop.permute.xlu1 %2065 }
 0x6cd   : > { %v2068_v46 = vmul.f32 %v2066_v28, %v1967_v32  ;;  %v2069_v9 = vmul.f32 %v2066_v28, %v1968_v11  ;;  %v2070_v58 = vmul.f32 %v2066_v28, %v1969_v42  ;;  %v2071_v1 = vmul.f32 %v2066_v28, %v1970_v49 }
 0x6ce   : > { %v2072_v21 = vmul.f32 %v2066_v28, %v1971_v7  ;;  %v2073_v16 = vmul.f32 %v2066_v28, %v1972_v6  ;;  %v2074_v25 = vmul.f32 %v2066_v28, %v1973_v20  ;;  %v2075_v54 = vmul.f32 %v2066_v28, %v1974_v19 }
 0x6cf   : > { %v2083_v0 = vmul.f32 %v2081_v43, %v2068_v46  ;;  %v2084_v12 = vmul.f32 %v2081_v43, %v2069_v9  ;;  %v2085_v55 = vmul.f32 %v2081_v43, %v2070_v58  ;;  %v2086_v29 = vmul.f32 %v2081_v43, %v2071_v1 }
 0x6d0   : > { %v2096_v48 = vpop.permute.xlu1 %2095  ;;  %v2087_v47 = vmul.f32 %v2081_v43, %v2072_v21  ;;  %v2088_v3 = vmul.f32 %v2081_v43, %v2073_v16  ;;  %v2089_v7 = vmul.f32 %v2081_v43, %v2074_v25  ;;  %v2090_v6 = vmul.f32 %v2081_v43, %v2075_v54 }
 0x6d1   : > { %v2098_v60 = vadd.f32 %v2096_v48, %v2083_v0  ;;  %v2099_v23 = vadd.f32 %v2096_v48, %v2084_v12  ;;  %v2100_v10 = vadd.f32 %v2096_v48, %v2085_v55  ;;  %v2101_v33 = vadd.f32 %v2096_v48, %v2086_v29 }
 0x6d2   : > { %v2102_v32 = vadd.f32 %v2096_v48, %v2087_v47  ;;  %v2103_v52 = vadd.f32 %v2096_v48, %v2088_v3  ;;  %v2105_v53 = vadd.f32 %v2096_v48, %v2090_v6  ;;  %v2104_v5 = vadd.f32 %v2096_v48, %v2089_v7  ;;  %v9378_v7 = vld [vmem:[#allocation29_spill] sm:$0xff] }
 0x6d3   : > { %v8694_v11 = vmax.f32 %v2098_v60, 0.0  ;;  %v8696_v42 = vmax.f32 %v2099_v23, 0.0  ;;  %v8698_v49 = vmax.f32 %v2100_v10, 0.0  ;;  %v8700_v4 = vmax.f32 %v2101_v33, 0.0  ;;  %v9375_v10 = vld [vmem:[#allocation23_spill] sm:$0xff]  ;;  %v9376_v33 = vld [vmem:[#allocation24_spill] sm:$0xff] }
 0x6d4   : > { %v8702_v20 = vmax.f32 %v2102_v32, 0.0  ;;  %v8710_v51 = vmax.f32 %v2103_v52, 0.0  ;;  %v8721_v9 = vmax.f32 %v2105_v53, 0.0  ;;  %v8723_v58 = vmax.f32 %v2104_v5, 0.0  ;;  %v9380_v53 = vld [vmem:[#allocation27_spill] sm:$0xff] }
 0x6d5   : > { %v6083_v19 = vpack.c.bf16 %v8698_v49, %v8696_v42  ;;  %v6082_v36 = vpack.c.bf16 %v8694_v11, %v9373_v22  ;;  %v8716_v46 = vpack.c.bf16 %v8700_v4, %v8698_v49  ;;  %v8727_v1 = vpack.c.bf16 %v8696_v42, %v8694_v11 }
 0x6d6   : > { %v6084_v28 = vpack.c.bf16 %v8702_v20, %v8700_v4  ;;  %v8731_v43 = vpack.c.bf16 %v8710_v51, %v8702_v20  ;;  %v6086_v21 = vpack.c.bf16 %v8721_v9, %v8721_v9  ;;  %v6085_v16 = vpack.c.bf16 %v8723_v58, %v8710_v51 }
 0x6d7   : > { %2246 = vrot.lane.b32.xlu1 %v6083_v19, %s7706_s20  ;;  %2244 = vrot.lane.b32.xlu0 %v6082_v36, %s7706_s20  ;;  %v2135_v0 = vmul.f32 %v8700_v4, %v8167_v39  ;;  %v2136_v12 = vmul.f32 %v8702_v20, %v8153_v31  ;;  %v2132_v55 = vmul.f32 %v8694_v11, %v8139_v24  ;;  %v9379_v19 = vld [vmem:[#allocation26_spill] sm:$0xff] }
 0x6d8   : > { %v2285_v29 = vmul.f32 %v8694_v11, %v8183_v59  ;;  %v2133_v48 = vmul.f32 %v8696_v42, %v8159_v34  ;;  %v2134_v39 = vmul.f32 %v8698_v49, %v8162_v35  ;;  %v2366_v24 = vmul.f32 %v8694_v11, %v8207_v30 }
 0x6d9   : > { %v6079_v25 = vpack.c.bf16 %v2136_v12, %v2135_v0  ;;  %v6077_v54 = vpack.c.bf16 %v2132_v55, %v8143_v27  ;;  %v2286_v59 = vmul.f32 %v8696_v42, %v8187_v63  ;;  %v2287_v27 = vmul.f32 %v8698_v49, %v8190_v13 }
 0x6da   : > { %v6087_v31 = vpack.c.bf16 %v2285_v29, %v8194_v18  ;;  %v6078_v47 = vpack.c.bf16 %v2134_v39, %v2133_v48  ;;  %v6092_v34 = vpack.c.bf16 %v2366_v24, %v8217_v41  ;;  %v2288_v35 = vmul.f32 %v8700_v4, %v8225_v57  ;;  %v9374_v41 = vld [vmem:[#allocation25_spill] sm:$0xff] }
 0x6db   : > { %2248 = vrot.lane.b32.xlu1 %v6084_v28, %s7706_s20  ;;  %2686 = vrot.lane.b32.xlu0 %v8716_v46, %s7707_s14  ;;  %v6088_v3 = vpack.c.bf16 %v2287_v27, %v2286_v59  ;;  %v2289_v18 = vmul.f32 %v8702_v20, %v8230_v50  ;;  %v2367_v30 = vmul.f32 %v8696_v42, %v8212_v38  ;;  %v9385_v59 = vld [vmem:[#allocation32_spill] sm:$0xff] }
 0x6dc   : > { %v2368_v63 = vmul.f32 %v8698_v49, %v8215_v40  ;;  %v2490_v13 = vmul.f32 %v8234_v61, %v8694_v11  ;;  %v2491_v57 = vmul.f32 %v8696_v42, %v9374_v41  ;;  %v2369_v50 = vmul.f32 %v8700_v4, %v9375_v10  ;;  %v9377_v40 = vld [vmem:[#allocation28_spill] sm:$0xff] }
 0x6dd   : > { %v6089_v60 = vpack.c.bf16 %v2289_v18, %v2288_v35  ;;  %v2370_v38 = vmul.f32 %v8702_v20, %v9376_v33  ;;  %v2494_v32 = vmul.f32 %v8702_v20, %v9377_v40  ;;  %v2495_v61 = vmul.f32 %v8710_v51, %v9378_v7 }
 0x6de   : > { %v6093_v23 = vpack.c.bf16 %v2368_v63, %v2367_v30  ;;  %v6101_v6 = vpack.c.bf16 %v2491_v57, %v2490_v13  ;;  %v2492_v36 = vmul.f32 %v8698_v49, %v9379_v19  ;;  %v2493_v5 = vmul.f32 %v8700_v4, %v9380_v53  ;;  %v9388_v30 = vld [vmem:[#allocation36_spill] sm:$0xff]  ;;  %v9389_v13 = vld [vmem:[#allocation37_spill] sm:$0xff] }
 0x6df   : > { %2684 = vrot.lane.b32.xlu1 %v8727_v1, %s7707_s14  ;;  %2688 = vrot.lane.b32.xlu0 %v8731_v43, %s7707_s14  ;;  %v6094_v52 = vpack.c.bf16 %v2370_v38, %v2369_v50  ;;  %v6103_v28 = vpack.c.bf16 %v2495_v61, %v2494_v32  ;;  %v2574_v0 = vmul.f32 %v8700_v4, %v8313_v37  ;;  %v9391_v50 = vld [vmem:[#allocation41_spill] sm:$0xff]  ;;  %v9392_v38 = vld [vmem:[#allocation38_spill] sm:$0xff]  ;;  %v9393_v32 = vld [vmem:[#allocation39_spill] sm:$0xff] }
 0x6e0   : > { %v2571_v12 = vmul.f32 %v8269_v56, %v8694_v11  ;;  %v2572_v55 = vmul.f32 %v8696_v42, %v8301_v14  ;;  %v2726_v29 = vmul.f32 %v8698_v49, %v8345_v45  ;;  %v2575_v37 = vmul.f32 %v8702_v20, %v8326_v17  ;;  %v9394_v61 = vld [vmem:[#allocation22_spill] sm:$0xff] }
 0x6e1   : > { %v2576_v56 = vmul.f32 %v8710_v51, %v8331_v8  ;;  %v2139_v14 = vmul.f32 %v8125_v15, %v8721_v9  ;;  %v9383_v8 = vld [vmem:[#allocation34_spill] sm:$0xff]  ;;  %v2137_v27 = vmul.f32 %v8710_v51, %v9385_v59  ;;  %v2728_v63 = vmul.f32 %v8702_v20, %v9388_v30 }
 0x6e2   : > { %v2290_v24 = vmul.f32 %v8710_v51, %v9383_v8  ;;  %v2729_v41 = vmul.f32 %v8710_v51, %v9389_v13  ;;  %v2372_v33 = vmul.f32 %v8723_v58, %v9391_v50  ;;  %v2496_v40 = vmul.f32 %v8723_v58, %v9392_v38 }
 0x6e3   : > { %2252 = vrot.lane.b32.xlu1 %v6086_v21, %s7706_s20  ;;  %2250 = vrot.lane.b32.xlu0 %v6085_v16, %s7706_s20  ;;  %v2573_v21 = vmul.f32 %v8698_v49, %v8310_v2  ;;  %v6102_v16 = vpack.c.bf16 %v2493_v5, %v2492_v36  ;;  %v2727_v2 = vmul.f32 %v8700_v4, %v8348_v26  ;;  %v9381_v49 = vld [vmem:[#allocation30_spill] sm:$0xff]  ;;  %v9382_v4 = vld [vmem:[#allocation31_spill] sm:$0xff]  ;;  %v9397_v5 = vld [vmem:[#allocation44_spill] sm:$0xff]  ;;  %s9129_s20 = scalar_lea.vmem [#allocation13], %s5809_s16  ;;  %s6121_s16 = sshll.u32 %s7779_s11, 10 }
 0x6e4   : > { %v6108_v45 = vpack.c.bf16 %v2576_v56, %v2575_v37  ;;  %v2724_v26 = vmul.f32 %v9381_v49, %v8694_v11  ;;  %v2725_v39 = vmul.f32 %v8696_v42, %v9382_v4  ;;  %v6081_v17 = vpack.c.bf16 %v2139_v14, %v2139_v14  ;;  %v9387_v42 = vld [vmem:[#allocation21_spill] sm:$0xff]  ;;  %v9396_v36 = vld [vmem:[#allocation43_spill] sm:$0xff]  ;;  %s9187_s25 = scalar_lea.hbm %s9270_s7, %s6121_s16  ;;  %s5644_s23 = sshll.u32 %s9129_s20, 4  ;;  %s5645_s23 = int_to_ptr.vmem [resolvable:$true] %s5644_s23 }
 0x6e5   : > { %v6117_v48 = vpack.c.bf16 %v2727_v2, %v2726_v29  ;;  %v2292_v35 = vmul.f32 %v9387_v42, %v8721_v9  ;;  %v2497_v7 = vmul.f32 %v8721_v9, %v9393_v32  ;;  %v2577_v53 = vmul.f32 %v8723_v58, %v9396_v36 }
 0x6e7   : > { %2176 = vrot.lane.b32.xlu0 %v6079_v25, %s7705_s15  ;;  %2172 = vrot.lane.b32.xlu1 %v6077_v54, %s7705_s15  ;;  %v6107_v25 = vpack.c.bf16 %v2574_v0, %v2573_v21  ;;  %v6106_v54 = vpack.c.bf16 %v2572_v55, %v2571_v12  ;;  %v6091_v57 = vpack.c.bf16 %v2292_v35, %v2292_v35  ;;  %v9398_v0 = vld [vmem:[#allocation45_spill] sm:$0xff]  ;;  %v9399_v55 = vld [vmem:[#allocation46_spill] sm:$0xff] }
 0x6e8   : > { %v2730_v12 = vmul.f32 %v8723_v58, %v9398_v0  ;;  %v2731_v29 = vmul.f32 %v8721_v9, %v9399_v55 }
 0x6ea   : > { %v6119_v2 = vpack.c.bf16 %v2731_v29, %v2730_v12 }
 0x6eb   : > { %2325 = vrot.lane.b32.xlu0 %v6087_v31, %s7704_s13  ;;  %2174 = vrot.lane.b32.xlu1 %v6078_v47, %s7705_s15  ;;  %v6116_v31 = vpack.c.bf16 %v2725_v39, %v2724_v26  ;;  %v9384_v47 = vld [vmem:[#allocation35_spill] sm:$0xff] }
 0x6ec   : > { %v2291_v15 = vmul.f32 %v8723_v58, %v9384_v47 }
 0x6ef   : > { %2406 = vrot.lane.b32.xlu0 %v6092_v34, %s7703_s9  ;;  %2327 = vrot.lane.b32.xlu1 %v6088_v3, %s7704_s13  ;;  %v9386_v34 = vld [vmem:[#allocation33_spill] sm:$0xff]  ;;  %v6090_v3 = vpack.c.bf16 %v2291_v15, %v2290_v24 }
 0x6f0   : > { %v2138_v11 = vmul.f32 %v8723_v58, %v9386_v34 }
 0x6f2   : > { %v6080_v18 = vpack.c.bf16 %v2138_v11, %v2137_v27 }
 0x6f3   : > { %2329 = vrot.lane.b32.xlu0 %v6089_v60, %s7704_s13  ;;  %2408 = vrot.lane.b32.xlu1 %v6093_v23, %s7703_s9  ;;  %v6118_v60 = vpack.c.bf16 %v2729_v41, %v2728_v63  ;;  %v9390_v23 = vld [vmem:[#allocation40_spill] sm:$0xff] }
 0x6f4   : > { %v2371_v10 = vmul.f32 %v8710_v51, %v9390_v23  ;;  %v6104_v51 = vpack.c.bf16 %v2497_v7, %v2496_v40 }
 0x6f6   : > { %v6095_v20 = vpack.c.bf16 %v2372_v33, %v2371_v10 }
 0x6f7   : > { %2531 = vrot.lane.b32.xlu0 %v6101_v6, %s7702_s26  ;;  %2410 = vrot.lane.b32.xlu1 %v6094_v52, %s7703_s9  ;;  %v2373_v6 = vmul.f32 %v9394_v61, %v8721_v9  ;;  %v9395_v52 = vld [vmem:[#allocation42_spill] sm:$0xff] }
 0x6f9   : > { %v6096_v19 = vpack.c.bf16 %v2373_v6, %v2373_v6 }
 0x6fb   : > { %2535 = vrot.lane.b32.xlu0 %v6103_v28, %s7702_s26  ;;  %2533 = vrot.lane.b32.xlu1 %v6102_v16, %s7702_s26  ;;  %v2578_v28 = vmul.f32 %v8721_v9, %v9397_v5  ;;  %v8867_v16 = vpack.c.bf16 %v8721_v9, %v8723_v58  ;;  %v9401_v58 = vld [vmem:[#allocation47_spill] sm:$0xff]  ;;  %v8884_v9 = vpop.permute.xlu1 %2539 }
 0x6fd   : > { %v6109_v21 = vpack.c.bf16 %v2578_v28, %v2577_v53 }
 0x6ff   : > { %2614 = vrot.lane.b32.xlu0 %v6107_v25, %s7701_s19  ;;  %2612 = vrot.lane.b32.xlu1 %v6106_v54, %s7701_s19  ;;  %v9400_v25 = vmov 0.0|0.0   ;;  %v2833_v54 = vld [vmem:[%s9267_s4] sm:$0xff] }
 0x703   : > { %2767 = vrot.lane.b32.xlu0 %v6117_v48, %s7700_s12  ;;  %2616 = vrot.lane.b32.xlu1 %v6108_v45, %s7701_s19 }
 0x707   : > { %2180 = vrot.lane.b32.xlu0 %v6081_v17, %s7705_s15  ;;  %2765 = vrot.lane.b32.xlu1 %v6116_v31, %s7700_s12 }
 0x70b   : > { %2331 = vrot.lane.b32.xlu0 %v6090_v3, %s7704_s13  ;;  %2178 = vrot.lane.b32.xlu1 %v6080_v18, %s7705_s15 }
 0x70f   : > { %2333 = vrot.lane.b32.xlu0 %v6091_v57, %s7704_s13  ;;  %2769 = vrot.lane.b32.xlu1 %v6118_v60, %s7700_s12 }
 0x713   : > { %2620 = vrot.lane.b32.xlu0 %v9395_v52, %s7701_s19  ;;  %2412 = vrot.lane.b32.xlu1 %v6095_v20, %s7703_s9 }
 0x717   : > { %2537 = vrot.lane.b32.xlu0 %v6104_v51, %s7702_s26  ;;  %2414 = vrot.lane.b32.xlu1 %v6096_v19, %s7703_s9  ;;  %s7584_s26 = scalar_lea.vmem %s5645_s23, 1024  ;;  %s7711_s9 = smov [#allocation13]  }
 0x718   : > { %p7585_p6 = scmp.ne.s32.totalorder %s5645_s23, %s7584_s26 }
 0x71a   : > { %p7586_p7 = pnand %p7585_p6, %p9402_p5 }
 0x71b   : > { %2618 = vrot.lane.b32.xlu0 %v6109_v21, %s7701_s19  ;;  %2690 = vrot.lane.b32.xlu1 %v8867_v16, %s7707_s14 }
 0x71c   : > { %p7587_p9 = pneg %p7586_p7 }
 0x71f   : > { %2771 = vrot.lane.b32.xlu0 %v6119_v2, %s7700_s12  ;;  %2692 = vrot.lane.b32.xlu1 %v9400_v25, %s7707_s14 }
 0x723   : > { %2836 = vperm.xlu0 %7425, %v2833_v54   ;;  %2773 = vrot.lane.b32.xlu1 %v9401_v58, %s7700_s12  ;;  %s7588_s12 = sshll.u32 %s7711_s9, 4  ;;  %s7589_s12 = int_to_ptr.vmem [resolvable:$false] %s7588_s12 }
 0x724   : > { %s7590_s19 = scalar_lea.vmem %s7589_s12, 2048  ;;  %p7591_p12 = scmp.lt.s32.totalorder %s5645_s23, %s7589_s12 }
 0x725   : > { %p7592_p3 = scmp.lt.s32.totalorder %s7590_s19, %s7584_s26 }
 0x727   : > { %p7593_p13 = por %p7592_p3, %p7591_p12 }
 0x729   : > { %p7594_p0 = pnand %p7593_p13, %p7587_p9 }
 0x749   : > { %v2247_v37 = vpop.permute.xlu1 %2246  ;;  %v2245_v56 = vpop.permute.xlu0 %2244 }
 0x74a   : > { %v2255_v24 = vrot.slane %v2247_v37, 4  ;;  %v2254_v31 = vrot.slane %v2245_v56, 4 }
 0x74c   : > { %v2259_v42 = vsel %vm671_vm6, %v2254_v31, %v2255_v24 }
 0x74d   : > { %v8886_v14 = vpop.permute.xlu1 %2248  ;;  %v8888_v48 = vpop.permute.xlu0 %2686  ;;  %v2260_v57 = vsel %vm746_vm7, %v2245_v56, %v2259_v42 }
 0x74e   : > { %v2256_v8 = vrot.slane %v8886_v14, 4  ;;  %v2695_v31 = vrot.slane %v8888_v48, 4 }
 0x750   : > { %v2261_v34 = vsel %vm671_vm6, %v2255_v24, %v2256_v8 }
 0x751   : > { %v8890_v45 = vpop.permute.xlu1 %2684  ;;  %v8892_v49 = vpop.permute.xlu0 %2688  ;;  %v2262_v18 = vsel %vm746_vm7, %v2247_v37, %v2261_v34 }
 0x752   : > { %v2694_v55 = vrot.slane %v8890_v45, 4  ;;  %v2696_v34 = vrot.slane %v8892_v49, 4 }
 0x755   : > { %v8894_v26 = vpop.permute.xlu1 %2252  ;;  %v8896_v4 = vpop.permute.xlu0 %2250 }
 0x759   : > { %v8898_v39 = vpop.permute.xlu0 %2176  ;;  %v2173_v17 = vpop.permute.xlu1 %2172 }
 0x75a   : > { %v2184_v59 = vrot.slane %v8898_v39, 4  ;;  %v2182_v27 = vrot.slane %v2173_v17, 4 }
 0x75d   : > { %v2326_v47 = vpop.permute.xlu0 %2325  ;;  %v2175_v15 = vpop.permute.xlu1 %2174 }
 0x75e   : > { %v2183_v11 = vrot.slane %v2175_v15, 4  ;;  %v2335_v20 = vrot.slane %v2326_v47, 4 }
 0x760   : > { %v2187_v35 = vsel %vm671_vm6, %v2182_v27, %v2183_v11  ;;  %v2189_v3 = vsel %vm671_vm6, %v2183_v11, %v2184_v59  ;;  %v2699_v27 = vsel %vm671_vm6, %v2694_v55, %v2695_v31 }
 0x761   : > { %v2190_v30 = vsel %vm673_vm5, %v2175_v15, %v2189_v3  ;;  %v2407_v63 = vpop.permute.xlu0 %2406  ;;  %v2328_v13 = vpop.permute.xlu1 %2327  ;;  %v2188_v41 = vsel %vm673_vm5, %v2173_v17, %v2187_v35 }
 0x762   : > { %v5974_v60 = vcombine.low %v2190_v30, %v2262_v18  ;;  %v5975_v23 = vcombine.high %v2190_v30, %v2262_v18  ;;  %v2336_v10 = vrot.slane %v2328_v13, 4  ;;  %v5972_v50 = vcombine.low %v2188_v41, %v2260_v57 }
 0x763   : > { %v5973_v33 = vcombine.high %v2188_v41, %v2260_v57  ;;  %v2416_v32 = vrot.slane %v2407_v63, 4 }
 0x764   : > { %3087 = vmatprep.subr.bf16.mxu1 %v5975_v23  ;;  %v2340_v7 = vsel %vm671_vm6, %v2335_v20, %v2336_v10  ;;  %v2700_v23 = vsel %vm1331_vm8, %v8890_v45, %v2699_v27  ;;  %v8981_v27 = vld [vmem:[#allocation9] sm:$0xf] }
 0x765   : > { %3046 = vmatprep.subr.bf16.mxu0 %v5973_v33  ;;  %v8914_v38 = vpop.permute.xlu0 %2329  ;;  %3088 = vmatpush1.bf16.msra.mxu1 %v5974_v60  ;;  %v2409_v40 = vpop.permute.xlu1 %2408  ;;  %v2341_v36 = vsel %vm869_vm4, %v2326_v47, %v2340_v7 }
 0x766   : > { %v2337_v61 = vrot.slane %v8914_v38, 4  ;;  %3047 = vmatpush1.bf16.msra.mxu0 %v5972_v50  ;;  %v2417_v6 = vrot.slane %v2409_v40, 4 }
 0x768   : > { %v2421_v52 = vsel %vm671_vm6, %v2416_v32, %v2417_v6  ;;  %v2342_v5 = vsel %vm671_vm6, %v2336_v10, %v2337_v61 }
 0x769   : > { %v2532_v51 = vpop.permute.xlu0 %2531  ;;  %v8919_v19 = vpop.permute.xlu1 %2410  ;;  %v2422_v53 = vsel %vm984_vm3, %v2407_v63, %v2421_v52  ;;  %v2343_v54 = vsel %vm869_vm4, %v2328_v13, %v2342_v5 }
 0x76a   : > { %v2418_v28 = vrot.slane %v8919_v19, 4  ;;  %v5980_v21 = vcombine.low %v2341_v36, %v2422_v53  ;;  %v5981_v0 = vcombine.high %v2341_v36, %v2422_v53  ;;  %v2541_v29 = vrot.slane %v2532_v51, 4 }
 0x76c   : > { %v2423_v12 = vsel %vm671_vm6, %v2417_v6, %v2418_v28  ;;  %3048 = vmatprep.subr.bf16.mxu0 %v5981_v0 }
 0x76d   : > { %v8931_v2 = vpop.permute.xlu0 %2535  ;;  %3049 = vmatpush1.bf16.msra.mxu0 %v5980_v21  ;;  %v2534_v25 = vpop.permute.xlu1 %2533  ;;  %v2424_v58 = vsel %vm984_vm3, %v2409_v40, %v2423_v12  ;;  %v2257_v21 = vrot.slane %v8896_v4, 4 }
 0x76e   : > { %v2543_v37 = vrot.slane %v8931_v2, 4  ;;  %v2542_v56 = vrot.slane %v2534_v25, 4  ;;  %v5982_v17 = vcombine.low %v2343_v54, %v2424_v58  ;;  %v5983_v24 = vcombine.high %v2343_v54, %v2424_v58 }
 0x770   : > { %v2546_v47 = vsel %vm671_vm6, %v2541_v29, %v2542_v56  ;;  %v2548_v15 = vsel %vm671_vm6, %v2542_v56, %v2543_v37  ;;  %3089 = vmatprep.subr.bf16.mxu1 %v5983_v24  ;;  %v2258_v56 = vrot.slane %v8894_v26, 4 }
 0x771   : > { %v2549_v11 = vsel %vm910_vm2, %v2534_v25, %v2548_v15  ;;  %v2615_v42 = vpop.permute.xlu0 %2614  ;;  %3090 = vmatpush1.bf16.msra.mxu1 %v5982_v17  ;;  %v2613_v35 = vpop.permute.xlu1 %2612  ;;  %v2547_v3 = vsel %vm910_vm2, %v2532_v51, %v2546_v47 }
 0x772   : > { %v5990_v18 = vcombine.low %v8716_v46, %v2549_v11  ;;  %v5991_v30 = vcombine.high %v8716_v46, %v2549_v11  ;;  %v2623_v63 = vrot.slane %v2615_v42, 4  ;;  %v2622_v13 = vrot.slane %v2613_v35, 4 }
 0x773   : > { %v5988_v41 = vcombine.low %v8727_v1, %v2547_v3  ;;  %v5989_v57 = vcombine.high %v8727_v1, %v2547_v3  ;;  %v2701_v46 = vsel %vm671_vm6, %v2695_v31, %v2696_v34 }
 0x774   : > { %v2627_v60 = vsel %vm671_vm6, %v2622_v13, %v2623_v63  ;;  %3091 = vmatprep.subr.bf16.mxu1 %v5991_v30  ;;  %v2702_v52 = vsel %vm1331_vm8, %v8888_v48, %v2701_v46  ;;  %v2263_v48 = vsel %vm671_vm6, %v2256_v8, %v2257_v21 }
 0x775   : > { %v2628_v10 = vsel %vm795_vm1, %v2613_v35, %v2627_v60  ;;  %3050 = vmatprep.subr.bf16.mxu0 %v5989_v57  ;;  %v2768_v50 = vpop.permute.xlu0 %2767  ;;  %3092 = vmatpush1.bf16.msra.mxu1 %v5990_v18  ;;  %v8953_v33 = vpop.permute.xlu1 %2616  ;;  %v2265_v18 = vsel %vm671_vm6, %v2257_v21, %v2258_v56 }
 0x776   : > { %v5996_v20 = vcombine.low %v2628_v10, %v2700_v23  ;;  %v5997_v40 = vcombine.high %v2628_v10, %v2700_v23  ;;  %3051 = vmatpush1.bf16.msra.mxu0 %v5988_v41  ;;  %v2624_v1 = vrot.slane %v8953_v33, 4  ;;  %v2776_v51 = vrot.slane %v2768_v50, 4 }
 0x777   : > { %v2266_v10 = vsel %vm746_vm7, %v8896_v4, %v2265_v18 }
 0x778   : > { %v2629_v45 = vsel %vm671_vm6, %v2623_v63, %v2624_v1  ;;  %3052 = vmatprep.subr.bf16.mxu0 %v5997_v40 }
 0x779   : > { %v2181_v32 = vpop.permute.xlu0 %2180  ;;  %v2766_v7 = vpop.permute.xlu1 %2765  ;;  %v2630_v6 = vsel %vm795_vm1, %v2615_v42, %v2629_v45  ;;  %v2545_v45 = vrot.slane %v8884_v9, 4 }
 0x77a   : > { %3053 = vmatpush1.bf16.msra.mxu0 %v5996_v20  ;;  %v2775_v36 = vrot.slane %v2766_v7, 4  ;;  %v5998_v53 = vcombine.low %v2630_v6, %v2702_v52  ;;  %v5999_v5 = vcombine.high %v2630_v6, %v2702_v52  ;;  %v2186_v17 = vrot.slane %v2181_v32, 4 }
 0x77c   : > { %v2780_v0 = vsel %vm671_vm6, %v2775_v36, %v2776_v51  ;;  %3093 = vmatprep.subr.bf16.mxu1 %v5999_v5 }
 0x77d   : > { %v2781_v12 = vsel %vm598_vm0, %v2766_v7, %v2780_v0  ;;  %v8968_v55 = vpop.permute.xlu0 %2331  ;;  %3094 = vmatpush1.bf16.msra.mxu1 %v5998_v53  ;;  %v2179_v29 = vpop.permute.xlu1 %2178 }
 0x77e   : > { %v6004_v25 = vcombine.low %v2781_v12, %v2781_v12  ;;  %v6005_v54 = vcombine.high %v2781_v12, %v2781_v12  ;;  %v2185_v58 = vrot.slane %v2179_v29, 4  ;;  %v2338_v26 = vrot.slane %v8968_v55, 4 }
 0x780   : > { %v2191_v24 = vsel %vm671_vm6, %v2184_v59, %v2185_v58  ;;  %6012 = vmatprep.subr.msk.bf16.mxu0 %vm671_vm6, %v6005_v54  ;;  %v3023_v31 = vsel %vm671_vm6, %v6004_v25, 0  ;;  %v2193_v11 = vsel %vm671_vm6, %v2185_v58, %v2186_v17  ;;  %v2264_v59 = vsel %vm746_vm7, %v8886_v14, %v2263_v48 }
 0x781   : > { %v2334_v47 = vpop.permute.xlu0 %2333  ;;  %3055 = vmatpush1.bf16.msra.mxu0 %v3023_v31  ;;  %v8979_v15 = vpop.permute.xlu1 %2769  ;;  %v2192_v8 = vsel %vm673_vm5, %v8898_v39, %v2191_v24  ;;  %v2194_v39 = vsel %vm673_vm5, %v2179_v29, %v2193_v11  ;;  %v2344_v14 = vsel %vm671_vm6, %v2337_v61, %v2338_v26 }
 0x782   : > { %v2777_v42 = vrot.slane %v8979_v15, 4  ;;  %v5976_v35 = vcombine.low %v2192_v8, %v2264_v59  ;;  %v5977_v3 = vcombine.high %v2192_v8, %v2264_v59  ;;  %v2339_v46 = vrot.slane %v2334_v47, 4 }
 0x783   : > { %v5979_v20 = vcombine.high %v2194_v39, %v2266_v10  ;;  %v2345_v7 = vsel %vm869_vm4, %v8914_v38, %v2344_v14  ;;  %v5978_v36 = vcombine.low %v2194_v39, %v2266_v10 }
 0x784   : > { %v2782_v30 = vsel %vm671_vm6, %v2776_v51, %v2777_v42  ;;  %6013 = vmatmul.mubr.msk.bf16.vlgmr.msra.gmra.mrb[12].mxu0 %vm1685_vm9, %v8981_v27  ;;  %3128 = vmatprep.subr.bf16.mxu0 %v5977_v3  ;;  %v2346_v53 = vsel %vm671_vm6, %v2338_v26, %v2339_v46 }
 0x785   : > { %v2621_v63 = vpop.permute.xlu0 %2620  ;;  %v2413_v13 = vpop.permute.xlu1 %2412  ;;  %v2783_v41 = vsel %vm598_vm0, %v2768_v50, %v2782_v30  ;;  %3160 = vmatprep.mubr.bf16.mxu0 %v9367_v44  ;;  %3129 = vmatpush1.bf16.msra.mxu0 %v5976_v35  ;;  %v2347_v58 = vsel %vm869_vm4, %v8968_v55, %v2346_v53 }
 0x786   : > { %v2419_v57 = vrot.slane %v2413_v13, 4  ;;  %v6007_v60 = vcombine.high %v2783_v41, %v2783_v41  ;;  %v6006_v23 = vcombine.low %v2783_v41, %v2783_v41 }
 0x788   : > { %v2425_v40 = vsel %vm671_vm6, %v2418_v28, %v2419_v57  ;;  %6014 = vmatprep.subr.msk.bf16.mxu1 %vm671_vm6, %v6007_v60  ;;  %v3029_v50 = vsel %vm671_vm6, %v6006_v23, 0 }
 0x789   : > { %v2538_v61 = vpop.permute.xlu0 %2537  ;;  %3096 = vmatpush1.bf16.msra.mxu1 %v3029_v50  ;;  %v2415_v32 = vpop.permute.xlu1 %2414  ;;  %v2426_v4 = vsel %vm984_vm3, %v8919_v19, %v2425_v40 }
 0x78a   : > { %v2544_v6 = vrot.slane %v2538_v61, 4  ;;  %v2420_v52 = vrot.slane %v2415_v32, 4  ;;  %3169 = vmatprep.subr.bf16.mxu1 %v5979_v20  ;;  %v5984_v51 = vcombine.low %v2345_v7, %v2426_v4  ;;  %v5985_v28 = vcombine.high %v2345_v7, %v2426_v4 }
 0x78c   : > { %v2550_v9 = vsel %vm671_vm6, %v2543_v37, %v2544_v6  ;;  %v2552_v5 = vsel %vm671_vm6, %v2544_v6, %v2545_v45  ;;  %v2427_v21 = vsel %vm671_vm6, %v2419_v57, %v2420_v52  ;;  %6015 = vmatmul.mubr.msk.bf16.vlgmr.msra.gmra.mrb[12].mxu1 %vm1685_vm9, %v8981_v27  ;;  %3130 = vmatprep.subr.bf16.mxu0 %v5985_v28  ;;  %v2626_v37 = vrot.slane %v2621_v63, 4 }
 0x78d   : > { %v2553_v38 = vsel %vm910_vm2, %v2538_v61, %v2552_v5  ;;  %v2619_v19 = vpop.permute.xlu0 %2618  ;;  %3131 = vmatpush1.bf16.msra.mxu0 %v5984_v51  ;;  %3170 = vmatpush1.bf16.msra.mxu1 %v5978_v36  ;;  %v2691_v0 = vpop.permute.xlu1 %2690  ;;  %v2551_v12 = vsel %vm910_vm2, %v8931_v2, %v2550_v9  ;;  %v2428_v29 = vsel %vm984_vm3, %v2413_v13, %v2427_v21 }
 0x78e   : > { %v2625_v25 = vrot.slane %v2619_v19, 4  ;;  %v2697_v54 = vrot.slane %v2691_v0, 4  ;;  %3201 = vmatprep.mubr.bf16.mxu1 %v9367_v44  ;;  %v5992_v48 = vcombine.low %v8731_v43, %v2551_v12  ;;  %v5993_v56 = vcombine.high %v8731_v43, %v2551_v12 }
 0x78f   : > { %v5986_v17 = vcombine.low %v2347_v58, %v2428_v29  ;;  %v5987_v24 = vcombine.high %v2347_v58, %v2428_v29  ;;  %v5995_v31 = vcombine.high %v8867_v16, %v2553_v38 }
 0x790   : > { %v2631_v2 = vsel %vm671_vm6, %v2624_v1, %v2625_v25  ;;  %v2703_v47 = vsel %vm671_vm6, %v2696_v34, %v2697_v54  ;;  %v2633_v55 = vsel %vm671_vm6, %v2625_v25, %v2626_v37  ;;  %3132 = vmatprep.subr.bf16.mxu0 %v5993_v56  ;;  %v5994_v34 = vcombine.low %v8867_v16, %v2553_v38 }
 0x791   : > { %3171 = vmatprep.subr.bf16.mxu1 %v5987_v24  ;;  %v2772_v44 = vpop.permute.xlu0 %2771  ;;  %v2693_v8 = vpop.permute.xlu1 %2692  ;;  %v2632_v43 = vsel %vm795_vm1, %v8953_v33, %v2631_v2  ;;  %v2704_v26 = vsel %vm1331_vm8, %v8892_v49, %v2703_v47  ;;  %3133 = vmatpush1.bf16.msra.mxu0 %v5992_v48  ;;  %v2634_v33 = vsel %vm795_vm1, %v2619_v19, %v2633_v55 }
 0x792   : > { %v2778_v11 = vrot.slane %v2772_v44, 4  ;;  %3172 = vmatpush1.bf16.msra.mxu1 %v5986_v17  ;;  %v2698_v1 = vrot.slane %v2693_v8, 4  ;;  %v6000_v59 = vcombine.low %v2632_v43, %v2704_v26  ;;  %v6001_v35 = vcombine.high %v2632_v43, %v2704_v26 }
 0x793   : > { %3173 = vmatprep.subr.bf16.mxu1 %v5995_v31 }
 0x794   : > { %v2784_v3 = vsel %vm671_vm6, %v2777_v42, %v2778_v11  ;;  %v2705_v18 = vsel %vm671_vm6, %v2697_v54, %v2698_v1  ;;  %3134 = vmatprep.subr.bf16.mxu0 %v6001_v35 }
 0x795   : > { %v2774_v30 = vpop.permute.xlu1 %2773  ;;  %v2785_v49 = vsel %vm598_vm0, %v8979_v15, %v2784_v3  ;;  %v2706_v39 = vsel %vm1331_vm8, %v2691_v0, %v2705_v18  ;;  %3135 = vmatpush1.bf16.msra.mxu0 %v6000_v59 }
 0x796   : > { %3174 = vmatpush1.bf16.msra.mxu1 %v5994_v34  ;;  %v2779_v63 = vrot.slane %v2774_v30, 4  ;;  %v6009_v13 = vcombine.high %v2785_v49, %v2785_v49  ;;  %v6002_v16 = vcombine.low %v2634_v33, %v2706_v39  ;;  %v6003_v41 = vcombine.high %v2634_v33, %v2706_v39 }
 0x797   : > { %v6008_v14 = vcombine.low %v2785_v49, %v2785_v49 }
 0x798   : > { %v2786_v42 = vsel %vm671_vm6, %v2778_v11, %v2779_v63  ;;  %6016 = vmatprep.subr.msk.bf16.mxu0 %vm671_vm6, %v6009_v13  ;;  %3175 = vmatprep.subr.bf16.mxu1 %v6003_v41 }
 0x799   : > { %v2787_v57 = vsel %vm598_vm0, %v2772_v44, %v2786_v42  ;;  %v3035_v60 = vsel %vm671_vm6, %v6008_v14, 0 }
 0x79a   : > { %3137 = vmatpush1.bf16.msra.mxu0 %v3035_v60  ;;  %3176 = vmatpush1.bf16.msra.mxu1 %v6002_v16  ;;  %v6011_v15 = vcombine.high %v2787_v57, %v2787_v57  ;;  %v6010_v23 = vcombine.low %v2787_v57, %v2787_v57  ;;  %v6022_v57 = vld [vmem:[%s9267_s4 + $0x8] sm:$0xff] }
 0x79b   : > { %6141 = vmatprep.subr.mxu0 %v9373_v22 }
 0x79c   : > { %6018 = vmatprep.subr.msk.bf16.mxu1 %vm671_vm6, %v6011_v15  ;;  %v3041_v10 = vsel %vm671_vm6, %v6010_v23, 0  ;;  %v7431_v15 = vld [vmem:[#allocation10] sm:$0xff]  ;;  %v3454_v23 = vld [vmem:[#allocation12 + $0x8] sm:$0xff] }
 0x79d   : > { %6017 = vmatmul.mubr.msk.bf16.vlgmr.msra.gmra.mrb[16].mxu0 %vm1685_vm9, %v8981_v27 }
 0x79e   : > { %3178 = vmatpush1.bf16.msra.mxu1 %v3041_v10  ;;  %6143 = vmatprep.mubr.msk.f32.mxu0 %vm7710_vm10, %v9373_v22  ;;  %v3456_v10 = vld [vmem:[#allocation12 + $0x18] sm:$0xff] }
 0x79f   : > { %6146 = vmatprep.subr.mxu1 %v9373_v22 }
 0x7a1   : > { %6019 = vmatmul.mubr.msk.bf16.vlgmr.msra.gmra.mrb[16].mxu1 %vm1685_vm9, %v8981_v27 }
 0x7a2   : > { %6148 = vmatprep.mubr.msk.f32.mxu1 %vm7710_vm10, %v9373_v22  ;;  %v2837_v4 = vpop.permute.xlu0 %2836 }
 0x857   : > { %v3080_v46 = vpop.f32.mrb[12].mxu0 }
 0x858   : > { %v3082_v20 = vpop.f32.mrb[13].mxu0  ;;  %v3081_v6 = vadd.f32 %v3080_v46, %v2837_v4  ;;  %v3995_v46 = vld [vmem:[#allocation12 + $0x808] sm:$0xff] }
 0x859   : > { %v3084_v40 = vpop.f32.mrb[14].mxu0  ;;  %v3083_v52 = vadd.f32 %v3082_v20, %v2837_v4  ;;  %v6151_v20 = vpack.c.bf16 %v3456_v10, %v3454_v23  ;;  %v4012_v10 = vld [vmem:[#allocation12 + $0x890] sm:$0xff] }
 0x85a   : > { %v3085_v50 = vpop.f32.mrb[15].mxu0  ;;  %v3997_v40 = vld [vmem:[#allocation12 + $0x818] sm:$0xff] }
 0x85b   : > { %v3210_v28 = vadd.f32 %v3083_v52, %v3081_v6  ;;  %v3453_v50 = vld [vmem:[#allocation12] sm:$0xff] }
 0x85f   : > { %v3121_v45 = vpop.f32.mrb[12].mxu1 }
 0x860   : > { %v3123_v61 = vpop.f32.mrb[13].mxu1  ;;  %v3122_v51 = vadd.f32 %v3121_v45, %v2837_v4  ;;  %v3455_v45 = vld [vmem:[#allocation12 + $0x10] sm:$0xff] }
 0x861   : > { %v3125_v32 = vpop.f32.mrb[14].mxu1  ;;  %v3124_v53 = vadd.f32 %v3123_v61, %v2837_v4  ;;  %v6407_v61 = vpack.c.bf16 %v3997_v40, %v3995_v46  ;;  %v3474_v46 = vld [vmem:[#allocation12 + $0xa8] sm:$0xff] }
 0x862   : > { %v3126_v7 = vpop.f32.mrb[15].mxu1  ;;  %v3211_v36 = vadd.f32 %v3210_v28, %v3122_v51  ;;  %v6153_v32 = vpack.c.bf16 %v3455_v45, %v3453_v50  ;;  %v3999_v28 = vld [vmem:[#allocation12 + $0x828] sm:$0xff]  ;;  %v4017_v50 = vld [vmem:[#allocation12 + $0x8b8] sm:$0xff] }
 0x863   : > { %v3994_v7 = vld [vmem:[#allocation12 + $0x800] sm:$0xff]  ;;  %v4015_v40 = vld [vmem:[#allocation12 + $0x8a8] sm:$0xff] }
 0x864   : > { %v3212_v27 = vadd.f32 %v3211_v36, %v3124_v53  ;;  %v4001_v36 = vld [vmem:[#allocation12 + $0x838] sm:$0xff] }
 0x870   : > { %v3162_v9 = vpop.f32.mrb[16].mxu0 }
 0x871   : > { %v3163_v5 = vadd.f32 %v3162_v9, %v2837_v4  ;;  %v3164_v21 = vpop.f32.mrb[17].mxu0  ;;  %v6411_v9 = vpack.c.bf16 %v4001_v36, %v3999_v28  ;;  %v3478_v28 = vld [vmem:[#allocation12 + $0xc8] sm:$0xff]  ;;  %v3480_v36 = vld [vmem:[#allocation12 + $0xd8] sm:$0xff] }
 0x872   : > { %v3165_v22 = vadd.f32 %v3164_v21, %v2837_v4  ;;  %v3166_v38 = vpop.f32.mrb[18].mxu0  ;;  %v3998_v21 = vld [vmem:[#allocation12 + $0x820] sm:$0xff] }
 0x873   : > { %v3213_v19 = vadd.f32 %v3212_v27, %v3163_v5  ;;  %v3167_v0 = vpop.f32.mrb[19].mxu0  ;;  %v3457_v27 = vld [vmem:[#allocation12 + $0x20] sm:$0xff]  ;;  %v4000_v38 = vld [vmem:[#allocation12 + $0x830] sm:$0xff] }
 0x874   : > { %v3203_v12 = vpop.f32.mrb[16].mxu1  ;;  %v3464_v0 = vld [vmem:[#allocation12 + $0x58] sm:$0xff] }
 0x875   : > { %v3214_v29 = vadd.f32 %v3213_v19, %v3165_v22  ;;  %v3204_v37 = vadd.f32 %v3203_v12, %v2837_v4  ;;  %v3205_v25 = vpop.f32.mrb[17].mxu1  ;;  %v3462_v19 = vld [vmem:[#allocation12 + $0x48] sm:$0xff]  ;;  %v6413_v12 = vpack.c.bf16 %v4000_v38, %v3998_v21  ;;  %v6175_v21 = vpack.c.bf16 %v3480_v36, %v3478_v28  ;;  %v3479_v38 = vld [vmem:[#allocation12 + $0xd0] sm:$0xff]  ;;  %v4034_v36 = vld [vmem:[#allocation12 + $0x940] sm:$0xff] }
 0x876   : > { %v3206_v54 = vadd.f32 %v3205_v25, %v2837_v4  ;;  %v3207_v58 = vpop.f32.mrb[18].mxu1  ;;  %v3996_v4 = vld [vmem:[#allocation12 + $0x810] sm:$0xff]  ;;  %v4005_v25 = vld [vmem:[#allocation12 + $0x858] sm:$0xff] }
 0x877   : > { %v3215_v48 = vadd.f32 %v3214_v29, %v3204_v37  ;;  %v3208_v56 = vpop.f32.mrb[19].mxu1  ;;  %v6159_v29 = vpack.c.bf16 %v3464_v0, %v3462_v19  ;;  %v4018_v19 = vld [vmem:[#allocation12 + $0x8c0] sm:$0xff]  ;;  %v3495_v28 = vld [vmem:[#allocation12 + $0x150] sm:$0xff] }
 0x878   : > { %v4002_v56 = vld [vmem:[#allocation12 + $0x840] sm:$0xff] }
 0x879   : > { %v3216_v17 = vadd.f32 %v3215_v48, %v3206_v54  ;;  %v3463_v48 = vld [vmem:[#allocation12 + $0x50] sm:$0xff] }
 0x87b   : > { %3217 = vadd.xlane.f32.xlu1 %v3216_v17  ;;  %v4004_v17 = vld [vmem:[#allocation12 + $0x850] sm:$0xff] }
 0x908   : > { %v3218_v24 = vpop.xlane.xlu1 %3217 }
 0x909   : > { %6142 = vmatpush3.msra.mxu0 %v3218_v24 }
 0x90a   : > { %6144 = vmatmul.mubr.msk.f32.vlgmr.msra.gmra.mrb[10].mxu0 %vm1888_vm11, %v8678_v62  ;;  %6152 = vmatprep.subr.bf16.mxu0 %v6151_v20  ;;  %v3476_v20 = vld [vmem:[#allocation12 + $0xb8] sm:$0xff] }
 0x90b   : > { %6154 = vmatpush1.bf16.msra.mxu0 %v6153_v32  ;;  %v6171_v32 = vpack.c.bf16 %v3476_v20, %v3474_v46  ;;  %v3491_v46 = vld [vmem:[#allocation12 + $0x130] sm:$0xff]  ;;  %v4030_v20 = vld [vmem:[#allocation12 + $0x920] sm:$0xff] }
 0x9dd   : > { %v3289_v31 = vpop.f32.mrb[10].mxu0 }
 0x9de   : > { %3295 = vperm.xlu0 %7425, %v3289_v31   ;;  %v6145_v2 = vpop.f32.mrb[11].mxu0  ;;  %v3466_v31 = vld [vmem:[#allocation12 + $0x68] sm:$0xff] }
 0x9df   : > { %v3468_v2 = vld [vmem:[#allocation12 + $0x78] sm:$0xff] }
 0xa5d   : > { %v3296_v47 = vpop.permute.xlu0 %3295 }
 0xa5e   : > { %v9070_v55 = vsub.f32 %v3081_v6, %v3296_v47  ;;  %v9072_v44 = vsub.f32 %v3083_v52, %v3296_v47  ;;  %v9074_v8 = vsub.f32 %v3122_v51, %v3296_v47  ;;  %v9076_v43 = vsub.f32 %v3124_v53, %v3296_v47  ;;  %v3458_v6 = vld [vmem:[#allocation12 + $0x28] sm:$0xff]  ;;  %v3460_v51 = vld [vmem:[#allocation12 + $0x38] sm:$0xff] }
 0xa5f   : > { %v9082_v1 = vsub.f32 %v3163_v5, %v3296_v47  ;;  %v9086_v35 = vsub.f32 %v3165_v22, %v3296_v47  ;;  %v9090_v18 = vsub.f32 %v3204_v37, %v3296_v47  ;;  %v9094_v49 = vsub.f32 %v3206_v54, %v3296_v47  ;;  %v3459_v5 = vld [vmem:[#allocation12 + $0x30] sm:$0xff]  ;;  %v4003_v37 = vld [vmem:[#allocation12 + $0x848] sm:$0xff]  ;;  %v3461_v54 = vld [vmem:[#allocation12 + $0x40] sm:$0xff] }
 0xa60   : > { %v3306_v26 = vmul.f32 %v9070_v55, %v9070_v55  ;;  %v3307_v11 = vmul.f32 %v9072_v44, %v9072_v44  ;;  %v3308_v62 = vmul.f32 %v9074_v8, %v9074_v8  ;;  %v3309_v34 = vmul.f32 %v9076_v43, %v9076_v43  ;;  %v4007_v47 = vld [vmem:[#allocation12 + $0x868] sm:$0xff] }
 0xa61   : > { %v3310_v33 = vmul.f32 %v9082_v1, %v9082_v1  ;;  %v3311_v39 = vmul.f32 %v9086_v35, %v9086_v35  ;;  %v3312_v13 = vmul.f32 %v9090_v18, %v9090_v18  ;;  %v3313_v41 = vmul.f32 %v9094_v49, %v9094_v49 }
 0xa62   : > { %v3314_v59 = vadd.f32 %v3307_v11, %v3306_v26  ;;  %v6409_v52 = vpack.c.bf16 %v3996_v4, %v3994_v7  ;;  %v6155_v53 = vpack.c.bf16 %v3460_v51, %v3458_v6  ;;  %v6157_v22 = vpack.c.bf16 %v3459_v5, %v3457_v27  ;;  %v3473_v7 = vld [vmem:[#allocation12 + $0xa0] sm:$0xff]  ;;  %v3475_v4 = vld [vmem:[#allocation12 + $0xb0] sm:$0xff] }
 0xa63   : > { %v6415_v58 = vpack.c.bf16 %v4005_v25, %v4003_v37  ;;  %v6161_v24 = vpack.c.bf16 %v3463_v48, %v3461_v54  ;;  %v6417_v26 = vpack.c.bf16 %v4004_v17, %v4002_v56  ;;  %v6163_v11 = vpack.c.bf16 %v3468_v2, %v3466_v31  ;;  %v4014_v6 = vld [vmem:[#allocation12 + $0x8a0] sm:$0xff]  ;;  %v4016_v51 = vld [vmem:[#allocation12 + $0x8b0] sm:$0xff]  ;;  %v3484_v37 = vld [vmem:[#allocation12 + $0xf8] sm:$0xff] }
 0xa64   : > { %v3315_v3 = vadd.f32 %v3314_v59, %v3308_v62  ;;  %6156 = vmatprep.subr.bf16.mxu0 %v6155_v53  ;;  %v4009_v62 = vld [vmem:[#allocation12 + $0x878] sm:$0xff]  ;;  %v3465_v59 = vld [vmem:[#allocation12 + $0x60] sm:$0xff]  ;;  %v4019_v53 = vld [vmem:[#allocation12 + $0x8c8] sm:$0xff]  ;;  %v6173_v27 = vpack.c.bf16 %v3475_v4, %v3473_v7  ;;  %v6429_v5 = vpack.c.bf16 %v4016_v51, %v4014_v6 }
 0xa65   : > { %6158 = vmatpush1.bf16.msra.mxu0 %v6157_v22  ;;  %v3477_v22 = vld [vmem:[#allocation12 + $0xc0] sm:$0xff]  ;;  %v4023_v25 = vld [vmem:[#allocation12 + $0x8e8] sm:$0xff]  ;;  %v4025_v54 = vld [vmem:[#allocation12 + $0x8f8] sm:$0xff] }
 0xa66   : > { %v3316_v30 = vadd.f32 %v3315_v3, %v3309_v34  ;;  %6160 = vmatprep.subr.bf16.mxu0 %v6159_v29  ;;  %v3467_v34 = vld [vmem:[#allocation12 + $0x70] sm:$0xff]  ;;  %v6419_v3 = vpack.c.bf16 %v4009_v62, %v4007_v47  ;;  %v3482_v29 = vld [vmem:[#allocation12 + $0xe8] sm:$0xff]  ;;  %v3481_v17 = vld [vmem:[#allocation12 + $0xe0] sm:$0xff]  ;;  %v6435_v2 = vpack.c.bf16 %v4025_v54, %v4023_v25 }
 0xa67   : > { %v6179_v56 = vpack.c.bf16 %v3484_v37, %v3482_v29  ;;  %v4022_v31 = vld [vmem:[#allocation12 + $0x8e0] sm:$0xff]  ;;  %v4024_v47 = vld [vmem:[#allocation12 + $0x8f0] sm:$0xff]  ;;  %v4027_v62 = vld [vmem:[#allocation12 + $0x908] sm:$0xff] }
 0xa68   : > { %v3317_v63 = vadd.f32 %v3316_v30, %v3310_v33  ;;  %v4006_v33 = vld [vmem:[#allocation12 + $0x860] sm:$0xff]  ;;  %v4008_v30 = vld [vmem:[#allocation12 + $0x870] sm:$0xff]  ;;  %v4037_v7 = vld [vmem:[#allocation12 + $0x958] sm:$0xff] }
 0xa69   : > { %6162 = vmatpush1.bf16.msra.mxu0 %v6161_v24  ;;  %v3483_v24 = vld [vmem:[#allocation12 + $0xf0] sm:$0xff]  ;;  %v3493_v51 = vld [vmem:[#allocation12 + $0x140] sm:$0xff] }
 0xa6a   : > { %v3318_v16 = vadd.f32 %v3317_v63, %v3311_v39  ;;  %v3470_v39 = vld [vmem:[#allocation12 + $0x88] sm:$0xff]  ;;  %v3472_v63 = vld [vmem:[#allocation12 + $0x98] sm:$0xff]  ;;  %6164 = vmatprep.subr.bf16.mxu0 %v6163_v11  ;;  %v3499_v29 = vld [vmem:[#allocation12 + $0x170] sm:$0xff] }
 0xa6b   : > { %v3488_v11 = vld [vmem:[#allocation12 + $0x118] sm:$0xff]  ;;  %v4038_v37 = vld [vmem:[#allocation12 + $0x960] sm:$0xff]  ;;  %v4040_v54 = vld [vmem:[#allocation12 + $0x970] sm:$0xff] }
 0xa6c   : > { %v3319_v14 = vadd.f32 %v3318_v16, %v3312_v13  ;;  %v4011_v13 = vld [vmem:[#allocation12 + $0x888] sm:$0xff]  ;;  %v4013_v16 = vld [vmem:[#allocation12 + $0x898] sm:$0xff] }
 0xa6d   : > { %v6423_v23 = vpack.c.bf16 %v4013_v16, %v4011_v13  ;;  %v4028_v16 = vld [vmem:[#allocation12 + $0x910] sm:$0xff] }
 0xa6e   : > { %v3320_v42 = vadd.f32 %v3319_v14, %v3313_v41  ;;  %v6165_v41 = vpack.c.bf16 %v3467_v34, %v3465_v59  ;;  %v6421_v14 = vpack.c.bf16 %v4008_v30, %v4006_v33  ;;  %v4029_v59 = vld [vmem:[#allocation12 + $0x918] sm:$0xff]  ;;  %v6181_v34 = vpack.c.bf16 %v3483_v24, %v3481_v17  ;;  %v3485_v30 = vld [vmem:[#allocation12 + $0x100] sm:$0xff] }
 0xa6f   : > { %v6439_v13 = vpack.c.bf16 %v4029_v59, %v4027_v62  ;;  %v4045_v17 = vld [vmem:[#allocation12 + $0x998] sm:$0xff]  ;;  %v4044_v59 = vld [vmem:[#allocation12 + $0x990] sm:$0xff] }
 0xa70   : > { %3321 = vadd.xlane.f32.xlu0 %v3320_v42  ;;  %v6167_v42 = vpack.c.bf16 %v3472_v63, %v3470_v39  ;;  %6166 = vmatpush1.bf16.msra.mxu0 %v6165_v41  ;;  %v3487_v39 = vld [vmem:[#allocation12 + $0x110] sm:$0xff]  ;;  %v4026_v63 = vld [vmem:[#allocation12 + $0x900] sm:$0xff]  ;;  %v3490_v41 = vld [vmem:[#allocation12 + $0x128] sm:$0xff] }
 0xa72   : > { %6168 = vmatprep.subr.bf16.mxu0 %v6167_v42  ;;  %v4031_v42 = vld [vmem:[#allocation12 + $0x928] sm:$0xff] }
 0xa86   : > { %3411 = vperm.xlu0 %7425, %v6022_v57   ;;  %v3469_v57 = vld [vmem:[#allocation12 + $0x80] sm:$0xff] }
 0xafd   : > { %v3322_v60 = vpop.xlane.xlu0 %3321 }
 0xafe   : > { %6147 = vmatpush3.msra.mxu1 %v3322_v60  ;;  %v3471_v60 = vld [vmem:[#allocation12 + $0x90] sm:$0xff] }
 0xaff   : > { %6149 = vmatmul.mubr.msk.f32.vlgmr.msra.gmra.mrb[10].mxu1 %vm1888_vm11, %v7431_v15  ;;  %6408 = vmatprep.subr.bf16.mxu1 %v6407_v61  ;;  %v4010_v15 = vld [vmem:[#allocation12 + $0x880] sm:$0xff]  ;;  %v6169_v45 = vpack.c.bf16 %v3471_v60, %v3469_v57  ;;  %v4033_v57 = vld [vmem:[#allocation12 + $0x938] sm:$0xff]  ;;  %v6185_v60 = vpack.c.bf16 %v3487_v39, %v3485_v30 }
 0xb00   : > { %6410 = vmatpush1.bf16.msra.mxu1 %v6409_v52  ;;  %v6425_v61 = vpack.c.bf16 %v4012_v10, %v4010_v15  ;;  %v6427_v52 = vpack.c.bf16 %v4017_v50, %v4015_v40  ;;  %v6441_v15 = vpack.c.bf16 %v4028_v16, %v4026_v63  ;;  %v3489_v10 = vld [vmem:[#allocation12 + $0x120] sm:$0xff]  ;;  %v6443_v40 = vpack.c.bf16 %v4033_v57, %v4031_v42  ;;  %v4032_v50 = vld [vmem:[#allocation12 + $0x930] sm:$0xff]  ;;  %v4049_v30 = vld [vmem:[#allocation12 + $0x9b8] sm:$0xff] }
 0xb01   : > { %6412 = vmatprep.subr.bf16.mxu1 %v6411_v9  ;;  %v4021_v9 = vld [vmem:[#allocation12 + $0x8d8] sm:$0xff]  ;;  %6170 = vmatpush1.bf16.msra.mxu0 %v6169_v45  ;;  %v3494_v45 = vld [vmem:[#allocation12 + $0x148] sm:$0xff]  ;;  %v6189_v4 = vpack.c.bf16 %v3491_v46, %v3489_v10  ;;  %v6445_v6 = vpack.c.bf16 %v4032_v50, %v4030_v20  ;;  %v3505_v16 = vld [vmem:[#allocation12 + $0x1a0] sm:$0xff] }
 0xb02   : > { %6172 = vmatprep.subr.bf16.mxu0 %v6171_v32  ;;  %v6431_v0 = vpack.c.bf16 %v4021_v9, %v4019_v53  ;;  %v4035_v32 = vld [vmem:[#allocation12 + $0x948] sm:$0xff]  ;;  %v4036_v9 = vld [vmem:[#allocation12 + $0x950] sm:$0xff]  ;;  %v4046_v42 = vld [vmem:[#allocation12 + $0x9a0] sm:$0xff] }
 0xb03   : > { %v6447_v53 = vpack.c.bf16 %v4037_v7, %v4035_v32  ;;  %v4048_v57 = vld [vmem:[#allocation12 + $0x9b0] sm:$0xff]  ;;  %v3512_v50 = vld [vmem:[#allocation12 + $0x1d8] sm:$0xff]  ;;  %v3509_v7 = vld [vmem:[#allocation12 + $0x1c0] sm:$0xff] }
 0xb04   : > { %6414 = vmatpush1.bf16.msra.mxu1 %v6413_v12  ;;  %v4020_v12 = vld [vmem:[#allocation12 + $0x8d0] sm:$0xff]  ;;  %v4053_v32 = vld [vmem:[#allocation12 + $0x9d8] sm:$0xff] }
 0xb05   : > { %6416 = vmatprep.subr.bf16.mxu1 %v6415_v58  ;;  %6174 = vmatpush1.bf16.msra.mxu0 %v6173_v27  ;;  %v6177_v58 = vpack.c.bf16 %v3479_v38, %v3477_v22  ;;  %v6433_v48 = vpack.c.bf16 %v4020_v12, %v4018_v19  ;;  %v3498_v27 = vld [vmem:[#allocation12 + $0x168] sm:$0xff]  ;;  %v4041_v22 = vld [vmem:[#allocation12 + $0x978] sm:$0xff]  ;;  %v6193_v38 = vpack.c.bf16 %v3495_v28, %v3493_v51  ;;  %v3497_v12 = vld [vmem:[#allocation12 + $0x160] sm:$0xff] }
 0xb06   : > { %6176 = vmatprep.subr.bf16.mxu0 %v6175_v21  ;;  %v4039_v21 = vld [vmem:[#allocation12 + $0x968] sm:$0xff]  ;;  %v6449_v19 = vpack.c.bf16 %v4036_v9, %v4034_v36  ;;  %v6197_v24 = vpack.c.bf16 %v3499_v29, %v3497_v12  ;;  %v4050_v28 = vld [vmem:[#allocation12 + $0x9c0] sm:$0xff]  ;;  %v4052_v36 = vld [vmem:[#allocation12 + $0x9d0] sm:$0xff] }
 0xb07   : > { %v6451_v25 = vpack.c.bf16 %v4041_v22, %v4039_v21  ;;  %v3514_v9 = vld [vmem:[#allocation12 + $0x1e8] sm:$0xff]  ;;  %v4057_v22 = vld [vmem:[#allocation12 + $0x9f8] sm:$0xff]  ;;  %v4054_v29 = vld [vmem:[#allocation12 + $0x9e0] sm:$0xff] }
 0xb08   : > { %6418 = vmatpush1.bf16.msra.mxu1 %v6417_v26  ;;  %v3486_v26 = vld [vmem:[#allocation12 + $0x108] sm:$0xff] }
 0xb09   : > { %6420 = vmatprep.subr.bf16.mxu1 %v6419_v3  ;;  %6178 = vmatpush1.bf16.msra.mxu0 %v6177_v58  ;;  %v6437_v3 = vpack.c.bf16 %v4024_v47, %v4022_v31  ;;  %v6183_v33 = vpack.c.bf16 %v3488_v11, %v3486_v26  ;;  %v3502_v58 = vld [vmem:[#allocation12 + $0x188] sm:$0xff]  ;;  %v6453_v31 = vpack.c.bf16 %v4040_v54, %v4038_v37  ;;  %v3501_v47 = vld [vmem:[#allocation12 + $0x180] sm:$0xff]  ;;  %v3503_v26 = vld [vmem:[#allocation12 + $0x190] sm:$0xff] }
 0xb0a   : > { %6180 = vmatprep.subr.bf16.mxu0 %v6179_v56  ;;  %v4043_v56 = vld [vmem:[#allocation12 + $0x988] sm:$0xff]  ;;  %v4042_v11 = vld [vmem:[#allocation12 + $0x980] sm:$0xff]  ;;  %v6201_v39 = vpack.c.bf16 %v3503_v26, %v3501_v47  ;;  %v4056_v37 = vld [vmem:[#allocation12 + $0x9f0] sm:$0xff] }
 0xb0b   : > { %v6455_v62 = vpack.c.bf16 %v4045_v17, %v4043_v56  ;;  %v6457_v63 = vpack.c.bf16 %v4044_v59, %v4042_v11  ;;  %v3518_v54 = vld [vmem:[#allocation12 + $0x208] sm:$0xff]  ;;  %v4061_v17 = vld [vmem:[#allocation12 + $0xa18] sm:$0xff]  ;;  %v3517_v59 = vld [vmem:[#allocation12 + $0x200] sm:$0xff] }
 0xb0c   : > { %6422 = vmatpush1.bf16.msra.mxu1 %v6421_v14  ;;  %v3492_v14 = vld [vmem:[#allocation12 + $0x138] sm:$0xff] }
 0xb0d   : > { %6424 = vmatprep.subr.bf16.mxu1 %v6423_v23  ;;  %6182 = vmatpush1.bf16.msra.mxu0 %v6181_v34  ;;  %v6187_v23 = vpack.c.bf16 %v3492_v14, %v3490_v41  ;;  %v3506_v34 = vld [vmem:[#allocation12 + $0x1a8] sm:$0xff]  ;;  %v3507_v41 = vld [vmem:[#allocation12 + $0x1b0] sm:$0xff] }
 0xb0e   : > { %6184 = vmatprep.subr.bf16.mxu0 %v6183_v33  ;;  %v4047_v33 = vld [vmem:[#allocation12 + $0x9a8] sm:$0xff] }
 0xb0f   : > { %v6459_v14 = vpack.c.bf16 %v4049_v30, %v4047_v33  ;;  %v3519_v30 = vld [vmem:[#allocation12 + $0x210] sm:$0xff] }
 0xb10   : > { %6426 = vmatpush1.bf16.msra.mxu1 %v6425_v61  ;;  %v3496_v61 = vld [vmem:[#allocation12 + $0x158] sm:$0xff] }
 0xb11   : > { %6428 = vmatprep.subr.bf16.mxu1 %v6427_v52  ;;  %6186 = vmatpush1.bf16.msra.mxu0 %v6185_v60  ;;  %v6191_v52 = vpack.c.bf16 %v3496_v61, %v3494_v45  ;;  %v6205_v60 = vpack.c.bf16 %v3507_v41, %v3505_v16  ;;  %v4051_v45 = vld [vmem:[#allocation12 + $0x9c8] sm:$0xff] }
 0xb12   : > { %6188 = vmatprep.subr.bf16.mxu0 %v6187_v23 }
 0xb14   : > { %6430 = vmatpush1.bf16.msra.mxu1 %v6429_v5  ;;  %v3500_v5 = vld [vmem:[#allocation12 + $0x178] sm:$0xff] }
 0xb15   : > { %6432 = vmatprep.subr.bf16.mxu1 %v6431_v0  ;;  %6190 = vmatpush1.bf16.msra.mxu0 %v6189_v4  ;;  %v6195_v0 = vpack.c.bf16 %v3500_v5, %v3498_v27  ;;  %v3511_v4 = vld [vmem:[#allocation12 + $0x1d0] sm:$0xff]  ;;  %v3516_v27 = vld [vmem:[#allocation12 + $0x1f8] sm:$0xff]  ;;  %v4055_v5 = vld [vmem:[#allocation12 + $0x9e8] sm:$0xff] }
 0xb16   : > { %6192 = vmatprep.subr.bf16.mxu0 %v6191_v52  ;;  %v6463_v52 = vpack.c.bf16 %v4053_v32, %v4051_v45  ;;  %v6209_v51 = vpack.c.bf16 %v3511_v4, %v3509_v7  ;;  %v6211_v21 = vpack.c.bf16 %v3516_v27, %v3514_v9  ;;  %v3523_v45 = vld [vmem:[#allocation12 + $0x230] sm:$0xff]  ;;  %v4062_v32 = vld [vmem:[#allocation12 + $0xa20] sm:$0xff]  ;;  %v3526_v4 = vld [vmem:[#allocation12 + $0x248] sm:$0xff] }
 0xb17   : > { %v4064_v7 = vld [vmem:[#allocation12 + $0xa30] sm:$0xff]  ;;  %v4067_v9 = vld [vmem:[#allocation12 + $0xa48] sm:$0xff]  ;;  %v4069_v27 = vld [vmem:[#allocation12 + $0xa58] sm:$0xff] }
 0xb18   : > { %6434 = vmatpush1.bf16.msra.mxu1 %v6433_v48  ;;  %v3504_v48 = vld [vmem:[#allocation12 + $0x198] sm:$0xff] }
 0xb19   : > { %6436 = vmatprep.subr.bf16.mxu1 %v6435_v2  ;;  %6194 = vmatpush1.bf16.msra.mxu0 %v6193_v38  ;;  %v6199_v2 = vpack.c.bf16 %v3504_v48, %v3502_v58  ;;  %v3513_v38 = vld [vmem:[#allocation12 + $0x1e0] sm:$0xff]  ;;  %v3520_v58 = vld [vmem:[#allocation12 + $0x218] sm:$0xff]  ;;  %v4059_v48 = vld [vmem:[#allocation12 + $0xa08] sm:$0xff] }
 0xb1a   : > { %6196 = vmatprep.subr.bf16.mxu0 %v6195_v0  ;;  %v6467_v0 = vpack.c.bf16 %v4057_v22, %v4055_v5  ;;  %v6215_v56 = vpack.c.bf16 %v3520_v58, %v3518_v54  ;;  %v4068_v54 = vld [vmem:[#allocation12 + $0xa50] sm:$0xff]  ;;  %v3530_v58 = vld [vmem:[#allocation12 + $0x268] sm:$0xff] }
 0xb1c   : > { %6438 = vmatpush1.bf16.msra.mxu1 %v6437_v3  ;;  %v3508_v3 = vld [vmem:[#allocation12 + $0x1b8] sm:$0xff] }
 0xb1d   : > { %6440 = vmatprep.subr.bf16.mxu1 %v6439_v13  ;;  %6198 = vmatpush1.bf16.msra.mxu0 %v6197_v24  ;;  %v6203_v13 = vpack.c.bf16 %v3508_v3, %v3506_v34  ;;  %v6471_v24 = vpack.c.bf16 %v4061_v17, %v4059_v48  ;;  %v3532_v17 = vld [vmem:[#allocation12 + $0x278] sm:$0xff] }
 0xb1e   : > { %6200 = vmatprep.subr.bf16.mxu0 %v6199_v2 }
 0xb20   : > { %6442 = vmatpush1.bf16.msra.mxu1 %v6441_v15  ;;  %v6461_v15 = vpack.c.bf16 %v4048_v57, %v4046_v42  ;;  %v3522_v42 = vld [vmem:[#allocation12 + $0x228] sm:$0xff] }
 0xb21   : > { %6444 = vmatprep.subr.bf16.mxu1 %v6443_v40  ;;  %6202 = vmatpush1.bf16.msra.mxu0 %v6201_v39  ;;  %v3510_v40 = vld [vmem:[#allocation12 + $0x1c8] sm:$0xff]  ;;  %v4058_v39 = vld [vmem:[#allocation12 + $0xa00] sm:$0xff] }
 0xb22   : > { %6204 = vmatprep.subr.bf16.mxu0 %v6203_v13  ;;  %v6207_v61 = vpack.c.bf16 %v3512_v50, %v3510_v40  ;;  %v3521_v50 = vld [vmem:[#allocation12 + $0x220] sm:$0xff] }
 0xb24   : > { %6446 = vmatpush1.bf16.msra.mxu1 %v6445_v6  ;;  %v6023_v6 = vld [vmem:[%s9267_s4 + $0x10] sm:$0xff] }
 0xb25   : > { %6448 = vmatprep.subr.bf16.mxu1 %v6447_v53  ;;  %6206 = vmatpush1.bf16.msra.mxu0 %v6205_v60  ;;  %v6465_v53 = vpack.c.bf16 %v4052_v36, %v4050_v28  ;;  %v6217_v60 = vpack.c.bf16 %v3519_v30, %v3517_v59  ;;  %v4072_v30 = vld [vmem:[#allocation12 + $0xa70] sm:$0xff] }
 0xb26   : > { %6208 = vmatprep.subr.bf16.mxu0 %v6207_v61 }
 0xb28   : > { %6450 = vmatpush1.bf16.msra.mxu1 %v6449_v19  ;;  %v3515_v19 = vld [vmem:[#allocation12 + $0x1f0] sm:$0xff] }
 0xb29   : > { %6452 = vmatprep.subr.bf16.mxu1 %v6451_v25  ;;  %6210 = vmatpush1.bf16.msra.mxu0 %v6209_v51  ;;  %v6213_v12 = vpack.c.bf16 %v3515_v19, %v3513_v38  ;;  %v6469_v25 = vpack.c.bf16 %v4056_v37, %v4054_v29  ;;  %v6221_v38 = vpack.c.bf16 %v3523_v45, %v3521_v50  ;;  %v4078_v50 = vld [vmem:[#allocation12 + $0xaa0] sm:$0xff]  ;;  %v4080_v45 = vld [vmem:[#allocation12 + $0xab0] sm:$0xff] }
 0xb2a   : > { %6212 = vmatprep.subr.bf16.mxu0 %v6211_v21  ;;  %v6477_v19 = vpack.c.bf16 %v4064_v7, %v4062_v32  ;;  %v6479_v37 = vpack.c.bf16 %v4069_v27, %v4067_v9  ;;  %v3542_v32 = vld [vmem:[#allocation12 + $0x2c8] sm:$0xff]  ;;  %v3544_v7 = vld [vmem:[#allocation12 + $0x2d8] sm:$0xff] }
 0xb2b   : > { %v6239_v9 = vpack.c.bf16 %v3544_v7, %v3542_v32  ;;  %v4100_v32 = vld [vmem:[#allocation12 + $0xb50] sm:$0xff]  ;;  %v3562_v7 = vld [vmem:[#allocation12 + $0x368] sm:$0xff] }
 0xb2c   : > { %6454 = vmatpush1.bf16.msra.mxu1 %v6453_v31 }
 0xb2d   : > { %6456 = vmatprep.subr.bf16.mxu1 %v6455_v62  ;;  %6214 = vmatpush1.bf16.msra.mxu0 %v6213_v12  ;;  %v3412_v62 = vpop.permute.xlu0 %3411  ;;  %v3527_v12 = vld [vmem:[#allocation12 + $0x250] sm:$0xff] }
 0xb2e   : > { %6216 = vmatprep.subr.bf16.mxu0 %v6215_v56 }
 0xb30   : > { %6458 = vmatpush1.bf16.msra.mxu1 %v6457_v63  ;;  %v4060_v63 = vld [vmem:[#allocation12 + $0xa10] sm:$0xff] }
 0xb31   : > { %6460 = vmatprep.subr.bf16.mxu1 %v6459_v14 }
 0xb34   : > { %6462 = vmatpush1.bf16.msra.mxu1 %v6461_v15  ;;  %v6473_v15 = vpack.c.bf16 %v4060_v63, %v4058_v39  ;;  %v3534_v39 = vld [vmem:[#allocation12 + $0x288] sm:$0xff]  ;;  %v3536_v63 = vld [vmem:[#allocation12 + $0x298] sm:$0xff] }
 0xb35   : > { %6464 = vmatprep.subr.bf16.mxu1 %v6463_v52 }
 0xb38   : > { %6466 = vmatpush1.bf16.msra.mxu1 %v6465_v53  ;;  %v3528_v53 = vld [vmem:[#allocation12 + $0x258] sm:$0xff] }
 0xb39   : > { %6468 = vmatprep.subr.bf16.mxu1 %v6467_v0  ;;  %v3525_v0 = vld [vmem:[#allocation12 + $0x240] sm:$0xff] }
 0xb3c   : > { %6470 = vmatpush1.bf16.msra.mxu1 %v6469_v25  ;;  %v4066_v25 = vld [vmem:[#allocation12 + $0xa40] sm:$0xff] }
 0xb3d   : > { %6472 = vmatprep.subr.bf16.mxu1 %v6471_v24  ;;  %v4071_v24 = vld [vmem:[#allocation12 + $0xa68] sm:$0xff] }
 0xbd2   : > { %v3389_v23 = vpop.f32.mrb[10].mxu1 }
 0xbd3   : > { %v3390_v10 = vadd.f32 1e-05, %v3389_v23  ;;  %v6150_v46 = vpop.f32.mrb[11].mxu1  ;;  %v3524_v23 = vld [vmem:[#allocation12 + $0x238] sm:$0xff] }
 0xbd4   : > { %v4065_v46 = vld [vmem:[#allocation12 + $0xa38] sm:$0xff]  ;;  %v6219_v28 = vpack.c.bf16 %v3524_v23, %v3522_v42  ;;  %v4076_v42 = vld [vmem:[#allocation12 + $0xa90] sm:$0xff] }
 0xbd5   : > { %7429 = vrsqrt.f32 %v3390_v10  ;;  %v4063_v10 = vld [vmem:[#allocation12 + $0xa28] sm:$0xff]  ;;  %v4081_v23 = vld [vmem:[#allocation12 + $0xab8] sm:$0xff] }
 0xbd6   : > { %v6475_v36 = vpack.c.bf16 %v4065_v46, %v4063_v10 }
 0xbdf   : > { %v7430_v20 = vpop.eup %7429 }
 0xbe0   : > { %3396 = vperm.xlu1 %7426, %v7430_v20  }
 0xbe4   : > { %3426 = vperm.xlu1 %7426, %v6023_v6  }
 0xc5f   : > { %v3397_v31 = vpop.permute.xlu1 %3396 }
 0xc60   : > { %v3400_v2 = vmul.f32 %v3397_v31, %v9072_v44  ;;  %v3399_v47 = vmul.f32 %v3397_v31, %v9070_v55  ;;  %v3402_v26 = vmul.f32 %v3397_v31, %v9076_v43  ;;  %v3401_v11 = vmul.f32 %v3397_v31, %v9074_v8 }
 0xc61   : > { %v3404_v34 = vmul.f32 %v3397_v31, %v9086_v35  ;;  %v3403_v55 = vmul.f32 %v3397_v31, %v9082_v1  ;;  %v3406_v43 = vmul.f32 %v3397_v31, %v9094_v49  ;;  %v3405_v5 = vmul.f32 %v3397_v31, %v9090_v18  ;;  %v4073_v31 = vld [vmem:[#allocation12 + $0xa78] sm:$0xff] }
 0xc62   : > { %v3415_v3 = vmul.f32 %v3412_v62, %v3400_v2  ;;  %v3414_v33 = vmul.f32 %v3412_v62, %v3399_v47  ;;  %v3417_v13 = vmul.f32 %v3412_v62, %v3402_v26  ;;  %v3416_v16 = vmul.f32 %v3412_v62, %v3401_v11  ;;  %v3529_v11 = vld [vmem:[#allocation12 + $0x260] sm:$0xff] }
 0xc63   : > { %v9114_v41 = vpop.permute.xlu1 %3426  ;;  %v3419_v44 = vmul.f32 %v3412_v62, %v3404_v34  ;;  %v3418_v52 = vmul.f32 %v3412_v62, %v3403_v55  ;;  %v3421_v51 = vmul.f32 %v3412_v62, %v3406_v43  ;;  %v3420_v29 = vmul.f32 %v3412_v62, %v3405_v5  ;;  %v3531_v62 = vld [vmem:[#allocation12 + $0x270] sm:$0xff]  ;;  %v3533_v55 = vld [vmem:[#allocation12 + $0x280] sm:$0xff] }
 0xc64   : > { %v3430_v8 = vadd.f32 %v9114_v41, %v3415_v3  ;;  %v3429_v14 = vadd.f32 %v9114_v41, %v3414_v33  ;;  %v3432_v35 = vadd.f32 %v9114_v41, %v3417_v13  ;;  %v3431_v57 = vadd.f32 %v9114_v41, %v3416_v16  ;;  %v4070_v33 = vld [vmem:[#allocation12 + $0xa60] sm:$0xff]  ;;  %v4075_v13 = vld [vmem:[#allocation12 + $0xa88] sm:$0xff]  ;;  %v4077_v16 = vld [vmem:[#allocation12 + $0xa98] sm:$0xff] }
 0xc65   : > { %v3434_v20 = vadd.f32 %v9114_v41, %v3419_v44  ;;  %v3433_v21 = vadd.f32 %v9114_v41, %v3418_v52  ;;  %v9141_v22 = vadd.f32 %v9114_v41, %v3421_v51  ;;  %v6223_v18 = vpack.c.bf16 %v3528_v53, %v3526_v4  ;;  %v3535_v43 = vld [vmem:[#allocation12 + $0x290] sm:$0xff]  ;;  %v4083_v4 = vld [vmem:[#allocation12 + $0xac8] sm:$0xff]  ;;  %v4085_v52 = vld [vmem:[#allocation12 + $0xad8] sm:$0xff] }
 0xc66   : > { %v3438_v1 = vmax.f32 %v3430_v8, 0.0  ;;  %v3437_v40 = vmax.f32 %v3429_v14, 0.0  ;;  %v3440_v49 = vmax.f32 %v3432_v35, 0.0  ;;  %v9123_v61 = vmax.f32 %v3431_v57, 0.0  ;;  %v4074_v35 = vld [vmem:[#allocation12 + $0xa80] sm:$0xff]  ;;  %v3538_v57 = vld [vmem:[#allocation12 + $0x2a8] sm:$0xff] }
 0xc67   : > { %v9125_v6 = vmax.f32 %v3434_v20, 0.0  ;;  %v9143_v48 = vmax.f32 %v3433_v21, 0.0  ;;  %v3444_v56 = vmax.f32 %v9141_v22, 0.0  ;;  %v3435_v2 = vadd.f32 %v9114_v41, %v3420_v29  ;;  %v3537_v20 = vld [vmem:[#allocation12 + $0x2a0] sm:$0xff]  ;;  %v3543_v53 = vld [vmem:[#allocation12 + $0x2d0] sm:$0xff] }
 0xc68   : > { %3446 = vst [vmem:[%s9129_s20 + $0x8] sm:$0xff] %v3438_v1  ;;  %3773 = vmatprep.mubr.f32.mxu0 %v3438_v1  ;;  %4314 = vmatprep.mubr.f32.mxu1 %v3438_v1  ;;  %3445 = vst [vmem:[%s9129_s20] sm:$0xff] %v3437_v40  ;;  %v6225_v47 = vpack.c.bf16 %v3527_v12, %v3525_v0  ;;  %v6481_v26 = vpack.c.bf16 %v4068_v54, %v4066_v25  ;;  %v3539_v1 = vld [vmem:[#allocation12 + $0x2b0] sm:$0xff]  ;;  %v4082_v5 = vld [vmem:[#allocation12 + $0xac0] sm:$0xff] }
 0xc69   : > { %3448 = vst [vmem:[%s9129_s20 + $0x18] sm:$0xff] %v3440_v49  ;;  %3447 = vst [vmem:[%s9129_s20 + $0x10] sm:$0xff] %v9123_v61  ;;  %3774 = vmatmul.mubr.f32.vlgmr.msra.gmra.mrb[20].mxu0 %v3437_v40  ;;  %4315 = vmatmul.mubr.f32.vlgmr.msra.gmra.mrb[20].mxu1 %v3437_v40  ;;  %v3443_v59 = vmax.f32 %v3435_v2, 0.0  ;;  %v6227_v34 = vpack.c.bf16 %v3532_v17, %v3530_v58  ;;  %v6483_v3 = vpack.c.bf16 %v4073_v31, %v4071_v24  ;;  %v4084_v21 = vld [vmem:[#allocation12 + $0xad0] sm:$0xff]  ;;  %v4087_v0 = vld [vmem:[#allocation12 + $0xae8] sm:$0xff] }
 0xc6a   : > { %3450 = vst [vmem:[%s9129_s20 + $0x28] sm:$0xff] %v9125_v6  ;;  %6218 = vmatpush1.bf16.msra.mxu0 %v6217_v60  ;;  %6474 = vmatpush1.bf16.msra.mxu1 %v6473_v15  ;;  %3449 = vst [vmem:[%s9129_s20 + $0x20] sm:$0xff] %v9143_v48  ;;  %v6229_v41 = vpack.c.bf16 %v3531_v62, %v3529_v11  ;;  %v6485_v44 = vpack.c.bf16 %v4072_v30, %v4070_v33  ;;  %v3540_v60 = vld [vmem:[#allocation12 + $0x2b8] sm:$0xff]  ;;  %v4079_v15 = vld [vmem:[#allocation12 + $0xaa8] sm:$0xff] }
 0xc6b   : > { %3844 = vmatprep.mubr.f32.mxu0 %v3440_v49  ;;  %4385 = vmatprep.mubr.f32.mxu1 %v3440_v49  ;;  %3452 = vst [vmem:[%s9129_s20 + $0x38] sm:$0xff] %v3444_v56  ;;  %3451 = vst [vmem:[%s9129_s20 + $0x30] sm:$0xff] %v3443_v59  ;;  %v6231_v8 = vpack.c.bf16 %v3536_v63, %v3534_v39  ;;  %v6487_v14 = vpack.c.bf16 %v4077_v16, %v4075_v13  ;;  %v4089_v12 = vld [vmem:[#allocation12 + $0xaf8] sm:$0xff]  ;;  %v3547_v25 = vld [vmem:[#allocation12 + $0x2f0] sm:$0xff] }
 0xc6c   : > { %6220 = vmatprep.subr.bf16.mxu0 %v6219_v28  ;;  %6476 = vmatprep.subr.bf16.mxu1 %v6475_v36  ;;  %v6233_v10 = vpack.c.bf16 %v3535_v43, %v3533_v55  ;;  %v6489_v46 = vpack.c.bf16 %v4076_v42, %v4074_v35  ;;  %v6235_v40 = vpack.c.bf16 %v3540_v60, %v3538_v57  ;;  %v3541_v36 = vld [vmem:[#allocation12 + $0x2c0] sm:$0xff]  ;;  %v4088_v24 = vld [vmem:[#allocation12 + $0xaf0] sm:$0xff]  ;;  %v3550_v31 = vld [vmem:[#allocation12 + $0x308] sm:$0xff] }
 0xc6d   : > { %v6491_v49 = vpack.c.bf16 %v4081_v23, %v4079_v15  ;;  %v6237_v51 = vpack.c.bf16 %v3539_v1, %v3537_v20  ;;  %v6493_v28 = vpack.c.bf16 %v4080_v45, %v4078_v50  ;;  %v6495_v27 = vpack.c.bf16 %v4085_v52, %v4083_v4  ;;  %v4086_v17 = vld [vmem:[#allocation12 + $0xae0] sm:$0xff]  ;;  %v3552_v2 = vld [vmem:[#allocation12 + $0x318] sm:$0xff]  ;;  %v4092_v39 = vld [vmem:[#allocation12 + $0xb10] sm:$0xff] }
 0xc6e   : > { %6222 = vmatpush1.bf16.msra.mxu0 %v6221_v38  ;;  %6478 = vmatpush1.bf16.msra.mxu1 %v6477_v19  ;;  %v3546_v38 = vld [vmem:[#allocation12 + $0x2e8] sm:$0xff]  ;;  %v3548_v19 = vld [vmem:[#allocation12 + $0x2f8] sm:$0xff]  ;;  %v6241_v29 = vpack.c.bf16 %v3543_v53, %v3541_v36  ;;  %v6499_v58 = vpack.c.bf16 %v4089_v12, %v4087_v0  ;;  %v6501_v62 = vpack.c.bf16 %v4088_v24, %v4086_v17  ;;  %v3549_v59 = vld [vmem:[#allocation12 + $0x300] sm:$0xff] }
 0xc6f   : > { %6224 = vmatprep.subr.bf16.mxu0 %v6223_v18  ;;  %6480 = vmatprep.subr.bf16.mxu1 %v6479_v37  ;;  %v6497_v18 = vpack.c.bf16 %v4084_v21, %v4082_v5  ;;  %v3545_v37 = vld [vmem:[#allocation12 + $0x2e0] sm:$0xff]  ;;  %v6243_v54 = vpack.c.bf16 %v3548_v19, %v3546_v38  ;;  %v3554_v63 = vld [vmem:[#allocation12 + $0x328] sm:$0xff]  ;;  %v3556_v13 = vld [vmem:[#allocation12 + $0x338] sm:$0xff] }
 0xc70   : > { %v6245_v11 = vpack.c.bf16 %v3547_v25, %v3545_v37  ;;  %v4090_v30 = vld [vmem:[#allocation12 + $0xb00] sm:$0xff]  ;;  %v4095_v16 = vld [vmem:[#allocation12 + $0xb28] sm:$0xff]  ;;  %v4096_v57 = vld [vmem:[#allocation12 + $0xb30] sm:$0xff] }
 0xc71   : > { %v6505_v55 = vpack.c.bf16 %v4092_v39, %v4090_v30  ;;  %v3553_v43 = vld [vmem:[#allocation12 + $0x320] sm:$0xff]  ;;  %v3558_v60 = vld [vmem:[#allocation12 + $0x348] sm:$0xff]  ;;  %v3560_v15 = vld [vmem:[#allocation12 + $0x358] sm:$0xff] }
 0xc72   : > { %6226 = vmatpush1.bf16.msra.mxu0 %v6225_v47  ;;  %6482 = vmatpush1.bf16.msra.mxu1 %v6481_v26  ;;  %v4091_v47 = vld [vmem:[#allocation12 + $0xb08] sm:$0xff]  ;;  %v4093_v26 = vld [vmem:[#allocation12 + $0xb18] sm:$0xff]  ;;  %v4094_v42 = vld [vmem:[#allocation12 + $0xb20] sm:$0xff] }
 0xc73   : > { %6228 = vmatprep.subr.bf16.mxu0 %v6227_v34  ;;  %6484 = vmatprep.subr.bf16.mxu1 %v6483_v3  ;;  %v3551_v34 = vld [vmem:[#allocation12 + $0x310] sm:$0xff]  ;;  %v6247_v3 = vpack.c.bf16 %v3552_v2, %v3550_v31  ;;  %v6503_v33 = vpack.c.bf16 %v4093_v26, %v4091_v47  ;;  %v4099_v23 = vld [vmem:[#allocation12 + $0xb48] sm:$0xff]  ;;  %v6509_v20 = vpack.c.bf16 %v4096_v57, %v4094_v42  ;;  %v3557_v1 = vld [vmem:[#allocation12 + $0x340] sm:$0xff] }
 0xc74   : > { %v4098_v45 = vld [vmem:[#allocation12 + $0xb40] sm:$0xff]  ;;  %v3564_v4 = vld [vmem:[#allocation12 + $0x378] sm:$0xff]  ;;  %v4103_v52 = vld [vmem:[#allocation12 + $0xb68] sm:$0xff] }
 0xc75   : > { %v6513_v36 = vpack.c.bf16 %v4100_v32, %v4098_v45  ;;  %v3561_v53 = vld [vmem:[#allocation12 + $0x360] sm:$0xff]  ;;  %v4104_v38 = vld [vmem:[#allocation12 + $0xb70] sm:$0xff]  ;;  %v3566_v19 = vld [vmem:[#allocation12 + $0x388] sm:$0xff] }
 0xc76   : > { %6230 = vmatpush1.bf16.msra.mxu0 %v6229_v41  ;;  %6486 = vmatpush1.bf16.msra.mxu1 %v6485_v44  ;;  %v4097_v41 = vld [vmem:[#allocation12 + $0xb38] sm:$0xff]  ;;  %v6249_v44 = vpack.c.bf16 %v3551_v34, %v3549_v59  ;;  %v4102_v21 = vld [vmem:[#allocation12 + $0xb60] sm:$0xff]  ;;  %v4107_v12 = vld [vmem:[#allocation12 + $0xb88] sm:$0xff] }
 0xc77   : > { %6232 = vmatprep.subr.bf16.mxu0 %v6231_v8  ;;  %6488 = vmatprep.subr.bf16.mxu1 %v6487_v14  ;;  %v3555_v8 = vld [vmem:[#allocation12 + $0x330] sm:$0xff]  ;;  %v6251_v14 = vpack.c.bf16 %v3556_v13, %v3554_v63  ;;  %v6507_v35 = vpack.c.bf16 %v4097_v41, %v4095_v16  ;;  %v3568_v0 = vld [vmem:[#allocation12 + $0x398] sm:$0xff]  ;;  %v6517_v37 = vpack.c.bf16 %v4104_v38, %v4102_v21  ;;  %v3565_v25 = vld [vmem:[#allocation12 + $0x380] sm:$0xff] }
 0xc78   : > { %v4106_v24 = vld [vmem:[#allocation12 + $0xb80] sm:$0xff]  ;;  %v4108_v31 = vld [vmem:[#allocation12 + $0xb90] sm:$0xff]  ;;  %v3570_v2 = vld [vmem:[#allocation12 + $0x3a8] sm:$0xff] }
 0xc79   : > { %v3572_v47 = vld [vmem:[#allocation12 + $0x3b8] sm:$0xff]  ;;  %v4111_v26 = vld [vmem:[#allocation12 + $0xba8] sm:$0xff]  ;;  %v6521_v59 = vpack.c.bf16 %v4108_v31, %v4106_v24  ;;  %v3569_v34 = vld [vmem:[#allocation12 + $0x3a0] sm:$0xff] }
 0xc7a   : > { %6234 = vmatpush1.bf16.msra.mxu0 %v6233_v10  ;;  %6490 = vmatpush1.bf16.msra.mxu1 %v6489_v46  ;;  %v4101_v10 = vld [vmem:[#allocation12 + $0xb58] sm:$0xff]  ;;  %v6253_v46 = vpack.c.bf16 %v3555_v8, %v3553_v43  ;;  %v4110_v39 = vld [vmem:[#allocation12 + $0xba0] sm:$0xff]  ;;  %v4112_v63 = vld [vmem:[#allocation12 + $0xbb0] sm:$0xff] }
 0xc7b   : > { %6236 = vmatprep.subr.bf16.mxu0 %v6235_v40  ;;  %6492 = vmatprep.subr.bf16.mxu1 %v6491_v49  ;;  %v3559_v40 = vld [vmem:[#allocation12 + $0x350] sm:$0xff]  ;;  %v6255_v49 = vpack.c.bf16 %v3560_v15, %v3558_v60  ;;  %v6511_v50 = vpack.c.bf16 %v4101_v10, %v4099_v23  ;;  %v3574_v13 = vld [vmem:[#allocation12 + $0x3c8] sm:$0xff]  ;;  %v3576_v16 = vld [vmem:[#allocation12 + $0x3d8] sm:$0xff]  ;;  %v6525_v43 = vpack.c.bf16 %v4112_v63, %v4110_v39 }
 0xc7c   : > { %v4115_v41 = vld [vmem:[#allocation12 + $0xbc8] sm:$0xff]  ;;  %v3573_v8 = vld [vmem:[#allocation12 + $0x3c0] sm:$0xff]  ;;  %v4116_v60 = vld [vmem:[#allocation12 + $0xbd0] sm:$0xff] }
 0xc7d   : > { %v4114_v57 = vld [vmem:[#allocation12 + $0xbc0] sm:$0xff]  ;;  %v3578_v15 = vld [vmem:[#allocation12 + $0x3e8] sm:$0xff]  ;;  %v3580_v23 = vld [vmem:[#allocation12 + $0x3f8] sm:$0xff] }
 0xc7e   : > { %6238 = vmatpush1.bf16.msra.mxu0 %v6237_v51  ;;  %6494 = vmatpush1.bf16.msra.mxu1 %v6493_v28  ;;  %v4105_v51 = vld [vmem:[#allocation12 + $0xb78] sm:$0xff]  ;;  %v6257_v28 = vpack.c.bf16 %v3559_v40, %v3557_v1  ;;  %v4119_v10 = vld [vmem:[#allocation12 + $0xbe8] sm:$0xff]  ;;  %v6529_v1 = vpack.c.bf16 %v4116_v60, %v4114_v57  ;;  %v3577_v40 = vld [vmem:[#allocation12 + $0x3e0] sm:$0xff] }
 0xc7f   : > { %6240 = vmatprep.subr.bf16.mxu0 %v6239_v9  ;;  %6496 = vmatprep.subr.bf16.mxu1 %v6495_v27  ;;  %v3563_v9 = vld [vmem:[#allocation12 + $0x370] sm:$0xff]  ;;  %v6259_v27 = vpack.c.bf16 %v3564_v4, %v3562_v7  ;;  %v6515_v5 = vpack.c.bf16 %v4105_v51, %v4103_v52  ;;  %v4118_v32 = vld [vmem:[#allocation12 + $0xbe0] sm:$0xff]  ;;  %v3582_v4 = vld [vmem:[#allocation12 + $0x408] sm:$0xff] }
 0xc80   : > { %v4120_v7 = vld [vmem:[#allocation12 + $0xbf0] sm:$0xff]  ;;  %v3584_v52 = vld [vmem:[#allocation12 + $0x418] sm:$0xff]  ;;  %v4123_v51 = vld [vmem:[#allocation12 + $0xc08] sm:$0xff] }
 0xc81   : > { %v3583_v21 = vld [vmem:[#allocation12 + $0x410] sm:$0xff]  ;;  %v4122_v38 = vld [vmem:[#allocation12 + $0xc00] sm:$0xff]  ;;  %v3598_v60 = vld [vmem:[#allocation12 + $0x488] sm:$0xff] }
 0xc82   : > { %6242 = vmatpush1.bf16.msra.mxu0 %v6241_v29  ;;  %6498 = vmatpush1.bf16.msra.mxu1 %v6497_v18  ;;  %v4109_v29 = vld [vmem:[#allocation12 + $0xb98] sm:$0xff]  ;;  %v6261_v18 = vpack.c.bf16 %v3563_v9, %v3561_v53  ;;  %v6533_v53 = vpack.c.bf16 %v4120_v7, %v4118_v32  ;;  %v6279_v9 = vpack.c.bf16 %v3584_v52, %v3582_v4  ;;  %v4130_v39 = vld [vmem:[#allocation12 + $0xc40] sm:$0xff]  ;;  %v4136_v57 = vld [vmem:[#allocation12 + $0xc70] sm:$0xff] }
 0xc83   : > { %6244 = vmatprep.subr.bf16.mxu0 %v6243_v54  ;;  %6500 = vmatprep.subr.bf16.mxu1 %v6499_v58  ;;  %v3567_v54 = vld [vmem:[#allocation12 + $0x390] sm:$0xff]  ;;  %v6263_v58 = vpack.c.bf16 %v3568_v0, %v3566_v19  ;;  %v6519_v17 = vpack.c.bf16 %v4109_v29, %v4107_v12  ;;  %v3586_v0 = vld [vmem:[#allocation12 + $0x428] sm:$0xff]  ;;  %v3588_v12 = vld [vmem:[#allocation12 + $0x438] sm:$0xff] }
 0xc84   : > { %v4124_v19 = vld [vmem:[#allocation12 + $0xc10] sm:$0xff]  ;;  %v4127_v29 = vld [vmem:[#allocation12 + $0xc28] sm:$0xff]  ;;  %v6283_v24 = vpack.c.bf16 %v3588_v12, %v3586_v0  ;;  %v3604_v4 = vld [vmem:[#allocation12 + $0x4b8] sm:$0xff] }
 0xc85   : > { %v4140_v32 = vld [vmem:[#allocation12 + $0xc90] sm:$0xff]  ;;  %v3602_v7 = vld [vmem:[#allocation12 + $0x4a8] sm:$0xff]  ;;  %v3608_v0 = vld [vmem:[#allocation12 + $0x4d8] sm:$0xff] }
 0xc86   : > { %6246 = vmatpush1.bf16.msra.mxu0 %v6245_v11  ;;  %6502 = vmatpush1.bf16.msra.mxu1 %v6501_v62  ;;  %v4113_v11 = vld [vmem:[#allocation12 + $0xbb8] sm:$0xff]  ;;  %v6265_v62 = vpack.c.bf16 %v3567_v54, %v3565_v25  ;;  %v6537_v25 = vpack.c.bf16 %v4124_v19, %v4122_v38  ;;  %v3585_v54 = vld [vmem:[#allocation12 + $0x420] sm:$0xff]  ;;  %v4143_v52 = vld [vmem:[#allocation12 + $0xca8] sm:$0xff] }
 0xc87   : > { %6248 = vmatprep.subr.bf16.mxu0 %v6247_v3  ;;  %6504 = vmatprep.subr.bf16.mxu1 %v6503_v33  ;;  %v3571_v3 = vld [vmem:[#allocation12 + $0x3b0] sm:$0xff]  ;;  %v6267_v33 = vpack.c.bf16 %v3572_v47, %v3570_v2  ;;  %v6523_v30 = vpack.c.bf16 %v4113_v11, %v4111_v26  ;;  %v3590_v47 = vld [vmem:[#allocation12 + $0x448] sm:$0xff]  ;;  %v3592_v26 = vld [vmem:[#allocation12 + $0x458] sm:$0xff] }
 0xc88   : > { %v4128_v2 = vld [vmem:[#allocation12 + $0xc30] sm:$0xff]  ;;  %v4131_v11 = vld [vmem:[#allocation12 + $0xc48] sm:$0xff] }
 0xc89   : > { %v4144_v38 = vld [vmem:[#allocation12 + $0xcb0] sm:$0xff]  ;;  %v3606_v19 = vld [vmem:[#allocation12 + $0x4c8] sm:$0xff] }
 0xc8a   : > { %6250 = vmatpush1.bf16.msra.mxu0 %v6249_v44  ;;  %6506 = vmatpush1.bf16.msra.mxu1 %v6505_v55  ;;  %v4117_v44 = vld [vmem:[#allocation12 + $0xbd8] sm:$0xff]  ;;  %v6269_v55 = vpack.c.bf16 %v3571_v3, %v3569_v34  ;;  %v6287_v3 = vpack.c.bf16 %v3592_v26, %v3590_v47  ;;  %v4147_v12 = vld [vmem:[#allocation12 + $0xcc8] sm:$0xff] }
 0xc8b   : > { %6252 = vmatprep.subr.bf16.mxu0 %v6251_v14  ;;  %6508 = vmatprep.subr.bf16.mxu1 %v6507_v35  ;;  %v3575_v14 = vld [vmem:[#allocation12 + $0x3d0] sm:$0xff]  ;;  %v6271_v35 = vpack.c.bf16 %v3576_v16, %v3574_v13  ;;  %v6527_v42 = vpack.c.bf16 %v4117_v44, %v4115_v41  ;;  %v3594_v16 = vld [vmem:[#allocation12 + $0x468] sm:$0xff]  ;;  %v4137_v44 = vld [vmem:[#allocation12 + $0xc78] sm:$0xff] }
 0xc8c   : > { %v4132_v13 = vld [vmem:[#allocation12 + $0xc50] sm:$0xff]  ;;  %v4135_v41 = vld [vmem:[#allocation12 + $0xc68] sm:$0xff]  ;;  %v3612_v47 = vld [vmem:[#allocation12 + $0x4f8] sm:$0xff] }
 0xc8d   : > { %v4151_v26 = vld [vmem:[#allocation12 + $0xce8] sm:$0xff] }
 0xc8e   : > { %6254 = vmatpush1.bf16.msra.mxu0 %v6253_v46  ;;  %6510 = vmatpush1.bf16.msra.mxu1 %v6509_v20  ;;  %v4121_v46 = vld [vmem:[#allocation12 + $0xbf8] sm:$0xff]  ;;  %v6273_v20 = vpack.c.bf16 %v3575_v14, %v3573_v8  ;;  %v3595_v14 = vld [vmem:[#allocation12 + $0x470] sm:$0xff] }
 0xc8f   : > { %6256 = vmatprep.subr.bf16.mxu0 %v6255_v49  ;;  %6512 = vmatprep.subr.bf16.mxu1 %v6511_v50  ;;  %v3579_v49 = vld [vmem:[#allocation12 + $0x3f0] sm:$0xff]  ;;  %v6275_v50 = vpack.c.bf16 %v3580_v23, %v3578_v15  ;;  %v6531_v45 = vpack.c.bf16 %v4121_v46, %v4119_v10  ;;  %v3600_v15 = vld [vmem:[#allocation12 + $0x498] sm:$0xff]  ;;  %v4139_v23 = vld [vmem:[#allocation12 + $0xc88] sm:$0xff] }
 0xc90   : > { %v4141_v10 = vld [vmem:[#allocation12 + $0xc98] sm:$0xff] }
 0xc92   : > { %6258 = vmatpush1.bf16.msra.mxu0 %v6257_v28  ;;  %6514 = vmatpush1.bf16.msra.mxu1 %v6513_v36  ;;  %v4125_v28 = vld [vmem:[#allocation12 + $0xc18] sm:$0xff]  ;;  %v6277_v36 = vpack.c.bf16 %v3579_v49, %v3577_v40  ;;  %v3597_v40 = vld [vmem:[#allocation12 + $0x480] sm:$0xff]  ;;  %v3599_v49 = vld [vmem:[#allocation12 + $0x490] sm:$0xff] }
 0xc93   : > { %6260 = vmatprep.subr.bf16.mxu0 %v6259_v27  ;;  %6516 = vmatprep.subr.bf16.mxu1 %v6515_v5  ;;  %v6535_v27 = vpack.c.bf16 %v4125_v28, %v4123_v51  ;;  %v3581_v5 = vld [vmem:[#allocation12 + $0x400] sm:$0xff]  ;;  %v4145_v51 = vld [vmem:[#allocation12 + $0xcb8] sm:$0xff]  ;;  %v6297_v28 = vpack.c.bf16 %v3599_v49, %v3597_v40  ;;  %v3619_v40 = vld [vmem:[#allocation12 + $0x530] sm:$0xff] }
 0xc94   : > { %v4158_v49 = vld [vmem:[#allocation12 + $0xd20] sm:$0xff] }
 0xc96   : > { %6262 = vmatpush1.bf16.msra.mxu0 %v6261_v18  ;;  %6518 = vmatpush1.bf16.msra.mxu1 %v6517_v37  ;;  %v4129_v18 = vld [vmem:[#allocation12 + $0xc38] sm:$0xff]  ;;  %v6281_v37 = vpack.c.bf16 %v3583_v21, %v3581_v5  ;;  %v4142_v5 = vld [vmem:[#allocation12 + $0xca0] sm:$0xff]  ;;  %v6555_v21 = vpack.c.bf16 %v4145_v51, %v4143_v52 }
 0xc97   : > { %6264 = vmatprep.subr.bf16.mxu0 %v6263_v58  ;;  %6520 = vmatprep.subr.bf16.mxu1 %v6519_v17  ;;  %v3587_v58 = vld [vmem:[#allocation12 + $0x430] sm:$0xff]  ;;  %v4126_v17 = vld [vmem:[#allocation12 + $0xc20] sm:$0xff]  ;;  %v6539_v31 = vpack.c.bf16 %v4129_v18, %v4127_v29  ;;  %v4149_v29 = vld [vmem:[#allocation12 + $0xcd8] sm:$0xff] }
 0xc98   : > { %v6541_v34 = vpack.c.bf16 %v4128_v2, %v4126_v17  ;;  %v4146_v17 = vld [vmem:[#allocation12 + $0xcc0] sm:$0xff]  ;;  %v3610_v2 = vld [vmem:[#allocation12 + $0x4e8] sm:$0xff]  ;;  %v4165_v52 = vld [vmem:[#allocation12 + $0xd58] sm:$0xff] }
 0xc9a   : > { %6266 = vmatpush1.bf16.msra.mxu0 %v6265_v62  ;;  %6522 = vmatpush1.bf16.msra.mxu1 %v6521_v59  ;;  %v4133_v62 = vld [vmem:[#allocation12 + $0xc58] sm:$0xff]  ;;  %v6285_v59 = vpack.c.bf16 %v3587_v58, %v3585_v54  ;;  %v3605_v54 = vld [vmem:[#allocation12 + $0x4c0] sm:$0xff]  ;;  %v3607_v58 = vld [vmem:[#allocation12 + $0x4d0] sm:$0xff] }
 0xc9b   : > { %6268 = vmatprep.subr.bf16.mxu0 %v6267_v33  ;;  %6524 = vmatprep.subr.bf16.mxu1 %v6523_v30  ;;  %v3589_v33 = vld [vmem:[#allocation12 + $0x440] sm:$0xff]  ;;  %v3591_v30 = vld [vmem:[#allocation12 + $0x450] sm:$0xff]  ;;  %v6543_v63 = vpack.c.bf16 %v4133_v62, %v4131_v11  ;;  %v4153_v11 = vld [vmem:[#allocation12 + $0xcf8] sm:$0xff]  ;;  %v6305_v62 = vpack.c.bf16 %v3607_v58, %v3605_v54 }
 0xc9c   : > { %v3627_v54 = vld [vmem:[#allocation12 + $0x570] sm:$0xff]  ;;  %v4166_v58 = vld [vmem:[#allocation12 + $0xd60] sm:$0xff] }
 0xc9e   : > { %6270 = vmatpush1.bf16.msra.mxu0 %v6269_v55  ;;  %6526 = vmatpush1.bf16.msra.mxu1 %v6525_v43  ;;  %v6289_v55 = vpack.c.bf16 %v3591_v30, %v3589_v33  ;;  %v6545_v43 = vpack.c.bf16 %v4132_v13, %v4130_v39  ;;  %v3611_v33 = vld [vmem:[#allocation12 + $0x4f0] sm:$0xff]  ;;  %v4150_v30 = vld [vmem:[#allocation12 + $0xce0] sm:$0xff]  ;;  %v6563_v39 = vpack.c.bf16 %v4153_v11, %v4151_v26  ;;  %v3614_v13 = vld [vmem:[#allocation12 + $0x508] sm:$0xff] }
 0xc9f   : > { %6272 = vmatprep.subr.bf16.mxu0 %v6271_v35  ;;  %6528 = vmatprep.subr.bf16.mxu1 %v6527_v42  ;;  %v4134_v35 = vld [vmem:[#allocation12 + $0xc60] sm:$0xff]  ;;  %v6547_v42 = vpack.c.bf16 %v4137_v44, %v4135_v41  ;;  %v4157_v41 = vld [vmem:[#allocation12 + $0xd18] sm:$0xff] }
 0xca0   : > { %v4173_v26 = vld [vmem:[#allocation12 + $0xd98] sm:$0xff] }
 0xca2   : > { %6274 = vmatpush1.bf16.msra.mxu0 %v6273_v20  ;;  %6530 = vmatpush1.bf16.msra.mxu1 %v6529_v1  ;;  %v6549_v20 = vpack.c.bf16 %v4136_v57, %v4134_v35  ;;  %v6295_v1 = vpack.c.bf16 %v3600_v15, %v3598_v60  ;;  %v3618_v57 = vld [vmem:[#allocation12 + $0x528] sm:$0xff]  ;;  %v3620_v60 = vld [vmem:[#allocation12 + $0x538] sm:$0xff] }
 0xca3   : > { %6276 = vmatprep.subr.bf16.mxu0 %v6275_v50  ;;  %6532 = vmatprep.subr.bf16.mxu1 %v6531_v45  ;;  %v4138_v50 = vld [vmem:[#allocation12 + $0xc80] sm:$0xff]  ;;  %v6551_v45 = vpack.c.bf16 %v4141_v10, %v4139_v23  ;;  %v4159_v15 = vld [vmem:[#allocation12 + $0xd28] sm:$0xff]  ;;  %v4161_v23 = vld [vmem:[#allocation12 + $0xd38] sm:$0xff] }
 0xca6   : > { %6278 = vmatpush1.bf16.msra.mxu0 %v6277_v36  ;;  %6534 = vmatpush1.bf16.msra.mxu1 %v6533_v53  ;;  %v6553_v36 = vpack.c.bf16 %v4140_v32, %v4138_v50  ;;  %v6299_v53 = vpack.c.bf16 %v3604_v4, %v3602_v7  ;;  %v6571_v50 = vpack.c.bf16 %v4161_v23, %v4159_v15  ;;  %v3622_v32 = vld [vmem:[#allocation12 + $0x548] sm:$0xff]  ;;  %v3624_v7 = vld [vmem:[#allocation12 + $0x558] sm:$0xff] }
 0xca7   : > { %6280 = vmatprep.subr.bf16.mxu0 %v6279_v9  ;;  %6536 = vmatprep.subr.bf16.mxu1 %v6535_v27  ;;  %v3601_v9 = vld [vmem:[#allocation12 + $0x4a0] sm:$0xff]  ;;  %v3603_v27 = vld [vmem:[#allocation12 + $0x4b0] sm:$0xff]  ;;  %v4163_v4 = vld [vmem:[#allocation12 + $0xd48] sm:$0xff] }
 0xca8   : > { %v6301_v18 = vpack.c.bf16 %v3603_v27, %v3601_v9  ;;  %v3623_v9 = vld [vmem:[#allocation12 + $0x550] sm:$0xff]  ;;  %v4162_v27 = vld [vmem:[#allocation12 + $0xd40] sm:$0xff]  ;;  %v4181_v15 = vld [vmem:[#allocation12 + $0xdd8] sm:$0xff] }
 0xca9   : > { %3845 = vmatmul.mubr.f32.vlgmr.msra.gmra.mrb[20].mxu0 %v9123_v61  ;;  %4386 = vmatmul.mubr.f32.vlgmr.msra.gmra.mrb[20].mxu1 %v9123_v61  ;;  %v3596_v61 = vld [vmem:[#allocation12 + $0x478] sm:$0xff] }
 0xcaa   : > { %6282 = vmatpush1.bf16.msra.mxu0 %v6281_v37  ;;  %3915 = vmatprep.mubr.f32.mxu0 %v9125_v6  ;;  %v6291_v8 = vpack.c.bf16 %v3596_v61, %v3594_v16  ;;  %v6557_v37 = vpack.c.bf16 %v4144_v38, %v4142_v5  ;;  %v3616_v16 = vld [vmem:[#allocation12 + $0x518] sm:$0xff]  ;;  %v4155_v61 = vld [vmem:[#allocation12 + $0xd08] sm:$0xff]  ;;  %v6575_v5 = vpack.c.bf16 %v4165_v52, %v4163_v4 }
 0xcab   : > { %6538 = vmatpush1.bf16.msra.mxu1 %v6537_v25  ;;  %4456 = vmatprep.mubr.f32.mxu1 %v9125_v6  ;;  %v3593_v6 = vld [vmem:[#allocation12 + $0x460] sm:$0xff]  ;;  %v6303_v25 = vpack.c.bf16 %v3608_v0, %v3606_v19  ;;  %v6567_v35 = vpack.c.bf16 %v4157_v41, %v4155_v61  ;;  %v3626_v38 = vld [vmem:[#allocation12 + $0x568] sm:$0xff]  ;;  %v3628_v19 = vld [vmem:[#allocation12 + $0x578] sm:$0xff] }
 0xcac   : > { %6284 = vmatprep.subr.bf16.mxu0 %v6283_v24  ;;  %6540 = vmatprep.subr.bf16.mxu1 %v6539_v31  ;;  %v6293_v46 = vpack.c.bf16 %v3595_v14, %v3593_v6  ;;  %v6559_v24 = vpack.c.bf16 %v4149_v29, %v4147_v12  ;;  %v4148_v31 = vld [vmem:[#allocation12 + $0xcd0] sm:$0xff]  ;;  %v4154_v14 = vld [vmem:[#allocation12 + $0xd00] sm:$0xff]  ;;  %v4167_v0 = vld [vmem:[#allocation12 + $0xd68] sm:$0xff] }
 0xcad   : > { %v3615_v6 = vld [vmem:[#allocation12 + $0x510] sm:$0xff]  ;;  %v4169_v12 = vld [vmem:[#allocation12 + $0xd78] sm:$0xff] }
 0xcae   : > { %6286 = vmatpush1.bf16.msra.mxu0 %v6285_v59  ;;  %v6561_v59 = vpack.c.bf16 %v4148_v31, %v4146_v17  ;;  %v6579_v17 = vpack.c.bf16 %v4169_v12, %v4167_v0  ;;  %v3630_v31 = vld [vmem:[#allocation12 + $0x588] sm:$0xff]  ;;  %v4177_v61 = vld [vmem:[#allocation12 + $0xdb8] sm:$0xff] }
 0xcaf   : > { %6542 = vmatpush1.bf16.msra.mxu1 %v6541_v34  ;;  %6288 = vmatprep.subr.bf16.mxu0 %v6287_v3  ;;  %v6307_v34 = vpack.c.bf16 %v3612_v47, %v3610_v2  ;;  %v3609_v3 = vld [vmem:[#allocation12 + $0x4e0] sm:$0xff]  ;;  %v3632_v2 = vld [vmem:[#allocation12 + $0x598] sm:$0xff]  ;;  %v4171_v47 = vld [vmem:[#allocation12 + $0xd88] sm:$0xff] }
 0xcb0   : > { %6544 = vmatprep.subr.bf16.mxu1 %v6543_v63  ;;  %v4152_v63 = vld [vmem:[#allocation12 + $0xcf0] sm:$0xff]  ;;  %v6309_v44 = vpack.c.bf16 %v3611_v33, %v3609_v3  ;;  %v4170_v33 = vld [vmem:[#allocation12 + $0xd80] sm:$0xff]  ;;  %v4185_v4 = vld [vmem:[#allocation12 + $0xdf8] sm:$0xff] }
 0xcb1   : > { %v3631_v3 = vld [vmem:[#allocation12 + $0x590] sm:$0xff]  ;;  %v4189_v0 = vld [vmem:[#allocation12 + $0xe18] sm:$0xff] }
 0xcb2   : > { %6290 = vmatpush1.bf16.msra.mxu0 %v6289_v55  ;;  %v6565_v55 = vpack.c.bf16 %v4152_v63, %v4150_v30  ;;  %v6583_v30 = vpack.c.bf16 %v4173_v26, %v4171_v47  ;;  %v3634_v63 = vld [vmem:[#allocation12 + $0x5a8] sm:$0xff]  ;;  %v4193_v26 = vld [vmem:[#allocation12 + $0xe38] sm:$0xff] }
 0xcb3   : > { %6546 = vmatpush1.bf16.msra.mxu1 %v6545_v43  ;;  %6292 = vmatprep.subr.bf16.mxu0 %v6291_v8  ;;  %v6311_v43 = vpack.c.bf16 %v3616_v16, %v3614_v13  ;;  %v3613_v8 = vld [vmem:[#allocation12 + $0x500] sm:$0xff]  ;;  %v3636_v13 = vld [vmem:[#allocation12 + $0x5b8] sm:$0xff]  ;;  %v4175_v16 = vld [vmem:[#allocation12 + $0xda8] sm:$0xff] }
 0xcb4   : > { %6548 = vmatprep.subr.bf16.mxu1 %v6547_v42  ;;  %v4156_v42 = vld [vmem:[#allocation12 + $0xd10] sm:$0xff]  ;;  %v6313_v10 = vpack.c.bf16 %v3615_v6, %v3613_v8  ;;  %v4174_v6 = vld [vmem:[#allocation12 + $0xda0] sm:$0xff]  ;;  %v4191_v47 = vld [vmem:[#allocation12 + $0xe28] sm:$0xff] }
 0xcb5   : > { %v3635_v8 = vld [vmem:[#allocation12 + $0x5b0] sm:$0xff] }
 0xcb6   : > { %6294 = vmatpush1.bf16.msra.mxu0 %v6293_v46  ;;  %v6569_v46 = vpack.c.bf16 %v4156_v42, %v4154_v14  ;;  %v6587_v14 = vpack.c.bf16 %v4177_v61, %v4175_v16  ;;  %v3638_v42 = vld [vmem:[#allocation12 + $0x5c8] sm:$0xff]  ;;  %v4197_v16 = vld [vmem:[#allocation12 + $0xe58] sm:$0xff] }
 0xcb7   : > { %6550 = vmatpush1.bf16.msra.mxu1 %v6549_v20  ;;  %6296 = vmatprep.subr.bf16.mxu0 %v6295_v1  ;;  %v6315_v20 = vpack.c.bf16 %v3620_v60, %v3618_v57  ;;  %v3617_v1 = vld [vmem:[#allocation12 + $0x520] sm:$0xff]  ;;  %v3640_v57 = vld [vmem:[#allocation12 + $0x5d8] sm:$0xff]  ;;  %v4179_v60 = vld [vmem:[#allocation12 + $0xdc8] sm:$0xff] }
 0xcb8   : > { %6552 = vmatprep.subr.bf16.mxu1 %v6551_v45  ;;  %v4160_v45 = vld [vmem:[#allocation12 + $0xd30] sm:$0xff]  ;;  %v6317_v51 = vpack.c.bf16 %v3619_v40, %v3617_v1  ;;  %v4178_v40 = vld [vmem:[#allocation12 + $0xdc0] sm:$0xff] }
 0xcb9   : > { %v3639_v1 = vld [vmem:[#allocation12 + $0x5d0] sm:$0xff] }
 0xcba   : > { %6298 = vmatpush1.bf16.msra.mxu0 %v6297_v28  ;;  %v6573_v28 = vpack.c.bf16 %v4160_v45, %v4158_v49  ;;  %v6591_v49 = vpack.c.bf16 %v4181_v15, %v4179_v60  ;;  %v3642_v45 = vld [vmem:[#allocation12 + $0x5e8] sm:$0xff]  ;;  %v4201_v60 = vld [vmem:[#allocation12 + $0xe78] sm:$0xff] }
 0xcbb   : > { %6554 = vmatpush1.bf16.msra.mxu1 %v6553_v36  ;;  %6300 = vmatprep.subr.bf16.mxu0 %v6299_v53  ;;  %v6319_v36 = vpack.c.bf16 %v3624_v7, %v3622_v32  ;;  %v3621_v53 = vld [vmem:[#allocation12 + $0x540] sm:$0xff]  ;;  %v3644_v32 = vld [vmem:[#allocation12 + $0x5f8] sm:$0xff]  ;;  %v4183_v7 = vld [vmem:[#allocation12 + $0xde8] sm:$0xff] }
 0xcbc   : > { %6556 = vmatprep.subr.bf16.mxu1 %v6555_v21  ;;  %v4164_v21 = vld [vmem:[#allocation12 + $0xd50] sm:$0xff]  ;;  %v6321_v29 = vpack.c.bf16 %v3623_v9, %v3621_v53  ;;  %v4182_v9 = vld [vmem:[#allocation12 + $0xde0] sm:$0xff] }
 0xcbd   : > { %v3643_v53 = vld [vmem:[#allocation12 + $0x5f0] sm:$0xff] }
 0xcbe   : > { %6302 = vmatpush1.bf16.msra.mxu0 %v6301_v18  ;;  %v6577_v18 = vpack.c.bf16 %v4164_v21, %v4162_v27  ;;  %v6595_v27 = vpack.c.bf16 %v4185_v4, %v4183_v7  ;;  %v3646_v21 = vld [vmem:[#allocation12 + $0x608] sm:$0xff] }
 0xcbf   : > { %6558 = vmatpush1.bf16.msra.mxu1 %v6557_v37  ;;  %6304 = vmatprep.subr.bf16.mxu0 %v6303_v25  ;;  %v6323_v37 = vpack.c.bf16 %v3628_v19, %v3626_v38  ;;  %v3625_v25 = vld [vmem:[#allocation12 + $0x560] sm:$0xff]  ;;  %v3648_v38 = vld [vmem:[#allocation12 + $0x618] sm:$0xff]  ;;  %v4187_v19 = vld [vmem:[#allocation12 + $0xe08] sm:$0xff] }
 0xcc0   : > { %6560 = vmatprep.subr.bf16.mxu1 %v6559_v24  ;;  %v4168_v24 = vld [vmem:[#allocation12 + $0xd70] sm:$0xff]  ;;  %v6325_v11 = vpack.c.bf16 %v3627_v54, %v3625_v25  ;;  %v6599_v54 = vpack.c.bf16 %v4189_v0, %v4187_v19 }
 0xcc1   : > { %v3647_v25 = vld [vmem:[#allocation12 + $0x610] sm:$0xff] }
 0xcc2   : > { %6306 = vmatpush1.bf16.msra.mxu0 %v6305_v62  ;;  %v6581_v62 = vpack.c.bf16 %v4168_v24, %v4166_v58  ;;  %v4186_v58 = vld [vmem:[#allocation12 + $0xe00] sm:$0xff]  ;;  %v3650_v24 = vld [vmem:[#allocation12 + $0x628] sm:$0xff] }
 0xcc3   : > { %6562 = vmatpush1.bf16.msra.mxu1 %v6561_v59  ;;  %6308 = vmatprep.subr.bf16.mxu0 %v6307_v34  ;;  %v6327_v59 = vpack.c.bf16 %v3632_v2, %v3630_v31  ;;  %v3629_v34 = vld [vmem:[#allocation12 + $0x580] sm:$0xff]  ;;  %v3652_v31 = vld [vmem:[#allocation12 + $0x638] sm:$0xff] }
 0xcc4   : > { %6564 = vmatprep.subr.bf16.mxu1 %v6563_v39  ;;  %v4172_v39 = vld [vmem:[#allocation12 + $0xd90] sm:$0xff]  ;;  %v6329_v41 = vpack.c.bf16 %v3631_v3, %v3629_v34  ;;  %v4190_v34 = vld [vmem:[#allocation12 + $0xe20] sm:$0xff]  ;;  %v6347_v3 = vpack.c.bf16 %v3652_v31, %v3650_v24  ;;  %v4213_v24 = vld [vmem:[#allocation12 + $0xed8] sm:$0xff] }
 0xcc6   : > { %6310 = vmatpush1.bf16.msra.mxu0 %v6309_v44  ;;  %v6585_v44 = vpack.c.bf16 %v4172_v39, %v4170_v33  ;;  %v4192_v33 = vld [vmem:[#allocation12 + $0xe30] sm:$0xff]  ;;  %v3656_v39 = vld [vmem:[#allocation12 + $0x658] sm:$0xff] }
 0xcc7   : > { %6566 = vmatpush1.bf16.msra.mxu1 %v6565_v55  ;;  %6312 = vmatprep.subr.bf16.mxu0 %v6311_v43  ;;  %v6331_v55 = vpack.c.bf16 %v3636_v13, %v3634_v63  ;;  %v3633_v43 = vld [vmem:[#allocation12 + $0x5a0] sm:$0xff]  ;;  %v6603_v63 = vpack.c.bf16 %v4193_v26, %v4191_v47  ;;  %v4195_v13 = vld [vmem:[#allocation12 + $0xe48] sm:$0xff] }
 0xcc8   : > { %6568 = vmatprep.subr.bf16.mxu1 %v6567_v35  ;;  %v4176_v35 = vld [vmem:[#allocation12 + $0xdb0] sm:$0xff]  ;;  %v6333_v23 = vpack.c.bf16 %v3635_v8, %v3633_v43  ;;  %v4194_v8 = vld [vmem:[#allocation12 + $0xe40] sm:$0xff] }
 0xcc9   : > { %v3655_v43 = vld [vmem:[#allocation12 + $0x650] sm:$0xff]  ;;  %v3669_v26 = vld [vmem:[#allocation12 + $0x6c0] sm:$0xff] }
 0xcca   : > { %6314 = vmatpush1.bf16.msra.mxu0 %v6313_v10  ;;  %v6589_v10 = vpack.c.bf16 %v4176_v35, %v4174_v6  ;;  %v7432_v6 = vld [vmem:[%s9129_s20 + $0x38] sm:$0xff]  ;;  %v4196_v35 = vld [vmem:[#allocation12 + $0xe50] sm:$0xff] }
 0xccb   : > { %6570 = vmatpush1.bf16.msra.mxu1 %v6569_v46  ;;  %6316 = vmatprep.subr.bf16.mxu0 %v6315_v20  ;;  %v6335_v46 = vpack.c.bf16 %v3640_v57, %v3638_v42  ;;  %v3637_v20 = vld [vmem:[#allocation12 + $0x5c0] sm:$0xff]  ;;  %v3658_v42 = vld [vmem:[#allocation12 + $0x668] sm:$0xff]  ;;  %v3660_v57 = vld [vmem:[#allocation12 + $0x678] sm:$0xff]  ;;  %v6609_v22 = vpack.c.bf16 %v4196_v35, %v4194_v8 }
 0xccc   : > { %6572 = vmatprep.subr.bf16.mxu1 %v6571_v50  ;;  %v4180_v50 = vld [vmem:[#allocation12 + $0xdd0] sm:$0xff]  ;;  %v6337_v52 = vpack.c.bf16 %v3639_v1, %v3637_v20  ;;  %v3678_v8 = vld [vmem:[#allocation12 + $0x708] sm:$0xff]  ;;  %v4221_v35 = vld [vmem:[#allocation12 + $0xf18] sm:$0xff] }
 0xccd   : > { %v4200_v1 = vld [vmem:[#allocation12 + $0xe70] sm:$0xff] }
 0xcce   : > { %6318 = vmatpush1.bf16.msra.mxu0 %v6317_v51  ;;  %v6593_v51 = vpack.c.bf16 %v4180_v50, %v4178_v40  ;;  %v3662_v40 = vld [vmem:[#allocation12 + $0x688] sm:$0xff] }
 0xccf   : > { %6574 = vmatpush1.bf16.msra.mxu1 %v6573_v28  ;;  %6320 = vmatprep.subr.bf16.mxu0 %v6319_v36  ;;  %v6339_v28 = vpack.c.bf16 %v3644_v32, %v3642_v45  ;;  %v3641_v36 = vld [vmem:[#allocation12 + $0x5e0] sm:$0xff]  ;;  %v4203_v50 = vld [vmem:[#allocation12 + $0xe88] sm:$0xff]  ;;  %v4205_v45 = vld [vmem:[#allocation12 + $0xe98] sm:$0xff] }
 0xcd0   : > { %6576 = vmatprep.subr.bf16.mxu1 %v6575_v5  ;;  %v4184_v5 = vld [vmem:[#allocation12 + $0xdf0] sm:$0xff]  ;;  %v6341_v12 = vpack.c.bf16 %v3643_v53, %v3641_v36  ;;  %v6615_v36 = vpack.c.bf16 %v4205_v45, %v4203_v50  ;;  %v3681_v45 = vld [vmem:[#allocation12 + $0x720] sm:$0xff] }
 0xcd1   : > { %v4204_v53 = vld [vmem:[#allocation12 + $0xe90] sm:$0xff] }
 0xcd2   : > { %6322 = vmatpush1.bf16.msra.mxu0 %v6321_v29  ;;  %v6597_v29 = vpack.c.bf16 %v4184_v5, %v4182_v9  ;;  %v3666_v9 = vld [vmem:[#allocation12 + $0x6a8] sm:$0xff] }
 0xcd3   : > { %6578 = vmatpush1.bf16.msra.mxu1 %v6577_v18  ;;  %6324 = vmatprep.subr.bf16.mxu0 %v6323_v37  ;;  %v6343_v18 = vpack.c.bf16 %v3648_v38, %v3646_v21  ;;  %v3645_v37 = vld [vmem:[#allocation12 + $0x600] sm:$0xff]  ;;  %v4207_v5 = vld [vmem:[#allocation12 + $0xea8] sm:$0xff]  ;;  %v4209_v21 = vld [vmem:[#allocation12 + $0xeb8] sm:$0xff] }
 0xcd4   : > { %6580 = vmatprep.subr.bf16.mxu1 %v6579_v17  ;;  %v4188_v17 = vld [vmem:[#allocation12 + $0xe10] sm:$0xff]  ;;  %v6345_v2 = vpack.c.bf16 %v3647_v25, %v3645_v37  ;;  %v6619_v37 = vpack.c.bf16 %v4209_v21, %v4207_v5  ;;  %v3685_v21 = vld [vmem:[#allocation12 + $0x740] sm:$0xff] }
 0xcd5   : > { %v4208_v25 = vld [vmem:[#allocation12 + $0xeb0] sm:$0xff] }
 0xcd6   : > { %6326 = vmatpush1.bf16.msra.mxu0 %v6325_v11  ;;  %v6601_v11 = vpack.c.bf16 %v4188_v17, %v4186_v58  ;;  %v3672_v58 = vld [vmem:[#allocation12 + $0x6d8] sm:$0xff]  ;;  %v4211_v17 = vld [vmem:[#allocation12 + $0xec8] sm:$0xff] }
 0xcd7   : > { %6582 = vmatpush1.bf16.msra.mxu1 %v6581_v62  ;;  %6328 = vmatprep.subr.bf16.mxu0 %v6327_v59  ;;  %v3649_v62 = vld [vmem:[#allocation12 + $0x620] sm:$0xff]  ;;  %v3651_v59 = vld [vmem:[#allocation12 + $0x630] sm:$0xff] }
 0xcd8   : > { %6584 = vmatprep.subr.bf16.mxu1 %v6583_v30  ;;  %v3654_v30 = vld [vmem:[#allocation12 + $0x648] sm:$0xff]  ;;  %v6349_v61 = vpack.c.bf16 %v3651_v59, %v3649_v62  ;;  %v4210_v62 = vld [vmem:[#allocation12 + $0xec0] sm:$0xff]  ;;  %v6623_v59 = vpack.c.bf16 %v4213_v24, %v4211_v17 }
 0xcd9   : > { %v3689_v24 = vld [vmem:[#allocation12 + $0x760] sm:$0xff] }
 0xcda   : > { %6330 = vmatpush1.bf16.msra.mxu0 %v6329_v41  ;;  %v6605_v41 = vpack.c.bf16 %v4192_v33, %v4190_v34  ;;  %v4212_v34 = vld [vmem:[#allocation12 + $0xed0] sm:$0xff]  ;;  %v3676_v33 = vld [vmem:[#allocation12 + $0x6f8] sm:$0xff] }
 0xcdb   : > { %6586 = vmatpush1.bf16.msra.mxu1 %v6585_v44  ;;  %6332 = vmatprep.subr.bf16.mxu0 %v6331_v55  ;;  %v6351_v44 = vpack.c.bf16 %v3656_v39, %v3654_v30  ;;  %v3653_v55 = vld [vmem:[#allocation12 + $0x640] sm:$0xff]  ;;  %v4215_v30 = vld [vmem:[#allocation12 + $0xee8] sm:$0xff]  ;;  %v4217_v39 = vld [vmem:[#allocation12 + $0xef8] sm:$0xff] }
 0xcdc   : > { %6588 = vmatprep.subr.bf16.mxu1 %v6587_v14  ;;  %v6607_v14 = vpack.c.bf16 %v4197_v16, %v4195_v13  ;;  %v6353_v15 = vpack.c.bf16 %v3655_v43, %v3653_v55  ;;  %v6625_v13 = vpack.c.bf16 %v4212_v34, %v4210_v62  ;;  %v6627_v55 = vpack.c.bf16 %v4217_v39, %v4215_v30  ;;  %v4216_v43 = vld [vmem:[#allocation12 + $0xef0] sm:$0xff]  ;;  %v3696_v62 = vld [vmem:[#allocation12 + $0x798] sm:$0xff]  ;;  %v3693_v39 = vld [vmem:[#allocation12 + $0x780] sm:$0xff] }
 0xcdd   : > { %v4237_v34 = vld [vmem:[#allocation12 + $0xf98] sm:$0xff] }
 0xcde   : > { %6334 = vmatpush1.bf16.msra.mxu0 %v6333_v23  ;;  %v3657_v23 = vld [vmem:[#allocation12 + $0x660] sm:$0xff] }
 0xcdf   : > { %6590 = vmatpush1.bf16.msra.mxu1 %v6589_v10  ;;  %6336 = vmatprep.subr.bf16.mxu0 %v6335_v46  ;;  %v3659_v10 = vld [vmem:[#allocation12 + $0x670] sm:$0xff]  ;;  %v4198_v46 = vld [vmem:[#allocation12 + $0xe60] sm:$0xff] }
 0xce0   : > { %6592 = vmatprep.subr.bf16.mxu1 %v6591_v49  ;;  %v3664_v49 = vld [vmem:[#allocation12 + $0x698] sm:$0xff]  ;;  %v6357_v32 = vpack.c.bf16 %v3659_v10, %v3657_v23  ;;  %v6613_v7 = vpack.c.bf16 %v4200_v1, %v4198_v46  ;;  %v4220_v23 = vld [vmem:[#allocation12 + $0xf10] sm:$0xff]  ;;  %v3682_v10 = vld [vmem:[#allocation12 + $0x728] sm:$0xff] }
 0xce1   : > { %v6359_v4 = vpack.c.bf16 %v3664_v49, %v3662_v40  ;;  %v3684_v46 = vld [vmem:[#allocation12 + $0x738] sm:$0xff] }
 0xce2   : > { %6338 = vmatpush1.bf16.msra.mxu0 %v6337_v52  ;;  %v3661_v52 = vld [vmem:[#allocation12 + $0x680] sm:$0xff]  ;;  %v4225_v1 = vld [vmem:[#allocation12 + $0xf38] sm:$0xff]  ;;  %v6379_v50 = vpack.c.bf16 %v3684_v46, %v3682_v10 }
 0xce3   : > { %6594 = vmatpush1.bf16.msra.mxu1 %v6593_v51  ;;  %6340 = vmatprep.subr.bf16.mxu0 %v6339_v28  ;;  %v3663_v51 = vld [vmem:[#allocation12 + $0x690] sm:$0xff]  ;;  %v4202_v28 = vld [vmem:[#allocation12 + $0xe80] sm:$0xff] }
 0xce4   : > { %6596 = vmatprep.subr.bf16.mxu1 %v6595_v27  ;;  %v3668_v27 = vld [vmem:[#allocation12 + $0x6b8] sm:$0xff]  ;;  %v6361_v38 = vpack.c.bf16 %v3663_v51, %v3661_v52  ;;  %v6617_v19 = vpack.c.bf16 %v4204_v53, %v4202_v28  ;;  %v4224_v52 = vld [vmem:[#allocation12 + $0xf30] sm:$0xff]  ;;  %v3686_v51 = vld [vmem:[#allocation12 + $0x748] sm:$0xff] }
 0xce5   : > { %v6363_v0 = vpack.c.bf16 %v3668_v27, %v3666_v9  ;;  %v3688_v28 = vld [vmem:[#allocation12 + $0x758] sm:$0xff] }
 0xce6   : > { %6342 = vmatpush1.bf16.msra.mxu0 %v6341_v12  ;;  %v3665_v12 = vld [vmem:[#allocation12 + $0x6a0] sm:$0xff]  ;;  %v4229_v53 = vld [vmem:[#allocation12 + $0xf58] sm:$0xff]  ;;  %v6383_v5 = vpack.c.bf16 %v3688_v28, %v3686_v51 }
 0xce7   : > { %6598 = vmatpush1.bf16.msra.mxu1 %v6597_v29  ;;  %6344 = vmatprep.subr.bf16.mxu0 %v6343_v18  ;;  %v3667_v29 = vld [vmem:[#allocation12 + $0x6b0] sm:$0xff]  ;;  %v4206_v18 = vld [vmem:[#allocation12 + $0xea0] sm:$0xff] }
 0xce8   : > { %6600 = vmatprep.subr.bf16.mxu1 %v6599_v54  ;;  %v3670_v54 = vld [vmem:[#allocation12 + $0x6c8] sm:$0xff]  ;;  %v6365_v31 = vpack.c.bf16 %v3667_v29, %v3665_v12  ;;  %v4228_v12 = vld [vmem:[#allocation12 + $0xf50] sm:$0xff] }
 0xce9   : > { %3916 = vmatmul.mubr.f32.vlgmr.msra.gmra.mrb[20].mxu0 %v9143_v48  ;;  %v6367_v47 = vpack.c.bf16 %v3672_v58, %v3670_v54  ;;  %v3690_v29 = vld [vmem:[#allocation12 + $0x768] sm:$0xff] }
 0xcea   : > { %4457 = vmatmul.mubr.f32.vlgmr.msra.gmra.mrb[20].mxu1 %v9143_v48  ;;  %6346 = vmatpush1.bf16.msra.mxu0 %v6345_v2  ;;  %v4199_v48 = vld [vmem:[#allocation12 + $0xe68] sm:$0xff]  ;;  %v6621_v2 = vpack.c.bf16 %v4208_v25, %v4206_v18  ;;  %v3692_v18 = vld [vmem:[#allocation12 + $0x778] sm:$0xff] }
 0xceb   : > { %3986 = vmatprep.mubr.f32.mxu0 %v3444_v56  ;;  %6602 = vmatpush1.bf16.msra.mxu1 %v6601_v11  ;;  %v6355_v56 = vpack.c.bf16 %v3660_v57, %v3658_v42  ;;  %v6611_v20 = vpack.c.bf16 %v4201_v60, %v4199_v48  ;;  %v3671_v11 = vld [vmem:[#allocation12 + $0x6d0] sm:$0xff]  ;;  %v3677_v60 = vld [vmem:[#allocation12 + $0x700] sm:$0xff]  ;;  %v4233_v25 = vld [vmem:[#allocation12 + $0xf78] sm:$0xff]  ;;  %v6387_v17 = vpack.c.bf16 %v3692_v18, %v3690_v29 }
 0xcec   : > { %4527 = vmatprep.mubr.f32.mxu1 %v7432_v6  ;;  %6348 = vmatprep.subr.bf16.mxu0 %v6347_v3  ;;  %v3674_v3 = vld [vmem:[#allocation12 + $0x6e8] sm:$0xff]  ;;  %v3680_v6 = vld [vmem:[#allocation12 + $0x718] sm:$0xff] }
 0xced   : > { %6604 = vmatprep.subr.bf16.mxu1 %v6603_v63  ;;  %v6369_v63 = vpack.c.bf16 %v3671_v11, %v3669_v26  ;;  %v6371_v16 = vpack.c.bf16 %v3676_v33, %v3674_v3  ;;  %v6375_v48 = vpack.c.bf16 %v3680_v6, %v3678_v8  ;;  %v4232_v26 = vld [vmem:[#allocation12 + $0xf70] sm:$0xff]  ;;  %v3694_v11 = vld [vmem:[#allocation12 + $0x788] sm:$0xff] }
 0xcee   : > { %6350 = vmatpush1.bf16.msra.mxu0 %v6349_v61  ;;  %v3673_v61 = vld [vmem:[#allocation12 + $0x6e0] sm:$0xff]  ;;  %v6391_v30 = vpack.c.bf16 %v3696_v62, %v3694_v11  ;;  %v5087_v11 = vld [vmem:[#allocation12 + $0x1838] sm:$0xff] }
 0xcef   : > { %6606 = vmatpush1.bf16.msra.mxu1 %v6605_v41  ;;  %6352 = vmatprep.subr.bf16.mxu0 %v6351_v44  ;;  %v3675_v41 = vld [vmem:[#allocation12 + $0x6f0] sm:$0xff]  ;;  %v4214_v44 = vld [vmem:[#allocation12 + $0xee0] sm:$0xff] }
 0xcf0   : > { %6608 = vmatprep.subr.bf16.mxu1 %v6607_v14  ;;  %v4219_v14 = vld [vmem:[#allocation12 + $0xf08] sm:$0xff]  ;;  %v6373_v42 = vpack.c.bf16 %v3675_v41, %v3673_v61  ;;  %v6629_v57 = vpack.c.bf16 %v4216_v43, %v4214_v44  ;;  %v4236_v61 = vld [vmem:[#allocation12 + $0xf90] sm:$0xff]  ;;  %v3700_v44 = vld [vmem:[#allocation12 + $0x7b8] sm:$0xff] }
 0xcf1   : > { %v3698_v41 = vld [vmem:[#allocation12 + $0x7a8] sm:$0xff]  ;;  %v4241_v43 = vld [vmem:[#allocation12 + $0xfb8] sm:$0xff] }
 0xcf2   : > { %6354 = vmatpush1.bf16.msra.mxu0 %v6353_v15  ;;  %v3679_v15 = vld [vmem:[#allocation12 + $0x710] sm:$0xff] }
 0xcf3   : > { %6610 = vmatpush1.bf16.msra.mxu1 %v6609_v22  ;;  %6356 = vmatprep.subr.bf16.mxu0 %v6355_v56  ;;  %v4218_v22 = vld [vmem:[#allocation12 + $0xf00] sm:$0xff]  ;;  %v6631_v56 = vpack.c.bf16 %v4221_v35, %v4219_v14  ;;  %v6377_v40 = vpack.c.bf16 %v3679_v15, %v3677_v60  ;;  %v6395_v14 = vpack.c.bf16 %v3700_v44, %v3698_v41  ;;  %v4240_v60 = vld [vmem:[#allocation12 + $0xfb0] sm:$0xff]  ;;  %v3702_v15 = vld [vmem:[#allocation12 + $0x7c8] sm:$0xff] }
 0xcf4   : > { %6612 = vmatprep.subr.bf16.mxu1 %v6611_v20  ;;  %v4223_v20 = vld [vmem:[#allocation12 + $0xf28] sm:$0xff]  ;;  %v6633_v49 = vpack.c.bf16 %v4220_v23, %v4218_v22  ;;  %v3697_v35 = vld [vmem:[#allocation12 + $0x7a0] sm:$0xff]  ;;  %v3704_v22 = vld [vmem:[#allocation12 + $0x7d8] sm:$0xff] }
 0xcf5   : > { %v4245_v23 = vld [vmem:[#allocation12 + $0xfd8] sm:$0xff] }
 0xcf6   : > { %6358 = vmatpush1.bf16.msra.mxu0 %v6357_v32  ;;  %v3683_v32 = vld [vmem:[#allocation12 + $0x730] sm:$0xff]  ;;  %v5091_v41 = vld [vmem:[#allocation12 + $0x1858] sm:$0xff] }
 0xcf7   : > { %6614 = vmatpush1.bf16.msra.mxu1 %v6613_v7  ;;  %6360 = vmatprep.subr.bf16.mxu0 %v6359_v4  ;;  %v4222_v7 = vld [vmem:[#allocation12 + $0xf20] sm:$0xff]  ;;  %v6635_v4 = vpack.c.bf16 %v4225_v1, %v4223_v20  ;;  %v6381_v9 = vpack.c.bf16 %v3683_v32, %v3681_v45  ;;  %v6399_v20 = vpack.c.bf16 %v3704_v22, %v3702_v15  ;;  %v4244_v45 = vld [vmem:[#allocation12 + $0xfd0] sm:$0xff]  ;;  %v3706_v32 = vld [vmem:[#allocation12 + $0x7e8] sm:$0xff] }
 0xcf8   : > { %6616 = vmatprep.subr.bf16.mxu1 %v6615_v36  ;;  %v4227_v36 = vld [vmem:[#allocation12 + $0xf48] sm:$0xff]  ;;  %v6637_v27 = vpack.c.bf16 %v4224_v52, %v4222_v7  ;;  %v3701_v1 = vld [vmem:[#allocation12 + $0x7c0] sm:$0xff]  ;;  %v3708_v7 = vld [vmem:[#allocation12 + $0x7f8] sm:$0xff] }
 0xcf9   : > { %v4249_v52 = vld [vmem:[#allocation12 + $0xff8] sm:$0xff]  ;;  %v5093_v15 = vld [vmem:[#allocation12 + $0x1868] sm:$0xff] }
 0xcfa   : > { %6362 = vmatpush1.bf16.msra.mxu0 %v6361_v38  ;;  %v3687_v38 = vld [vmem:[#allocation12 + $0x750] sm:$0xff]  ;;  %v5095_v22 = vld [vmem:[#allocation12 + $0x1878] sm:$0xff] }
 0xcfb   : > { %6618 = vmatpush1.bf16.msra.mxu1 %v6617_v19  ;;  %6364 = vmatprep.subr.bf16.mxu0 %v6363_v0  ;;  %v4226_v19 = vld [vmem:[#allocation12 + $0xf40] sm:$0xff]  ;;  %v6639_v0 = vpack.c.bf16 %v4229_v53, %v4227_v36  ;;  %v6385_v54 = vpack.c.bf16 %v3687_v38, %v3685_v21  ;;  %v6403_v36 = vpack.c.bf16 %v3708_v7, %v3706_v32  ;;  %v4248_v21 = vld [vmem:[#allocation12 + $0xff0] sm:$0xff]  ;;  %v4538_v38 = vld [vmem:[#allocation12 + $0x1008] sm:$0xff] }
 0xcfc   : > { %6620 = vmatprep.subr.bf16.mxu1 %v6619_v37  ;;  %v4231_v37 = vld [vmem:[#allocation12 + $0xf68] sm:$0xff]  ;;  %v6641_v58 = vpack.c.bf16 %v4228_v12, %v4226_v19  ;;  %v3705_v53 = vld [vmem:[#allocation12 + $0x7e0] sm:$0xff]  ;;  %v4540_v19 = vld [vmem:[#allocation12 + $0x1018] sm:$0xff] }
 0xcfd   : > { %v5083_v12 = vld [vmem:[#allocation12 + $0x1818] sm:$0xff]  ;;  %v5097_v32 = vld [vmem:[#allocation12 + $0x1888] sm:$0xff] }
 0xcfe   : > { %6366 = vmatpush1.bf16.msra.mxu0 %v6365_v31  ;;  %v3691_v31 = vld [vmem:[#allocation12 + $0x770] sm:$0xff]  ;;  %v5099_v7 = vld [vmem:[#allocation12 + $0x1898] sm:$0xff] }
 0xcff   : > { %6622 = vmatpush1.bf16.msra.mxu1 %v6621_v2  ;;  %6368 = vmatprep.subr.bf16.mxu0 %v6367_v47  ;;  %v4230_v2 = vld [vmem:[#allocation12 + $0xf60] sm:$0xff]  ;;  %v6643_v47 = vpack.c.bf16 %v4233_v25, %v4231_v37  ;;  %v6389_v3 = vpack.c.bf16 %v3691_v31, %v3689_v24  ;;  %v6663_v37 = vpack.c.bf16 %v4540_v19, %v4538_v38  ;;  %v5082_v24 = vld [vmem:[#allocation12 + $0x1810] sm:$0xff]  ;;  %v4542_v31 = vld [vmem:[#allocation12 + $0x1028] sm:$0xff] }
 0xd00   : > { %6624 = vmatprep.subr.bf16.mxu1 %v6623_v59  ;;  %v4235_v59 = vld [vmem:[#allocation12 + $0xf88] sm:$0xff]  ;;  %v6645_v33 = vpack.c.bf16 %v4232_v26, %v4230_v2  ;;  %v4537_v25 = vld [vmem:[#allocation12 + $0x1000] sm:$0xff]  ;;  %v4544_v2 = vld [vmem:[#allocation12 + $0x1038] sm:$0xff] }
 0xd01   : > { %v5085_v26 = vld [vmem:[#allocation12 + $0x1828] sm:$0xff]  ;;  %v5103_v19 = vld [vmem:[#allocation12 + $0x18b8] sm:$0xff] }
 0xd02   : > { %6370 = vmatpush1.bf16.msra.mxu0 %v6369_v63  ;;  %v3695_v63 = vld [vmem:[#allocation12 + $0x790] sm:$0xff]  ;;  %v5101_v38 = vld [vmem:[#allocation12 + $0x18a8] sm:$0xff] }
 0xd03   : > { %6626 = vmatpush1.bf16.msra.mxu1 %v6625_v13  ;;  %6372 = vmatprep.subr.bf16.mxu0 %v6371_v16  ;;  %v4234_v13 = vld [vmem:[#allocation12 + $0xf80] sm:$0xff]  ;;  %v6647_v16 = vpack.c.bf16 %v4237_v34, %v4235_v59  ;;  %v6393_v8 = vpack.c.bf16 %v3695_v63, %v3693_v39  ;;  %v4543_v34 = vld [vmem:[#allocation12 + $0x1030] sm:$0xff]  ;;  %v4546_v39 = vld [vmem:[#allocation12 + $0x1048] sm:$0xff] }
 0xd04   : > { %6628 = vmatprep.subr.bf16.mxu1 %v6627_v55  ;;  %v4239_v55 = vld [vmem:[#allocation12 + $0xfa8] sm:$0xff]  ;;  %v6649_v6 = vpack.c.bf16 %v4236_v61, %v4234_v13  ;;  %v4541_v59 = vld [vmem:[#allocation12 + $0x1020] sm:$0xff]  ;;  %v4548_v63 = vld [vmem:[#allocation12 + $0x1058] sm:$0xff] }
 0xd05   : > { %v7433_v13 = vld [vmem:[%s9129_s20 + $0x30] sm:$0xff]  ;;  %v5089_v61 = vld [vmem:[#allocation12 + $0x1848] sm:$0xff]  ;;  %v6669_v44 = vpack.c.bf16 %v4543_v34, %v4541_v59  ;;  %v5104_v34 = vld [vmem:[#allocation12 + $0x18c0] sm:$0xff] }
 0xd06   : > { %6374 = vmatpush1.bf16.msra.mxu0 %v6373_v42  ;;  %v3699_v42 = vld [vmem:[#allocation12 + $0x7b0] sm:$0xff] }
 0xd07   : > { %6630 = vmatpush1.bf16.msra.mxu1 %v6629_v57  ;;  %6376 = vmatprep.subr.bf16.mxu0 %v6375_v48  ;;  %v4238_v57 = vld [vmem:[#allocation12 + $0xfa0] sm:$0xff]  ;;  %v6651_v48 = vpack.c.bf16 %v4241_v43, %v4239_v55  ;;  %v6397_v10 = vpack.c.bf16 %v3699_v42, %v3697_v35  ;;  %v7434_v55 = vld [vmem:[%s9129_s20 + $0x8] sm:$0xff]  ;;  %v6927_v42 = vpack.c.bf16 %v5091_v41, %v5089_v61  ;;  %v4563_v59 = vld [vmem:[#allocation12 + $0x10d0] sm:$0xff] }
 0xd08   : > { %6632 = vmatprep.subr.bf16.mxu1 %v6631_v56  ;;  %v4243_v56 = vld [vmem:[#allocation12 + $0xfc8] sm:$0xff]  ;;  %v6653_v46 = vpack.c.bf16 %v4240_v60, %v4238_v57  ;;  %v5088_v35 = vld [vmem:[#allocation12 + $0x1840] sm:$0xff]  ;;  %v5090_v57 = vld [vmem:[#allocation12 + $0x1850] sm:$0xff] }
 0xd09   : > { %v4552_v60 = vld [vmem:[#allocation12 + $0x1078] sm:$0xff] }
 0xd0a   : > { %6378 = vmatpush1.bf16.msra.mxu0 %v6377_v40  ;;  %v3703_v40 = vld [vmem:[#allocation12 + $0x7d0] sm:$0xff] }
 0xd0b   : > { %6634 = vmatpush1.bf16.msra.mxu1 %v6633_v49  ;;  %6380 = vmatprep.subr.bf16.mxu0 %v6379_v50  ;;  %v4242_v49 = vld [vmem:[#allocation12 + $0xfc0] sm:$0xff]  ;;  %v6655_v50 = vpack.c.bf16 %v4245_v23, %v4243_v56  ;;  %v6401_v51 = vpack.c.bf16 %v3703_v40, %v3701_v1  ;;  %v6929_v23 = vpack.c.bf16 %v5090_v57, %v5088_v35  ;;  %v4572_v35 = vld [vmem:[#allocation12 + $0x1118] sm:$0xff] }
 0xd0c   : > { %6636 = vmatprep.subr.bf16.mxu1 %v6635_v4  ;;  %v4247_v4 = vld [vmem:[#allocation12 + $0xfe8] sm:$0xff]  ;;  %v6657_v28 = vpack.c.bf16 %v4244_v45, %v4242_v49  ;;  %v5092_v1 = vld [vmem:[#allocation12 + $0x1860] sm:$0xff]  ;;  %v6931_v40 = vpack.c.bf16 %v5095_v22, %v5093_v15  ;;  %v5094_v49 = vld [vmem:[#allocation12 + $0x1870] sm:$0xff] }
 0xd0d   : > { %v4556_v45 = vld [vmem:[#allocation12 + $0x1098] sm:$0xff]  ;;  %v4569_v22 = vld [vmem:[#allocation12 + $0x1100] sm:$0xff] }
 0xd0e   : > { %6382 = vmatpush1.bf16.msra.mxu0 %v6381_v9  ;;  %v3707_v9 = vld [vmem:[#allocation12 + $0x7f0] sm:$0xff]  ;;  %v5115_v57 = vld [vmem:[#allocation12 + $0x1918] sm:$0xff] }
 0xd0f   : > { %6638 = vmatpush1.bf16.msra.mxu1 %v6637_v27  ;;  %6384 = vmatprep.subr.bf16.mxu0 %v6383_v5  ;;  %v4246_v27 = vld [vmem:[#allocation12 + $0xfe0] sm:$0xff]  ;;  %v6659_v5 = vpack.c.bf16 %v4249_v52, %v4247_v4  ;;  %v6405_v29 = vpack.c.bf16 %v3707_v9, %v3705_v53  ;;  %v6933_v52 = vpack.c.bf16 %v5094_v49, %v5092_v1  ;;  %v4576_v1 = vld [vmem:[#allocation12 + $0x1138] sm:$0xff] }
 0xd10   : > { %6640 = vmatprep.subr.bf16.mxu1 %v6639_v0  ;;  %v5081_v0 = vld [vmem:[#allocation12 + $0x1808] sm:$0xff]  ;;  %v6661_v18 = vpack.c.bf16 %v4248_v21, %v4246_v27  ;;  %v5096_v53 = vld [vmem:[#allocation12 + $0x1880] sm:$0xff]  ;;  %v6935_v9 = vpack.c.bf16 %v5099_v7, %v5097_v32  ;;  %v5098_v27 = vld [vmem:[#allocation12 + $0x1890] sm:$0xff] }
 0xd11   : > { %v4560_v21 = vld [vmem:[#allocation12 + $0x10b8] sm:$0xff]  ;;  %v4573_v7 = vld [vmem:[#allocation12 + $0x1120] sm:$0xff] }
 0xd12   : > { %6386 = vmatpush1.bf16.msra.mxu0 %v6385_v54  ;;  %v4539_v54 = vld [vmem:[#allocation12 + $0x1010] sm:$0xff]  ;;  %v5119_v49 = vld [vmem:[#allocation12 + $0x1938] sm:$0xff] }
 0xd13   : > { %6642 = vmatpush1.bf16.msra.mxu1 %v6641_v58  ;;  %6388 = vmatprep.subr.bf16.mxu0 %v6387_v17  ;;  %v6919_v58 = vpack.c.bf16 %v5083_v12, %v5081_v0  ;;  %v5080_v17 = vld [vmem:[#allocation12 + $0x1800] sm:$0xff]  ;;  %v6937_v12 = vpack.c.bf16 %v5098_v27, %v5096_v53  ;;  %v4580_v53 = vld [vmem:[#allocation12 + $0x1158] sm:$0xff] }
 0xd14   : > { %6644 = vmatprep.subr.bf16.mxu1 %v6643_v47  ;;  %v6665_v47 = vpack.c.bf16 %v4539_v54, %v4537_v25  ;;  %v6921_v62 = vpack.c.bf16 %v5082_v24, %v5080_v17  ;;  %v5100_v25 = vld [vmem:[#allocation12 + $0x18a0] sm:$0xff]  ;;  %v6939_v54 = vpack.c.bf16 %v5103_v19, %v5101_v38  ;;  %v4562_v17 = vld [vmem:[#allocation12 + $0x10c8] sm:$0xff]  ;;  %v4564_v24 = vld [vmem:[#allocation12 + $0x10d8] sm:$0xff] }
 0xd15   : > { %v5123_v27 = vld [vmem:[#allocation12 + $0x1958] sm:$0xff]  ;;  %v4577_v19 = vld [vmem:[#allocation12 + $0x1140] sm:$0xff] }
 0xd16   : > { %6390 = vmatpush1.bf16.msra.mxu0 %v6389_v3  ;;  %v5084_v3 = vld [vmem:[#allocation12 + $0x1820] sm:$0xff] }
 0xd17   : > { %6646 = vmatpush1.bf16.msra.mxu1 %v6645_v33  ;;  %6392 = vmatprep.subr.bf16.mxu0 %v6391_v30  ;;  %v6667_v33 = vpack.c.bf16 %v4544_v2, %v4542_v31  ;;  %v5086_v30 = vld [vmem:[#allocation12 + $0x1830] sm:$0xff]  ;;  %v5105_v31 = vld [vmem:[#allocation12 + $0x18c8] sm:$0xff]  ;;  %v5107_v2 = vld [vmem:[#allocation12 + $0x18d8] sm:$0xff] }
 0xd18   : > { %6648 = vmatprep.subr.bf16.mxu1 %v6647_v16  ;;  %v6923_v16 = vpack.c.bf16 %v5087_v11, %v5085_v26  ;;  %v6925_v43 = vpack.c.bf16 %v5086_v30, %v5084_v3  ;;  %v6687_v11 = vpack.c.bf16 %v4564_v24, %v4562_v17  ;;  %v6943_v3 = vpack.c.bf16 %v5107_v2, %v5105_v31  ;;  %v4566_v30 = vld [vmem:[#allocation12 + $0x10e8] sm:$0xff]  ;;  %v4581_v2 = vld [vmem:[#allocation12 + $0x1160] sm:$0xff] }
 0xd1a   : > { %6394 = vmatpush1.bf16.msra.mxu0 %v6393_v8  ;;  %v6671_v8 = vpack.c.bf16 %v4548_v63, %v4546_v39  ;;  %v4568_v39 = vld [vmem:[#allocation12 + $0x10f8] sm:$0xff]  ;;  %v5109_v63 = vld [vmem:[#allocation12 + $0x18e8] sm:$0xff] }
 0xd1b   : > { %6650 = vmatpush1.bf16.msra.mxu1 %v6649_v6  ;;  %6396 = vmatprep.subr.bf16.mxu0 %v6395_v14  ;;  %v4545_v6 = vld [vmem:[#allocation12 + $0x1040] sm:$0xff]  ;;  %v4547_v14 = vld [vmem:[#allocation12 + $0x1050] sm:$0xff]  ;;  %v6691_v41 = vpack.c.bf16 %v4568_v39, %v4566_v30 }
 0xd1c   : > { %6652 = vmatprep.subr.bf16.mxu1 %v6651_v48  ;;  %v4550_v48 = vld [vmem:[#allocation12 + $0x1068] sm:$0xff]  ;;  %v6673_v56 = vpack.c.bf16 %v4547_v14, %v4545_v6  ;;  %v5110_v6 = vld [vmem:[#allocation12 + $0x18f0] sm:$0xff] }
 0xd1d   : > { %v4570_v14 = vld [vmem:[#allocation12 + $0x1108] sm:$0xff] }
 0xd1e   : > { %6398 = vmatpush1.bf16.msra.mxu0 %v6397_v10  ;;  %v6675_v10 = vpack.c.bf16 %v4552_v60, %v4550_v48  ;;  %v6695_v15 = vpack.c.bf16 %v4572_v35, %v4570_v14 }
 0xd1f   : > { %6654 = vmatpush1.bf16.msra.mxu1 %v6653_v46  ;;  %6400 = vmatprep.subr.bf16.mxu0 %v6399_v20  ;;  %v4549_v46 = vld [vmem:[#allocation12 + $0x1060] sm:$0xff]  ;;  %v4551_v20 = vld [vmem:[#allocation12 + $0x1070] sm:$0xff] }
 0xd20   : > { %6656 = vmatprep.subr.bf16.mxu1 %v6655_v50  ;;  %v4554_v50 = vld [vmem:[#allocation12 + $0x1088] sm:$0xff]  ;;  %v6677_v4 = vpack.c.bf16 %v4551_v20, %v4549_v46  ;;  %v5114_v46 = vld [vmem:[#allocation12 + $0x1910] sm:$0xff] }
 0xd21   : > { %v4574_v20 = vld [vmem:[#allocation12 + $0x1128] sm:$0xff] }
 0xd22   : > { %6402 = vmatpush1.bf16.msra.mxu0 %v6401_v51  ;;  %v6679_v51 = vpack.c.bf16 %v4556_v45, %v4554_v50  ;;  %v6699_v32 = vpack.c.bf16 %v4576_v1, %v4574_v20 }
 0xd23   : > { %6658 = vmatpush1.bf16.msra.mxu1 %v6657_v28  ;;  %6404 = vmatprep.subr.bf16.mxu0 %v6403_v36  ;;  %v4553_v28 = vld [vmem:[#allocation12 + $0x1080] sm:$0xff]  ;;  %v4555_v36 = vld [vmem:[#allocation12 + $0x1090] sm:$0xff] }
 0xd24   : > { %6660 = vmatprep.subr.bf16.mxu1 %v6659_v5  ;;  %v4558_v5 = vld [vmem:[#allocation12 + $0x10a8] sm:$0xff]  ;;  %v6681_v0 = vpack.c.bf16 %v4555_v36, %v4553_v28  ;;  %v5118_v28 = vld [vmem:[#allocation12 + $0x1930] sm:$0xff] }
 0xd25   : > { %v4578_v36 = vld [vmem:[#allocation12 + $0x1148] sm:$0xff] }
 0xd26   : > { %6406 = vmatpush1.bf16.msra.mxu0 %v6405_v29  ;;  %v6683_v29 = vpack.c.bf16 %v4560_v21, %v4558_v5  ;;  %v6703_v38 = vpack.c.bf16 %v4580_v53, %v4578_v36 }
 0xd27   : > { %6662 = vmatpush1.bf16.msra.mxu1 %v6661_v18  ;;  %6664 = vmatprep.subr.bf16.mxu0 %v6663_v37  ;;  %v4557_v18 = vld [vmem:[#allocation12 + $0x10a0] sm:$0xff]  ;;  %v4559_v37 = vld [vmem:[#allocation12 + $0x10b0] sm:$0xff] }
 0xd28   : > { %6920 = vmatprep.subr.bf16.mxu1 %v6919_v58  ;;  %v5102_v58 = vld [vmem:[#allocation12 + $0x18b0] sm:$0xff] }
 0xd29   : > { %3987 = vmatmul.mubr.f32.vlgmr.msra.gmra.mrb[20].mxu0 %v7433_v13  ;;  %v6941_v26 = vpack.c.bf16 %v5102_v58, %v5100_v25  ;;  %v4584_v25 = vld [vmem:[#allocation12 + $0x1178] sm:$0xff] }
 0xd2a   : > { %4528 = vmatmul.mubr.f32.vlgmr.msra.gmra.mrb[20].mxu1 %v7433_v13  ;;  %6666 = vmatpush1.bf16.msra.mxu0 %v6665_v47  ;;  %v6685_v47 = vpack.c.bf16 %v4559_v37, %v4557_v18  ;;  %v5111_v13 = vld [vmem:[#allocation12 + $0x18f8] sm:$0xff]  ;;  %v5122_v18 = vld [vmem:[#allocation12 + $0x1950] sm:$0xff]  ;;  %v4582_v37 = vld [vmem:[#allocation12 + $0x1168] sm:$0xff] }
 0xd2b   : > { %4857 = vmatprep.mubr.f32.mxu0 %v7434_v55  ;;  %6922 = vmatpush1.bf16.msra.mxu1 %v6921_v62  ;;  %v4561_v62 = vld [vmem:[#allocation12 + $0x10c0] sm:$0xff]  ;;  %v5127_v58 = vld [vmem:[#allocation12 + $0x1978] sm:$0xff]  ;;  %v6707_v31 = vpack.c.bf16 %v4584_v25, %v4582_v37 }
 0xd2c   : > { %5400 = vmatprep.mubr.f32.mxu1 %v7434_v55  ;;  %6668 = vmatprep.subr.bf16.mxu0 %v6667_v33  ;;  %v5106_v33 = vld [vmem:[#allocation12 + $0x18d0] sm:$0xff] }
 0xd2d   : > { %6924 = vmatprep.subr.bf16.mxu1 %v6923_v16  ;;  %v6689_v16 = vpack.c.bf16 %v4563_v59, %v4561_v62  ;;  %v6945_v61 = vpack.c.bf16 %v5106_v33, %v5104_v34  ;;  %v4567_v55 = vld [vmem:[#allocation12 + $0x10f0] sm:$0xff]  ;;  %v4586_v59 = vld [vmem:[#allocation12 + $0x1188] sm:$0xff]  ;;  %v4588_v34 = vld [vmem:[#allocation12 + $0x1198] sm:$0xff] }
 0xd2e   : > { %6670 = vmatpush1.bf16.msra.mxu0 %v6669_v44  ;;  %v4565_v44 = vld [vmem:[#allocation12 + $0x10e0] sm:$0xff]  ;;  %v5126_v62 = vld [vmem:[#allocation12 + $0x1970] sm:$0xff]  ;;  %v5131_v33 = vld [vmem:[#allocation12 + $0x1998] sm:$0xff] }
 0xd2f   : > { %6926 = vmatpush1.bf16.msra.mxu1 %v6925_v43  ;;  %6672 = vmatprep.subr.bf16.mxu0 %v6671_v8  ;;  %v5108_v43 = vld [vmem:[#allocation12 + $0x18e0] sm:$0xff]  ;;  %v6947_v8 = vpack.c.bf16 %v5111_v13, %v5109_v63  ;;  %v6693_v48 = vpack.c.bf16 %v4567_v55, %v4565_v44  ;;  %v6711_v63 = vpack.c.bf16 %v4588_v34, %v4586_v59  ;;  %v5130_v44 = vld [vmem:[#allocation12 + $0x1990] sm:$0xff]  ;;  %v4590_v55 = vld [vmem:[#allocation12 + $0x11a8] sm:$0xff] }
 0xd30   : > { %6928 = vmatprep.subr.bf16.mxu1 %v6927_v42  ;;  %v5113_v42 = vld [vmem:[#allocation12 + $0x1908] sm:$0xff]  ;;  %v6949_v60 = vpack.c.bf16 %v5110_v6, %v5108_v43  ;;  %v4585_v13 = vld [vmem:[#allocation12 + $0x1180] sm:$0xff]  ;;  %v4592_v43 = vld [vmem:[#allocation12 + $0x11b8] sm:$0xff] }
 0xd31   : > { %v5135_v6 = vld [vmem:[#allocation12 + $0x19b8] sm:$0xff] }
 0xd32   : > { %6674 = vmatpush1.bf16.msra.mxu0 %v6673_v56  ;;  %v4571_v56 = vld [vmem:[#allocation12 + $0x1110] sm:$0xff]  ;;  %v5151_v59 = vld [vmem:[#allocation12 + $0x1a38] sm:$0xff] }
 0xd33   : > { %6930 = vmatpush1.bf16.msra.mxu1 %v6929_v23  ;;  %6676 = vmatprep.subr.bf16.mxu0 %v6675_v10  ;;  %v5112_v23 = vld [vmem:[#allocation12 + $0x1900] sm:$0xff]  ;;  %v6951_v10 = vpack.c.bf16 %v5115_v57, %v5113_v42  ;;  %v6697_v50 = vpack.c.bf16 %v4571_v56, %v4569_v22  ;;  %v6715_v42 = vpack.c.bf16 %v4592_v43, %v4590_v55  ;;  %v5134_v22 = vld [vmem:[#allocation12 + $0x19b0] sm:$0xff]  ;;  %v4594_v56 = vld [vmem:[#allocation12 + $0x11c8] sm:$0xff] }
 0xd34   : > { %6932 = vmatprep.subr.bf16.mxu1 %v6931_v40  ;;  %v5117_v40 = vld [vmem:[#allocation12 + $0x1928] sm:$0xff]  ;;  %v6953_v45 = vpack.c.bf16 %v5114_v46, %v5112_v23  ;;  %v4589_v57 = vld [vmem:[#allocation12 + $0x11a0] sm:$0xff]  ;;  %v4596_v23 = vld [vmem:[#allocation12 + $0x11d8] sm:$0xff] }
 0xd35   : > { %v5139_v46 = vld [vmem:[#allocation12 + $0x19d8] sm:$0xff] }
 0xd36   : > { %6678 = vmatpush1.bf16.msra.mxu0 %v6677_v4  ;;  %v4575_v4 = vld [vmem:[#allocation12 + $0x1130] sm:$0xff]  ;;  %v5155_v55 = vld [vmem:[#allocation12 + $0x1a58] sm:$0xff] }
 0xd37   : > { %6934 = vmatpush1.bf16.msra.mxu1 %v6933_v52  ;;  %6680 = vmatprep.subr.bf16.mxu0 %v6679_v51  ;;  %v5116_v52 = vld [vmem:[#allocation12 + $0x1920] sm:$0xff]  ;;  %v6955_v51 = vpack.c.bf16 %v5119_v49, %v5117_v40  ;;  %v6701_v5 = vpack.c.bf16 %v4575_v4, %v4573_v7  ;;  %v6719_v40 = vpack.c.bf16 %v4596_v23, %v4594_v56  ;;  %v5138_v7 = vld [vmem:[#allocation12 + $0x19d0] sm:$0xff]  ;;  %v4598_v4 = vld [vmem:[#allocation12 + $0x11e8] sm:$0xff] }
 0xd38   : > { %6936 = vmatprep.subr.bf16.mxu1 %v6935_v9  ;;  %v5121_v9 = vld [vmem:[#allocation12 + $0x1948] sm:$0xff]  ;;  %v6957_v21 = vpack.c.bf16 %v5118_v28, %v5116_v52  ;;  %v4593_v49 = vld [vmem:[#allocation12 + $0x11c0] sm:$0xff]  ;;  %v4600_v52 = vld [vmem:[#allocation12 + $0x11f8] sm:$0xff] }
 0xd39   : > { %v5143_v28 = vld [vmem:[#allocation12 + $0x19f8] sm:$0xff]  ;;  %v5157_v56 = vld [vmem:[#allocation12 + $0x1a68] sm:$0xff] }
 0xd3a   : > { %6682 = vmatpush1.bf16.msra.mxu0 %v6681_v0  ;;  %v4579_v0 = vld [vmem:[#allocation12 + $0x1150] sm:$0xff]  ;;  %v5159_v23 = vld [vmem:[#allocation12 + $0x1a78] sm:$0xff] }
 0xd3b   : > { %6938 = vmatpush1.bf16.msra.mxu1 %v6937_v12  ;;  %6684 = vmatprep.subr.bf16.mxu0 %v6683_v29  ;;  %v5120_v12 = vld [vmem:[#allocation12 + $0x1940] sm:$0xff]  ;;  %v6959_v29 = vpack.c.bf16 %v5123_v27, %v5121_v9  ;;  %v6705_v17 = vpack.c.bf16 %v4579_v0, %v4577_v19  ;;  %v6723_v9 = vpack.c.bf16 %v4600_v52, %v4598_v4  ;;  %v5142_v19 = vld [vmem:[#allocation12 + $0x19f0] sm:$0xff]  ;;  %v4602_v0 = vld [vmem:[#allocation12 + $0x1208] sm:$0xff] }
 0xd3c   : > { %6940 = vmatprep.subr.bf16.mxu1 %v6939_v54  ;;  %v5125_v54 = vld [vmem:[#allocation12 + $0x1968] sm:$0xff]  ;;  %v6961_v24 = vpack.c.bf16 %v5122_v18, %v5120_v12  ;;  %v4597_v27 = vld [vmem:[#allocation12 + $0x11e0] sm:$0xff]  ;;  %v4604_v12 = vld [vmem:[#allocation12 + $0x1218] sm:$0xff] }
 0xd3d   : > { %v5147_v18 = vld [vmem:[#allocation12 + $0x1a18] sm:$0xff]  ;;  %v5161_v4 = vld [vmem:[#allocation12 + $0x1a88] sm:$0xff] }
 0xd3e   : > { %6686 = vmatpush1.bf16.msra.mxu0 %v6685_v47  ;;  %v4583_v47 = vld [vmem:[#allocation12 + $0x1170] sm:$0xff]  ;;  %v5163_v52 = vld [vmem:[#allocation12 + $0x1a98] sm:$0xff] }
 0xd3f   : > { %6942 = vmatpush1.bf16.msra.mxu1 %v6941_v26  ;;  %6688 = vmatprep.subr.bf16.mxu0 %v6687_v11  ;;  %v5124_v26 = vld [vmem:[#allocation12 + $0x1960] sm:$0xff]  ;;  %v6963_v11 = vpack.c.bf16 %v5127_v58, %v5125_v54  ;;  %v6709_v30 = vpack.c.bf16 %v4583_v47, %v4581_v2  ;;  %v6727_v54 = vpack.c.bf16 %v4604_v12, %v4602_v0  ;;  %v5146_v2 = vld [vmem:[#allocation12 + $0x1a10] sm:$0xff]  ;;  %v4606_v47 = vld [vmem:[#allocation12 + $0x1228] sm:$0xff] }
 0xd40   : > { %6944 = vmatprep.subr.bf16.mxu1 %v6943_v3  ;;  %v5129_v3 = vld [vmem:[#allocation12 + $0x1988] sm:$0xff]  ;;  %v6965_v39 = vpack.c.bf16 %v5126_v62, %v5124_v26  ;;  %v4601_v58 = vld [vmem:[#allocation12 + $0x1200] sm:$0xff]  ;;  %v4608_v26 = vld [vmem:[#allocation12 + $0x1238] sm:$0xff] }
 0xd41   : > { %v5149_v62 = vld [vmem:[#allocation12 + $0x1a28] sm:$0xff]  ;;  %v5167_v12 = vld [vmem:[#allocation12 + $0x1ab8] sm:$0xff] }
 0xd42   : > { %6690 = vmatpush1.bf16.msra.mxu0 %v6689_v16  ;;  %v4587_v16 = vld [vmem:[#allocation12 + $0x1190] sm:$0xff]  ;;  %v5165_v0 = vld [vmem:[#allocation12 + $0x1aa8] sm:$0xff] }
 0xd43   : > { %6946 = vmatpush1.bf16.msra.mxu1 %v6945_v61  ;;  %6692 = vmatprep.subr.bf16.mxu0 %v6691_v41  ;;  %v5128_v61 = vld [vmem:[#allocation12 + $0x1980] sm:$0xff]  ;;  %v6967_v41 = vpack.c.bf16 %v5131_v33, %v5129_v3  ;;  %v6713_v14 = vpack.c.bf16 %v4587_v16, %v4585_v13  ;;  %v4607_v33 = vld [vmem:[#allocation12 + $0x1230] sm:$0xff]  ;;  %v4610_v13 = vld [vmem:[#allocation12 + $0x1248] sm:$0xff] }
 0xd44   : > { %6948 = vmatprep.subr.bf16.mxu1 %v6947_v8  ;;  %v5133_v8 = vld [vmem:[#allocation12 + $0x19a8] sm:$0xff]  ;;  %v6969_v35 = vpack.c.bf16 %v5130_v44, %v5128_v61  ;;  %v4605_v3 = vld [vmem:[#allocation12 + $0x1220] sm:$0xff]  ;;  %v4612_v16 = vld [vmem:[#allocation12 + $0x1258] sm:$0xff] }
 0xd45   : > { %v7435_v61 = vld [vmem:[%s9129_s20] sm:$0xff]  ;;  %v5153_v44 = vld [vmem:[#allocation12 + $0x1a48] sm:$0xff]  ;;  %v6733_v43 = vpack.c.bf16 %v4607_v33, %v4605_v3  ;;  %v4627_v3 = vld [vmem:[#allocation12 + $0x12d0] sm:$0xff] }
 0xd46   : > { %6694 = vmatpush1.bf16.msra.mxu0 %v6693_v48  ;;  %v4591_v48 = vld [vmem:[#allocation12 + $0x11b0] sm:$0xff]  ;;  %v5168_v33 = vld [vmem:[#allocation12 + $0x1ac0] sm:$0xff] }
 0xd47   : > { %6950 = vmatpush1.bf16.msra.mxu1 %v6949_v60  ;;  %6696 = vmatprep.subr.bf16.mxu0 %v6695_v15  ;;  %v5132_v60 = vld [vmem:[#allocation12 + $0x19a0] sm:$0xff]  ;;  %v6971_v15 = vpack.c.bf16 %v5135_v6, %v5133_v8  ;;  %v6717_v20 = vpack.c.bf16 %v4591_v48, %v4589_v57  ;;  %v7436_v8 = vld [vmem:[%s9129_s20 + $0x18] sm:$0xff]  ;;  %v6991_v48 = vpack.c.bf16 %v5155_v55, %v5153_v44 }
 0xd48   : > { %6952 = vmatprep.subr.bf16.mxu1 %v6951_v10  ;;  %v5137_v10 = vld [vmem:[#allocation12 + $0x19c8] sm:$0xff]  ;;  %v6973_v1 = vpack.c.bf16 %v5134_v22, %v5132_v60  ;;  %v5152_v57 = vld [vmem:[#allocation12 + $0x1a40] sm:$0xff]  ;;  %v5154_v60 = vld [vmem:[#allocation12 + $0x1a50] sm:$0xff] }
 0xd49   : > { %v4616_v22 = vld [vmem:[#allocation12 + $0x1278] sm:$0xff] }
 0xd4a   : > { %6698 = vmatpush1.bf16.msra.mxu0 %v6697_v50  ;;  %v4595_v50 = vld [vmem:[#allocation12 + $0x11d0] sm:$0xff] }
 0xd4b   : > { %6954 = vmatpush1.bf16.msra.mxu1 %v6953_v45  ;;  %6700 = vmatprep.subr.bf16.mxu0 %v6699_v32  ;;  %v5136_v45 = vld [vmem:[#allocation12 + $0x19c0] sm:$0xff]  ;;  %v6975_v32 = vpack.c.bf16 %v5139_v46, %v5137_v10  ;;  %v6721_v36 = vpack.c.bf16 %v4595_v50, %v4593_v49  ;;  %v6993_v46 = vpack.c.bf16 %v5154_v60, %v5152_v57  ;;  %v4636_v57 = vld [vmem:[#allocation12 + $0x1318] sm:$0xff] }
 0xd4c   : > { %6956 = vmatprep.subr.bf16.mxu1 %v6955_v51  ;;  %v5141_v51 = vld [vmem:[#allocation12 + $0x19e8] sm:$0xff]  ;;  %v6977_v53 = vpack.c.bf16 %v5138_v7, %v5136_v45  ;;  %v5156_v49 = vld [vmem:[#allocation12 + $0x1a60] sm:$0xff]  ;;  %v6995_v50 = vpack.c.bf16 %v5159_v23, %v5157_v56  ;;  %v5158_v45 = vld [vmem:[#allocation12 + $0x1a70] sm:$0xff] }
 0xd4d   : > { %v4620_v7 = vld [vmem:[#allocation12 + $0x1298] sm:$0xff]  ;;  %v4633_v23 = vld [vmem:[#allocation12 + $0x1300] sm:$0xff] }
 0xd4e   : > { %6702 = vmatpush1.bf16.msra.mxu0 %v6701_v5  ;;  %v4599_v5 = vld [vmem:[#allocation12 + $0x11f0] sm:$0xff]  ;;  %v5179_v60 = vld [vmem:[#allocation12 + $0x1b18] sm:$0xff] }
 0xd4f   : > { %6958 = vmatpush1.bf16.msra.mxu1 %v6957_v21  ;;  %6704 = vmatprep.subr.bf16.mxu0 %v6703_v38  ;;  %v5140_v21 = vld [vmem:[#allocation12 + $0x19e0] sm:$0xff]  ;;  %v6979_v38 = vpack.c.bf16 %v5143_v28, %v5141_v51  ;;  %v6725_v37 = vpack.c.bf16 %v4599_v5, %v4597_v27  ;;  %v6997_v28 = vpack.c.bf16 %v5158_v45, %v5156_v49  ;;  %v4640_v49 = vld [vmem:[#allocation12 + $0x1338] sm:$0xff] }
 0xd50   : > { %6960 = vmatprep.subr.bf16.mxu1 %v6959_v29  ;;  %v5145_v29 = vld [vmem:[#allocation12 + $0x1a08] sm:$0xff]  ;;  %v6981_v25 = vpack.c.bf16 %v5142_v19, %v5140_v21  ;;  %v5160_v27 = vld [vmem:[#allocation12 + $0x1a80] sm:$0xff]  ;;  %v6999_v5 = vpack.c.bf16 %v5163_v52, %v5161_v4  ;;  %v5162_v21 = vld [vmem:[#allocation12 + $0x1a90] sm:$0xff] }
 0xd51   : > { %v4624_v19 = vld [vmem:[#allocation12 + $0x12b8] sm:$0xff]  ;;  %v4637_v52 = vld [vmem:[#allocation12 + $0x1320] sm:$0xff] }
 0xd52   : > { %6706 = vmatpush1.bf16.msra.mxu0 %v6705_v17  ;;  %v4603_v17 = vld [vmem:[#allocation12 + $0x1210] sm:$0xff]  ;;  %v5183_v45 = vld [vmem:[#allocation12 + $0x1b38] sm:$0xff] }
 0xd53   : > { %6962 = vmatpush1.bf16.msra.mxu1 %v6961_v24  ;;  %6708 = vmatprep.subr.bf16.mxu0 %v6707_v31  ;;  %v6983_v24 = vpack.c.bf16 %v5147_v18, %v5145_v29  ;;  %v5144_v31 = vld [vmem:[#allocation12 + $0x1a00] sm:$0xff]  ;;  %v7001_v18 = vpack.c.bf16 %v5162_v21, %v5160_v27  ;;  %v4644_v27 = vld [vmem:[#allocation12 + $0x1358] sm:$0xff] }
 0xd54   : > { %6964 = vmatprep.subr.bf16.mxu1 %v6963_v11  ;;  %v6729_v11 = vpack.c.bf16 %v4603_v17, %v4601_v58  ;;  %v6985_v34 = vpack.c.bf16 %v5146_v2, %v5144_v31  ;;  %v5164_v58 = vld [vmem:[#allocation12 + $0x1aa0] sm:$0xff]  ;;  %v7003_v17 = vpack.c.bf16 %v5167_v12, %v5165_v0  ;;  %v4626_v31 = vld [vmem:[#allocation12 + $0x12c8] sm:$0xff]  ;;  %v4628_v2 = vld [vmem:[#allocation12 + $0x12d8] sm:$0xff] }
 0xd55   : > { %v5187_v21 = vld [vmem:[#allocation12 + $0x1b58] sm:$0xff]  ;;  %v4641_v12 = vld [vmem:[#allocation12 + $0x1340] sm:$0xff] }
 0xd56   : > { %6710 = vmatpush1.bf16.msra.mxu0 %v6709_v30  ;;  %v5148_v30 = vld [vmem:[#allocation12 + $0x1a20] sm:$0xff] }
 0xd57   : > { %6966 = vmatpush1.bf16.msra.mxu1 %v6965_v39  ;;  %6712 = vmatprep.subr.bf16.mxu0 %v6711_v63  ;;  %v6731_v39 = vpack.c.bf16 %v4608_v26, %v4606_v47  ;;  %v5150_v63 = vld [vmem:[#allocation12 + $0x1a30] sm:$0xff]  ;;  %v5169_v47 = vld [vmem:[#allocation12 + $0x1ac8] sm:$0xff]  ;;  %v5171_v26 = vld [vmem:[#allocation12 + $0x1ad8] sm:$0xff] }
 0xd58   : > { %6968 = vmatprep.subr.bf16.mxu1 %v6967_v41  ;;  %v6987_v41 = vpack.c.bf16 %v5151_v59, %v5149_v62  ;;  %v6989_v6 = vpack.c.bf16 %v5150_v63, %v5148_v30  ;;  %v6751_v59 = vpack.c.bf16 %v4628_v2, %v4626_v31  ;;  %v7007_v30 = vpack.c.bf16 %v5171_v26, %v5169_v47  ;;  %v4630_v63 = vld [vmem:[#allocation12 + $0x12e8] sm:$0xff]  ;;  %v4645_v26 = vld [vmem:[#allocation12 + $0x1360] sm:$0xff] }
 0xd5a   : > { %6714 = vmatpush1.bf16.msra.mxu0 %v6713_v14  ;;  %v6735_v14 = vpack.c.bf16 %v4612_v16, %v4610_v13  ;;  %v4632_v13 = vld [vmem:[#allocation12 + $0x12f8] sm:$0xff]  ;;  %v5173_v16 = vld [vmem:[#allocation12 + $0x1ae8] sm:$0xff] }
 0xd5b   : > { %6970 = vmatpush1.bf16.msra.mxu1 %v6969_v35  ;;  %6716 = vmatprep.subr.bf16.mxu0 %v6715_v42  ;;  %v4609_v35 = vld [vmem:[#allocation12 + $0x1240] sm:$0xff]  ;;  %v4611_v42 = vld [vmem:[#allocation12 + $0x1250] sm:$0xff]  ;;  %v6755_v55 = vpack.c.bf16 %v4632_v13, %v4630_v63 }
 0xd5c   : > { %6972 = vmatprep.subr.bf16.mxu1 %v6971_v15  ;;  %v4614_v15 = vld [vmem:[#allocation12 + $0x1268] sm:$0xff]  ;;  %v6737_v10 = vpack.c.bf16 %v4611_v42, %v4609_v35  ;;  %v5174_v35 = vld [vmem:[#allocation12 + $0x1af0] sm:$0xff] }
 0xd5d   : > { %v4634_v42 = vld [vmem:[#allocation12 + $0x1308] sm:$0xff] }
 0xd5e   : > { %6718 = vmatpush1.bf16.msra.mxu0 %v6717_v20  ;;  %v6739_v20 = vpack.c.bf16 %v4616_v22, %v4614_v15  ;;  %v6759_v56 = vpack.c.bf16 %v4636_v57, %v4634_v42 }
 0xd5f   : > { %6974 = vmatpush1.bf16.msra.mxu1 %v6973_v1  ;;  %6720 = vmatprep.subr.bf16.mxu0 %v6719_v40  ;;  %v4613_v1 = vld [vmem:[#allocation12 + $0x1260] sm:$0xff]  ;;  %v4615_v40 = vld [vmem:[#allocation12 + $0x1270] sm:$0xff] }
 0xd60   : > { %6976 = vmatprep.subr.bf16.mxu1 %v6975_v32  ;;  %v4618_v32 = vld [vmem:[#allocation12 + $0x1288] sm:$0xff]  ;;  %v6741_v51 = vpack.c.bf16 %v4615_v40, %v4613_v1  ;;  %v5178_v1 = vld [vmem:[#allocation12 + $0x1b10] sm:$0xff] }
 0xd61   : > { %v4638_v40 = vld [vmem:[#allocation12 + $0x1328] sm:$0xff] }
 0xd62   : > { %6722 = vmatpush1.bf16.msra.mxu0 %v6721_v36  ;;  %v6743_v36 = vpack.c.bf16 %v4620_v7, %v4618_v32  ;;  %v6763_v4 = vpack.c.bf16 %v4640_v49, %v4638_v40 }
 0xd63   : > { %6978 = vmatpush1.bf16.msra.mxu1 %v6977_v53  ;;  %6724 = vmatprep.subr.bf16.mxu0 %v6723_v9  ;;  %v4617_v53 = vld [vmem:[#allocation12 + $0x1280] sm:$0xff]  ;;  %v4619_v9 = vld [vmem:[#allocation12 + $0x1290] sm:$0xff] }
 0xd64   : > { %6980 = vmatprep.subr.bf16.mxu1 %v6979_v38  ;;  %v4622_v38 = vld [vmem:[#allocation12 + $0x12a8] sm:$0xff]  ;;  %v6745_v29 = vpack.c.bf16 %v4619_v9, %v4617_v53  ;;  %v5182_v53 = vld [vmem:[#allocation12 + $0x1b30] sm:$0xff] }
 0xd65   : > { %v4642_v9 = vld [vmem:[#allocation12 + $0x1348] sm:$0xff] }
 0xd66   : > { %6726 = vmatpush1.bf16.msra.mxu0 %v6725_v37  ;;  %v6747_v37 = vpack.c.bf16 %v4624_v19, %v4622_v38  ;;  %v6767_v0 = vpack.c.bf16 %v4644_v27, %v4642_v9 }
 0xd67   : > { %6982 = vmatpush1.bf16.msra.mxu1 %v6981_v25  ;;  %6728 = vmatprep.subr.bf16.mxu0 %v6727_v54  ;;  %v4621_v25 = vld [vmem:[#allocation12 + $0x12a0] sm:$0xff]  ;;  %v4623_v54 = vld [vmem:[#allocation12 + $0x12b0] sm:$0xff] }
 0xd68   : > { %6984 = vmatprep.subr.bf16.mxu1 %v6983_v24  ;;  %v5166_v24 = vld [vmem:[#allocation12 + $0x1ab0] sm:$0xff] }
 0xd69   : > { %4858 = vmatmul.mubr.f32.vlgmr.msra.gmra.mrb[22].mxu0 %v7435_v61  ;;  %v7005_v62 = vpack.c.bf16 %v5166_v24, %v5164_v58  ;;  %v4648_v58 = vld [vmem:[#allocation12 + $0x1378] sm:$0xff] }
 0xd6a   : > { %5401 = vmatmul.mubr.f32.vlgmr.msra.gmra.mrb[22].mxu1 %v7435_v61  ;;  %6730 = vmatpush1.bf16.msra.mxu0 %v6729_v11  ;;  %v6749_v11 = vpack.c.bf16 %v4623_v54, %v4621_v25  ;;  %v5175_v61 = vld [vmem:[#allocation12 + $0x1af8] sm:$0xff]  ;;  %v5186_v25 = vld [vmem:[#allocation12 + $0x1b50] sm:$0xff]  ;;  %v4646_v54 = vld [vmem:[#allocation12 + $0x1368] sm:$0xff] }
 0xd6b   : > { %4928 = vmatprep.mubr.f32.mxu0 %v7436_v8  ;;  %6986 = vmatpush1.bf16.msra.mxu1 %v6985_v34  ;;  %v4625_v34 = vld [vmem:[#allocation12 + $0x12c0] sm:$0xff]  ;;  %v5191_v24 = vld [vmem:[#allocation12 + $0x1b78] sm:$0xff]  ;;  %v6771_v47 = vpack.c.bf16 %v4648_v58, %v4646_v54 }
 0xd6c   : > { %5471 = vmatprep.mubr.f32.mxu1 %v7436_v8  ;;  %6732 = vmatprep.subr.bf16.mxu0 %v6731_v39  ;;  %v5170_v39 = vld [vmem:[#allocation12 + $0x1ad0] sm:$0xff] }
 0xd6d   : > { %6988 = vmatprep.subr.bf16.mxu1 %v6987_v41  ;;  %v6753_v41 = vpack.c.bf16 %v4627_v3, %v4625_v34  ;;  %v7009_v44 = vpack.c.bf16 %v5170_v39, %v5168_v33  ;;  %v4631_v8 = vld [vmem:[#allocation12 + $0x12f0] sm:$0xff]  ;;  %v4650_v3 = vld [vmem:[#allocation12 + $0x1388] sm:$0xff]  ;;  %v4652_v33 = vld [vmem:[#allocation12 + $0x1398] sm:$0xff] }
 0xd6e   : > { %6734 = vmatpush1.bf16.msra.mxu0 %v6733_v43  ;;  %v4629_v43 = vld [vmem:[#allocation12 + $0x12e0] sm:$0xff]  ;;  %v5190_v34 = vld [vmem:[#allocation12 + $0x1b70] sm:$0xff]  ;;  %v5195_v39 = vld [vmem:[#allocation12 + $0x1b98] sm:$0xff] }
 0xd6f   : > { %6990 = vmatpush1.bf16.msra.mxu1 %v6989_v6  ;;  %6736 = vmatprep.subr.bf16.mxu0 %v6735_v14  ;;  %v5172_v6 = vld [vmem:[#allocation12 + $0x1ae0] sm:$0xff]  ;;  %v7011_v14 = vpack.c.bf16 %v5175_v61, %v5173_v16  ;;  %v6757_v15 = vpack.c.bf16 %v4631_v8, %v4629_v43  ;;  %v6775_v16 = vpack.c.bf16 %v4652_v33, %v4650_v3  ;;  %v5194_v43 = vld [vmem:[#allocation12 + $0x1b90] sm:$0xff]  ;;  %v4654_v8 = vld [vmem:[#allocation12 + $0x13a8] sm:$0xff] }
 0xd70   : > { %6992 = vmatprep.subr.bf16.mxu1 %v6991_v48  ;;  %v5177_v48 = vld [vmem:[#allocation12 + $0x1b08] sm:$0xff]  ;;  %v7013_v22 = vpack.c.bf16 %v5174_v35, %v5172_v6  ;;  %v4649_v61 = vld [vmem:[#allocation12 + $0x1380] sm:$0xff]  ;;  %v4656_v6 = vld [vmem:[#allocation12 + $0x13b8] sm:$0xff] }
 0xd71   : > { %v5199_v35 = vld [vmem:[#allocation12 + $0x1bb8] sm:$0xff] }
 0xd72   : > { %6738 = vmatpush1.bf16.msra.mxu0 %v6737_v10  ;;  %v4635_v10 = vld [vmem:[#allocation12 + $0x1310] sm:$0xff]  ;;  %v5215_v3 = vld [vmem:[#allocation12 + $0x1c38] sm:$0xff] }
 0xd73   : > { %6994 = vmatpush1.bf16.msra.mxu1 %v6993_v46  ;;  %6740 = vmatprep.subr.bf16.mxu0 %v6739_v20  ;;  %v5176_v46 = vld [vmem:[#allocation12 + $0x1b00] sm:$0xff]  ;;  %v7015_v20 = vpack.c.bf16 %v5179_v60, %v5177_v48  ;;  %v6761_v32 = vpack.c.bf16 %v4635_v10, %v4633_v23  ;;  %v6779_v48 = vpack.c.bf16 %v4656_v6, %v4654_v8  ;;  %v5198_v23 = vld [vmem:[#allocation12 + $0x1bb0] sm:$0xff]  ;;  %v4658_v10 = vld [vmem:[#allocation12 + $0x13c8] sm:$0xff] }
 0xd74   : > { %6996 = vmatprep.subr.bf16.mxu1 %v6995_v50  ;;  %v5181_v50 = vld [vmem:[#allocation12 + $0x1b28] sm:$0xff]  ;;  %v7017_v7 = vpack.c.bf16 %v5178_v1, %v5176_v46  ;;  %v4653_v60 = vld [vmem:[#allocation12 + $0x13a0] sm:$0xff]  ;;  %v4660_v46 = vld [vmem:[#allocation12 + $0x13d8] sm:$0xff] }
 0xd75   : > { %v5203_v1 = vld [vmem:[#allocation12 + $0x1bd8] sm:$0xff] }
 0xd76   : > { %6742 = vmatpush1.bf16.msra.mxu0 %v6741_v51  ;;  %v4639_v51 = vld [vmem:[#allocation12 + $0x1330] sm:$0xff]  ;;  %v5219_v8 = vld [vmem:[#allocation12 + $0x1c58] sm:$0xff] }
 0xd77   : > { %6998 = vmatpush1.bf16.msra.mxu1 %v6997_v28  ;;  %6744 = vmatprep.subr.bf16.mxu0 %v6743_v36  ;;  %v5180_v28 = vld [vmem:[#allocation12 + $0x1b20] sm:$0xff]  ;;  %v7019_v36 = vpack.c.bf16 %v5183_v45, %v5181_v50  ;;  %v6765_v38 = vpack.c.bf16 %v4639_v51, %v4637_v52  ;;  %v6783_v50 = vpack.c.bf16 %v4660_v46, %v4658_v10  ;;  %v5202_v52 = vld [vmem:[#allocation12 + $0x1bd0] sm:$0xff]  ;;  %v4662_v51 = vld [vmem:[#allocation12 + $0x13e8] sm:$0xff] }
 0xd78   : > { %7000 = vmatprep.subr.bf16.mxu1 %v6999_v5  ;;  %v5185_v5 = vld [vmem:[#allocation12 + $0x1b48] sm:$0xff]  ;;  %v7021_v19 = vpack.c.bf16 %v5182_v53, %v5180_v28  ;;  %v4657_v45 = vld [vmem:[#allocation12 + $0x13c0] sm:$0xff]  ;;  %v4664_v28 = vld [vmem:[#allocation12 + $0x13f8] sm:$0xff] }
 0xd79   : > { %v5207_v53 = vld [vmem:[#allocation12 + $0x1bf8] sm:$0xff]  ;;  %v5221_v10 = vld [vmem:[#allocation12 + $0x1c68] sm:$0xff] }
 0xd7a   : > { %6746 = vmatpush1.bf16.msra.mxu0 %v6745_v29  ;;  %v4643_v29 = vld [vmem:[#allocation12 + $0x1350] sm:$0xff]  ;;  %v5223_v46 = vld [vmem:[#allocation12 + $0x1c78] sm:$0xff] }
 0xd7b   : > { %7002 = vmatpush1.bf16.msra.mxu1 %v7001_v18  ;;  %6748 = vmatprep.subr.bf16.mxu0 %v6747_v37  ;;  %v5184_v18 = vld [vmem:[#allocation12 + $0x1b40] sm:$0xff]  ;;  %v7023_v37 = vpack.c.bf16 %v5187_v21, %v5185_v5  ;;  %v6769_v31 = vpack.c.bf16 %v4643_v29, %v4641_v12  ;;  %v6787_v5 = vpack.c.bf16 %v4664_v28, %v4662_v51  ;;  %v5206_v12 = vld [vmem:[#allocation12 + $0x1bf0] sm:$0xff]  ;;  %v4666_v29 = vld [vmem:[#allocation12 + $0x1408] sm:$0xff] }
 0xd7c   : > { %7004 = vmatprep.subr.bf16.mxu1 %v7003_v17  ;;  %v5189_v17 = vld [vmem:[#allocation12 + $0x1b68] sm:$0xff]  ;;  %v7025_v2 = vpack.c.bf16 %v5186_v25, %v5184_v18  ;;  %v4661_v21 = vld [vmem:[#allocation12 + $0x13e0] sm:$0xff]  ;;  %v4668_v18 = vld [vmem:[#allocation12 + $0x1418] sm:$0xff] }
 0xd7d   : > { %v5211_v25 = vld [vmem:[#allocation12 + $0x1c18] sm:$0xff]  ;;  %v5225_v51 = vld [vmem:[#allocation12 + $0x1c88] sm:$0xff] }
 0xd7e   : > { %6750 = vmatpush1.bf16.msra.mxu0 %v6749_v11  ;;  %v4647_v11 = vld [vmem:[#allocation12 + $0x1370] sm:$0xff]  ;;  %v5227_v28 = vld [vmem:[#allocation12 + $0x1c98] sm:$0xff] }
 0xd7f   : > { %7006 = vmatpush1.bf16.msra.mxu1 %v7005_v62  ;;  %6752 = vmatprep.subr.bf16.mxu0 %v6751_v59  ;;  %v5188_v62 = vld [vmem:[#allocation12 + $0x1b60] sm:$0xff]  ;;  %v7027_v59 = vpack.c.bf16 %v5191_v24, %v5189_v17  ;;  %v6773_v63 = vpack.c.bf16 %v4647_v11, %v4645_v26  ;;  %v6791_v17 = vpack.c.bf16 %v4668_v18, %v4666_v29  ;;  %v5210_v26 = vld [vmem:[#allocation12 + $0x1c10] sm:$0xff]  ;;  %v4670_v11 = vld [vmem:[#allocation12 + $0x1428] sm:$0xff] }
 0xd80   : > { %7008 = vmatprep.subr.bf16.mxu1 %v7007_v30  ;;  %v5193_v30 = vld [vmem:[#allocation12 + $0x1b88] sm:$0xff]  ;;  %v7029_v13 = vpack.c.bf16 %v5190_v34, %v5188_v62  ;;  %v4665_v24 = vld [vmem:[#allocation12 + $0x1400] sm:$0xff]  ;;  %v4672_v62 = vld [vmem:[#allocation12 + $0x1438] sm:$0xff] }
 0xd81   : > { %v5213_v34 = vld [vmem:[#allocation12 + $0x1c28] sm:$0xff]  ;;  %v5231_v18 = vld [vmem:[#allocation12 + $0x1cb8] sm:$0xff] }
 0xd82   : > { %6754 = vmatpush1.bf16.msra.mxu0 %v6753_v41  ;;  %v4651_v41 = vld [vmem:[#allocation12 + $0x1390] sm:$0xff]  ;;  %v5229_v29 = vld [vmem:[#allocation12 + $0x1ca8] sm:$0xff] }
 0xd83   : > { %7010 = vmatpush1.bf16.msra.mxu1 %v7009_v44  ;;  %6756 = vmatprep.subr.bf16.mxu0 %v6755_v55  ;;  %v5192_v44 = vld [vmem:[#allocation12 + $0x1b80] sm:$0xff]  ;;  %v7031_v55 = vpack.c.bf16 %v5195_v39, %v5193_v30  ;;  %v6777_v42 = vpack.c.bf16 %v4651_v41, %v4649_v61  ;;  %v4671_v39 = vld [vmem:[#allocation12 + $0x1430] sm:$0xff]  ;;  %v4674_v61 = vld [vmem:[#allocation12 + $0x1448] sm:$0xff] }
 0xd84   : > { %7012 = vmatprep.subr.bf16.mxu1 %v7011_v14  ;;  %v5197_v14 = vld [vmem:[#allocation12 + $0x1ba8] sm:$0xff]  ;;  %v7033_v57 = vpack.c.bf16 %v5194_v43, %v5192_v44  ;;  %v4669_v30 = vld [vmem:[#allocation12 + $0x1420] sm:$0xff]  ;;  %v4676_v41 = vld [vmem:[#allocation12 + $0x1458] sm:$0xff] }
 0xd85   : > { %v7437_v44 = vld [vmem:[%s9129_s20 + $0x10] sm:$0xff]  ;;  %v5217_v43 = vld [vmem:[#allocation12 + $0x1c48] sm:$0xff]  ;;  %v6797_v6 = vpack.c.bf16 %v4671_v39, %v4669_v30  ;;  %v5232_v39 = vld [vmem:[#allocation12 + $0x1cc0] sm:$0xff] }
 0xd86   : > { %6758 = vmatpush1.bf16.msra.mxu0 %v6757_v15  ;;  %v4655_v15 = vld [vmem:[#allocation12 + $0x13b0] sm:$0xff] }
 0xd87   : > { %7014 = vmatpush1.bf16.msra.mxu1 %v7013_v22  ;;  %6760 = vmatprep.subr.bf16.mxu0 %v6759_v56  ;;  %v5196_v22 = vld [vmem:[#allocation12 + $0x1ba0] sm:$0xff]  ;;  %v7035_v56 = vpack.c.bf16 %v5199_v35, %v5197_v14  ;;  %v6781_v40 = vpack.c.bf16 %v4655_v15, %v4653_v60  ;;  %v7438_v14 = vld [vmem:[%s9129_s20 + $0x28] sm:$0xff]  ;;  %v7055_v15 = vpack.c.bf16 %v5219_v8, %v5217_v43  ;;  %v4691_v30 = vld [vmem:[#allocation12 + $0x14d0] sm:$0xff] }
 0xd88   : > { %7016 = vmatprep.subr.bf16.mxu1 %v7015_v20  ;;  %v5201_v20 = vld [vmem:[#allocation12 + $0x1bc8] sm:$0xff]  ;;  %v7037_v49 = vpack.c.bf16 %v5198_v23, %v5196_v22  ;;  %v5216_v60 = vld [vmem:[#allocation12 + $0x1c40] sm:$0xff]  ;;  %v5218_v22 = vld [vmem:[#allocation12 + $0x1c50] sm:$0xff] }
 0xd89   : > { %v4680_v23 = vld [vmem:[#allocation12 + $0x1478] sm:$0xff] }
 0xd8a   : > { %6762 = vmatpush1.bf16.msra.mxu0 %v6761_v32  ;;  %v4659_v32 = vld [vmem:[#allocation12 + $0x13d0] sm:$0xff] }
 0xd8b   : > { %7018 = vmatpush1.bf16.msra.mxu1 %v7017_v7  ;;  %6764 = vmatprep.subr.bf16.mxu0 %v6763_v4  ;;  %v5200_v7 = vld [vmem:[#allocation12 + $0x1bc0] sm:$0xff]  ;;  %v7039_v4 = vpack.c.bf16 %v5203_v1, %v5201_v20  ;;  %v6785_v9 = vpack.c.bf16 %v4659_v32, %v4657_v45  ;;  %v7057_v1 = vpack.c.bf16 %v5218_v22, %v5216_v60  ;;  %v4700_v60 = vld [vmem:[#allocation12 + $0x1518] sm:$0xff] }
 0xd8c   : > { %7020 = vmatprep.subr.bf16.mxu1 %v7019_v36  ;;  %v5205_v36 = vld [vmem:[#allocation12 + $0x1be8] sm:$0xff]  ;;  %v7041_v27 = vpack.c.bf16 %v5202_v52, %v5200_v7  ;;  %v5220_v45 = vld [vmem:[#allocation12 + $0x1c60] sm:$0xff]  ;;  %v7059_v32 = vpack.c.bf16 %v5223_v46, %v5221_v10  ;;  %v5222_v7 = vld [vmem:[#allocation12 + $0x1c70] sm:$0xff] }
 0xd8d   : > { %v4684_v52 = vld [vmem:[#allocation12 + $0x1498] sm:$0xff]  ;;  %v4697_v46 = vld [vmem:[#allocation12 + $0x1500] sm:$0xff] }
 0xd8e   : > { %6766 = vmatpush1.bf16.msra.mxu0 %v6765_v38  ;;  %v4663_v38 = vld [vmem:[#allocation12 + $0x13f0] sm:$0xff]  ;;  %v5243_v22 = vld [vmem:[#allocation12 + $0x1d18] sm:$0xff] }
 0xd8f   : > { %7022 = vmatpush1.bf16.msra.mxu1 %v7021_v19  ;;  %6768 = vmatprep.subr.bf16.mxu0 %v6767_v0  ;;  %v5204_v19 = vld [vmem:[#allocation12 + $0x1be0] sm:$0xff]  ;;  %v7043_v0 = vpack.c.bf16 %v5207_v53, %v5205_v36  ;;  %v6789_v54 = vpack.c.bf16 %v4663_v38, %v4661_v21  ;;  %v7061_v53 = vpack.c.bf16 %v5222_v7, %v5220_v45  ;;  %v4704_v45 = vld [vmem:[#allocation12 + $0x1538] sm:$0xff] }
 0xd90   : > { %7024 = vmatprep.subr.bf16.mxu1 %v7023_v37  ;;  %v5209_v37 = vld [vmem:[#allocation12 + $0x1c08] sm:$0xff]  ;;  %v7045_v58 = vpack.c.bf16 %v5206_v12, %v5204_v19  ;;  %v5224_v21 = vld [vmem:[#allocation12 + $0x1c80] sm:$0xff]  ;;  %v7063_v38 = vpack.c.bf16 %v5227_v28, %v5225_v51  ;;  %v5226_v19 = vld [vmem:[#allocation12 + $0x1c90] sm:$0xff] }
 0xd91   : > { %v4688_v12 = vld [vmem:[#allocation12 + $0x14b8] sm:$0xff]  ;;  %v4701_v28 = vld [vmem:[#allocation12 + $0x1520] sm:$0xff] }
 0xd92   : > { %6770 = vmatpush1.bf16.msra.mxu0 %v6769_v31  ;;  %v4667_v31 = vld [vmem:[#allocation12 + $0x1410] sm:$0xff]  ;;  %v5247_v7 = vld [vmem:[#allocation12 + $0x1d38] sm:$0xff] }
 0xd93   : > { %7026 = vmatpush1.bf16.msra.mxu1 %v7025_v2  ;;  %6772 = vmatprep.subr.bf16.mxu0 %v6771_v47  ;;  %v7047_v2 = vpack.c.bf16 %v5211_v25, %v5209_v37  ;;  %v5208_v47 = vld [vmem:[#allocation12 + $0x1c00] sm:$0xff]  ;;  %v7065_v25 = vpack.c.bf16 %v5226_v19, %v5224_v21  ;;  %v4708_v21 = vld [vmem:[#allocation12 + $0x1558] sm:$0xff] }
 0xd94   : > { %7028 = vmatprep.subr.bf16.mxu1 %v7027_v59  ;;  %v6793_v59 = vpack.c.bf16 %v4667_v31, %v4665_v24  ;;  %v7049_v33 = vpack.c.bf16 %v5210_v26, %v5208_v47  ;;  %v5228_v24 = vld [vmem:[#allocation12 + $0x1ca0] sm:$0xff]  ;;  %v7067_v31 = vpack.c.bf16 %v5231_v18, %v5229_v29  ;;  %v4690_v47 = vld [vmem:[#allocation12 + $0x14c8] sm:$0xff]  ;;  %v4692_v26 = vld [vmem:[#allocation12 + $0x14d8] sm:$0xff] }
 0xd95   : > { %v5251_v19 = vld [vmem:[#allocation12 + $0x1d58] sm:$0xff]  ;;  %v4705_v18 = vld [vmem:[#allocation12 + $0x1540] sm:$0xff] }
 0xd96   : > { %6774 = vmatpush1.bf16.msra.mxu0 %v6773_v63  ;;  %v5212_v63 = vld [vmem:[#allocation12 + $0x1c20] sm:$0xff] }
 0xd97   : > { %7030 = vmatpush1.bf16.msra.mxu1 %v7029_v13  ;;  %6776 = vmatprep.subr.bf16.mxu0 %v6775_v16  ;;  %v6795_v13 = vpack.c.bf16 %v4672_v62, %v4670_v11  ;;  %v5214_v16 = vld [vmem:[#allocation12 + $0x1c30] sm:$0xff]  ;;  %v5233_v11 = vld [vmem:[#allocation12 + $0x1cc8] sm:$0xff]  ;;  %v5235_v62 = vld [vmem:[#allocation12 + $0x1cd8] sm:$0xff] }
 0xd98   : > { %7032 = vmatprep.subr.bf16.mxu1 %v7031_v55  ;;  %v7051_v55 = vpack.c.bf16 %v5215_v3, %v5213_v34  ;;  %v7053_v35 = vpack.c.bf16 %v5214_v16, %v5212_v63  ;;  %v6815_v3 = vpack.c.bf16 %v4692_v26, %v4690_v47  ;;  %v7071_v63 = vpack.c.bf16 %v5235_v62, %v5233_v11  ;;  %v4694_v16 = vld [vmem:[#allocation12 + $0x14e8] sm:$0xff]  ;;  %v4709_v62 = vld [vmem:[#allocation12 + $0x1560] sm:$0xff] }
 0xd9a   : > { %6778 = vmatpush1.bf16.msra.mxu0 %v6777_v42  ;;  %v6799_v42 = vpack.c.bf16 %v4676_v41, %v4674_v61  ;;  %v4696_v61 = vld [vmem:[#allocation12 + $0x14f8] sm:$0xff]  ;;  %v5237_v41 = vld [vmem:[#allocation12 + $0x1ce8] sm:$0xff] }
 0xd9b   : > { %7034 = vmatpush1.bf16.msra.mxu1 %v7033_v57  ;;  %6780 = vmatprep.subr.bf16.mxu0 %v6779_v48  ;;  %v4673_v57 = vld [vmem:[#allocation12 + $0x1440] sm:$0xff]  ;;  %v4675_v48 = vld [vmem:[#allocation12 + $0x1450] sm:$0xff]  ;;  %v6819_v8 = vpack.c.bf16 %v4696_v61, %v4694_v16 }
 0xd9c   : > { %7036 = vmatprep.subr.bf16.mxu1 %v7035_v56  ;;  %v4678_v56 = vld [vmem:[#allocation12 + $0x1468] sm:$0xff]  ;;  %v6801_v20 = vpack.c.bf16 %v4675_v48, %v4673_v57  ;;  %v5238_v57 = vld [vmem:[#allocation12 + $0x1cf0] sm:$0xff] }
 0xd9d   : > { %v4698_v48 = vld [vmem:[#allocation12 + $0x1508] sm:$0xff] }
 0xd9e   : > { %6782 = vmatpush1.bf16.msra.mxu0 %v6781_v40  ;;  %v6803_v40 = vpack.c.bf16 %v4680_v23, %v4678_v56  ;;  %v6823_v10 = vpack.c.bf16 %v4700_v60, %v4698_v48 }
 0xd9f   : > { %7038 = vmatpush1.bf16.msra.mxu1 %v7037_v49  ;;  %6784 = vmatprep.subr.bf16.mxu0 %v6783_v50  ;;  %v4677_v49 = vld [vmem:[#allocation12 + $0x1460] sm:$0xff]  ;;  %v4679_v50 = vld [vmem:[#allocation12 + $0x1470] sm:$0xff] }
 0xda0   : > { %7040 = vmatprep.subr.bf16.mxu1 %v7039_v4  ;;  %v4682_v4 = vld [vmem:[#allocation12 + $0x1488] sm:$0xff]  ;;  %v6805_v36 = vpack.c.bf16 %v4679_v50, %v4677_v49  ;;  %v5242_v49 = vld [vmem:[#allocation12 + $0x1d10] sm:$0xff] }
 0xda1   : > { %v4702_v50 = vld [vmem:[#allocation12 + $0x1528] sm:$0xff] }
 0xda2   : > { %6786 = vmatpush1.bf16.msra.mxu0 %v6785_v9  ;;  %v6807_v9 = vpack.c.bf16 %v4684_v52, %v4682_v4  ;;  %v6827_v51 = vpack.c.bf16 %v4704_v45, %v4702_v50 }
 0xda3   : > { %7042 = vmatpush1.bf16.msra.mxu1 %v7041_v27  ;;  %6788 = vmatprep.subr.bf16.mxu0 %v6787_v5  ;;  %v4681_v27 = vld [vmem:[#allocation12 + $0x1480] sm:$0xff]  ;;  %v4683_v5 = vld [vmem:[#allocation12 + $0x1490] sm:$0xff] }
 0xda4   : > { %7044 = vmatprep.subr.bf16.mxu1 %v7043_v0  ;;  %v4686_v0 = vld [vmem:[#allocation12 + $0x14a8] sm:$0xff]  ;;  %v6809_v37 = vpack.c.bf16 %v4683_v5, %v4681_v27  ;;  %v5246_v27 = vld [vmem:[#allocation12 + $0x1d30] sm:$0xff] }
 0xda5   : > { %v4706_v5 = vld [vmem:[#allocation12 + $0x1548] sm:$0xff] }
 0xda6   : > { %6790 = vmatpush1.bf16.msra.mxu0 %v6789_v54  ;;  %v6811_v54 = vpack.c.bf16 %v4688_v12, %v4686_v0  ;;  %v6831_v29 = vpack.c.bf16 %v4708_v21, %v4706_v5 }
 0xda7   : > { %7046 = vmatpush1.bf16.msra.mxu1 %v7045_v58  ;;  %6792 = vmatprep.subr.bf16.mxu0 %v6791_v17  ;;  %v4685_v58 = vld [vmem:[#allocation12 + $0x14a0] sm:$0xff]  ;;  %v4687_v17 = vld [vmem:[#allocation12 + $0x14b0] sm:$0xff] }
 0xda8   : > { %7048 = vmatprep.subr.bf16.mxu1 %v7047_v2  ;;  %v5230_v2 = vld [vmem:[#allocation12 + $0x1cb0] sm:$0xff] }
 0xda9   : > { %4929 = vmatmul.mubr.f32.vlgmr.msra.gmra.mrb[22].mxu0 %v7437_v44  ;;  %v7069_v34 = vpack.c.bf16 %v5230_v2, %v5228_v24  ;;  %v4712_v24 = vld [vmem:[#allocation12 + $0x1578] sm:$0xff] }
 0xdaa   : > { %5472 = vmatmul.mubr.f32.vlgmr.msra.gmra.mrb[22].mxu1 %v7437_v44  ;;  %6794 = vmatpush1.bf16.msra.mxu0 %v6793_v59  ;;  %v6813_v59 = vpack.c.bf16 %v4687_v17, %v4685_v58  ;;  %v5239_v44 = vld [vmem:[#allocation12 + $0x1cf8] sm:$0xff]  ;;  %v5250_v58 = vld [vmem:[#allocation12 + $0x1d50] sm:$0xff]  ;;  %v4710_v17 = vld [vmem:[#allocation12 + $0x1568] sm:$0xff] }
 0xdab   : > { %4999 = vmatprep.mubr.f32.mxu0 %v7438_v14  ;;  %7050 = vmatpush1.bf16.msra.mxu1 %v7049_v33  ;;  %v4689_v33 = vld [vmem:[#allocation12 + $0x14c0] sm:$0xff]  ;;  %v5255_v2 = vld [vmem:[#allocation12 + $0x1d78] sm:$0xff]  ;;  %v6835_v11 = vpack.c.bf16 %v4712_v24, %v4710_v17 }
 0xdac   : > { %5542 = vmatprep.mubr.f32.mxu1 %v7438_v14  ;;  %6796 = vmatprep.subr.bf16.mxu0 %v6795_v13  ;;  %v5234_v13 = vld [vmem:[#allocation12 + $0x1cd0] sm:$0xff] }
 0xdad   : > { %7052 = vmatprep.subr.bf16.mxu1 %v7051_v55  ;;  %v6817_v55 = vpack.c.bf16 %v4691_v30, %v4689_v33  ;;  %v7073_v43 = vpack.c.bf16 %v5234_v13, %v5232_v39  ;;  %v4695_v14 = vld [vmem:[#allocation12 + $0x14f0] sm:$0xff]  ;;  %v4714_v30 = vld [vmem:[#allocation12 + $0x1588] sm:$0xff]  ;;  %v4716_v39 = vld [vmem:[#allocation12 + $0x1598] sm:$0xff] }
 0xdae   : > { %6798 = vmatpush1.bf16.msra.mxu0 %v6797_v6  ;;  %v4693_v6 = vld [vmem:[#allocation12 + $0x14e0] sm:$0xff]  ;;  %v5254_v33 = vld [vmem:[#allocation12 + $0x1d70] sm:$0xff]  ;;  %v5259_v13 = vld [vmem:[#allocation12 + $0x1d98] sm:$0xff] }
 0xdaf   : > { %7054 = vmatpush1.bf16.msra.mxu1 %v7053_v35  ;;  %6800 = vmatprep.subr.bf16.mxu0 %v6799_v42  ;;  %v5236_v35 = vld [vmem:[#allocation12 + $0x1ce0] sm:$0xff]  ;;  %v7075_v42 = vpack.c.bf16 %v5239_v44, %v5237_v41  ;;  %v6821_v56 = vpack.c.bf16 %v4695_v14, %v4693_v6  ;;  %v6839_v41 = vpack.c.bf16 %v4716_v39, %v4714_v30  ;;  %v5258_v6 = vld [vmem:[#allocation12 + $0x1d90] sm:$0xff]  ;;  %v4718_v14 = vld [vmem:[#allocation12 + $0x15a8] sm:$0xff] }
 0xdb0   : > { %7056 = vmatprep.subr.bf16.mxu1 %v7055_v15  ;;  %v5241_v15 = vld [vmem:[#allocation12 + $0x1d08] sm:$0xff]  ;;  %v7077_v23 = vpack.c.bf16 %v5238_v57, %v5236_v35  ;;  %v4713_v44 = vld [vmem:[#allocation12 + $0x1580] sm:$0xff]  ;;  %v4720_v35 = vld [vmem:[#allocation12 + $0x15b8] sm:$0xff] }
 0xdb1   : > { %v5263_v57 = vld [vmem:[#allocation12 + $0x1db8] sm:$0xff] }
 0xdb2   : > { %6802 = vmatpush1.bf16.msra.mxu0 %v6801_v20  ;;  %v4699_v20 = vld [vmem:[#allocation12 + $0x1510] sm:$0xff]  ;;  %v5279_v30 = vld [vmem:[#allocation12 + $0x1e38] sm:$0xff] }
 0xdb3   : > { %7058 = vmatpush1.bf16.msra.mxu1 %v7057_v1  ;;  %6804 = vmatprep.subr.bf16.mxu0 %v6803_v40  ;;  %v5240_v1 = vld [vmem:[#allocation12 + $0x1d00] sm:$0xff]  ;;  %v7079_v40 = vpack.c.bf16 %v5243_v22, %v5241_v15  ;;  %v6825_v4 = vpack.c.bf16 %v4699_v20, %v4697_v46  ;;  %v6843_v15 = vpack.c.bf16 %v4720_v35, %v4718_v14  ;;  %v5262_v46 = vld [vmem:[#allocation12 + $0x1db0] sm:$0xff]  ;;  %v4722_v20 = vld [vmem:[#allocation12 + $0x15c8] sm:$0xff] }
 0xdb4   : > { %7060 = vmatprep.subr.bf16.mxu1 %v7059_v32  ;;  %v5245_v32 = vld [vmem:[#allocation12 + $0x1d28] sm:$0xff]  ;;  %v7081_v52 = vpack.c.bf16 %v5242_v49, %v5240_v1  ;;  %v4717_v22 = vld [vmem:[#allocation12 + $0x15a0] sm:$0xff]  ;;  %v4724_v1 = vld [vmem:[#allocation12 + $0x15d8] sm:$0xff] }
 0xdb5   : > { %v5267_v49 = vld [vmem:[#allocation12 + $0x1dd8] sm:$0xff] }
 0xdb6   : > { %6806 = vmatpush1.bf16.msra.mxu0 %v6805_v36  ;;  %v4703_v36 = vld [vmem:[#allocation12 + $0x1530] sm:$0xff]  ;;  %v5283_v14 = vld [vmem:[#allocation12 + $0x1e58] sm:$0xff] }
 0xdb7   : > { %7062 = vmatpush1.bf16.msra.mxu1 %v7061_v53  ;;  %6808 = vmatprep.subr.bf16.mxu0 %v6807_v9  ;;  %v5244_v53 = vld [vmem:[#allocation12 + $0x1d20] sm:$0xff]  ;;  %v7083_v9 = vpack.c.bf16 %v5247_v7, %v5245_v32  ;;  %v6829_v0 = vpack.c.bf16 %v4703_v36, %v4701_v28  ;;  %v6847_v32 = vpack.c.bf16 %v4724_v1, %v4722_v20  ;;  %v5266_v28 = vld [vmem:[#allocation12 + $0x1dd0] sm:$0xff]  ;;  %v4726_v36 = vld [vmem:[#allocation12 + $0x15e8] sm:$0xff] }
 0xdb8   : > { %7064 = vmatprep.subr.bf16.mxu1 %v7063_v38  ;;  %v5249_v38 = vld [vmem:[#allocation12 + $0x1d48] sm:$0xff]  ;;  %v7085_v12 = vpack.c.bf16 %v5246_v27, %v5244_v53  ;;  %v4721_v7 = vld [vmem:[#allocation12 + $0x15c0] sm:$0xff]  ;;  %v4728_v53 = vld [vmem:[#allocation12 + $0x15f8] sm:$0xff] }
 0xdb9   : > { %v5271_v27 = vld [vmem:[#allocation12 + $0x1df8] sm:$0xff]  ;;  %v5285_v20 = vld [vmem:[#allocation12 + $0x1e68] sm:$0xff] }
 0xdba   : > { %6810 = vmatpush1.bf16.msra.mxu0 %v6809_v37  ;;  %v4707_v37 = vld [vmem:[#allocation12 + $0x1550] sm:$0xff]  ;;  %v5287_v1 = vld [vmem:[#allocation12 + $0x1e78] sm:$0xff] }
 0xdbb   : > { %7066 = vmatpush1.bf16.msra.mxu1 %v7065_v25  ;;  %6812 = vmatprep.subr.bf16.mxu0 %v6811_v54  ;;  %v5248_v25 = vld [vmem:[#allocation12 + $0x1d40] sm:$0xff]  ;;  %v7087_v54 = vpack.c.bf16 %v5251_v19, %v5249_v38  ;;  %v6833_v47 = vpack.c.bf16 %v4707_v37, %v4705_v18  ;;  %v6851_v38 = vpack.c.bf16 %v4728_v53, %v4726_v36  ;;  %v5270_v18 = vld [vmem:[#allocation12 + $0x1df0] sm:$0xff]  ;;  %v4730_v37 = vld [vmem:[#allocation12 + $0x1608] sm:$0xff] }
 0xdbc   : > { %7068 = vmatprep.subr.bf16.mxu1 %v7067_v31  ;;  %v5253_v31 = vld [vmem:[#allocation12 + $0x1d68] sm:$0xff]  ;;  %v7089_v26 = vpack.c.bf16 %v5250_v58, %v5248_v25  ;;  %v4725_v19 = vld [vmem:[#allocation12 + $0x15e0] sm:$0xff]  ;;  %v4732_v25 = vld [vmem:[#allocation12 + $0x1618] sm:$0xff] }
 0xdbd   : > { %v5275_v58 = vld [vmem:[#allocation12 + $0x1e18] sm:$0xff]  ;;  %v5289_v36 = vld [vmem:[#allocation12 + $0x1e88] sm:$0xff] }
 0xdbe   : > { %6814 = vmatpush1.bf16.msra.mxu0 %v6813_v59  ;;  %v4711_v59 = vld [vmem:[#allocation12 + $0x1570] sm:$0xff]  ;;  %v5291_v53 = vld [vmem:[#allocation12 + $0x1e98] sm:$0xff] }
 0xdbf   : > { %7070 = vmatpush1.bf16.msra.mxu1 %v7069_v34  ;;  %6816 = vmatprep.subr.bf16.mxu0 %v6815_v3  ;;  %v5252_v34 = vld [vmem:[#allocation12 + $0x1d60] sm:$0xff]  ;;  %v7091_v3 = vpack.c.bf16 %v5255_v2, %v5253_v31  ;;  %v6837_v16 = vpack.c.bf16 %v4711_v59, %v4709_v62  ;;  %v6855_v31 = vpack.c.bf16 %v4732_v25, %v4730_v37  ;;  %v5274_v62 = vld [vmem:[#allocation12 + $0x1e10] sm:$0xff]  ;;  %v4734_v59 = vld [vmem:[#allocation12 + $0x1628] sm:$0xff] }
 0xdc0   : > { %7072 = vmatprep.subr.bf16.mxu1 %v7071_v63  ;;  %v5257_v63 = vld [vmem:[#allocation12 + $0x1d88] sm:$0xff]  ;;  %v7093_v61 = vpack.c.bf16 %v5254_v33, %v5252_v34  ;;  %v4729_v2 = vld [vmem:[#allocation12 + $0x1600] sm:$0xff]  ;;  %v4736_v34 = vld [vmem:[#allocation12 + $0x1638] sm:$0xff] }
 0xdc1   : > { %v5277_v33 = vld [vmem:[#allocation12 + $0x1e28] sm:$0xff]  ;;  %v5295_v25 = vld [vmem:[#allocation12 + $0x1eb8] sm:$0xff] }
 0xdc2   : > { %6818 = vmatpush1.bf16.msra.mxu0 %v6817_v55  ;;  %v4715_v55 = vld [vmem:[#allocation12 + $0x1590] sm:$0xff]  ;;  %v5293_v37 = vld [vmem:[#allocation12 + $0x1ea8] sm:$0xff] }
 0xdc3   : > { %7074 = vmatpush1.bf16.msra.mxu1 %v7073_v43  ;;  %6820 = vmatprep.subr.bf16.mxu0 %v6819_v8  ;;  %v5256_v43 = vld [vmem:[#allocation12 + $0x1d80] sm:$0xff]  ;;  %v7095_v8 = vpack.c.bf16 %v5259_v13, %v5257_v63  ;;  %v6841_v48 = vpack.c.bf16 %v4715_v55, %v4713_v44  ;;  %v4735_v13 = vld [vmem:[#allocation12 + $0x1630] sm:$0xff]  ;;  %v4738_v44 = vld [vmem:[#allocation12 + $0x1648] sm:$0xff] }
 0xdc4   : > { %7076 = vmatprep.subr.bf16.mxu1 %v7075_v42  ;;  %v5261_v42 = vld [vmem:[#allocation12 + $0x1da8] sm:$0xff]  ;;  %v7097_v60 = vpack.c.bf16 %v5258_v6, %v5256_v43  ;;  %v4733_v63 = vld [vmem:[#allocation12 + $0x1620] sm:$0xff]  ;;  %v4740_v55 = vld [vmem:[#allocation12 + $0x1658] sm:$0xff] }
 0xdc5   : > { %v7439_v43 = vld [vmem:[%s9129_s20 + $0x20] sm:$0xff]  ;;  %v5281_v6 = vld [vmem:[#allocation12 + $0x1e48] sm:$0xff]  ;;  %v6861_v35 = vpack.c.bf16 %v4735_v13, %v4733_v63  ;;  %v4755_v63 = vld [vmem:[#allocation12 + $0x16d0] sm:$0xff] }
 0xdc6   : > { %6822 = vmatpush1.bf16.msra.mxu0 %v6821_v56  ;;  %v4719_v56 = vld [vmem:[#allocation12 + $0x15b0] sm:$0xff]  ;;  %v5296_v13 = vld [vmem:[#allocation12 + $0x1ec0] sm:$0xff] }
 0xdc7   : > { %7078 = vmatpush1.bf16.msra.mxu1 %v7077_v23  ;;  %6824 = vmatprep.subr.bf16.mxu0 %v6823_v10  ;;  %v5260_v23 = vld [vmem:[#allocation12 + $0x1da0] sm:$0xff]  ;;  %v7099_v10 = vpack.c.bf16 %v5263_v57, %v5261_v42  ;;  %v6845_v50 = vpack.c.bf16 %v4719_v56, %v4717_v22  ;;  %v7440_v42 = vld [vmem:[%s9129_s20 + $0x38] sm:$0xff]  ;;  %v7119_v56 = vpack.c.bf16 %v5283_v14, %v5281_v6  ;;  %v5301_v6 = vld [vmem:[#allocation12 + $0x1ee8] sm:$0xff] }
 0xdc8   : > { %7080 = vmatprep.subr.bf16.mxu1 %v7079_v40  ;;  %v5265_v40 = vld [vmem:[#allocation12 + $0x1dc8] sm:$0xff]  ;;  %v7101_v45 = vpack.c.bf16 %v5262_v46, %v5260_v23  ;;  %v5280_v22 = vld [vmem:[#allocation12 + $0x1e40] sm:$0xff]  ;;  %v5282_v23 = vld [vmem:[#allocation12 + $0x1e50] sm:$0xff] }
 0xdc9   : > { %v4744_v46 = vld [vmem:[#allocation12 + $0x1678] sm:$0xff] }
 0xdca   : > { %6826 = vmatpush1.bf16.msra.mxu0 %v6825_v4  ;;  %v4723_v4 = vld [vmem:[#allocation12 + $0x15d0] sm:$0xff]  ;;  %v5303_v14 = vld [vmem:[#allocation12 + $0x1ef8] sm:$0xff] }
 0xdcb   : > { %7082 = vmatpush1.bf16.msra.mxu1 %v7081_v52  ;;  %6828 = vmatprep.subr.bf16.mxu0 %v6827_v51  ;;  %v5264_v52 = vld [vmem:[#allocation12 + $0x1dc0] sm:$0xff]  ;;  %v7103_v51 = vpack.c.bf16 %v5267_v49, %v5265_v40  ;;  %v6849_v5 = vpack.c.bf16 %v4723_v4, %v4721_v7  ;;  %v7121_v49 = vpack.c.bf16 %v5282_v23, %v5280_v22 }
 0xdcc   : > { %7084 = vmatprep.subr.bf16.mxu1 %v7083_v9  ;;  %v5269_v9 = vld [vmem:[#allocation12 + $0x1de8] sm:$0xff]  ;;  %v7105_v21 = vpack.c.bf16 %v5266_v28, %v5264_v52  ;;  %v5284_v7 = vld [vmem:[#allocation12 + $0x1e60] sm:$0xff]  ;;  %v7123_v4 = vpack.c.bf16 %v5287_v1, %v5285_v20  ;;  %v5286_v52 = vld [vmem:[#allocation12 + $0x1e70] sm:$0xff] }
 0xdcd   : > { %v4748_v28 = vld [vmem:[#allocation12 + $0x1698] sm:$0xff]  ;;  %v4757_v22 = vld [vmem:[#allocation12 + $0x16e0] sm:$0xff]  ;;  %v4762_v20 = vld [vmem:[#allocation12 + $0x1708] sm:$0xff] }
 0xdce   : > { %6830 = vmatpush1.bf16.msra.mxu0 %v6829_v0  ;;  %v4727_v0 = vld [vmem:[#allocation12 + $0x15f0] sm:$0xff]  ;;  %v5300_v23 = vld [vmem:[#allocation12 + $0x1ee0] sm:$0xff]  ;;  %v4764_v1 = vld [vmem:[#allocation12 + $0x1718] sm:$0xff] }
 0xdcf   : > { %7086 = vmatpush1.bf16.msra.mxu1 %v7085_v12  ;;  %6832 = vmatprep.subr.bf16.mxu0 %v6831_v29  ;;  %v5268_v12 = vld [vmem:[#allocation12 + $0x1de0] sm:$0xff]  ;;  %v7107_v29 = vpack.c.bf16 %v5271_v27, %v5269_v9  ;;  %v6853_v17 = vpack.c.bf16 %v4727_v0, %v4725_v19  ;;  %v7125_v27 = vpack.c.bf16 %v5286_v52, %v5284_v7 }
 0xdd0   : > { %7088 = vmatprep.subr.bf16.mxu1 %v7087_v54  ;;  %v5273_v54 = vld [vmem:[#allocation12 + $0x1e08] sm:$0xff]  ;;  %v7109_v24 = vpack.c.bf16 %v5270_v18, %v5268_v12  ;;  %v5288_v19 = vld [vmem:[#allocation12 + $0x1e80] sm:$0xff]  ;;  %v7127_v0 = vpack.c.bf16 %v5291_v53, %v5289_v36  ;;  %v5290_v12 = vld [vmem:[#allocation12 + $0x1e90] sm:$0xff] }
 0xdd1   : > { %v4752_v18 = vld [vmem:[#allocation12 + $0x16b8] sm:$0xff]  ;;  %v4761_v7 = vld [vmem:[#allocation12 + $0x1700] sm:$0xff]  ;;  %v4766_v36 = vld [vmem:[#allocation12 + $0x1728] sm:$0xff] }
 0xdd2   : > { %6834 = vmatpush1.bf16.msra.mxu0 %v6833_v47  ;;  %v4731_v47 = vld [vmem:[#allocation12 + $0x1610] sm:$0xff]  ;;  %v5304_v52 = vld [vmem:[#allocation12 + $0x1f00] sm:$0xff]  ;;  %v4768_v53 = vld [vmem:[#allocation12 + $0x1738] sm:$0xff] }
 0xdd3   : > { %7090 = vmatpush1.bf16.msra.mxu1 %v7089_v26  ;;  %6836 = vmatprep.subr.bf16.mxu0 %v6835_v11  ;;  %v7111_v26 = vpack.c.bf16 %v5275_v58, %v5273_v54  ;;  %v5272_v11 = vld [vmem:[#allocation12 + $0x1e00] sm:$0xff]  ;;  %v7129_v58 = vpack.c.bf16 %v5290_v12, %v5288_v19 }
 0xdd4   : > { %7092 = vmatprep.subr.bf16.mxu1 %v7091_v3  ;;  %v6857_v3 = vpack.c.bf16 %v4731_v47, %v4729_v2  ;;  %v7113_v39 = vpack.c.bf16 %v5274_v62, %v5272_v11  ;;  %v5292_v2 = vld [vmem:[#allocation12 + $0x1ea0] sm:$0xff]  ;;  %v7131_v47 = vpack.c.bf16 %v5295_v25, %v5293_v37  ;;  %v4754_v11 = vld [vmem:[#allocation12 + $0x16c8] sm:$0xff]  ;;  %v4756_v62 = vld [vmem:[#allocation12 + $0x16d8] sm:$0xff] }
 0xdd5   : > { %v4765_v19 = vld [vmem:[#allocation12 + $0x1720] sm:$0xff]  ;;  %v4770_v37 = vld [vmem:[#allocation12 + $0x1748] sm:$0xff]  ;;  %v4772_v25 = vld [vmem:[#allocation12 + $0x1758] sm:$0xff] }
 0xdd6   : > { %6838 = vmatpush1.bf16.msra.mxu0 %v6837_v16  ;;  %v5276_v16 = vld [vmem:[#allocation12 + $0x1e20] sm:$0xff] }
 0xdd7   : > { %7094 = vmatpush1.bf16.msra.mxu1 %v7093_v61  ;;  %6840 = vmatprep.subr.bf16.mxu0 %v6839_v41  ;;  %v6859_v61 = vpack.c.bf16 %v4736_v34, %v4734_v59  ;;  %v5278_v41 = vld [vmem:[#allocation12 + $0x1e30] sm:$0xff]  ;;  %v5297_v59 = vld [vmem:[#allocation12 + $0x1ec8] sm:$0xff]  ;;  %v5299_v34 = vld [vmem:[#allocation12 + $0x1ed8] sm:$0xff] }
 0xdd8   : > { %7096 = vmatprep.subr.bf16.mxu1 %v7095_v8  ;;  %v7115_v8 = vpack.c.bf16 %v5279_v30, %v5277_v33  ;;  %v7117_v57 = vpack.c.bf16 %v5278_v41, %v5276_v16  ;;  %v6879_v30 = vpack.c.bf16 %v4756_v62, %v4754_v11  ;;  %v5298_v41 = vld [vmem:[#allocation12 + $0x1ed0] sm:$0xff]  ;;  %v5308_v12 = vld [vmem:[#allocation12 + $0x1f20] sm:$0xff] }
 0xdd9   : > { %v5314_v62 = vld [vmem:[#allocation12 + $0x1f50] sm:$0xff] }
 0xdda   : > { %6842 = vmatpush1.bf16.msra.mxu0 %v6841_v48  ;;  %v6863_v48 = vpack.c.bf16 %v4740_v55, %v4738_v44  ;;  %v4758_v44 = vld [vmem:[#allocation12 + $0x16e8] sm:$0xff]  ;;  %v4760_v55 = vld [vmem:[#allocation12 + $0x16f8] sm:$0xff] }
 0xddb   : > { %7098 = vmatpush1.bf16.msra.mxu1 %v7097_v60  ;;  %6844 = vmatprep.subr.bf16.mxu0 %v6843_v15  ;;  %v4737_v60 = vld [vmem:[#allocation12 + $0x1640] sm:$0xff]  ;;  %v4739_v15 = vld [vmem:[#allocation12 + $0x1650] sm:$0xff] }
 0xddc   : > { %7100 = vmatprep.subr.bf16.mxu1 %v7099_v10  ;;  %v4742_v10 = vld [vmem:[#allocation12 + $0x1668] sm:$0xff]  ;;  %v6865_v40 = vpack.c.bf16 %v4739_v15, %v4737_v60  ;;  %v7137_v60 = vpack.c.bf16 %v5298_v41, %v5296_v13  ;;  %v6883_v15 = vpack.c.bf16 %v4760_v55, %v4758_v44  ;;  %v4773_v13 = vld [vmem:[#allocation12 + $0x1760] sm:$0xff]  ;;  %v5318_v55 = vld [vmem:[#allocation12 + $0x1f70] sm:$0xff] }
 0xddd   : > { %v5316_v41 = vld [vmem:[#allocation12 + $0x1f60] sm:$0xff] }
 0xdde   : > { %6846 = vmatpush1.bf16.msra.mxu0 %v6845_v50  ;;  %v6867_v50 = vpack.c.bf16 %v4744_v46, %v4742_v10  ;;  %v7139_v10 = vpack.c.bf16 %v5303_v14, %v5301_v6  ;;  %v5302_v46 = vld [vmem:[#allocation12 + $0x1ef0] sm:$0xff]  ;;  %v4778_v6 = vld [vmem:[#allocation12 + $0x1788] sm:$0xff]  ;;  %v4780_v14 = vld [vmem:[#allocation12 + $0x1798] sm:$0xff] }
 0xddf   : > { %7102 = vmatpush1.bf16.msra.mxu1 %v7101_v45  ;;  %6848 = vmatprep.subr.bf16.mxu0 %v6847_v32  ;;  %v4741_v45 = vld [vmem:[#allocation12 + $0x1660] sm:$0xff]  ;;  %v4743_v32 = vld [vmem:[#allocation12 + $0x1670] sm:$0xff] }
 0xde0   : > { %7104 = vmatprep.subr.bf16.mxu1 %v7103_v51  ;;  %v4746_v51 = vld [vmem:[#allocation12 + $0x1688] sm:$0xff]  ;;  %v6869_v9 = vpack.c.bf16 %v4743_v32, %v4741_v45  ;;  %v7141_v45 = vpack.c.bf16 %v5302_v46, %v5300_v23  ;;  %v6887_v32 = vpack.c.bf16 %v4764_v1, %v4762_v20  ;;  %v4777_v23 = vld [vmem:[#allocation12 + $0x1780] sm:$0xff]  ;;  %v5322_v1 = vld [vmem:[#allocation12 + $0x1f90] sm:$0xff] }
 0xde1   : > { %v5320_v46 = vld [vmem:[#allocation12 + $0x1f80] sm:$0xff] }
 0xde2   : > { %6850 = vmatpush1.bf16.msra.mxu0 %v6849_v5  ;;  %v6871_v5 = vpack.c.bf16 %v4748_v28, %v4746_v51  ;;  %v5306_v28 = vld [vmem:[#allocation12 + $0x1f10] sm:$0xff] }
 0xde3   : > { %7106 = vmatpush1.bf16.msra.mxu1 %v7105_v21  ;;  %6852 = vmatprep.subr.bf16.mxu0 %v6851_v38  ;;  %v4745_v21 = vld [vmem:[#allocation12 + $0x1680] sm:$0xff]  ;;  %v4747_v38 = vld [vmem:[#allocation12 + $0x1690] sm:$0xff] }
 0xde4   : > { %7108 = vmatprep.subr.bf16.mxu1 %v7107_v29  ;;  %v4750_v29 = vld [vmem:[#allocation12 + $0x16a8] sm:$0xff]  ;;  %v6873_v54 = vpack.c.bf16 %v4747_v38, %v4745_v21  ;;  %v7145_v21 = vpack.c.bf16 %v5306_v28, %v5304_v52  ;;  %v6891_v38 = vpack.c.bf16 %v4768_v53, %v4766_v36  ;;  %v4781_v52 = vld [vmem:[#allocation12 + $0x17a0] sm:$0xff]  ;;  %v5326_v53 = vld [vmem:[#allocation12 + $0x1fb0] sm:$0xff] }
 0xde5   : > { %v5324_v28 = vld [vmem:[#allocation12 + $0x1fa0] sm:$0xff] }
 0xde6   : > { %6854 = vmatpush1.bf16.msra.mxu0 %v6853_v17  ;;  %v6875_v17 = vpack.c.bf16 %v4752_v18, %v4750_v29  ;;  %v5310_v18 = vld [vmem:[#allocation12 + $0x1f30] sm:$0xff] }
 0xde7   : > { %7110 = vmatpush1.bf16.msra.mxu1 %v7109_v24  ;;  %6856 = vmatprep.subr.bf16.mxu0 %v6855_v31  ;;  %v4749_v24 = vld [vmem:[#allocation12 + $0x16a0] sm:$0xff]  ;;  %v4751_v31 = vld [vmem:[#allocation12 + $0x16b0] sm:$0xff] }
 0xde8   : > { %7112 = vmatprep.subr.bf16.mxu1 %v7111_v26  ;;  %v5294_v26 = vld [vmem:[#allocation12 + $0x1eb0] sm:$0xff] }
 0xde9   : > { %5000 = vmatmul.mubr.f32.vlgmr.msra.gmra.mrb[22].mxu0 %v7439_v43  ;;  %v7133_v33 = vpack.c.bf16 %v5294_v26, %v5292_v2  ;;  %v4769_v2 = vld [vmem:[#allocation12 + $0x1740] sm:$0xff] }
 0xdea   : > { %5543 = vmatmul.mubr.f32.vlgmr.msra.gmra.mrb[22].mxu1 %v7439_v43  ;;  %6858 = vmatpush1.bf16.msra.mxu0 %v6857_v3  ;;  %v6877_v3 = vpack.c.bf16 %v4751_v31, %v4749_v24  ;;  %v7149_v24 = vpack.c.bf16 %v5310_v18, %v5308_v12  ;;  %v6895_v31 = vpack.c.bf16 %v4772_v25, %v4770_v37  ;;  %v5312_v26 = vld [vmem:[#allocation12 + $0x1f40] sm:$0xff]  ;;  %v5330_v25 = vld [vmem:[#allocation12 + $0x1fd0] sm:$0xff] }
 0xdeb   : > { %5070 = vmatprep.mubr.f32.mxu0 %v7440_v42  ;;  %7114 = vmatpush1.bf16.msra.mxu1 %v7113_v39  ;;  %v4753_v39 = vld [vmem:[#allocation12 + $0x16c0] sm:$0xff] }
 0xdec   : > { %5613 = vmatprep.mubr.f32.mxu1 %v7440_v42  ;;  %6860 = vmatprep.subr.bf16.mxu0 %v6859_v61  ;;  %v7135_v61 = vpack.c.bf16 %v5299_v34, %v5297_v59  ;;  %v4774_v59 = vld [vmem:[#allocation12 + $0x1768] sm:$0xff]  ;;  %v4776_v34 = vld [vmem:[#allocation12 + $0x1778] sm:$0xff]  ;;  %v4785_v12 = vld [vmem:[#allocation12 + $0x17c0] sm:$0xff] }
 0xded   : > { %7116 = vmatprep.subr.bf16.mxu1 %v7115_v8  ;;  %v5328_v18 = vld [vmem:[#allocation12 + $0x1fc0] sm:$0xff] }
 0xdee   : > { %6862 = vmatpush1.bf16.msra.mxu0 %v6861_v35 }
 0xdef   : > { %7118 = vmatpush1.bf16.msra.mxu1 %v7117_v57  ;;  %6864 = vmatprep.subr.bf16.mxu0 %v6863_v48  ;;  %v6881_v57 = vpack.c.bf16 %v4755_v63, %v4753_v39  ;;  %v7153_v39 = vpack.c.bf16 %v5314_v62, %v5312_v26  ;;  %v6899_v63 = vpack.c.bf16 %v4776_v34, %v4774_v59  ;;  %v4789_v26 = vld [vmem:[#allocation12 + $0x17e0] sm:$0xff]  ;;  %v5334_v34 = vld [vmem:[#allocation12 + $0x1ff0] sm:$0xff] }
 0xdf0   : > { %7120 = vmatprep.subr.bf16.mxu1 %v7119_v56  ;;  %v4759_v56 = vld [vmem:[#allocation12 + $0x16f0] sm:$0xff]  ;;  %v5332_v59 = vld [vmem:[#allocation12 + $0x1fe0] sm:$0xff] }
 0xdf2   : > { %6866 = vmatpush1.bf16.msra.mxu0 %v6865_v40  ;;  %v5305_v40 = vld [vmem:[#allocation12 + $0x1f08] sm:$0xff] }
 0xdf3   : > { %7122 = vmatpush1.bf16.msra.mxu1 %v7121_v49  ;;  %6868 = vmatprep.subr.bf16.mxu0 %v6867_v50  ;;  %v5307_v49 = vld [vmem:[#allocation12 + $0x1f18] sm:$0xff]  ;;  %v6885_v50 = vpack.c.bf16 %v4759_v56, %v4757_v22  ;;  %v7157_v22 = vpack.c.bf16 %v5318_v55, %v5316_v41  ;;  %v6903_v56 = vpack.c.bf16 %v4780_v14, %v4778_v6 }
 0xdf4   : > { %7124 = vmatprep.subr.bf16.mxu1 %v7123_v4  ;;  %v4763_v4 = vld [vmem:[#allocation12 + $0x1710] sm:$0xff]  ;;  %v7143_v51 = vpack.c.bf16 %v5307_v49, %v5305_v40  ;;  %v4782_v40 = vld [vmem:[#allocation12 + $0x17a8] sm:$0xff]  ;;  %v4784_v49 = vld [vmem:[#allocation12 + $0x17b8] sm:$0xff] }
 0xdf6   : > { %6870 = vmatpush1.bf16.msra.mxu0 %v6869_v9  ;;  %v5309_v9 = vld [vmem:[#allocation12 + $0x1f28] sm:$0xff] }
 0xdf7   : > { %7126 = vmatpush1.bf16.msra.mxu1 %v7125_v27  ;;  %6872 = vmatprep.subr.bf16.mxu0 %v6871_v5  ;;  %v5311_v27 = vld [vmem:[#allocation12 + $0x1f38] sm:$0xff]  ;;  %v6889_v5 = vpack.c.bf16 %v4763_v4, %v4761_v7  ;;  %v7161_v7 = vpack.c.bf16 %v5322_v1, %v5320_v46  ;;  %v6907_v4 = vpack.c.bf16 %v4784_v49, %v4782_v40 }
 0xdf8   : > { %7128 = vmatprep.subr.bf16.mxu1 %v7127_v0  ;;  %v4767_v0 = vld [vmem:[#allocation12 + $0x1730] sm:$0xff]  ;;  %v7147_v29 = vpack.c.bf16 %v5311_v27, %v5309_v9  ;;  %v4786_v9 = vld [vmem:[#allocation12 + $0x17c8] sm:$0xff]  ;;  %v4788_v27 = vld [vmem:[#allocation12 + $0x17d8] sm:$0xff] }
 0xdfa   : > { %6874 = vmatpush1.bf16.msra.mxu0 %v6873_v54  ;;  %v5313_v54 = vld [vmem:[#allocation12 + $0x1f48] sm:$0xff] }
 0xdfb   : > { %7130 = vmatpush1.bf16.msra.mxu1 %v7129_v58  ;;  %6876 = vmatprep.subr.bf16.mxu0 %v6875_v17  ;;  %v5315_v58 = vld [vmem:[#allocation12 + $0x1f58] sm:$0xff]  ;;  %v6893_v17 = vpack.c.bf16 %v4767_v0, %v4765_v19  ;;  %v7165_v19 = vpack.c.bf16 %v5326_v53, %v5324_v28  ;;  %v6911_v0 = vpack.c.bf16 %v4788_v27, %v4786_v9 }
 0xdfc   : > { %v9170_v16 = vpop.f32.mrb[20].mxu0  ;;  %7132 = vmatprep.subr.bf16.mxu1 %v7131_v47  ;;  %v4771_v47 = vld [vmem:[#allocation12 + $0x1750] sm:$0xff]  ;;  %v7151_v11 = vpack.c.bf16 %v5315_v58, %v5313_v54  ;;  %v4790_v54 = vld [vmem:[#allocation12 + $0x17e8] sm:$0xff]  ;;  %v4792_v58 = vld [vmem:[#allocation12 + $0x17f8] sm:$0xff] }
 0xdfd   : > { %v9172_v43 = vpop.f32.mrb[20].mxu1  ;;  %v9174_v8 = vpop.f32.mrb[21].mxu0 }
 0xdfe   : > { %v4534_v35 = vmax.f32 %v9170_v16, %v9172_v43  ;;  %v9178_v42 = vpop.f32.mrb[21].mxu1  ;;  %6878 = vmatpush1.bf16.msra.mxu0 %v6877_v3  ;;  %v5317_v3 = vld [vmem:[#allocation12 + $0x1f68] sm:$0xff] }
 0xdff   : > { %v4535_v48 = vmax.f32 %v9174_v8, %v9178_v42  ;;  %7134 = vmatpush1.bf16.msra.mxu1 %v7133_v33  ;;  %6880 = vmatprep.subr.bf16.mxu0 %v6879_v30  ;;  %v5319_v33 = vld [vmem:[#allocation12 + $0x1f78] sm:$0xff]  ;;  %v6897_v30 = vpack.c.bf16 %v4771_v47, %v4769_v2  ;;  %v7169_v2 = vpack.c.bf16 %v5330_v25, %v5328_v18 }
 0xe00   : > { %7136 = vmatprep.subr.bf16.mxu1 %v7135_v61  ;;  %v4775_v61 = vld [vmem:[#allocation12 + $0x1770] sm:$0xff]  ;;  %v7155_v44 = vpack.c.bf16 %v5319_v33, %v5317_v3  ;;  %v6915_v47 = vpack.c.bf16 %v4792_v58, %v4790_v54  ;;  %v7173_v33 = vpack.c.bf16 %v5334_v34, %v5332_v59 }
 0xe02   : > { %6882 = vmatpush1.bf16.msra.mxu0 %v6881_v57  ;;  %v5321_v57 = vld [vmem:[#allocation12 + $0x1f88] sm:$0xff] }
 0xe03   : > { %7138 = vmatpush1.bf16.msra.mxu1 %v7137_v60  ;;  %6884 = vmatprep.subr.bf16.mxu0 %v6883_v15  ;;  %v5323_v60 = vld [vmem:[#allocation12 + $0x1f98] sm:$0xff]  ;;  %v6901_v15 = vpack.c.bf16 %v4775_v61, %v4773_v13 }
 0xe04   : > { %7140 = vmatprep.subr.bf16.mxu1 %v7139_v10  ;;  %v4779_v10 = vld [vmem:[#allocation12 + $0x1790] sm:$0xff]  ;;  %v7159_v20 = vpack.c.bf16 %v5323_v60, %v5321_v57 }
 0xe06   : > { %6886 = vmatpush1.bf16.msra.mxu0 %v6885_v50  ;;  %v5325_v50 = vld [vmem:[#allocation12 + $0x1fa8] sm:$0xff] }
 0xe07   : > { %7142 = vmatpush1.bf16.msra.mxu1 %v7141_v45  ;;  %6888 = vmatprep.subr.bf16.mxu0 %v6887_v32  ;;  %v5327_v45 = vld [vmem:[#allocation12 + $0x1fb8] sm:$0xff]  ;;  %v6905_v32 = vpack.c.bf16 %v4779_v10, %v4777_v23 }
 0xe08   : > { %7144 = vmatprep.subr.bf16.mxu1 %v7143_v51  ;;  %v4783_v51 = vld [vmem:[#allocation12 + $0x17b0] sm:$0xff]  ;;  %v7163_v36 = vpack.c.bf16 %v5327_v45, %v5325_v50 }
 0xe0a   : > { %6890 = vmatpush1.bf16.msra.mxu0 %v6889_v5  ;;  %v5329_v5 = vld [vmem:[#allocation12 + $0x1fc8] sm:$0xff] }
 0xe0b   : > { %7146 = vmatpush1.bf16.msra.mxu1 %v7145_v21  ;;  %6892 = vmatprep.subr.bf16.mxu0 %v6891_v38  ;;  %v5331_v21 = vld [vmem:[#allocation12 + $0x1fd8] sm:$0xff]  ;;  %v6909_v38 = vpack.c.bf16 %v4783_v51, %v4781_v52 }
 0xe0c   : > { %7148 = vmatprep.subr.bf16.mxu1 %v7147_v29  ;;  %v4787_v29 = vld [vmem:[#allocation12 + $0x17d0] sm:$0xff]  ;;  %v7167_v37 = vpack.c.bf16 %v5331_v21, %v5329_v5 }
 0xe0e   : > { %6894 = vmatpush1.bf16.msra.mxu0 %v6893_v17  ;;  %v5333_v17 = vld [vmem:[#allocation12 + $0x1fe8] sm:$0xff] }
 0xe0f   : > { %7150 = vmatpush1.bf16.msra.mxu1 %v7149_v24  ;;  %6896 = vmatprep.subr.bf16.mxu0 %v6895_v31  ;;  %v5335_v24 = vld [vmem:[#allocation12 + $0x1ff8] sm:$0xff]  ;;  %v6913_v31 = vpack.c.bf16 %v4787_v29, %v4785_v12 }
 0xe10   : > { %7152 = vmatprep.subr.bf16.mxu1 %v7151_v11  ;;  %v4791_v11 = vld [vmem:[#allocation12 + $0x17f0] sm:$0xff]  ;;  %v7171_v62 = vpack.c.bf16 %v5335_v24, %v5333_v17 }
 0xe11   : > { %v6917_v3 = vpack.c.bf16 %v4791_v11, %v4789_v26 }
 0xe12   : > { %6898 = vmatpush1.bf16.msra.mxu0 %v6897_v30  ;;  %v7441_v30 = vld [vmem:[%s9129_s20 + $0x30] sm:$0xff] }
 0xe13   : > { %7154 = vmatpush1.bf16.msra.mxu1 %v7153_v39  ;;  %6900 = vmatprep.subr.bf16.mxu0 %v6899_v63 }
 0xe14   : > { %7156 = vmatprep.subr.bf16.mxu1 %v7155_v44 }
 0xe16   : > { %6902 = vmatpush1.bf16.msra.mxu0 %v6901_v15 }
 0xe17   : > { %7158 = vmatpush1.bf16.msra.mxu1 %v7157_v22  ;;  %6904 = vmatprep.subr.bf16.mxu0 %v6903_v56 }
 0xe18   : > { %7160 = vmatprep.subr.bf16.mxu1 %v7159_v20 }
 0xe1a   : > { %6906 = vmatpush1.bf16.msra.mxu0 %v6905_v32 }
 0xe1b   : > { %7162 = vmatpush1.bf16.msra.mxu1 %v7161_v7  ;;  %6908 = vmatprep.subr.bf16.mxu0 %v6907_v4 }
 0xe1c   : > { %7164 = vmatprep.subr.bf16.mxu1 %v7163_v36 }
 0xe1e   : > { %6910 = vmatpush1.bf16.msra.mxu0 %v6909_v38 }
 0xe1f   : > { %7166 = vmatpush1.bf16.msra.mxu1 %v7165_v19  ;;  %6912 = vmatprep.subr.bf16.mxu0 %v6911_v0 }
 0xe20   : > { %7168 = vmatprep.subr.bf16.mxu1 %v7167_v37 }
 0xe22   : > { %6914 = vmatpush1.bf16.msra.mxu0 %v6913_v31 }
 0xe23   : > { %7170 = vmatpush1.bf16.msra.mxu1 %v7169_v2  ;;  %6916 = vmatprep.subr.bf16.mxu0 %v6915_v47 }
 0xe24   : > { %7172 = vmatprep.subr.bf16.mxu1 %v7171_v62 }
 0xe26   : > { %6918 = vmatpush1.bf16.msra.mxu0 %v6917_v3 }
 0xe27   : > { %7174 = vmatpush1.bf16.msra.mxu1 %v7173_v33 }
 0xe29   : > { %5071 = vmatmul.mubr.f32.vlgmr.msra.gmra.mrb[22].mxu0 %v7441_v30 }
 0xe2a   : > { %5614 = vmatmul.mubr.f32.vlgmr.msra.gmra.mrb[22].mxu1 %v7441_v30 }
 0xe2b   : > { %7597 = shalt.err (!%p7594_p0)
}
 0xe2c   : > { %s7598_s13 = scalar_lea.hbm %s9187_s25, 1024  ;;  %s7602_s16 = scalar_lea.hbm %s9270_s7, 2048 }
 0xe2d   : > { %p7599_p2 = scmp.ne.s32.totalorder %s9187_s25, %s7598_s13  ;;  %p7603_p4 = scmp.lt.u32.totalorder %s9187_s25, %s9270_s7 }
 0xe2e   : > { %p7604_p11 = scmp.lt.u32.totalorder %s7602_s16, %s7598_s13  ;;  %p7606_p6 = scmp.lt.u32.totalorder %s7598_s13, %s9187_s25 }
 0xe2f   : > { %p7600_p8 = pnand %p7599_p2, %p9402_p5 }
 0xe30   : > { %p7605_p1 = por %p7604_p11, %p7603_p4 }
 0xe31   : > { %p7601_p10 = pneg %p7600_p8 }
 0xe32   : > { %p7607_p7 = por %p7606_p6, %p7605_p1 }
 0xe34   : > { %p7608_p9 = pnand %p7607_p7, %p7601_p10 }
 0xe36   : > { %7611 = shalt.err (!%p7608_p9)
}
 0xe37   : > { %7217 = dma.vmem_to_hbm [thread:$0]  (%p9402_p5), %s5645_s23, 1024, %s9187_s25, %s5625_s24  }
 0xe38   : > { %s5815_s26 = sshll.u32 %s7977_s1, 4  ;;  %s6122_s9 = sshll.u32 %s7779_s11, 8 }
 0xe39   : > { %s384_s12 = scalar_lea.vmem [#allocation14], %s5815_s26  ;;  %s9219_s24 = scalar_lea.hbm %s9271_s8, %s6122_s9 }
 0xe3a   : > { %s5658_s19 = sshll.u32 %s384_s12, 4  ;;  %s5630_s11 = scalar_lea.sflag [#allocation15], %s7977_s1  ;;  %s9221_s19 = int_to_ptr.vmem [resolvable:$true] %s5658_s19 }
 0xe3b   : > { %s7612_s13 = scalar_lea.vmem %s9221_s19, 256  ;;  %s7712_s15 = smov [#allocation14]  }
 0xe3c   : > { %p7613_p12 = scmp.ne.s32.totalorder %s9221_s19, %s7612_s13  ;;  %s7616_s20 = sshll.u32 %s7712_s15, 4  ;;  %s7617_s20 = int_to_ptr.vmem [resolvable:$false] %s7616_s20 }
 0xe3d   : > { %s7618_s16 = scalar_lea.vmem %s7617_s20, 512  ;;  %p7619_p0 = scmp.lt.s32.totalorder %s9221_s19, %s7617_s20 }
 0xe3e   : > { %p7614_p3 = pnand %p7613_p12, %p9402_p5  ;;  %p7620_p2 = scmp.lt.s32.totalorder %s7618_s16, %s7612_s13 }
 0xe40   : > { %p7615_p13 = pneg %p7614_p3  ;;  %p7621_p8 = por %p7620_p2, %p7619_p0 }
 0xe42   : > { %p7622_p10 = pnand %p7621_p8, %p7615_p13 }
 0xefc   : > { %v5072_v39 = vpop.f32.mrb[22].mxu0 }
 0xefd   : > { %v5077_v63 = vmax.f32 %v4534_v35, %v5072_v39  ;;  %v5615_v13 = vpop.f32.mrb[22].mxu1  ;;  %v5074_v61 = vpop.f32.mrb[23].mxu0 }
 0xefe   : > { %v5078_v41 = vmax.f32 %v4535_v48, %v5074_v61  ;;  %v5617_v44 = vpop.f32.mrb[23].mxu1 }
 0xeff   : > { %v5620_v55 = vmax.f32 %v5077_v63, %v5615_v13 }
 0xf00   : > { %v5621_v6 = vmax.f32 %v5078_v41, %v5617_v44 }
 0xf01   : > { %5622 = vst [vmem:[%s384_s12] sm:$0xff] %v5620_v55 }
 0xf02   : > { %5623 = vst [vmem:[%s384_s12 + $0x8] sm:$0xff] %v5621_v6 }
 0xf03   : > { %7625 = shalt.err (!%p7622_p10)
}
 0xf04   : > { %s7626_s1 = scalar_lea.hbm %s9219_s24, 256  ;;  %s7630_s26 = scalar_lea.hbm %s9271_s8, 512 }
 0xf05   : > { %p7627_p4 = scmp.ne.s32.totalorder %s9219_s24, %s7626_s1  ;;  %p7631_p6 = scmp.lt.u32.totalorder %s9219_s24, %s9271_s8 }
 0xf06   : > { %p7632_p7 = scmp.lt.u32.totalorder %s7630_s26, %s7626_s1  ;;  %p7634_p12 = scmp.lt.u32.totalorder %s7626_s1, %s9219_s24 }
 0xf07   : > { %p7628_p11 = pnand %p7627_p4, %p9402_p5 }
 0xf08   : > { %p7633_p9 = por %p7632_p7, %p7631_p6 }
 0xf09   : > { %p7629_p1 = pneg %p7628_p11 }
 0xf0a   : > { %p7635_p3 = por %p7634_p12, %p7633_p9 }
 0xf0c   : > { %p7636_p13 = pnand %p7635_p3, %p7629_p1 }
 0xf0e   : > { %7639 = shalt.err (!%p7636_p13)
}
 0xf0f   : > { %7218 = dma.vmem_to_hbm [thread:$0]  (%p9402_p5), %s9221_s19, 256, %s9219_s24, %s5630_s11  }
 0xf10 PF: > { %s5670_s25 = sand.u32 1, %s7678_s27   ;;  %p9403_p0 = scmp.ne.s32.totalorder %s9325_s22, 0 }
 0xf11   : > { %p9404_p2 = scmp.ge.s32.totalorder %s7690_s30, 2  ;;  %s5671_s23 = scalar_lea.sflag [#allocation6], %s5670_s25 }
 0xf13   : > { %p7239_p8 = pnand %p9404_p2, %p9403_p0 }
 0xf15   : > { %7669 = dma.done.wait (!%p7239_p8), %s5671_s23, 1024  }
 0xf16   : > { %7671 = vsyncadd (!%p7239_p8), %s5671_s23, 4294966272  ;;  %s5680_s13 = scalar_lea.sflag [#allocation15], %s5670_s25 }
 0xf17   : > { %7673 = dma.done.wait (!%p7239_p8), %s5680_s13, 256  }
 0xf18   : > { %7675 = vsyncadd (!%p7239_p8), %s5680_s13, 4294967040  ;;  %p27_p5 = scmp.ge.s32.totalorder %s7901_s10, 4   ;;  %s9405_s27 = smov %s7682_s28 }
 0xf19   : > { %s9406_s28 = smov %s7686_s29  ;;  %s9407_s29 = smov %s7912_s18 }
 0xf1a   : > { %s9408_s30 = smov %s7901_s10  ;;  %29 = sbr.rel (!%p27_p5) target bundleno = 11 (0xb), region = 133 }
 0xf21   :  { %5685 = vsyncpa [#allocation5], 1 }
 0xf22   :  { %5687 = vsyncpa [#allocation5 + $0x1], 1 }
 0xf23   :  { %5688 = vsyncpa [#allocation8], 1 }
 0xf24   :  { %5689 = vsyncpa [#allocation11], 1 }
 0xf25   :  { %5690 = vsyncpa [#allocation6], 1 }
 0xf26   :  { %5692 = vsyncpa [#allocation6 + $0x1], 1 }
 0xf27   :  { %5693 = vsyncpa [#allocation15], 1 }
 0xf28   :  { %5695 = vsyncpa [#allocation15 + $0x1], 1 }

</bundles_post_ra>
